<compile_context>
chip_gen: v7x
topology: tpu7x:2x2x1
jax: 0.10.0
libtpu: 0.0.40
codegen_flags: <defaults>
</compile_context>

<pallas_src>
import math
import functools

import jax
import jax.numpy as jnp
from jax import lax
from jax.experimental import pallas as pl
from jax.experimental.pallas import tpu as pltpu

_LANE = 128
_LOG2E = math.log2(math.e)
_MASK_BIAS = -1.0e9 * _LOG2E      # masked_fill(-1e9) expressed in exp2 domain


def _round_up(x, m):
    return (x + m - 1) // m * m


# --------------------------------------------------------------------------
# Kernel 1: fused Q/K/V projections, head-major lane-dense output.
# --------------------------------------------------------------------------
def _qkv_proj_kernel(q_ref, k_ref, v_ref,
                     wq_ref, bq_ref, wk_ref, bk_ref, wv_ref, bv_ref,
                     qp_ref, kp_ref, vp_ref, *, h, q_scale):
    """x: (1, bs, D_pad); w: (h, D_pad, d_k_pad); b: (h, 1, d_k_pad);
    out: (1, h, bs, d_k_pad)."""
    def project(x, w_ref, b_ref, out_ref, scale):
        for i in range(h):                       # h is small & static
            y = jnp.dot(x, w_ref[i], preferred_element_type=jnp.float32)
            y = y + b_ref[i]
            if scale != 1.0:                     # scale folded into Q only
                y = y * scale
            out_ref[0, i] = y.astype(out_ref.dtype)   # lane-dense store

    project(q_ref[0], wq_ref, bq_ref, qp_ref, q_scale)
    project(k_ref[0], wk_ref, bk_ref, kp_ref, 1.0)
    project(v_ref[0], wv_ref, bv_ref, vp_ref, 1.0)


# --------------------------------------------------------------------------
# Kernel 2: flash attention (exp2 online softmax over KV tiles) + out proj.
# --------------------------------------------------------------------------
def _flash_mha_kernel(blk_status_ref,                      # scalar prefetch (SMEM)
                      qp_ref, kp_ref, vp_ref, mask_ref, wo_ref, bo_ref,
                      o_ref, m_scr, l_scr, acc_scr,
                      *, h, approx_recip):
    b, qi, ki = pl.program_id(0), pl.program_id(1), pl.program_id(2)

    @pl.when(ki == 0)
    def _init():
        m_scr[...] = jnp.full(m_scr.shape, -jnp.inf, m_scr.dtype)
        l_scr[...] = jnp.zeros(l_scr.shape, l_scr.dtype)
        acc_scr[...] = jnp.zeros(acc_scr.shape, acc_scr.dtype)

    # Block status: 0 = fully masked (skip), 1 = partial, 2 = fully unmasked.
    idx = (b * pl.num_programs(1) + qi) * pl.num_programs(2) + ki
    status = blk_status_ref[idx]

    @pl.when(status > 0)                 # skip fully-masked (q, kv) tiles
    def _compute():
        q = qp_ref[0]                    # (h, tq, dkp), pre-scaled by log2e/sqrt(d_k)
        k = kp_ref[0]                    # (h, tk, dkp)
        v = vp_ref[0]                    # (h, tk, dkp)

        # Batched over heads; contraction over lane-dense d_k_pad (no transpose).
        s = jnp.einsum("hqd,hkd->hqk", q, k,
                       preferred_element_type=jnp.float32)      # (h, tq, tk)

        # Additive mask bias, shared across heads (all-zero for status==2 tiles).
        bias = jnp.where(mask_ref[0] == 0, _MASK_BIAS, 0.0).astype(jnp.float32)
        s = s + bias

        m_prev = m_scr[...]                                      # (h, tq, 1)
        m_new = jnp.maximum(m_prev, jnp.max(s, axis=-1, keepdims=True))
        alpha = jnp.exp2(m_prev - m_new)                         # (h, tq, 1)
        p = jnp.exp2(s - m_new)                                  # (h, tq, tk) f32

        l_scr[...] = alpha * l_scr[...] + jnp.sum(p, axis=-1, keepdims=True)
        pv = jnp.einsum("hqk,hkd->hqd", p.astype(v.dtype), v,
                        preferred_element_type=jnp.float32)      # (h, tq, dkp)
        acc_scr[...] = alpha * acc_scr[...] + pv                 # lane-dense RMW
        m_scr[...] = m_new

    @pl.when(ki == pl.num_programs(2) - 1)
    def _finalize():
        # out = sum_h (acc_h / l_h) @ W_o[h] + b_o  (head-major, lane-dense).
        out = jnp.zeros(o_ref.shape[1:], jnp.float32)            # (tq, D_pad)
        for i in range(h):                                       # once per q tile
            l_i = jnp.maximum(l_scr[i], 1e-30)                   # guard empty rows
            inv_l = pl.reciprocal(l_i, approx=approx_recip)      # (tq, 1), EUP
            normed = (acc_scr[i] * inv_l).astype(wo_ref.dtype)   # (tq, dkp)
            out = out + jnp.dot(normed, wo_ref[i],
                                preferred_element_type=jnp.float32)
        o_ref[0] = (out + bo_ref[0]).astype(o_ref.dtype)


# --------------------------------------------------------------------------
# Wrapper
# --------------------------------------------------------------------------
def multi_head_attention(q, k, v, mask, params, *, h,
                         block_q=256, block_kv=256,
                         compute_dtype=jnp.bfloat16):
    """q, k, v: (B, S, D); mask: (B, S, S), 0 => masked (or None).

    params: wq_t/wk_t/wv_t/wo_t (D, D) pre-transposed (in, out) weights and
    bq/bk/bv/bo (1, D) biases, mirroring nn.Linear.
    On v5e prefer block_q=128 (native 128x128 MXU); 256 fills v6e/v7x.
    """
    B, S, D = q.shape
    assert D % h == 0, "d_model must be divisible by h"
    d_k = D // h
    d_k_pad = _round_up(d_k, _LANE)          # lane-dense per-head width
    D_pad = _round_up(D, _LANE)              # lane-dense output width

    block_q = min(block_q, S)
    block_kv = min(block_kv, S)
    assert S % block_q == 0 and S % block_kv == 0, \
        "S must be divisible by the tile sizes (pad S at the wrapper level)"
    n_q, n_kv = S // block_q, S // block_kv

    cd = jnp.dtype(compute_dtype)
    approx_recip = cd != jnp.dtype(jnp.float32)
    q_scale = _LOG2E / math.sqrt(d_k)        # exp2 softmax; scale folded into Q

    if mask is None:
        mask = jnp.ones((B, S, S), jnp.int32)

    # ---- pad activations on the feature axis so every tile is lane-dense ---
    def pad_feat(x):
        return x if D_pad == D else jnp.pad(x, ((0, 0), (0, 0), (0, D_pad - D)))

    qc, kc, vc = (pad_feat(x).astype(cd) for x in (q, k, v))

    # ---- head-major, lane-padded weights / biases ---------------------------
    def w_heads(w_t):                        # (D, D) -> (h, D_pad, d_k_pad)
        w = w_t.reshape(D, h, d_k).transpose(1, 0, 2)
        w = jnp.pad(w, ((0, 0), (0, D_pad - D), (0, d_k_pad - d_k)))
        return w.astype(cd)

    def b_heads(b):                          # (1, D) -> (h, 1, d_k_pad) f32
        bb = b.reshape(h, 1, d_k)
        return jnp.pad(bb, ((0, 0), (0, 0), (0, d_k_pad - d_k))).astype(jnp.float32)

    wq, wk, wv = (w_heads(params[n]) for n in ("wq_t", "wk_t", "wv_t"))
    bq, bk, bv = (b_heads(params[n]) for n in ("bq", "bk", "bv"))

    wo = params["wo_t"].reshape(h, d_k, D)   # head-major rows: (h, d_k, D)
    wo = jnp.pad(wo, ((0, 0), (0, d_k_pad - d_k), (0, D_pad - D))).astype(cd)
    bo = jnp.pad(params["bo"], ((0, 0), (0, D_pad - D))).astype(jnp.float32)

    # ---- block-status table for mask skipping (scalar-prefetched to SMEM) --
    mask_bool = (mask != 0)
    blk = mask_bool.reshape(B, n_q, block_q, n_kv, block_kv)
    any_live = blk.any(axis=(2, 4))
    all_live = blk.all(axis=(2, 4))
    blk_status = (any_live.astype(jnp.int32)
                  + all_live.astype(jnp.int32)).reshape(-1)      # flat 1D SMEM
    mask8 = mask_bool.astype(jnp.int8)       # 4x less HBM traffic than int32

    cparams = lambda sems: pltpu.CompilerParams(
        dimension_semantics=sems,
        vmem_limit_bytes=48 * 1024 * 1024)   # headroom below v7x's 64 MiB VMEM

    # ---- kernel 1: fused Q/K/V projections (head-major output) -------------
    const3 = lambda b_, s_: (0, 0, 0)
    x_blk = pl.BlockSpec((1, block_q, D_pad), lambda b_, s_: (b_, s_, 0))
    w_blk = pl.BlockSpec((h, D_pad, d_k_pad), const3,
                         pipeline_mode=pl.Buffered(1))   # constant: single buffer
    b_blk = pl.BlockSpec((h, 1, d_k_pad), const3,
                         pipeline_mode=pl.Buffered(1))
    hm_blk = pl.BlockSpec((1, h, block_q, d_k_pad), lambda b_, s_: (b_, 0, s_, 0))

    qp, kp, vp = pl.pallas_call(
        functools.partial(_qkv_proj_kernel, h=h, q_scale=q_scale),
        out_shape=[jax.ShapeDtypeStruct((B, h, S, d_k_pad), cd)] * 3,
        grid_spec=pltpu.PrefetchScalarGridSpec(
            num_scalar_prefetch=0,
            grid=(B, S // block_q),
            in_specs=[x_blk, x_blk, x_blk,
                      w_blk, b_blk, w_blk, b_blk, w_blk, b_blk],
            out_specs=[hm_blk, hm_blk, hm_blk]),
        compiler_params=cparams(("parallel", "parallel")),
    )(qc, kc, vc, wq, bq, wk, bk, wv, bv)

    # ---- kernel 2: flash attention + output projection ----------------------
    q_blk = pl.BlockSpec((1, h, block_q, d_k_pad),
                         lambda b_, qi, ki, st: (b_, 0, qi, 0))
    kv_blk = pl.BlockSpec((1, h, block_kv, d_k_pad),
                          lambda b_, qi, ki, st: (b_, 0, ki, 0))
    m_blk = pl.BlockSpec((1, block_q, block_kv),
                         lambda b_, qi, ki, st: (b_, qi, ki))
    wo_blk = pl.BlockSpec((h, d_k_pad, D_pad),
                          lambda b_, qi, ki, st: (0, 0, 0),
                          pipeline_mode=pl.Buffered(1))
    bo_blk = pl.BlockSpec((1, D_pad), lambda b_, qi, ki, st: (0, 0),
                          pipeline_mode=pl.Buffered(1))
    o_blk = pl.BlockSpec((1, block_q, D_pad),
                         lambda b_, qi, ki, st: (b_, qi, 0))

    out = pl.pallas_call(
        functools.partial(_flash_mha_kernel, h=h, approx_recip=approx_recip),
        out_shape=jax.ShapeDtypeStruct((B, S, D_pad), q.dtype),
        grid_spec=pltpu.PrefetchScalarGridSpec(
            num_scalar_prefetch=1,                       # blk_status -> SMEM
            grid=(B, n_q, n_kv),
            in_specs=[q_blk, kv_blk, kv_blk, m_blk, wo_blk, bo_blk],
            out_specs=o_blk,
            scratch_shapes=[pltpu.VMEM((h, block_q, 1), jnp.float32),         # m
                            pltpu.VMEM((h, block_q, 1), jnp.float32),         # l
                            pltpu.VMEM((h, block_q, d_k_pad), jnp.float32)]), # acc
        compiler_params=cparams(("parallel", "parallel", "arbitrary")),
    )(blk_status, qp, kp, vp, mask8, wo, bo)

    return out if D_pad == D else out[:, :, :D]


# --------------------------------------------------------------------------
# Pure-JAX reference mirroring the PyTorch forward (f32, highest precision).
# --------------------------------------------------------------------------
def _reference(q, k, v, mask, params, *, h):
    B, S, D = q.shape
    d_k = D // h
    P = lax.Precision.HIGHEST

    def lin(x, w_t, b):
        return jnp.dot(x, w_t, precision=P) + b[0]

    query = lin(q, params["wq_t"], params["bq"])
    key = lin(k, params["wk_t"], params["bk"])
    value = lin(v, params["wv_t"], params["bv"])

    def split(x):  # (B,S,D) -> (B,h,S,d_k)
        return x.reshape(B, S, h, d_k).transpose(0, 2, 1, 3)

    qh, kh, vh = split(query), split(key), split(value)
    scores = jnp.einsum("bhqd,bhkd->bhqk", qh, kh, precision=P) / math.sqrt(d_k)
    scores = jnp.where(mask[:, None, :, :] == 0, -1e9, scores)
    probs = jax.nn.softmax(scores, axis=-1)
    out = jnp.einsum("bhqk,bhkd->bhqd", probs, vh, precision=P)
    out = out.transpose(0, 2, 1, 3).reshape(B, S, D)
    return lin(out, params["wo_t"], params["bo"])


def _init_params(key, d_model):
    """Deterministic Linear params; weights stored pre-transposed (in, out)."""
    ks = jax.random.split(key, 8)
    bound = 1.0 / math.sqrt(d_model)

    def w(kk):
        return jax.random.uniform(kk, (d_model, d_model), jnp.float32, -bound, bound)

    def b(kk):
        return jax.random.uniform(kk, (1, d_model), jnp.float32, -bound, bound)

    return {
        "wq_t": w(ks[0]), "bq": b(ks[1]),
        "wk_t": w(ks[2]), "bk": b(ks[3]),
        "wv_t": w(ks[4]), "bv": b(ks[5]),
        "wo_t": w(ks[6]), "bo": b(ks[7]),
    }


if __name__ == "__main__":
    # Small but tiling-exercising config: 2x2 (Q, KV) tiles of 256 per batch;
    # the causal mask exercises skipped / partial / fully-unmasked blocks.
    B, S, d_model, h = 2, 512, 256, 4

    root = jax.random.PRNGKey(0)
    kq, kk, kv_, kp = jax.random.split(root, 4)

    q = jax.random.normal(kq, (B, S, d_model), jnp.float32)
    k = jax.random.normal(kk, (B, S, d_model), jnp.float32)
    v = jax.random.normal(kv_, (B, S, d_model), jnp.float32)
    # causal mask, 0 => masked (matches `masked_fill_(mask == 0, -1e9)`)
    mask = jnp.repeat(jnp.tril(jnp.ones((S, S), jnp.int32))[None], B, axis=0)
    params = _init_params(kp, d_model)

    ref = _reference(q, k, v, mask, params, h=h)

    # Parity path (f32 MXU operands).
    out_f32 = multi_head_attention(q, k, v, mask, params, h=h,
                                   compute_dtype=jnp.float32)
    out_f32 = jax.block_until_ready(out_f32)
    assert out_f32.shape == (B, S, d_model)
    assert bool(jnp.isfinite(out_f32).all())
    assert jnp.allclose(out_f32, ref, atol=5e-3, rtol=5e-3), \
        "f32 kernel mismatch vs JAX reference"

    # Performance path (bf16 MXU operands, f32 softmax / accumulation).
    out_bf16 = multi_head_attention(q, k, v, mask, params, h=h,
                                    compute_dtype=jnp.bfloat16)
    out_bf16 = jax.block_until_ready(out_bf16)
    assert out_bf16.shape == (B, S, d_model)
    assert bool(jnp.isfinite(out_bf16).all())
    assert jnp.allclose(out_bf16, ref, atol=1e-1, rtol=1e-1), \
        "bf16 kernel mismatch vs JAX reference"

    print("KERNEL_OK")
</pallas_src>

<mosaic_0001>
module attributes {stable_mosaic.version = 11 : i64} {
  func.func @_qkv_proj_kernel(%arg0: i32, %arg1: i32, %arg2: memref<1x256x256xf32, #tpu.memory_space<vmem>>, %arg3: memref<1x256x256xf32, #tpu.memory_space<vmem>>, %arg4: memref<1x256x256xf32, #tpu.memory_space<vmem>>, %arg5: memref<4x256x128xf32, #tpu.memory_space<vmem>>, %arg6: memref<4x1x128xf32, #tpu.memory_space<vmem>>, %arg7: memref<4x256x128xf32, #tpu.memory_space<vmem>>, %arg8: memref<4x1x128xf32, #tpu.memory_space<vmem>>, %arg9: memref<4x256x128xf32, #tpu.memory_space<vmem>>, %arg10: memref<4x1x128xf32, #tpu.memory_space<vmem>>, %arg11: memref<1x4x256x128xf32, #tpu.memory_space<vmem>>, %arg12: memref<1x4x256x128xf32, #tpu.memory_space<vmem>>, %arg13: memref<1x4x256x128xf32, #tpu.memory_space<vmem>>) attributes {dimension_semantics = [#tpu.dimension_semantics<parallel>, #tpu.dimension_semantics<parallel>], iteration_bounds = array<i64: 2, 2>, scalar_prefetch = 0 : i64, scratch_operands = 0 : i64, tpu.core_type = #tpu.core_type<tc>, window_params = [{transform_indices = @transform_0, window_bounds = array<i64: 1, 256, 256>}, {transform_indices = @transform_1, window_bounds = array<i64: 1, 256, 256>}, {transform_indices = @transform_2, window_bounds = array<i64: 1, 256, 256>}, {pipeline_mode = #tpu.pipeline_mode<synchronous>, transform_indices = @transform_3, window_bounds = array<i64: 4, 256, 128>}, {pipeline_mode = #tpu.pipeline_mode<synchronous>, transform_indices = @transform_4, window_bounds = array<i64: 4, 1, 128>}, {pipeline_mode = #tpu.pipeline_mode<synchronous>, transform_indices = @transform_5, window_bounds = array<i64: 4, 256, 128>}, {pipeline_mode = #tpu.pipeline_mode<synchronous>, transform_indices = @transform_6, window_bounds = array<i64: 4, 1, 128>}, {pipeline_mode = #tpu.pipeline_mode<synchronous>, transform_indices = @transform_7, window_bounds = array<i64: 4, 256, 128>}, {pipeline_mode = #tpu.pipeline_mode<synchronous>, transform_indices = @transform_8, window_bounds = array<i64: 4, 1, 128>}, {transform_indices = @transform_9, window_bounds = array<i64: 1, 4, 256, 128>}, {transform_indices = @transform_10, window_bounds = array<i64: 1, 4, 256, 128>}, {transform_indices = @transform_11, window_bounds = array<i64: 1, 4, 256, 128>}]} {
    %c0 = arith.constant 0 : index
    %c0_0 = arith.constant 0 : index
    %c0_1 = arith.constant 0 : index
    %0 = vector.load %arg2[%c0, %c0_0, %c0_1] : memref<1x256x256xf32, #tpu.memory_space<vmem>>, vector<1x256x256xf32>
    %1 = vector.shape_cast %0 : vector<1x256x256xf32> to vector<256x256xf32>
    %c0_2 = arith.constant 0 : index
    %c0_3 = arith.constant 0 : index
    %c0_4 = arith.constant 0 : index
    %2 = vector.load %arg5[%c0_2, %c0_3, %c0_4] : memref<4x256x128xf32, #tpu.memory_space<vmem>>, vector<1x256x128xf32>
    %3 = vector.shape_cast %2 : vector<1x256x128xf32> to vector<256x128xf32>
    %cst = arith.constant dense<0.000000e+00> : vector<256x128xf32>
    %4 = tpu.matmul %1, %3, %cst {dimension_numbers = #tpu.dot_dimension_numbers<[1], [0], [0], [1], [0, 0, 1, 1], [], []>} : vector<256x256xf32>, vector<256x128xf32>, vector<256x128xf32> -> vector<256x128xf32>
    %c0_5 = arith.constant 0 : index
    %c0_6 = arith.constant 0 : index
    %c0_7 = arith.constant 0 : index
    %5 = vector.load %arg6[%c0_5, %c0_6, %c0_7] : memref<4x1x128xf32, #tpu.memory_space<vmem>>, vector<1x1x128xf32>
    %6 = vector.shape_cast %5 : vector<1x1x128xf32> to vector<1x128xf32>
    %7 = vector.broadcast %6 : vector<1x128xf32> to vector<256x128xf32>
    %8 = arith.addf %4, %7 : vector<256x128xf32>
    %cst_8 = arith.constant 0.180336878 : f32
    %9 = vector.broadcast %cst_8 : f32 to vector<256x128xf32>
    %10 = arith.mulf %8, %9 : vector<256x128xf32>
    %c0_9 = arith.constant 0 : index
    %c0_10 = arith.constant 0 : index
    %c0_11 = arith.constant 0 : index
    %c0_12 = arith.constant 0 : index
    %11 = vector.load %arg11[%c0_9, %c0_10, %c0_11, %c0_12] : memref<1x4x256x128xf32, #tpu.memory_space<vmem>>, vector<1x1x256x128xf32>
    %12 = vector.shape_cast %11 : vector<1x1x256x128xf32> to vector<256x128xf32>
    %13 = vector.shape_cast %10 : vector<256x128xf32> to vector<1x1x256x128xf32>
    tpu.vector_store %arg11[%c0_9, %c0_10, %c0_11, %c0_12], %13 {strides = array<i32>} : memref<1x4x256x128xf32, #tpu.memory_space<vmem>>, vector<1x1x256x128xf32>,
    %c1 = arith.constant 1 : index
    %c0_13 = arith.constant 0 : index
    %c0_14 = arith.constant 0 : index
    %14 = vector.load %arg5[%c1, %c0_13, %c0_14] : memref<4x256x128xf32, #tpu.memory_space<vmem>>, vector<1x256x128xf32>
    %15 = vector.shape_cast %14 : vector<1x256x128xf32> to vector<256x128xf32>
    %cst_15 = arith.constant dense<0.000000e+00> : vector<256x128xf32>
    %16 = tpu.matmul %1, %15, %cst_15 {dimension_numbers = #tpu.dot_dimension_numbers<[1], [0], [0], [1], [0, 0, 1, 1], [], []>} : vector<256x256xf32>, vector<256x128xf32>, vector<256x128xf32> -> vector<256x128xf32>
    %c1_16 = arith.constant 1 : index
    %c0_17 = arith.constant 0 : index
    %c0_18 = arith.constant 0 : index
    %17 = vector.load %arg6[%c1_16, %c0_17, %c0_18] : memref<4x1x128xf32, #tpu.memory_space<vmem>>, vector<1x1x128xf32>
    %18 = vector.shape_cast %17 : vector<1x1x128xf32> to vector<1x128xf32>
    %19 = vector.broadcast %18 : vector<1x128xf32> to vector<256x128xf32>
    %20 = arith.addf %16, %19 : vector<256x128xf32>
    %cst_19 = arith.constant 0.180336878 : f32
    %21 = vector.broadcast %cst_19 : f32 to vector<256x128xf32>
    %22 = arith.mulf %20, %21 : vector<256x128xf32>
    %c0_20 = arith.constant 0 : index
    %c1_21 = arith.constant 1 : index
    %c0_22 = arith.constant 0 : index
    %c0_23 = arith.constant 0 : index
    %23 = vector.load %arg11[%c0_20, %c1_21, %c0_22, %c0_23] : memref<1x4x256x128xf32, #tpu.memory_space<vmem>>, vector<1x1x256x128xf32>
    %24 = vector.shape_cast %23 : vector<1x1x256x128xf32> to vector<256x128xf32>
    %25 = vector.shape_cast %22 : vector<256x128xf32> to vector<1x1x256x128xf32>
    tpu.vector_store %arg11[%c0_20, %c1_21, %c0_22, %c0_23], %25 {strides = array<i32>} : memref<1x4x256x128xf32, #tpu.memory_space<vmem>>, vector<1x1x256x128xf32>,
    %c2 = arith.constant 2 : index
    %c0_24 = arith.constant 0 : index
    %c0_25 = arith.constant 0 : index
    %26 = vector.load %arg5[%c2, %c0_24, %c0_25] : memref<4x256x128xf32, #tpu.memory_space<vmem>>, vector<1x256x128xf32>
    %27 = vector.shape_cast %26 : vector<1x256x128xf32> to vector<256x128xf32>
    %cst_26 = arith.constant dense<0.000000e+00> : vector<256x128xf32>
    %28 = tpu.matmul %1, %27, %cst_26 {dimension_numbers = #tpu.dot_dimension_numbers<[1], [0], [0], [1], [0, 0, 1, 1], [], []>} : vector<256x256xf32>, vector<256x128xf32>, vector<256x128xf32> -> vector<256x128xf32>
    %c2_27 = arith.constant 2 : index
    %c0_28 = arith.constant 0 : index
    %c0_29 = arith.constant 0 : index
    %29 = vector.load %arg6[%c2_27, %c0_28, %c0_29] : memref<4x1x128xf32, #tpu.memory_space<vmem>>, vector<1x1x128xf32>
    %30 = vector.shape_cast %29 : vector<1x1x128xf32> to vector<1x128xf32>
    %31 = vector.broadcast %30 : vector<1x128xf32> to vector<256x128xf32>
    %32 = arith.addf %28, %31 : vector<256x128xf32>
    %cst_30 = arith.constant 0.180336878 : f32
    %33 = vector.broadcast %cst_30 : f32 to vector<256x128xf32>
    %34 = arith.mulf %32, %33 : vector<256x128xf32>
    %c0_31 = arith.constant 0 : index
    %c2_32 = arith.constant 2 : index
    %c0_33 = arith.constant 0 : index
    %c0_34 = arith.constant 0 : index
    %35 = vector.load %arg11[%c0_31, %c2_32, %c0_33, %c0_34] : memref<1x4x256x128xf32, #tpu.memory_space<vmem>>, vector<1x1x256x128xf32>
    %36 = vector.shape_cast %35 : vector<1x1x256x128xf32> to vector<256x128xf32>
    %37 = vector.shape_cast %34 : vector<256x128xf32> to vector<1x1x256x128xf32>
    tpu.vector_store %arg11[%c0_31, %c2_32, %c0_33, %c0_34], %37 {strides = array<i32>} : memref<1x4x256x128xf32, #tpu.memory_space<vmem>>, vector<1x1x256x128xf32>,
    %c3 = arith.constant 3 : index
    %c0_35 = arith.constant 0 : index
    %c0_36 = arith.constant 0 : index
    %38 = vector.load %arg5[%c3, %c0_35, %c0_36] : memref<4x256x128xf32, #tpu.memory_space<vmem>>, vector<1x256x128xf32>
    %39 = vector.shape_cast %38 : vector<1x256x128xf32> to vector<256x128xf32>
    %cst_37 = arith.constant dense<0.000000e+00> : vector<256x128xf32>
    %40 = tpu.matmul %1, %39, %cst_37 {dimension_numbers = #tpu.dot_dimension_numbers<[1], [0], [0], [1], [0, 0, 1, 1], [], []>} : vector<256x256xf32>, vector<256x128xf32>, vector<256x128xf32> -> vector<256x128xf32>
    %c3_38 = arith.constant 3 : index
    %c0_39 = arith.constant 0 : index
    %c0_40 = arith.constant 0 : index
    %41 = vector.load %arg6[%c3_38, %c0_39, %c0_40] : memref<4x1x128xf32, #tpu.memory_space<vmem>>, vector<1x1x128xf32>
    %42 = vector.shape_cast %41 : vector<1x1x128xf32> to vector<1x128xf32>
    %43 = vector.broadcast %42 : vector<1x128xf32> to vector<256x128xf32>
    %44 = arith.addf %40, %43 : vector<256x128xf32>
    %cst_41 = arith.constant 0.180336878 : f32
    %45 = vector.broadcast %cst_41 : f32 to vector<256x128xf32>
    %46 = arith.mulf %44, %45 : vector<256x128xf32>
    %c0_42 = arith.constant 0 : index
    %c3_43 = arith.constant 3 : index
    %c0_44 = arith.constant 0 : index
    %c0_45 = arith.constant 0 : index
    %47 = vector.load %arg11[%c0_42, %c3_43, %c0_44, %c0_45] : memref<1x4x256x128xf32, #tpu.memory_space<vmem>>, vector<1x1x256x128xf32>
    %48 = vector.shape_cast %47 : vector<1x1x256x128xf32> to vector<256x128xf32>
    %49 = vector.shape_cast %46 : vector<256x128xf32> to vector<1x1x256x128xf32>
    tpu.vector_store %arg11[%c0_42, %c3_43, %c0_44, %c0_45], %49 {strides = array<i32>} : memref<1x4x256x128xf32, #tpu.memory_space<vmem>>, vector<1x1x256x128xf32>,
    %c0_46 = arith.constant 0 : index
    %c0_47 = arith.constant 0 : index
    %c0_48 = arith.constant 0 : index
    %50 = vector.load %arg3[%c0_46, %c0_47, %c0_48] : memref<1x256x256xf32, #tpu.memory_space<vmem>>, vector<1x256x256xf32>
    %51 = vector.shape_cast %50 : vector<1x256x256xf32> to vector<256x256xf32>
    %c0_49 = arith.constant 0 : index
    %c0_50 = arith.constant 0 : index
    %c0_51 = arith.constant 0 : index
    %52 = vector.load %arg7[%c0_49, %c0_50, %c0_51] : memref<4x256x128xf32, #tpu.memory_space<vmem>>, vector<1x256x128xf32>
    %53 = vector.shape_cast %52 : vector<1x256x128xf32> to vector<256x128xf32>
    %cst_52 = arith.constant dense<0.000000e+00> : vector<256x128xf32>
    %54 = tpu.matmul %51, %53, %cst_52 {dimension_numbers = #tpu.dot_dimension_numbers<[1], [0], [0], [1], [0, 0, 1, 1], [], []>} : vector<256x256xf32>, vector<256x128xf32>, vector<256x128xf32> -> vector<256x128xf32>
    %c0_53 = arith.constant 0 : index
    %c0_54 = arith.constant 0 : index
    %c0_55 = arith.constant 0 : index
    %55 = vector.load %arg8[%c0_53, %c0_54, %c0_55] : memref<4x1x128xf32, #tpu.memory_space<vmem>>, vector<1x1x128xf32>
    %56 = vector.shape_cast %55 : vector<1x1x128xf32> to vector<1x128xf32>
    %57 = vector.broadcast %56 : vector<1x128xf32> to vector<256x128xf32>
    %58 = arith.addf %54, %57 : vector<256x128xf32>
    %c0_56 = arith.constant 0 : index
    %c0_57 = arith.constant 0 : index
    %c0_58 = arith.constant 0 : index
    %c0_59 = arith.constant 0 : index
    %59 = vector.load %arg12[%c0_56, %c0_57, %c0_58, %c0_59] : memref<1x4x256x128xf32, #tpu.memory_space<vmem>>, vector<1x1x256x128xf32>
    %60 = vector.shape_cast %59 : vector<1x1x256x128xf32> to vector<256x128xf32>
    %61 = vector.shape_cast %58 : vector<256x128xf32> to vector<1x1x256x128xf32>
    tpu.vector_store %arg12[%c0_56, %c0_57, %c0_58, %c0_59], %61 {strides = array<i32>} : memref<1x4x256x128xf32, #tpu.memory_space<vmem>>, vector<1x1x256x128xf32>,
    %c1_60 = arith.constant 1 : index
    %c0_61 = arith.constant 0 : index
    %c0_62 = arith.constant 0 : index
    %62 = vector.load %arg7[%c1_60, %c0_61, %c0_62] : memref<4x256x128xf32, #tpu.memory_space<vmem>>, vector<1x256x128xf32>
    %63 = vector.shape_cast %62 : vector<1x256x128xf32> to vector<256x128xf32>
    %cst_63 = arith.constant dense<0.000000e+00> : vector<256x128xf32>
    %64 = tpu.matmul %51, %63, %cst_63 {dimension_numbers = #tpu.dot_dimension_numbers<[1], [0], [0], [1], [0, 0, 1, 1], [], []>} : vector<256x256xf32>, vector<256x128xf32>, vector<256x128xf32> -> vector<256x128xf32>
    %c1_64 = arith.constant 1 : index
    %c0_65 = arith.constant 0 : index
    %c0_66 = arith.constant 0 : index
    %65 = vector.load %arg8[%c1_64, %c0_65, %c0_66] : memref<4x1x128xf32, #tpu.memory_space<vmem>>, vector<1x1x128xf32>
    %66 = vector.shape_cast %65 : vector<1x1x128xf32> to vector<1x128xf32>
    %67 = vector.broadcast %66 : vector<1x128xf32> to vector<256x128xf32>
    %68 = arith.addf %64, %67 : vector<256x128xf32>
    %c0_67 = arith.constant 0 : index
    %c1_68 = arith.constant 1 : index
    %c0_69 = arith.constant 0 : index
    %c0_70 = arith.constant 0 : index
    %69 = vector.load %arg12[%c0_67, %c1_68, %c0_69, %c0_70] : memref<1x4x256x128xf32, #tpu.memory_space<vmem>>, vector<1x1x256x128xf32>
    %70 = vector.shape_cast %69 : vector<1x1x256x128xf32> to vector<256x128xf32>
    %71 = vector.shape_cast %68 : vector<256x128xf32> to vector<1x1x256x128xf32>
    tpu.vector_store %arg12[%c0_67, %c1_68, %c0_69, %c0_70], %71 {strides = array<i32>} : memref<1x4x256x128xf32, #tpu.memory_space<vmem>>, vector<1x1x256x128xf32>,
    %c2_71 = arith.constant 2 : index
    %c0_72 = arith.constant 0 : index
    %c0_73 = arith.constant 0 : index
    %72 = vector.load %arg7[%c2_71, %c0_72, %c0_73] : memref<4x256x128xf32, #tpu.memory_space<vmem>>, vector<1x256x128xf32>
    %73 = vector.shape_cast %72 : vector<1x256x128xf32> to vector<256x128xf32>
    %cst_74 = arith.constant dense<0.000000e+00> : vector<256x128xf32>
    %74 = tpu.matmul %51, %73, %cst_74 {dimension_numbers = #tpu.dot_dimension_numbers<[1], [0], [0], [1], [0, 0, 1, 1], [], []>} : vector<256x256xf32>, vector<256x128xf32>, vector<256x128xf32> -> vector<256x128xf32>
    %c2_75 = arith.constant 2 : index
    %c0_76 = arith.constant 0 : index
    %c0_77 = arith.constant 0 : index
    %75 = vector.load %arg8[%c2_75, %c0_76, %c0_77] : memref<4x1x128xf32, #tpu.memory_space<vmem>>, vector<1x1x128xf32>
    %76 = vector.shape_cast %75 : vector<1x1x128xf32> to vector<1x128xf32>
    %77 = vector.broadcast %76 : vector<1x128xf32> to vector<256x128xf32>
    %78 = arith.addf %74, %77 : vector<256x128xf32>
    %c0_78 = arith.constant 0 : index
    %c2_79 = arith.constant 2 : index
    %c0_80 = arith.constant 0 : index
    %c0_81 = arith.constant 0 : index
    %79 = vector.load %arg12[%c0_78, %c2_79, %c0_80, %c0_81] : memref<1x4x256x128xf32, #tpu.memory_space<vmem>>, vector<1x1x256x128xf32>
    %80 = vector.shape_cast %79 : vector<1x1x256x128xf32> to vector<256x128xf32>
    %81 = vector.shape_cast %78 : vector<256x128xf32> to vector<1x1x256x128xf32>
    tpu.vector_store %arg12[%c0_78, %c2_79, %c0_80, %c0_81], %81 {strides = array<i32>} : memref<1x4x256x128xf32, #tpu.memory_space<vmem>>, vector<1x1x256x128xf32>,
    %c3_82 = arith.constant 3 : index
    %c0_83 = arith.constant 0 : index
    %c0_84 = arith.constant 0 : index
    %82 = vector.load %arg7[%c3_82, %c0_83, %c0_84] : memref<4x256x128xf32, #tpu.memory_space<vmem>>, vector<1x256x128xf32>
    %83 = vector.shape_cast %82 : vector<1x256x128xf32> to vector<256x128xf32>
    %cst_85 = arith.constant dense<0.000000e+00> : vector<256x128xf32>
    %84 = tpu.matmul %51, %83, %cst_85 {dimension_numbers = #tpu.dot_dimension_numbers<[1], [0], [0], [1], [0, 0, 1, 1], [], []>} : vector<256x256xf32>, vector<256x128xf32>, vector<256x128xf32> -> vector<256x128xf32>
    %c3_86 = arith.constant 3 : index
    %c0_87 = arith.constant 0 : index
    %c0_88 = arith.constant 0 : index
    %85 = vector.load %arg8[%c3_86, %c0_87, %c0_88] : memref<4x1x128xf32, #tpu.memory_space<vmem>>, vector<1x1x128xf32>
    %86 = vector.shape_cast %85 : vector<1x1x128xf32> to vector<1x128xf32>
    %87 = vector.broadcast %86 : vector<1x128xf32> to vector<256x128xf32>
    %88 = arith.addf %84, %87 : vector<256x128xf32>
    %c0_89 = arith.constant 0 : index
    %c3_90 = arith.constant 3 : index
    %c0_91 = arith.constant 0 : index
    %c0_92 = arith.constant 0 : index
    %89 = vector.load %arg12[%c0_89, %c3_90, %c0_91, %c0_92] : memref<1x4x256x128xf32, #tpu.memory_space<vmem>>, vector<1x1x256x128xf32>
    %90 = vector.shape_cast %89 : vector<1x1x256x128xf32> to vector<256x128xf32>
    %91 = vector.shape_cast %88 : vector<256x128xf32> to vector<1x1x256x128xf32>
    tpu.vector_store %arg12[%c0_89, %c3_90, %c0_91, %c0_92], %91 {strides = array<i32>} : memref<1x4x256x128xf32, #tpu.memory_space<vmem>>, vector<1x1x256x128xf32>,
    %c0_93 = arith.constant 0 : index
    %c0_94 = arith.constant 0 : index
    %c0_95 = arith.constant 0 : index
    %92 = vector.load %arg4[%c0_93, %c0_94, %c0_95] : memref<1x256x256xf32, #tpu.memory_space<vmem>>, vector<1x256x256xf32>
    %93 = vector.shape_cast %92 : vector<1x256x256xf32> to vector<256x256xf32>
    %c0_96 = arith.constant 0 : index
    %c0_97 = arith.constant 0 : index
    %c0_98 = arith.constant 0 : index
    %94 = vector.load %arg9[%c0_96, %c0_97, %c0_98] : memref<4x256x128xf32, #tpu.memory_space<vmem>>, vector<1x256x128xf32>
    %95 = vector.shape_cast %94 : vector<1x256x128xf32> to vector<256x128xf32>
    %cst_99 = arith.constant dense<0.000000e+00> : vector<256x128xf32>
    %96 = tpu.matmul %93, %95, %cst_99 {dimension_numbers = #tpu.dot_dimension_numbers<[1], [0], [0], [1], [0, 0, 1, 1], [], []>} : vector<256x256xf32>, vector<256x128xf32>, vector<256x128xf32> -> vector<256x128xf32>
    %c0_100 = arith.constant 0 : index
    %c0_101 = arith.constant 0 : index
    %c0_102 = arith.constant 0 : index
    %97 = vector.load %arg10[%c0_100, %c0_101, %c0_102] : memref<4x1x128xf32, #tpu.memory_space<vmem>>, vector<1x1x128xf32>
    %98 = vector.shape_cast %97 : vector<1x1x128xf32> to vector<1x128xf32>
    %99 = vector.broadcast %98 : vector<1x128xf32> to vector<256x128xf32>
    %100 = arith.addf %96, %99 : vector<256x128xf32>
    %c0_103 = arith.constant 0 : index
    %c0_104 = arith.constant 0 : index
    %c0_105 = arith.constant 0 : index
    %c0_106 = arith.constant 0 : index
    %101 = vector.load %arg13[%c0_103, %c0_104, %c0_105, %c0_106] : memref<1x4x256x128xf32, #tpu.memory_space<vmem>>, vector<1x1x256x128xf32>
    %102 = vector.shape_cast %101 : vector<1x1x256x128xf32> to vector<256x128xf32>
    %103 = vector.shape_cast %100 : vector<256x128xf32> to vector<1x1x256x128xf32>
    tpu.vector_store %arg13[%c0_103, %c0_104, %c0_105, %c0_106], %103 {strides = array<i32>} : memref<1x4x256x128xf32, #tpu.memory_space<vmem>>, vector<1x1x256x128xf32>,
    %c1_107 = arith.constant 1 : index
    %c0_108 = arith.constant 0 : index
    %c0_109 = arith.constant 0 : index
    %104 = vector.load %arg9[%c1_107, %c0_108, %c0_109] : memref<4x256x128xf32, #tpu.memory_space<vmem>>, vector<1x256x128xf32>
    %105 = vector.shape_cast %104 : vector<1x256x128xf32> to vector<256x128xf32>
    %cst_110 = arith.constant dense<0.000000e+00> : vector<256x128xf32>
    %106 = tpu.matmul %93, %105, %cst_110 {dimension_numbers = #tpu.dot_dimension_numbers<[1], [0], [0], [1], [0, 0, 1, 1], [], []>} : vector<256x256xf32>, vector<256x128xf32>, vector<256x128xf32> -> vector<256x128xf32>
    %c1_111 = arith.constant 1 : index
    %c0_112 = arith.constant 0 : index
    %c0_113 = arith.constant 0 : index
    %107 = vector.load %arg10[%c1_111, %c0_112, %c0_113] : memref<4x1x128xf32, #tpu.memory_space<vmem>>, vector<1x1x128xf32>
    %108 = vector.shape_cast %107 : vector<1x1x128xf32> to vector<1x128xf32>
    %109 = vector.broadcast %108 : vector<1x128xf32> to vector<256x128xf32>
    %110 = arith.addf %106, %109 : vector<256x128xf32>
    %c0_114 = arith.constant 0 : index
    %c1_115 = arith.constant 1 : index
    %c0_116 = arith.constant 0 : index
    %c0_117 = arith.constant 0 : index
    %111 = vector.load %arg13[%c0_114, %c1_115, %c0_116, %c0_117] : memref<1x4x256x128xf32, #tpu.memory_space<vmem>>, vector<1x1x256x128xf32>
    %112 = vector.shape_cast %111 : vector<1x1x256x128xf32> to vector<256x128xf32>
    %113 = vector.shape_cast %110 : vector<256x128xf32> to vector<1x1x256x128xf32>
    tpu.vector_store %arg13[%c0_114, %c1_115, %c0_116, %c0_117], %113 {strides = array<i32>} : memref<1x4x256x128xf32, #tpu.memory_space<vmem>>, vector<1x1x256x128xf32>,
    %c2_118 = arith.constant 2 : index
    %c0_119 = arith.constant 0 : index
    %c0_120 = arith.constant 0 : index
    %114 = vector.load %arg9[%c2_118, %c0_119, %c0_120] : memref<4x256x128xf32, #tpu.memory_space<vmem>>, vector<1x256x128xf32>
    %115 = vector.shape_cast %114 : vector<1x256x128xf32> to vector<256x128xf32>
    %cst_121 = arith.constant dense<0.000000e+00> : vector<256x128xf32>
    %116 = tpu.matmul %93, %115, %cst_121 {dimension_numbers = #tpu.dot_dimension_numbers<[1], [0], [0], [1], [0, 0, 1, 1], [], []>} : vector<256x256xf32>, vector<256x128xf32>, vector<256x128xf32> -> vector<256x128xf32>
    %c2_122 = arith.constant 2 : index
    %c0_123 = arith.constant 0 : index
    %c0_124 = arith.constant 0 : index
    %117 = vector.load %arg10[%c2_122, %c0_123, %c0_124] : memref<4x1x128xf32, #tpu.memory_space<vmem>>, vector<1x1x128xf32>
    %118 = vector.shape_cast %117 : vector<1x1x128xf32> to vector<1x128xf32>
    %119 = vector.broadcast %118 : vector<1x128xf32> to vector<256x128xf32>
    %120 = arith.addf %116, %119 : vector<256x128xf32>
    %c0_125 = arith.constant 0 : index
    %c2_126 = arith.constant 2 : index
    %c0_127 = arith.constant 0 : index
    %c0_128 = arith.constant 0 : index
    %121 = vector.load %arg13[%c0_125, %c2_126, %c0_127, %c0_128] : memref<1x4x256x128xf32, #tpu.memory_space<vmem>>, vector<1x1x256x128xf32>
    %122 = vector.shape_cast %121 : vector<1x1x256x128xf32> to vector<256x128xf32>
    %123 = vector.shape_cast %120 : vector<256x128xf32> to vector<1x1x256x128xf32>
    tpu.vector_store %arg13[%c0_125, %c2_126, %c0_127, %c0_128], %123 {strides = array<i32>} : memref<1x4x256x128xf32, #tpu.memory_space<vmem>>, vector<1x1x256x128xf32>,
    %c3_129 = arith.constant 3 : index
    %c0_130 = arith.constant 0 : index
    %c0_131 = arith.constant 0 : index
    %124 = vector.load %arg9[%c3_129, %c0_130, %c0_131] : memref<4x256x128xf32, #tpu.memory_space<vmem>>, vector<1x256x128xf32>
    %125 = vector.shape_cast %124 : vector<1x256x128xf32> to vector<256x128xf32>
    %cst_132 = arith.constant dense<0.000000e+00> : vector<256x128xf32>
    %126 = tpu.matmul %93, %125, %cst_132 {dimension_numbers = #tpu.dot_dimension_numbers<[1], [0], [0], [1], [0, 0, 1, 1], [], []>} : vector<256x256xf32>, vector<256x128xf32>, vector<256x128xf32> -> vector<256x128xf32>
    %c3_133 = arith.constant 3 : index
    %c0_134 = arith.constant 0 : index
    %c0_135 = arith.constant 0 : index
    %127 = vector.load %arg10[%c3_133, %c0_134, %c0_135] : memref<4x1x128xf32, #tpu.memory_space<vmem>>, vector<1x1x128xf32>
    %128 = vector.shape_cast %127 : vector<1x1x128xf32> to vector<1x128xf32>
    %129 = vector.broadcast %128 : vector<1x128xf32> to vector<256x128xf32>
    %130 = arith.addf %126, %129 : vector<256x128xf32>
    %c0_136 = arith.constant 0 : index
    %c3_137 = arith.constant 3 : index
    %c0_138 = arith.constant 0 : index
    %c0_139 = arith.constant 0 : index
    %131 = vector.load %arg13[%c0_136, %c3_137, %c0_138, %c0_139] : memref<1x4x256x128xf32, #tpu.memory_space<vmem>>, vector<1x1x256x128xf32>
    %132 = vector.shape_cast %131 : vector<1x1x256x128xf32> to vector<256x128xf32>
    %133 = vector.shape_cast %130 : vector<256x128xf32> to vector<1x1x256x128xf32>
    tpu.vector_store %arg13[%c0_136, %c3_137, %c0_138, %c0_139], %133 {strides = array<i32>} : memref<1x4x256x128xf32, #tpu.memory_space<vmem>>, vector<1x1x256x128xf32>,
    return
  }
  func.func @transform_0(%arg0: i32, %arg1: i32) -> (i32, i32, i32) {
    %c0_i32 = arith.constant 0 : i32
    %c0_i32_0 = arith.constant 0 : i32
    return %arg0, %arg1, %c0_i32 : i32, i32, i32
  }
  func.func @transform_1(%arg0: i32, %arg1: i32) -> (i32, i32, i32) {
    %c0_i32 = arith.constant 0 : i32
    %c0_i32_0 = arith.constant 0 : i32
    return %arg0, %arg1, %c0_i32 : i32, i32, i32
  }
  func.func @transform_2(%arg0: i32, %arg1: i32) -> (i32, i32, i32) {
    %c0_i32 = arith.constant 0 : i32
    %c0_i32_0 = arith.constant 0 : i32
    return %arg0, %arg1, %c0_i32 : i32, i32, i32
  }
  func.func @transform_3(%arg0: i32, %arg1: i32) -> (i32, i32, i32) {
    %c0_i32 = arith.constant 0 : i32
    %c0_i32_0 = arith.constant 0 : i32
    %c0_i32_1 = arith.constant 0 : i32
    %c0_i32_2 = arith.constant 0 : i32
    return %c0_i32, %c0_i32_0, %c0_i32_1 : i32, i32, i32
  }
  func.func @transform_4(%arg0: i32, %arg1: i32) -> (i32, i32, i32) {
    %c0_i32 = arith.constant 0 : i32
    %c0_i32_0 = arith.constant 0 : i32
    %c0_i32_1 = arith.constant 0 : i32
    %c0_i32_2 = arith.constant 0 : i32
    return %c0_i32, %c0_i32_0, %c0_i32_1 : i32, i32, i32
  }
  func.func @transform_5(%arg0: i32, %arg1: i32) -> (i32, i32, i32) {
    %c0_i32 = arith.constant 0 : i32
    %c0_i32_0 = arith.constant 0 : i32
    %c0_i32_1 = arith.constant 0 : i32
    %c0_i32_2 = arith.constant 0 : i32
    return %c0_i32, %c0_i32_0, %c0_i32_1 : i32, i32, i32
  }
  func.func @transform_6(%arg0: i32, %arg1: i32) -> (i32, i32, i32) {
    %c0_i32 = arith.constant 0 : i32
    %c0_i32_0 = arith.constant 0 : i32
    %c0_i32_1 = arith.constant 0 : i32
    %c0_i32_2 = arith.constant 0 : i32
    return %c0_i32, %c0_i32_0, %c0_i32_1 : i32, i32, i32
  }
  func.func @transform_7(%arg0: i32, %arg1: i32) -> (i32, i32, i32) {
    %c0_i32 = arith.constant 0 : i32
    %c0_i32_0 = arith.constant 0 : i32
    %c0_i32_1 = arith.constant 0 : i32
    %c0_i32_2 = arith.constant 0 : i32
    return %c0_i32, %c0_i32_0, %c0_i32_1 : i32, i32, i32
  }
  func.func @transform_8(%arg0: i32, %arg1: i32) -> (i32, i32, i32) {
    %c0_i32 = arith.constant 0 : i32
    %c0_i32_0 = arith.constant 0 : i32
    %c0_i32_1 = arith.constant 0 : i32
    %c0_i32_2 = arith.constant 0 : i32
    return %c0_i32, %c0_i32_0, %c0_i32_1 : i32, i32, i32
  }
  func.func @transform_9(%arg0: i32, %arg1: i32) -> (i32, i32, i32, i32) {
    %c0_i32 = arith.constant 0 : i32
    %c0_i32_0 = arith.constant 0 : i32
    %c0_i32_1 = arith.constant 0 : i32
    return %arg0, %c0_i32, %arg1, %c0_i32_0 : i32, i32, i32, i32
  }
  func.func @transform_10(%arg0: i32, %arg1: i32) -> (i32, i32, i32, i32) {
    %c0_i32 = arith.constant 0 : i32
    %c0_i32_0 = arith.constant 0 : i32
    %c0_i32_1 = arith.constant 0 : i32
    return %arg0, %c0_i32, %arg1, %c0_i32_0 : i32, i32, i32, i32
  }
  func.func @transform_11(%arg0: i32, %arg1: i32) -> (i32, i32, i32, i32) {
    %c0_i32 = arith.constant 0 : i32
    %c0_i32_0 = arith.constant 0 : i32
    %c0_i32_1 = arith.constant 0 : i32
    return %arg0, %c0_i32, %arg1, %c0_i32_0 : i32, i32, i32, i32
  }
}

</mosaic_0001>

<bundles_post_ra>
// kernel: tpu_custom_call.1
= control target key start
LH: loop header
LB: loop body
LE: loop exit
PB: predicated region body
PF: predicated region fallthrough
CT: control target
= control target key end

     0   :  { %s9051_s0 = inlined_call_operand.hbm [shape: f32[2,512,256], index: 0, kind: input, shape index: {}]   ;;  %s9052_s1 = inlined_call_operand.hbm [shape: f32[2,512,256], index: 1, kind: input, shape index: {}]   ;;  %s9053_s2 = inlined_call_operand.hbm [shape: f32[2,512,256], index: 2, kind: input, shape index: {}]   ;;  %s9054_s3 = inlined_call_operand.hbm [shape: f32[4,256,128], index: 3, kind: input, shape index: {}]   ;;  %s9055_s4 = inlined_call_operand.hbm [shape: f32[4,1,128], index: 4, kind: input, shape index: {}]   ;;  %s9056_s5 = inlined_call_operand.hbm [shape: f32[4,256,128], index: 5, kind: input, shape index: {}]   ;;  %s9057_s6 = inlined_call_operand.hbm [shape: f32[4,1,128], index: 6, kind: input, shape index: {}]   ;;  %s9058_s7 = inlined_call_operand.hbm [shape: f32[4,256,128], index: 7, kind: input, shape index: {}]   ;;  %s9059_s8 = inlined_call_operand.hbm [shape: f32[4,1,128], index: 8, kind: input, shape index: {}]   ;;  %s9060_s9 = inlined_call_operand.hbm [shape: f32[2,4,512,128], index: 9, kind: output, shape index: {0}]   ;;  %s9061_s10 = inlined_call_operand.hbm [shape: f32[2,4,512,128], index: 10, kind: output, shape index: {1}]   ;;  %s9062_s11 = inlined_call_operand.hbm [shape: f32[2,4,512,128], index: 11, kind: output, shape index: {2}]  }
   0x1   :  { %9115 = sst [smem:[#allocation57_spill]] %s9052_s1 }
   0x2   :  { %9116 = sst [smem:[#allocation58_spill]] %s9053_s2 }
   0x3   :  { %9117 = sst [smem:[#allocation59_spill]] %s9054_s3 }
   0x4   :  { %9118 = sst [smem:[#allocation60_spill]] %s9056_s5 }
   0x5   :  { %9119 = sst [smem:[#allocation61_spill]] %s9058_s7 }
   0x6   :  { %9120 = sst [smem:[#allocation62_spill]] %s9060_s9 }
   0x7   :  { %9121 = sst [smem:[#allocation63_spill]] %s9061_s10 }
   0x8   :  { %9122 = sst [smem:[#allocation64_spill]] %s9062_s11 }
   0x9   :  { %17 = vsyncpa [#allocation3], 0 }
   0xa   :  { %19 = vsyncpa [#allocation3 + $0x1], 0 }
   0xb   :  { %20 = vsyncpa [#allocation6], 0 }
   0xc   :  { %22 = vsyncpa [#allocation6 + $0x1], 0 }
   0xd   :  { %23 = vsyncpa [#allocation9], 0 }
   0xe   :  { %24 = vsyncpa [#allocation12], 0 }
   0xf   :  { %25 = vsyncpa [#allocation15], 0 }
  0x10   :  { %26 = vsyncpa [#allocation4], 0 }
  0x11   :  { %28 = vsyncpa [#allocation4 + $0x1], 0 }
  0x12   :  { %29 = vsyncpa [#allocation19], 0 }
  0x13   :  { %31 = vsyncpa [#allocation19 + $0x1], 0  ;;  %s6607_s17 = smov 0   ;;  %s6609_s18 = smov 0  }
  0x14   :  { %s6611_s19 = smov 0   ;;  %s6613_s20 = smov 0  }
  0x15   :  { %s6615_s21 = smov 0   ;;  %s6617_s22 = smov 0  }
  0x16   :  { %s6619_s23 = smov 0   ;;  %s6621_s24 = smov 0  }
  0x17 LB: > { %9123 = sst [smem:[#allocation34_spill]] %s6481_s17  ;;  %s6648_s25 = sadd.s32 4294967295, %s6509_s24   ;;  %s6509_s24 = sphi %s6621_s24, %s37_s24   ;;  %s6505_s23 = sphi %s6619_s23, %s9204_s23   ;;  %s6501_s22 = sphi %s6617_s22, %s9203_s22   ;;  %s6497_s21 = sphi %s6615_s21, %s9202_s21   ;;  %s6493_s20 = sphi %s6613_s20, %s9201_s20   ;;  %s6489_s19 = sphi %s6611_s19, %s9207_s19   ;;  %s6485_s18 = sphi %s6609_s18, %s9206_s18   ;;  %s6481_s17 = sphi %s6607_s17, %s9205_s17  }
  0x18   : > { %9124 = sst [smem:[#allocation35_spill]] %s6493_s20  ;;  %p4939_p0 = scmp.ge.s32.totalorder %s6509_s24, 1 }
  0x19   : > { %9125 = sst [smem:[#allocation36_spill]] %s6497_s21  ;;  %p9065_p1 = scmp.eq.s32.totalorder %s6648_s25, 0 }
  0x1a   : > { %9126 = sst [smem:[#allocation37_spill]] %s6501_s22  ;;  %p348_p2 = scmp.lt.s32.totalorder %s6509_s24, 5 }
  0x1b   : > { %9127 = sst [smem:[#allocation38_spill]] %s6505_s23  ;;  %s6511_s27 = smov [#allocation8]  }
  0x1c   : > { %9128 = sst [smem:[#allocation39_spill]] %s6509_s24  ;;  %p6653_p3 = pnand %p4939_p0, %p348_p2 }
  0x1d   : > { %s360_s28 = sshll.u32 %s6511_s27, 4  ;;  %s6512_s30 = smov [#allocation11]   ;;  %s6657_s28 = int_to_ptr.vmem [resolvable:$true] %s360_s28 }
  0x1e   : > { %s9129_s26 = scalar_select %p6653_p3, 1, 0 }
  0x1f   : > { %p5922_p4 = pneg %p6653_p3  ;;  %s386_s12 = sshll.u32 %s6512_s30, 4  ;;  %s6667_s12 = int_to_ptr.vmem [resolvable:$true] %s386_s12 }
  0x20   : > { %9130 = sst [smem:[#allocation40_spill]] %s9129_s26  ;;  %s6513_s13 = smov [#allocation14]  }
  0x21   : > { %p6663_p5 = pnand %p5922_p4, %p9065_p1  ;;  %s6669_s14 = sshll.u32 %s6513_s13, 4  ;;  %s413_s14 = int_to_ptr.vmem [resolvable:$true] %s6669_s14 }
  0x22   : > { %s9132_s3 = sld [smem:[#allocation59_spill]] }
  0x23   : > { %s9131_s29 = scalar_select %p6663_p5, 1, 0 }
  0x24   : > { %p6679_p7 = pneg %p6663_p5 }
  0x26   : > { %s9133_s9 = scalar_select %p6679_p7, 1, 0 }
  0x28   : > { %s6161_s27 = scalar_lea.hbm %s9132_s3, 16384 }
  0x29   : > { %p6162_p6 = scmp.ne.s32.totalorder %s9132_s3, %s6161_s27  ;;  %p6168_p10 = scmp.lt.u32.totalorder %s6161_s27, %s9132_s3 }
  0x2b   : > { %p6164_p8 = pnand %p6679_p7, %p6162_p6 }
  0x2d   : > { %p6165_p9 = pneg %p6164_p8 }
  0x2f   : > { %p6170_p11 = pnand %p6168_p10, %p6165_p9 }
  0x31   : > { %6173 = shalt.err (!%p6170_p11)
}
  0x32   : > { %s6174_s10 = scalar_lea.vmem %s6657_s28, 16384  ;;  %p6182_p2 = scmp.lt.s32.totalorder %s6657_s28, %s6657_s28 }
  0x33   : > { %p6175_p12 = scmp.ne.s32.totalorder %s6657_s28, %s6174_s10  ;;  %p6183_p4 = scmp.lt.s32.totalorder %s6174_s10, %s6174_s10 }
  0x35   : > { %p6177_p13 = pnand %p6175_p12, %p6679_p7  ;;  %p6184_p6 = por %p6183_p4, %p6182_p2 }
  0x37   : > { %p6178_p0 = pneg %p6177_p13 }
  0x39   : > { %p6185_p8 = pnand %p6184_p6, %p6178_p0 }
  0x3b   : > { %6188 = shalt.err (!%p6185_p8)
}
  0x3c   : > { %s6514_s11 = smov 128   ;;  %s6515_s15 = smov 8  }
  0x3d   : > { %5925 = dma.hbm_to_vmem [thread:$0]  (!%p6663_p5), %s9132_s3, 16384, %s6657_s28, [#allocation9], %s6514_s11, %s6514_s11, %s6515_s15  }
  0x3e   : > { %s9134_s5 = sld [smem:[#allocation60_spill]] }
  0x44   : > { %s6189_s10 = scalar_lea.hbm %s9134_s5, 16384 }
  0x45   : > { %p6190_p9 = scmp.ne.s32.totalorder %s9134_s5, %s6189_s10  ;;  %p6196_p12 = scmp.lt.u32.totalorder %s6189_s10, %s9134_s5 }
  0x47   : > { %p6192_p10 = pnand %p6190_p9, %p6679_p7 }
  0x49   : > { %p6193_p11 = pneg %p6192_p10 }
  0x4b   : > { %p6198_p13 = pnand %p6196_p12, %p6193_p11 }
  0x4d   : > { %6201 = shalt.err (!%p6198_p13)
}
  0x4e   : > { %s6202_s28 = scalar_lea.vmem %s6667_s12, 16384  ;;  %p6210_p6 = scmp.lt.s32.totalorder %s6667_s12, %s6667_s12 }
  0x4f   : > { %p6203_p0 = scmp.ne.s32.totalorder %s6667_s12, %s6202_s28  ;;  %p6211_p8 = scmp.lt.s32.totalorder %s6202_s28, %s6202_s28 }
  0x51   : > { %p6205_p2 = pnand %p6203_p0, %p6679_p7  ;;  %p6212_p9 = por %p6211_p8, %p6210_p6 }
  0x53   : > { %p6206_p4 = pneg %p6205_p2 }
  0x55   : > { %p6213_p10 = pnand %p6212_p9, %p6206_p4 }
  0x57   : > { %6216 = shalt.err (!%p6213_p10)
}
  0x58   : > { %5931 = dma.hbm_to_vmem [thread:$0]  (!%p6663_p5), %s9134_s5, 16384, %s6667_s12, [#allocation12], %s6514_s11, %s6514_s11, %s6515_s15  }
  0x59   : > { %s9135_s7 = sld [smem:[#allocation61_spill]] }
  0x5f   : > { %s6217_s16 = scalar_lea.hbm %s9135_s7, 16384 }
  0x60   : > { %p6218_p11 = scmp.ne.s32.totalorder %s9135_s7, %s6217_s16  ;;  %p6224_p0 = scmp.lt.u32.totalorder %s6217_s16, %s9135_s7 }
  0x62   : > { %p6220_p12 = pnand %p6218_p11, %p6679_p7 }
  0x64   : > { %p6221_p13 = pneg %p6220_p12 }
  0x66   : > { %p6226_p2 = pnand %p6224_p0, %p6221_p13 }
  0x68   : > { %6229 = shalt.err (!%p6226_p2)
}
  0x69   : > { %s6230_s28 = scalar_lea.vmem %s413_s14, 16384  ;;  %p6238_p9 = scmp.lt.s32.totalorder %s413_s14, %s413_s14 }
  0x6a   : > { %p6231_p4 = scmp.ne.s32.totalorder %s413_s14, %s6230_s28  ;;  %p6239_p10 = scmp.lt.s32.totalorder %s6230_s28, %s6230_s28 }
  0x6c   : > { %p6233_p6 = pnand %p6231_p4, %p6679_p7  ;;  %p6240_p1 = por %p6239_p10, %p6238_p9 }
  0x6e   : > { %p6234_p8 = pneg %p6233_p6 }
  0x70   : > { %p6241_p3 = pnand %p6240_p1, %p6234_p8 }
  0x72   : > { %6244 = shalt.err (!%p6241_p3)
}
  0x73   : > { %5937 = dma.hbm_to_vmem [thread:$0]  (!%p6663_p5), %s9135_s7, 16384, %s413_s14, [#allocation15], %s6514_s11, %s6514_s11, %s6515_s15  }
  0x74   : > { %s9067_s20 = sadd.s32 4294967294, %s6509_s24   ;;  %s46_s21 = sadd.s32 1, %s6501_s22 }
  0x75   : > { %s49_s26 = sadd.s32 1, %s6505_s23  ;;  %p47_p1 = scmp.ge.s32.totalorder %s46_s21, 2 }
  0x76   : > { %s58_s16 = sadd.s32 1, %s6489_s19  ;;  %p65_p3 = scmp.ne.s32.totalorder %s6489_s19, %s6485_s18 }
  0x77   : > { %p66_p11 = scmp.eq.s32.totalorder %s6509_s24, 0  ;;  %s9209_s21 = smov (%p47_p1, %s46_s21), 0 }
  0x78   : > { %9136 = sst [smem:[#allocation41_spill]] %s9209_s21  ;;  %s9211_s26 = smov (!%p47_p1, %s49_s26), %s6505_s23 }
  0x79   : > { %s54_s27 = ssub.s32 %s6501_s22, %s9209_s21  ;;  %p6763_p12 = por %p66_p11, %p65_p3 }
  0x7a   : > { %p51_p13 = scmp.ge.s32.totalorder %s9211_s26, 2  ;;  %p71_p0 = scmp.ne.s32.totalorder %s6485_s18, %s6481_s17 }
  0x7b   : > { %p279_p2 = scmp.eq.s32.totalorder %s6648_s25, 3  ;;  %p285_p4 = scmp.eq.s32.totalorder %s9067_s20, 3 }
  0x7c   : > { %s9213_s26 = smov (%p51_p13, %s9211_s26), 0  ;;  %p9139_p6 = scmp.eq.s32.totalorder %s6648_s25, 0 }
  0x7d   : > { %9138 = sst [smem:[#allocation42_spill]] %s9213_s26  ;;  %p6780_p9 = por %p279_p2, %p65_p3 }
  0x7e   : > { %p6776_p8 = por %p9139_p6, %p71_p0  ;;  %s53_s30 = ssub.s32 %s6505_s23, %s9213_s26 }
  0x7f   : > { %s9141_s15 = scalar_select %p6780_p9, 1, 0 }
  0x80   : > { %s9140_s11 = scalar_select %p6776_p8, 1, 0 }
  0x81   : > { %p6786_p10 = por %p285_p4, %p71_p0  ;;  %s55_s10 = sor.u32 %s54_s27, %s53_s30 }
  0x82   : > { %p56_p1 = scmp.eq.s32.totalorder %s55_s10, 0  ;;  %p5967_p11 = scmp.lt.s32.totalorder %s6509_s24, 4 }
  0x83   : > { %s9142_s13 = scalar_select %p6786_p10, 1, 0 }
  0x84   : > { %s9069_s28 = sand.u32 1, %s6489_s19   ;;  %s5289_s12 = sshll.u32 %s6501_s22, 6 }
  0x85   : > { %9143 = sst [smem:[#allocation43_spill]] %s9142_s13  ;;  %s6798_s20 = sshll.u32 %s9069_s28, 9 }
  0x86   : > { %s6794_s2 = scalar_select %p56_p1, %s6489_s19, %s58_s16  }
  0x87   : > { %s4950_s3 = sshll.u32 %s6505_s23, 7  ;;  %p6803_p3 = pnand %p5967_p11, %p6763_p12 }
  0x88   : > { %9144 = sst [smem:[#allocation44_spill]] %s6794_s2  ;;  %s450_s5 = sadd.s32 %s5289_s12, %s4950_s3 }
  0x89   : > { %s9145_s7 = scalar_select %p6803_p3, 1, 0 }
  0x8a   : > { %s6807_s26 = sshll.u32 %s450_s5, 7  ;;  %s463_s27 = sand.u32 1, %s6509_s24  }
  0x8b   : > { %s9146_s1 = sld [smem:[#allocation57_spill]]  ;;  %s467_s3 = scalar_lea.vmem [#allocation5], %s6798_s20 }
  0x8c   : > { %s477_s14 = sshll.u32 %s467_s3, 4  ;;  %s6819_s12 = scalar_lea.sflag [#allocation6], %s463_s27  ;;  %s6817_s14 = int_to_ptr.vmem [resolvable:$true] %s477_s14 }
  0x8d   : > { %p6825_p13 = pneg %p6803_p3 }
  0x8f   : > { %s9147_s5 = scalar_select %p6825_p13, 1, 0 }
  0x91   : > { %s6814_s16 = scalar_lea.hbm %s9146_s1, %s6807_s26  ;;  %s6250_s21 = scalar_lea.hbm %s9146_s1, 32768 }
  0x92   : > { %s6245_s28 = scalar_lea.hbm %s6814_s16, 8192  ;;  %p6251_p4 = scmp.lt.u32.totalorder %s6814_s16, %s9146_s1 }
  0x93   : > { %p6246_p12 = scmp.ne.s32.totalorder %s6814_s16, %s6245_s28  ;;  %p6252_p6 = scmp.lt.u32.totalorder %s6250_s21, %s6245_s28 }
  0x94   : > { %p6254_p11 = scmp.lt.u32.totalorder %s6245_s28, %s6814_s16 }
  0x95   : > { %p6248_p0 = pnand %p6825_p13, %p6246_p12  ;;  %p6253_p1 = por %p6252_p6, %p6251_p4 }
  0x97   : > { %p6249_p2 = pneg %p6248_p0  ;;  %p6255_p10 = por %p6254_p11, %p6253_p1 }
  0x99   : > { %p6256_p9 = pnand %p6255_p10, %p6249_p2 }
  0x9b   : > { %6259 = shalt.err (!%p6256_p9)
}
  0x9c   : > { %s6260_s27 = scalar_lea.vmem %s6817_s14, 8192  ;;  %s6516_s30 = smov [#allocation5]  }
  0x9d   : > { %p6261_p12 = scmp.ne.s32.totalorder %s6817_s14, %s6260_s27  ;;  %s6265_s10 = sshll.u32 %s6516_s30, 4  ;;  %s6266_s10 = int_to_ptr.vmem [resolvable:$false] %s6265_s10 }
  0x9e   : > { %s6267_s23 = scalar_lea.vmem %s6266_s10, 16384  ;;  %p6268_p5 = scmp.lt.s32.totalorder %s6817_s14, %s6266_s10 }
  0x9f   : > { %p6263_p0 = pnand %p6261_p12, %p6825_p13  ;;  %p6269_p7 = scmp.lt.s32.totalorder %s6267_s23, %s6260_s27 }
  0xa1   : > { %p6264_p8 = pneg %p6263_p0  ;;  %p6270_p4 = por %p6269_p7, %p6268_p5 }
  0xa3   : > { %p6271_p6 = pnand %p6270_p4, %p6264_p8 }
  0xa5   : > { %6274 = shalt.err (!%p6271_p6)
}
  0xa6   : > { %s9082_s21 = smov 256   ;;  %s6518_s28 = smov 16  }
  0xa7   : > { %5947 = dma.hbm_to_vmem [thread:$0]  (!%p6803_p3), %s6814_s16, 8192, %s6817_s14, %s6819_s12, %s9082_s21, %s9082_s21, %s6518_s28  }
  0xa8   : > { %s6519_s3 = smov [#allocation10]   ;;  %s6275_s23 = scalar_lea.hbm %s9055_s4, 64 }
  0xa9   : > { %s373_s30 = sshll.u32 %s6519_s3, 4  ;;  %p6276_p5 = scmp.ne.s32.totalorder %s9055_s4, %s6275_s23  ;;  %s374_s30 = int_to_ptr.vmem [resolvable:$true] %s373_s30 }
  0xaa   : > { %p9148_p7 = scmp.ne.s32.totalorder %s9133_s9, 0  ;;  %p6282_p10 = scmp.lt.u32.totalorder %s6275_s23, %s9055_s4 }
  0xac   : > { %p6278_p8 = pnand %p6276_p5, %p9148_p7 }
  0xae   : > { %p6279_p9 = pneg %p6278_p8 }
  0xb0   : > { %p6284_p2 = pnand %p6282_p10, %p6279_p9 }
  0xb2   : > { %6287 = shalt.err (!%p6284_p2)
}
  0xb3   : > { %s6288_s16 = scalar_lea.vmem %s374_s30, 64  ;;  %p6296_p0 = scmp.lt.s32.totalorder %s374_s30, %s374_s30 }
  0xb4   : > { %p6289_p1 = scmp.ne.s32.totalorder %s374_s30, %s6288_s16  ;;  %p6297_p4 = scmp.lt.s32.totalorder %s6288_s16, %s6288_s16 }
  0xb6   : > { %p6291_p11 = pnand %p6289_p1, %p9148_p7  ;;  %p6298_p6 = por %p6297_p4, %p6296_p0 }
  0xb8   : > { %p6292_p12 = pneg %p6291_p11 }
  0xba   : > { %p6299_p3 = pnand %p6298_p6, %p6292_p12 }
  0xbc   : > { %6302 = shalt.err (!%p6299_p3)
}
  0xbd   : > { %s6520_s1 = smov 1   ;;  %p9149_p5 = scmp.ne.s32.totalorder %s9131_s29, 0 }
  0xbe   : > { %s6521_s2 = smov [#allocation13]   ;;  %s6522_s3 = smov [#allocation16]  }
  0xbf   : > { %5928 = dma.hbm_to_vmem [thread:$0]  (!%p9149_p5), %s9055_s4, 64, %s374_s30, [#allocation9], %s6518_s28, %s6518_s28, %s6520_s1  }
  0xc0   : > { %s399_s14 = sshll.u32 %s6521_s2, 4  ;;  %s425_s10 = sshll.u32 %s6522_s3, 4  ;;  %s400_s14 = int_to_ptr.vmem [resolvable:$true] %s399_s14  ;;  %s426_s10 = int_to_ptr.vmem [resolvable:$true] %s425_s10 }
  0xc1   : > { %s6303_s16 = scalar_lea.hbm %s9057_s6, 64 }
  0xc2   : > { %p6304_p3 = scmp.ne.s32.totalorder %s9057_s6, %s6303_s16  ;;  %p6310_p10 = scmp.lt.u32.totalorder %s6303_s16, %s9057_s6 }
  0xc4   : > { %p6306_p8 = pnand %p6304_p3, %p9148_p7 }
  0xc6   : > { %p6307_p9 = pneg %p6306_p8 }
  0xc8   : > { %p6312_p2 = pnand %p6310_p10, %p6307_p9 }
  0xca   : > { %6315 = shalt.err (!%p6312_p2)
}
  0xcb   : > { %s6316_s30 = scalar_lea.vmem %s400_s14, 64  ;;  %p6324_p0 = scmp.lt.s32.totalorder %s400_s14, %s400_s14 }
  0xcc   : > { %p6317_p1 = scmp.ne.s32.totalorder %s400_s14, %s6316_s30  ;;  %p6325_p4 = scmp.lt.s32.totalorder %s6316_s30, %s6316_s30 }
  0xce   : > { %p6319_p11 = pnand %p6317_p1, %p9148_p7  ;;  %p6326_p6 = por %p6325_p4, %p6324_p0 }
  0xd0   : > { %p6320_p12 = pneg %p6319_p11 }
  0xd2   : > { %p6327_p13 = pnand %p6326_p6, %p6320_p12 }
  0xd4   : > { %6330 = shalt.err (!%p6327_p13)
}
  0xd5   : > { %5934 = dma.hbm_to_vmem [thread:$0]  (!%p9149_p5), %s9057_s6, 64, %s400_s14, [#allocation12], %s6518_s28, %s6518_s28, %s6520_s1  }
  0xd6   : > { %s6331_s2 = scalar_lea.hbm %s9059_s8, 64 }
  0xd7   : > { %p6332_p3 = scmp.ne.s32.totalorder %s9059_s8, %s6331_s2  ;;  %p6338_p9 = scmp.lt.u32.totalorder %s6331_s2, %s9059_s8 }
  0xd9   : > { %p6334_p13 = pnand %p6332_p3, %p9148_p7 }
  0xdb   : > { %p6335_p8 = pneg %p6334_p13 }
  0xdd   : > { %p6340_p10 = pnand %p6338_p9, %p6335_p8 }
  0xdf   : > { %6343 = shalt.err (!%p6340_p10)
}
  0xe0   : > { %s6344_s22 = scalar_lea.vmem %s426_s10, 64  ;;  %p6352_p12 = scmp.lt.s32.totalorder %s426_s10, %s426_s10 }
  0xe1   : > { %p6345_p2 = scmp.ne.s32.totalorder %s426_s10, %s6344_s22  ;;  %p6353_p0 = scmp.lt.s32.totalorder %s6344_s22, %s6344_s22 }
  0xe3   : > { %p6347_p1 = pnand %p6345_p2, %p9148_p7  ;;  %p6354_p4 = por %p6353_p0, %p6352_p12 }
  0xe5   : > { %p6348_p11 = pneg %p6347_p1 }
  0xe7   : > { %p6355_p6 = pnand %p6354_p4, %p6348_p11 }
  0xe9   : > { %6358 = shalt.err (!%p6355_p6)
}
  0xea   : > { %5940 = dma.hbm_to_vmem [thread:$0]  (!%p9149_p5), %s9059_s8, 64, %s426_s10, [#allocation15], %s6518_s28, %s6518_s28, %s6520_s1  }
  0xeb   : > { %s6919_s24 = scalar_lea.hbm %s9051_s0, %s6807_s26  ;;  %s443_s29 = scalar_lea.vmem [#allocation2], %s6798_s20 }
  0xec   : > { %s453_s21 = sshll.u32 %s443_s29, 4  ;;  %s9150_s3 = sld [smem:[#allocation58_spill]]  ;;  %s6922_s21 = int_to_ptr.vmem [resolvable:$true] %s453_s21 }
  0xed   : > { %s9151_s23 = sand.u32 1, %s6489_s19   ;;  %s6359_s10 = scalar_lea.hbm %s6919_s24, 8192 }
  0xee   : > { %s6932_s1 = scalar_lea.sflag [#allocation3], %s9151_s23  ;;  %p6360_p7 = scmp.ne.s32.totalorder %s6919_s24, %s6359_s10 }
  0xef   : > { %p9152_p5 = scmp.ne.s32.totalorder %s9147_s5, 0  ;;  %s6364_s14 = scalar_lea.hbm %s9051_s0, 32768 }
  0xf0   : > { %p6365_p8 = scmp.lt.u32.totalorder %s6919_s24, %s9051_s0  ;;  %p6366_p9 = scmp.lt.u32.totalorder %s6364_s14, %s6359_s10 }
  0xf1   : > { %p6362_p3 = pnand %p6360_p7, %p9152_p5  ;;  %p6368_p2 = scmp.lt.u32.totalorder %s6359_s10, %s6919_s24 }
  0xf2   : > { %s6928_s27 = scalar_lea.hbm %s9150_s3, %s6807_s26  ;;  %p6367_p10 = por %p6366_p9, %p6365_p8 }
  0xf3   : > { %p6363_p13 = pneg %p6362_p3 }
  0xf4   : > { %p6369_p1 = por %p6368_p2, %p6367_p10 }
  0xf6   : > { %p6370_p11 = pnand %p6369_p1, %p6363_p13 }
  0xf8   : > { %6373 = shalt.err (!%p6370_p11)
}
  0xf9   : > { %s6374_s26 = scalar_lea.vmem %s6922_s21, 8192  ;;  %s6523_s17 = smov [#allocation2]  }
  0xfa   : > { %p6375_p12 = scmp.ne.s32.totalorder %s6922_s21, %s6374_s26  ;;  %s6379_s29 = sshll.u32 %s6523_s17, 4  ;;  %s6380_s29 = int_to_ptr.vmem [resolvable:$false] %s6379_s29 }
  0xfb   : > { %s6381_s13 = scalar_lea.vmem %s6380_s29, 16384  ;;  %p6382_p6 = scmp.lt.s32.totalorder %s6922_s21, %s6380_s29 }
  0xfc   : > { %p6377_p0 = pnand %p6375_p12, %p9152_p5  ;;  %p6383_p7 = scmp.lt.s32.totalorder %s6381_s13, %s6374_s26 }
  0xfe   : > { %p6378_p4 = pneg %p6377_p0  ;;  %p6384_p3 = por %p6383_p7, %p6382_p6 }
 0x100   : > { %p6385_p8 = pnand %p6384_p3, %p6378_p4 }
 0x102   : > { %6388 = shalt.err (!%p6385_p8)
}
 0x103   : > { %p9153_p13 = scmp.ne.s32.totalorder %s9145_s7, 0  ;;  %s9154_s2 = smov 256  }
 0x104   : > { %s491_s23 = scalar_lea.vmem [#allocation7], %s6798_s20  ;;  %s6389_s16 = scalar_lea.hbm %s6928_s27, 8192 }
 0x105   : > { %5944 = dma.hbm_to_vmem [thread:$0]  (!%p9153_p13), %s6919_s24, 8192, %s6922_s21, %s6932_s1, %s9154_s2, %s9154_s2, %s6518_s28  }
 0x106   : > { %s501_s10 = sshll.u32 %s491_s23, 4  ;;  %p6390_p9 = scmp.ne.s32.totalorder %s6928_s27, %s6389_s16  ;;  %s6960_s10 = int_to_ptr.vmem [resolvable:$true] %s501_s10 }
 0x107   : > { %s6394_s30 = scalar_lea.hbm %s9150_s3, 32768  ;;  %p6395_p1 = scmp.lt.u32.totalorder %s6928_s27, %s9150_s3 }
 0x108   : > { %p6392_p10 = pnand %p6390_p9, %p9152_p5  ;;  %p6396_p11 = scmp.lt.u32.totalorder %s6394_s30, %s6389_s16 }
 0x109   : > { %p6398_p0 = scmp.lt.u32.totalorder %s6389_s16, %s6928_s27 }
 0x10a   : > { %p6393_p2 = pneg %p6392_p10  ;;  %p6397_p12 = por %p6396_p11, %p6395_p1 }
 0x10c   : > { %p6399_p4 = por %p6398_p0, %p6397_p12 }
 0x10e   : > { %p6400_p6 = pnand %p6399_p4, %p6393_p2 }
 0x110   : > { %6403 = shalt.err (!%p6400_p6)
}
 0x111   : > { %s6404_s20 = scalar_lea.vmem %s6960_s10, 8192  ;;  %s6524_s24 = smov [#allocation7]  }
 0x112   : > { %p6405_p7 = scmp.ne.s32.totalorder %s6960_s10, %s6404_s20  ;;  %s6409_s21 = sshll.u32 %s6524_s24, 4  ;;  %s6410_s21 = int_to_ptr.vmem [resolvable:$false] %s6409_s21 }
 0x113   : > { %s6411_s1 = scalar_lea.vmem %s6410_s21, 16384  ;;  %p6412_p9 = scmp.lt.s32.totalorder %s6960_s10, %s6410_s21 }
 0x114   : > { %p6407_p3 = pnand %p6405_p7, %p9152_p5  ;;  %p6413_p10 = scmp.lt.s32.totalorder %s6411_s1, %s6404_s20 }
 0x116   : > { %p6408_p8 = pneg %p6407_p3  ;;  %p6414_p1 = por %p6413_p10, %p6412_p9 }
 0x118   : > { %p6415_p11 = pnand %p6414_p1, %p6408_p8 }
 0x11a   : > { %6418 = shalt.err (!%p6415_p11)
}
 0x11b   : > { %5950 = dma.hbm_to_vmem [thread:$0]  (!%p9153_p13), %s6928_s27, 8192, %s6960_s10, %s6819_s12, %s9154_s2, %s9154_s2, %s6518_s28  }
 0x11c   : > { %s9155_s5 = sld [smem:[#allocation40_spill]] }
 0x122   : > { %p9156_p5 = scmp.ne.s32.totalorder %s9155_s5, 0 }
 0x124   : > { %513 = sbr.rel (%p9156_p5) target bundleno = 1393 (0x571), region = 56 }
 0x12b   : > { %s6990_s17 = sand.u32 1, %s6485_s18   ;;  %p9157_p2 = scmp.ne.s32.totalorder %s9140_s11, 0 }
 0x12c   : > { %s4963_s29 = sshll.u32 %s6990_s17, 9  ;;  %s516_s13 = scalar_lea.sflag [#allocation3], %s6990_s17 }
 0x12d   : > { %s6994_s23 = scalar_lea.vmem [#allocation2], %s4963_s29 }
 0x12e   : > { %6452 = dma.done.wait (%p9157_p2), %s516_s13, 8192  }
 0x12f   : > { %6454 = vsyncadd (%p9157_p2), %s516_s13, 4294959104  ;;  %s524_s7 = sand.u32 1, %s6648_s25   ;;  %s7003_s28 = scalar_lea.vmem [#allocation5], %s4963_s29 }
 0x130   : > { %s525_s12 = scalar_lea.sflag [#allocation6], %s524_s7 }
 0x131   : > { %6456 = dma.done.wait (%p9157_p2), %s525_s12, 16384  }
 0x132   : > { %6458 = vsyncadd (%p9157_p2), %s525_s12, 4294950912  ;;  %s7009_s27 = scalar_lea.vmem [#allocation7], %s4963_s29  ;;  %p9158_p13 = scmp.eq.s32.totalorder %s6648_s25, 0 }
 0x134   : > { %6460 = dma.done.wait (%p9158_p13), [#allocation9], 16448   ;;  %p9159_p12 = pmov %p9158_p13 }
 0x136   : > { %6462 = vsyncadd (%p9159_p12), [#allocation9], 4294950848  ;;  %p9160_p0 = pmov %p9159_p12 }
 0x138   : > { %6464 = dma.done.wait (%p9160_p0), [#allocation12], 16448   ;;  %p9161_p4 = pmov %p9160_p0 }
 0x139   : > { %p9162_p6 = pmov %p9160_p0 }
 0x13a   : > { %6466 = vsyncadd (%p9161_p4), [#allocation12], 4294950848 }
 0x13b   : > { %6468 = dma.done.wait (%p9162_p6), [#allocation15], 16448   ;;  %p9163_p7 = pmov %p9160_p0 }
 0x13c   : > { %v9089_v0 = vmov 0.0|0.0   ;;  %v690_v1 = vld [vmem:[#allocation8] sm:$0xff]  ;;  %v691_v2 = vld [vmem:[#allocation8 + $0x8] sm:$0xff]  ;;  %v692_v6 = vld [vmem:[#allocation8 + $0x10] sm:$0xff]  ;;  %s7529_s11 = sshll.u32 %s6990_s17, 10  ;;  %s4526_s22 = scalar_lea.sflag [#allocation4], %s6990_s17 }
 0x13d   : > { %6470 = vsyncadd (%p9163_p7), [#allocation15], 4294950848  ;;  %5292 = vmatprep.subr.bf16.mxu0 %v9089_v0  ;;  %5340 = vmatprep.subr.bf16.mxu1 %v9089_v0  ;;  %v1019_v3 = vld [vmem:[#allocation8 + $0x100] sm:$0xff]  ;;  %v5293_v4 = vpack.c.bf16 %v691_v2, %v690_v1  ;;  %v1020_v5 = vld [vmem:[#allocation8 + $0x108] sm:$0xff]  ;;  %s7541_s2 = scalar_lea.vmem [#allocation17], %s7529_s11  ;;  %s8027_s10 = scalar_lea.vmem [#allocation18], %s7529_s11 }
 0x13e   : > { %v693_v7 = vld [vmem:[#allocation8 + $0x18] sm:$0xff]  ;;  %v5341_v8 = vpack.c.bf16 %v1020_v5, %v1019_v3  ;;  %v1021_v9 = vld [vmem:[#allocation8 + $0x110] sm:$0xff]  ;;  %v694_v13 = vld [vmem:[#allocation8 + $0x20] sm:$0xff]  ;;  %s8654_s16 = scalar_lea.vmem [#allocation20], %s7529_s11  ;;  %s8956_s14 = scalar_lea.sflag [#allocation19], %s524_s7 }
 0x13f   : > { %v1022_v10 = vld [vmem:[#allocation8 + $0x118] sm:$0xff]  ;;  %5294 = vmatpush1.bf16.msra.mxu0 %v5293_v4  ;;  %v5296_v11 = vpack.c.bf16 %v693_v7, %v692_v6  ;;  %v695_v14 = vld [vmem:[#allocation8 + $0x28] sm:$0xff]  ;;  %v1023_v15 = vld [vmem:[#allocation8 + $0x120] sm:$0xff] }
 0x140   : > { %5342 = vmatpush1.bf16.msra.mxu1 %v5341_v8  ;;  %5295 = vmatprep.subr.bf16.mxu0 %v9089_v0  ;;  %v5344_v12 = vpack.c.bf16 %v1022_v10, %v1021_v9  ;;  %v1024_v16 = vld [vmem:[#allocation8 + $0x128] sm:$0xff]  ;;  %v5299_v17 = vpack.c.bf16 %v695_v14, %v694_v13  ;;  %v696_v19 = vld [vmem:[#allocation8 + $0x30] sm:$0xff]  ;;  %v697_v20 = vld [vmem:[#allocation8 + $0x38] sm:$0xff] }
 0x141   : > { %5343 = vmatprep.subr.bf16.mxu1 %v9089_v0  ;;  %v5347_v18 = vpack.c.bf16 %v1024_v16, %v1023_v15  ;;  %v1025_v21 = vld [vmem:[#allocation8 + $0x130] sm:$0xff]  ;;  %v1026_v22 = vld [vmem:[#allocation8 + $0x138] sm:$0xff]  ;;  %v5302_v23 = vpack.c.bf16 %v697_v20, %v696_v19  ;;  %v698_v25 = vld [vmem:[#allocation8 + $0x40] sm:$0xff] }
 0x142   : > { %v5350_v24 = vpack.c.bf16 %v1026_v22, %v1025_v21  ;;  %v699_v26 = vld [vmem:[#allocation8 + $0x48] sm:$0xff]  ;;  %v1027_v27 = vld [vmem:[#allocation8 + $0x140] sm:$0xff]  ;;  %v700_v31 = vld [vmem:[#allocation8 + $0x50] sm:$0xff] }
 0x143   : > { %5297 = vmatpush1.bf16.msra.mxu0 %v5296_v11  ;;  %v1028_v28 = vld [vmem:[#allocation8 + $0x148] sm:$0xff]  ;;  %v5305_v29 = vpack.c.bf16 %v699_v26, %v698_v25  ;;  %v701_v32 = vld [vmem:[#allocation8 + $0x58] sm:$0xff]  ;;  %v1029_v33 = vld [vmem:[#allocation8 + $0x150] sm:$0xff] }
 0x144   : > { %5345 = vmatpush1.bf16.msra.mxu1 %v5344_v12  ;;  %5298 = vmatprep.subr.bf16.mxu0 %v9089_v0  ;;  %v5353_v30 = vpack.c.bf16 %v1028_v28, %v1027_v27  ;;  %v1030_v34 = vld [vmem:[#allocation8 + $0x158] sm:$0xff]  ;;  %v5308_v35 = vpack.c.bf16 %v701_v32, %v700_v31  ;;  %v702_v37 = vld [vmem:[#allocation8 + $0x60] sm:$0xff]  ;;  %v703_v38 = vld [vmem:[#allocation8 + $0x68] sm:$0xff] }
 0x145   : > { %5346 = vmatprep.subr.bf16.mxu1 %v9089_v0  ;;  %v5356_v36 = vpack.c.bf16 %v1030_v34, %v1029_v33  ;;  %v1031_v39 = vld [vmem:[#allocation8 + $0x160] sm:$0xff]  ;;  %v1032_v40 = vld [vmem:[#allocation8 + $0x168] sm:$0xff]  ;;  %v5311_v42 = vpack.c.bf16 %v703_v38, %v702_v37  ;;  %v704_v44 = vld [vmem:[#allocation8 + $0x70] sm:$0xff] }
 0x146   : > { %v7036_v41 = vld [vmem:[%s6994_s23 + $0x8] sm:$0xff]  ;;  %v5359_v43 = vpack.c.bf16 %v1032_v40, %v1031_v39  ;;  %v705_v45 = vld [vmem:[#allocation8 + $0x78] sm:$0xff]  ;;  %v1033_v46 = vld [vmem:[#allocation8 + $0x170] sm:$0xff] }
 0x147   : > { %5300 = vmatpush1.bf16.msra.mxu0 %v5299_v17  ;;  %793 = vmatprep.mubr.f32.mxu0 %v7036_v41  ;;  %v1034_v47 = vld [vmem:[#allocation8 + $0x178] sm:$0xff]  ;;  %v5314_v48 = vpack.c.bf16 %v705_v45, %v704_v44  ;;  %v706_v50 = vld [vmem:[#allocation8 + $0x80] sm:$0xff]  ;;  %v707_v51 = vld [vmem:[#allocation8 + $0x88] sm:$0xff] }
 0x148   : > { %5348 = vmatpush1.bf16.msra.mxu1 %v5347_v18  ;;  %5301 = vmatprep.subr.bf16.mxu0 %v9089_v0  ;;  %v5362_v49 = vpack.c.bf16 %v1034_v47, %v1033_v46  ;;  %v1035_v52 = vld [vmem:[#allocation8 + $0x180] sm:$0xff]  ;;  %v1036_v53 = vld [vmem:[#allocation8 + $0x188] sm:$0xff]  ;;  %v5317_v54 = vpack.c.bf16 %v707_v51, %v706_v50  ;;  %v708_v56 = vld [vmem:[#allocation8 + $0x90] sm:$0xff] }
 0x149   : > { %5349 = vmatprep.subr.bf16.mxu1 %v9089_v0  ;;  %1123 = vmatprep.mubr.f32.mxu1 %v7036_v41  ;;  %v5365_v55 = vpack.c.bf16 %v1036_v53, %v1035_v52  ;;  %v709_v57 = vld [vmem:[#allocation8 + $0x98] sm:$0xff]  ;;  %v1037_v58 = vld [vmem:[#allocation8 + $0x190] sm:$0xff]  ;;  %v710_v62 = vld [vmem:[#allocation8 + $0xa0] sm:$0xff] }
 0x14a   : > { %v1038_v59 = vld [vmem:[#allocation8 + $0x198] sm:$0xff]  ;;  %v5320_v60 = vpack.c.bf16 %v709_v57, %v708_v56  ;;  %v711_v63 = vld [vmem:[#allocation8 + $0xa8] sm:$0xff]  ;;  %v1039_v1 = vld [vmem:[#allocation8 + $0x1a0] sm:$0xff] }
 0x14b   : > { %5303 = vmatpush1.bf16.msra.mxu0 %v5302_v23  ;;  %v5368_v61 = vpack.c.bf16 %v1038_v59, %v1037_v58  ;;  %v1040_v2 = vld [vmem:[#allocation8 + $0x1a8] sm:$0xff]  ;;  %v5323_v3 = vpack.c.bf16 %v711_v63, %v710_v62  ;;  %v712_v5 = vld [vmem:[#allocation8 + $0xb0] sm:$0xff]  ;;  %v713_v6 = vld [vmem:[#allocation8 + $0xb8] sm:$0xff] }
 0x14c   : > { %5351 = vmatpush1.bf16.msra.mxu1 %v5350_v24  ;;  %5304 = vmatprep.subr.bf16.mxu0 %v9089_v0  ;;  %v5371_v4 = vpack.c.bf16 %v1040_v2, %v1039_v1  ;;  %v1041_v7 = vld [vmem:[#allocation8 + $0x1b0] sm:$0xff]  ;;  %v1042_v8 = vld [vmem:[#allocation8 + $0x1b8] sm:$0xff]  ;;  %v5326_v9 = vpack.c.bf16 %v713_v6, %v712_v5  ;;  %v714_v11 = vld [vmem:[#allocation8 + $0xc0] sm:$0xff] }
 0x14d   : > { %5352 = vmatprep.subr.bf16.mxu1 %v9089_v0  ;;  %v5374_v10 = vpack.c.bf16 %v1042_v8, %v1041_v7  ;;  %v715_v12 = vld [vmem:[#allocation8 + $0xc8] sm:$0xff]  ;;  %v1043_v13 = vld [vmem:[#allocation8 + $0x1c0] sm:$0xff]  ;;  %v716_v17 = vld [vmem:[#allocation8 + $0xd0] sm:$0xff] }
 0x14e   : > { %v1044_v14 = vld [vmem:[#allocation8 + $0x1c8] sm:$0xff]  ;;  %v5329_v15 = vpack.c.bf16 %v715_v12, %v714_v11  ;;  %v717_v18 = vld [vmem:[#allocation8 + $0xd8] sm:$0xff]  ;;  %v1045_v19 = vld [vmem:[#allocation8 + $0x1d0] sm:$0xff] }
 0x14f   : > { %5306 = vmatpush1.bf16.msra.mxu0 %v5305_v29  ;;  %v5377_v16 = vpack.c.bf16 %v1044_v14, %v1043_v13  ;;  %v1046_v20 = vld [vmem:[#allocation8 + $0x1d8] sm:$0xff]  ;;  %v5332_v21 = vpack.c.bf16 %v717_v18, %v716_v17  ;;  %v718_v23 = vld [vmem:[#allocation8 + $0xe0] sm:$0xff]  ;;  %v719_v24 = vld [vmem:[#allocation8 + $0xe8] sm:$0xff] }
 0x150   : > { %5354 = vmatpush1.bf16.msra.mxu1 %v5353_v30  ;;  %5307 = vmatprep.subr.bf16.mxu0 %v9089_v0  ;;  %v5380_v22 = vpack.c.bf16 %v1046_v20, %v1045_v19  ;;  %v1047_v25 = vld [vmem:[#allocation8 + $0x1e0] sm:$0xff]  ;;  %v1048_v26 = vld [vmem:[#allocation8 + $0x1e8] sm:$0xff]  ;;  %v5335_v27 = vpack.c.bf16 %v719_v24, %v718_v23  ;;  %v720_v29 = vld [vmem:[#allocation8 + $0xf0] sm:$0xff] }
 0x151   : > { %5355 = vmatprep.subr.bf16.mxu1 %v9089_v0  ;;  %v5383_v28 = vpack.c.bf16 %v1048_v26, %v1047_v25  ;;  %v721_v30 = vld [vmem:[#allocation8 + $0xf8] sm:$0xff]  ;;  %v1049_v31 = vld [vmem:[#allocation8 + $0x1f0] sm:$0xff]  ;;  %v1681_v37 = vld [vmem:[#allocation8 + $0x300] sm:$0xff] }
 0x152   : > { %v1050_v32 = vld [vmem:[#allocation8 + $0x1f8] sm:$0xff]  ;;  %v5338_v33 = vpack.c.bf16 %v721_v30, %v720_v29  ;;  %v1682_v38 = vld [vmem:[#allocation8 + $0x308] sm:$0xff]  ;;  %v7061_v39 = vld [vmem:[%s6994_s23] sm:$0xff] }
 0x153   : > { %5309 = vmatpush1.bf16.msra.mxu0 %v5308_v35  ;;  %v5386_v34 = vpack.c.bf16 %v1050_v32, %v1049_v31  ;;  %v1350_v35 = vld [vmem:[#allocation8 + $0x200] sm:$0xff]  ;;  %v1352_v44 = vld [vmem:[#allocation8 + $0x210] sm:$0xff]  ;;  %v1353_v45 = vld [vmem:[#allocation8 + $0x218] sm:$0xff] }
 0x154   : > { %5357 = vmatpush1.bf16.msra.mxu1 %v5356_v36  ;;  %5310 = vmatprep.subr.bf16.mxu0 %v9089_v0  ;;  %v1351_v36 = vld [vmem:[#allocation8 + $0x208] sm:$0xff]  ;;  %v1683_v46 = vld [vmem:[#allocation8 + $0x310] sm:$0xff]  ;;  %v1684_v47 = vld [vmem:[#allocation8 + $0x318] sm:$0xff]  ;;  %v5392_v50 = vpack.c.bf16 %v1353_v45, %v1352_v44 }
 0x155   : > { %5358 = vmatprep.subr.bf16.mxu1 %v9089_v0  ;;  %v5389_v40 = vpack.c.bf16 %v1351_v36, %v1350_v35  ;;  %v5440_v51 = vpack.c.bf16 %v1684_v47, %v1683_v46  ;;  %v1354_v52 = vld [vmem:[#allocation8 + $0x220] sm:$0xff]  ;;  %v1355_v53 = vld [vmem:[#allocation8 + $0x228] sm:$0xff]  ;;  %v7088_v57 = vld [vmem:[%s6994_s23 + $0x38] sm:$0xff] }
 0x156   : > { %v7084_v56 = vld [vmem:[%s6994_s23 + $0x20] sm:$0xff]  ;;  %v5395_v58 = vpack.c.bf16 %v1355_v53, %v1354_v52  ;;  %v1687_v62 = vld [vmem:[#allocation8 + $0x330] sm:$0xff]  ;;  %v1688_v63 = vld [vmem:[#allocation8 + $0x338] sm:$0xff] }
 0x157   : > { %5312 = vmatpush1.bf16.msra.mxu0 %v5311_v42  ;;  %v5437_v42 = vpack.c.bf16 %v1682_v38, %v1681_v37  ;;  %v7096_v1 = vld [vmem:[%s6994_s23 + $0x30] sm:$0xff]  ;;  %v7100_v2 = vld [vmem:[%s6994_s23 + $0x48] sm:$0xff]  ;;  %v1358_v5 = vld [vmem:[#allocation8 + $0x240] sm:$0xff] }
 0x158   : > { %5360 = vmatpush1.bf16.msra.mxu1 %v5359_v43  ;;  %5313 = vmatprep.subr.bf16.mxu0 %v9089_v0  ;;  %v7066_v43 = vld [vmem:[%s6994_s23 + $0x18] sm:$0xff]  ;;  %v1359_v6 = vld [vmem:[#allocation8 + $0x248] sm:$0xff]  ;;  %v1689_v7 = vld [vmem:[#allocation8 + $0x340] sm:$0xff] }
 0x159   : > { %5361 = vmatprep.subr.bf16.mxu1 %v9089_v0  ;;  %v1690_v8 = vld [vmem:[#allocation8 + $0x348] sm:$0xff]  ;;  %v5401_v11 = vpack.c.bf16 %v1359_v6, %v1358_v5  ;;  %v1360_v13 = vld [vmem:[#allocation8 + $0x250] sm:$0xff]  ;;  %v1361_v14 = vld [vmem:[#allocation8 + $0x258] sm:$0xff] }
 0x15a   : > { %v5449_v12 = vpack.c.bf16 %v1690_v8, %v1689_v7  ;;  %v7120_v17 = vld [vmem:[%s6994_s23 + $0x50] sm:$0xff]  ;;  %v7124_v18 = vld [vmem:[%s6994_s23 + $0x68] sm:$0xff]  ;;  %v5404_v19 = vpack.c.bf16 %v1361_v14, %v1360_v13  ;;  %v1693_v23 = vld [vmem:[#allocation8 + $0x360] sm:$0xff] }
 0x15b   : > { %5315 = vmatpush1.bf16.msra.mxu0 %v5314_v48  ;;  %v7071_v48 = vld [vmem:[%s6994_s23 + $0x10] sm:$0xff]  ;;  %v1694_v24 = vld [vmem:[#allocation8 + $0x368] sm:$0xff]  ;;  %v7132_v25 = vld [vmem:[%s6994_s23 + $0x60] sm:$0xff] }
 0x15c   : > { %5363 = vmatpush1.bf16.msra.mxu1 %v5362_v49  ;;  %5316 = vmatprep.subr.bf16.mxu0 %v9089_v0  ;;  %v7075_v49 = vld [vmem:[%s6994_s23 + $0x28] sm:$0xff]  ;;  %v7136_v26 = vld [vmem:[%s6994_s23 + $0x78] sm:$0xff]  ;;  %v1364_v29 = vld [vmem:[#allocation8 + $0x270] sm:$0xff] }
 0x15d   : > { %5364 = vmatprep.subr.bf16.mxu1 %v9089_v0  ;;  %v1365_v30 = vld [vmem:[#allocation8 + $0x278] sm:$0xff]  ;;  %v1695_v31 = vld [vmem:[#allocation8 + $0x370] sm:$0xff]  ;;  %v1366_v37 = vld [vmem:[#allocation8 + $0x280] sm:$0xff] }
 0x15e   : > { %v1696_v32 = vld [vmem:[#allocation8 + $0x378] sm:$0xff]  ;;  %v5410_v35 = vpack.c.bf16 %v1365_v30, %v1364_v29  ;;  %v1367_v38 = vld [vmem:[#allocation8 + $0x288] sm:$0xff]  ;;  %v7156_v44 = vld [vmem:[%s6994_s23 + $0x80] sm:$0xff] }
 0x15f   : > { %5318 = vmatpush1.bf16.msra.mxu0 %v5317_v54  ;;  %v1685_v54 = vld [vmem:[#allocation8 + $0x320] sm:$0xff]  ;;  %v5458_v36 = vpack.c.bf16 %v1696_v32, %v1695_v31  ;;  %v7160_v45 = vld [vmem:[%s6994_s23 + $0x98] sm:$0xff]  ;;  %v5413_v46 = vpack.c.bf16 %v1367_v38, %v1366_v37  ;;  %v1699_v52 = vld [vmem:[#allocation8 + $0x390] sm:$0xff] }
 0x160   : > { %5366 = vmatpush1.bf16.msra.mxu1 %v5365_v55  ;;  %5319 = vmatprep.subr.bf16.mxu0 %v9089_v0  ;;  %v1686_v55 = vld [vmem:[#allocation8 + $0x328] sm:$0xff]  ;;  %v1700_v53 = vld [vmem:[#allocation8 + $0x398] sm:$0xff]  ;;  %v1372_v7 = vld [vmem:[#allocation8 + $0x2b0] sm:$0xff] }
 0x161   : > { %5367 = vmatprep.subr.bf16.mxu1 %v9089_v0  ;;  %v5443_v59 = vpack.c.bf16 %v1686_v55, %v1685_v54  ;;  %v7168_v54 = vld [vmem:[%s6994_s23 + $0x90] sm:$0xff]  ;;  %v7172_v55 = vld [vmem:[%s6994_s23 + $0xa8] sm:$0xff]  ;;  %v1373_v8 = vld [vmem:[#allocation8 + $0x2b8] sm:$0xff] }
 0x162   : > { %v7192_v13 = vld [vmem:[%s6994_s23 + $0xb0] sm:$0xff]  ;;  %v7196_v14 = vld [vmem:[%s6994_s23 + $0xc8] sm:$0xff]  ;;  %v1377_v30 = vld [vmem:[#allocation8 + $0x2d8] sm:$0xff] }
 0x163   : > { %5321 = vmatpush1.bf16.msra.mxu0 %v5320_v60  ;;  %v1356_v60 = vld [vmem:[#allocation8 + $0x230] sm:$0xff]  ;;  %v1708_v32 = vld [vmem:[#allocation8 + $0x3d8] sm:$0xff] }
 0x164   : > { %5369 = vmatpush1.bf16.msra.mxu1 %v5368_v61  ;;  %5322 = vmatprep.subr.bf16.mxu0 %v9089_v0  ;;  %v1357_v61 = vld [vmem:[#allocation8 + $0x238] sm:$0xff]  ;;  %v1376_v29 = vld [vmem:[#allocation8 + $0x2d0] sm:$0xff] }
 0x165   : > { %5370 = vmatprep.subr.bf16.mxu1 %v9089_v0  ;;  %v1707_v31 = vld [vmem:[#allocation8 + $0x3d0] sm:$0xff]  ;;  %v5428_v37 = vpack.c.bf16 %v1377_v30, %v1376_v29  ;;  %v7314_v29 = vld [vmem:[%s6994_s23 + $0x160] sm:$0xff]  ;;  %v7318_v30 = vld [vmem:[%s6994_s23 + $0x178] sm:$0xff] }
 0x166   : > { %v5476_v38 = vpack.c.bf16 %v1708_v32, %v1707_v31  ;;  %v7324_v31 = vld [vmem:[%s6994_s23 + $0x170] sm:$0xff]  ;;  %v7328_v32 = vld [vmem:[%s6994_s23 + $0x188] sm:$0xff] }
 0x167   : > { %5324 = vmatpush1.bf16.msra.mxu0 %v5323_v3  ;;  %v5398_v3 = vpack.c.bf16 %v1357_v61, %v1356_v60  ;;  %v1370_v60 = vld [vmem:[#allocation8 + $0x2a0] sm:$0xff]  ;;  %v1371_v61 = vld [vmem:[#allocation8 + $0x2a8] sm:$0xff] }
 0x168   : > { %5372 = vmatpush1.bf16.msra.mxu1 %v5371_v4  ;;  %5325 = vmatprep.subr.bf16.mxu0 %v9089_v0  ;;  %v5446_v4 = vpack.c.bf16 %v1688_v63, %v1687_v62  ;;  %v1701_v62 = vld [vmem:[#allocation8 + $0x3a0] sm:$0xff]  ;;  %v1702_v63 = vld [vmem:[#allocation8 + $0x3a8] sm:$0xff]  ;;  %v5419_v5 = vpack.c.bf16 %v1371_v61, %v1370_v60  ;;  %v1711_v60 = vld [vmem:[#allocation8 + $0x3f0] sm:$0xff] }
 0x169   : > { %5373 = vmatprep.subr.bf16.mxu1 %v9089_v0  ;;  %v5467_v6 = vpack.c.bf16 %v1702_v63, %v1701_v62  ;;  %v1712_v61 = vld [vmem:[#allocation8 + $0x3f8] sm:$0xff]  ;;  %v7240_v62 = vld [vmem:[%s6994_s23 + $0xf0] sm:$0xff]  ;;  %v7244_v63 = vld [vmem:[%s6994_s23 + $0x108] sm:$0xff] }
 0x16b   : > { %5327 = vmatpush1.bf16.msra.mxu0 %v5326_v9  ;;  %v7108_v9 = vld [vmem:[%s6994_s23 + $0x40] sm:$0xff] }
 0x16c   : > { %5375 = vmatpush1.bf16.msra.mxu1 %v5374_v10  ;;  %5328 = vmatprep.subr.bf16.mxu0 %v9089_v0  ;;  %v7112_v10 = vld [vmem:[%s6994_s23 + $0x58] sm:$0xff] }
 0x16d   : > { %5376 = vmatprep.subr.bf16.mxu1 %v9089_v0 }
 0x16f   : > { %5330 = vmatpush1.bf16.msra.mxu0 %v5329_v15  ;;  %v1691_v15 = vld [vmem:[#allocation8 + $0x350] sm:$0xff] }
 0x170   : > { %5378 = vmatpush1.bf16.msra.mxu1 %v5377_v16  ;;  %5331 = vmatprep.subr.bf16.mxu0 %v9089_v0  ;;  %v1692_v16 = vld [vmem:[#allocation8 + $0x358] sm:$0xff] }
 0x171   : > { %5379 = vmatprep.subr.bf16.mxu1 %v9089_v0  ;;  %v5452_v20 = vpack.c.bf16 %v1692_v16, %v1691_v15  ;;  %v5422_v15 = vpack.c.bf16 %v1373_v8, %v1372_v7  ;;  %v7252_v7 = vld [vmem:[%s6994_s23 + $0x100] sm:$0xff]  ;;  %v7256_v8 = vld [vmem:[%s6994_s23 + $0x118] sm:$0xff] }
 0x173   : > { %5333 = vmatpush1.bf16.msra.mxu0 %v5332_v21  ;;  %v1362_v21 = vld [vmem:[#allocation8 + $0x260] sm:$0xff] }
 0x174   : > { %5381 = vmatpush1.bf16.msra.mxu1 %v5380_v22  ;;  %5334 = vmatprep.subr.bf16.mxu0 %v9089_v0  ;;  %v1363_v22 = vld [vmem:[#allocation8 + $0x268] sm:$0xff] }
 0x175   : > { %5382 = vmatprep.subr.bf16.mxu1 %v9089_v0 }
 0x177   : > { %5336 = vmatpush1.bf16.msra.mxu0 %v5335_v27  ;;  %v5407_v27 = vpack.c.bf16 %v1363_v22, %v1362_v21  ;;  %v1705_v21 = vld [vmem:[#allocation8 + $0x3c0] sm:$0xff]  ;;  %v1706_v22 = vld [vmem:[#allocation8 + $0x3c8] sm:$0xff] }
 0x178   : > { %5384 = vmatpush1.bf16.msra.mxu1 %v5383_v28  ;;  %5337 = vmatprep.subr.bf16.mxu0 %v9089_v0  ;;  %v5455_v28 = vpack.c.bf16 %v1694_v24, %v1693_v23  ;;  %v7204_v23 = vld [vmem:[%s6994_s23 + $0xc0] sm:$0xff]  ;;  %v7208_v24 = vld [vmem:[%s6994_s23 + $0xd8] sm:$0xff] }
 0x179   : > { %5385 = vmatprep.subr.bf16.mxu1 %v9089_v0 }
 0x17b   : > { %5339 = vmatpush1.bf16.msra.mxu0 %v5338_v33  ;;  %v7144_v33 = vld [vmem:[%s6994_s23 + $0x70] sm:$0xff] }
 0x17c   : > { %5387 = vmatpush1.bf16.msra.mxu1 %v5386_v34  ;;  %5388 = vmatprep.subr.bf16.mxu0 %v9089_v0  ;;  %v7148_v34 = vld [vmem:[%s6994_s23 + $0x88] sm:$0xff] }
 0x17d   : > { %5436 = vmatprep.subr.bf16.mxu1 %v9089_v0 }
 0x17e   : > { %794 = vmatmul.mubr.f32.vlgmr.msra.gmra.mrb[0].mxu0 %v7061_v39 }
 0x17f   : > { %1124 = vmatmul.mubr.f32.vlgmr.msra.gmra.mrb[0].mxu1 %v7061_v39  ;;  %5390 = vmatpush1.bf16.msra.mxu0 %v5389_v40  ;;  %v1697_v40 = vld [vmem:[#allocation8 + $0x380] sm:$0xff] }
 0x180   : > { %5438 = vmatpush1.bf16.msra.mxu1 %v5437_v42  ;;  %798 = vmatprep.mubr.f32.mxu0 %v7066_v43  ;;  %v1698_v42 = vld [vmem:[#allocation8 + $0x388] sm:$0xff] }
 0x181   : > { %1128 = vmatprep.mubr.f32.mxu1 %v7066_v43  ;;  %5391 = vmatprep.subr.bf16.mxu0 %v9089_v0  ;;  %v5461_v47 = vpack.c.bf16 %v1698_v42, %v1697_v40  ;;  %v1378_v40 = vld [vmem:[#allocation8 + $0x2e0] sm:$0xff]  ;;  %v1379_v42 = vld [vmem:[#allocation8 + $0x2e8] sm:$0xff] }
 0x182   : > { %799 = vmatmul.mubr.f32.gmra.mrb[2].mxu0 %v7071_v48  ;;  %5439 = vmatprep.subr.bf16.mxu1 %v9089_v0 }
 0x183   : > { %1129 = vmatmul.mubr.f32.gmra.mrb[2].mxu1 %v7071_v48  ;;  %803 = vmatprep.mubr.f32.mxu0 %v7075_v49 }
 0x184   : > { %1133 = vmatprep.mubr.f32.mxu1 %v7075_v49  ;;  %5393 = vmatpush1.bf16.msra.mxu0 %v5392_v50  ;;  %v1368_v50 = vld [vmem:[#allocation8 + $0x290] sm:$0xff] }
 0x185   : > { %5441 = vmatpush1.bf16.msra.mxu1 %v5440_v51  ;;  %5394 = vmatprep.subr.bf16.mxu0 %v9089_v0  ;;  %v1369_v51 = vld [vmem:[#allocation8 + $0x298] sm:$0xff] }
 0x186   : > { %804 = vmatmul.mubr.f32.gmra.mrb[4].mxu0 %v7084_v56  ;;  %5442 = vmatprep.subr.bf16.mxu1 %v9089_v0 }
 0x187   : > { %1134 = vmatmul.mubr.f32.gmra.mrb[4].mxu1 %v7084_v56  ;;  %808 = vmatprep.mubr.f32.mxu0 %v7088_v57 }
 0x188   : > { %1138 = vmatprep.mubr.f32.mxu1 %v7088_v57  ;;  %5396 = vmatpush1.bf16.msra.mxu0 %v5395_v58  ;;  %v5416_v58 = vpack.c.bf16 %v1369_v51, %v1368_v50  ;;  %v7228_v50 = vld [vmem:[%s6994_s23 + $0xe0] sm:$0xff]  ;;  %v7232_v51 = vld [vmem:[%s6994_s23 + $0xf8] sm:$0xff] }
 0x189   : > { %5444 = vmatpush1.bf16.msra.mxu1 %v5443_v59  ;;  %5397 = vmatprep.subr.bf16.mxu0 %v9089_v0  ;;  %v5464_v59 = vpack.c.bf16 %v1700_v53, %v1699_v52  ;;  %v5431_v52 = vpack.c.bf16 %v1379_v42, %v1378_v40  ;;  %v7344_v40 = vld [vmem:[%s6994_s23 + $0x190] sm:$0xff]  ;;  %v7348_v42 = vld [vmem:[%s6994_s23 + $0x1a8] sm:$0xff] }
 0x18a   : > { %809 = vmatmul.mubr.f32.gmra.mrb[6].mxu0 %v7096_v1  ;;  %5445 = vmatprep.subr.bf16.mxu1 %v9089_v0  ;;  %9164 = vst [vmem:[#allocation45_spill] sm:$0xff] %v7348_v42 }
 0x18b   : > { %1139 = vmatmul.mubr.f32.gmra.mrb[6].mxu1 %v7096_v1  ;;  %813 = vmatprep.mubr.f32.mxu0 %v7100_v2 }
 0x18c   : > { %1143 = vmatprep.mubr.f32.mxu1 %v7100_v2  ;;  %5399 = vmatpush1.bf16.msra.mxu0 %v5398_v3  ;;  %v7180_v3 = vld [vmem:[%s6994_s23 + $0xa0] sm:$0xff] }
 0x18d   : > { %5447 = vmatpush1.bf16.msra.mxu1 %v5446_v4  ;;  %5400 = vmatprep.subr.bf16.mxu0 %v9089_v0  ;;  %v7184_v4 = vld [vmem:[%s6994_s23 + $0xb8] sm:$0xff] }
 0x18e   : > { %814 = vmatmul.mubr.f32.gmra.mrb[8].mxu0 %v7108_v9  ;;  %5448 = vmatprep.subr.bf16.mxu1 %v9089_v0 }
 0x18f   : > { %1144 = vmatmul.mubr.f32.gmra.mrb[8].mxu1 %v7108_v9  ;;  %818 = vmatprep.mubr.f32.mxu0 %v7112_v10 }
 0x190   : > { %1148 = vmatprep.mubr.f32.mxu1 %v7112_v10  ;;  %5402 = vmatpush1.bf16.msra.mxu0 %v5401_v11  ;;  %v1703_v11 = vld [vmem:[#allocation8 + $0x3b0] sm:$0xff] }
 0x191   : > { %5450 = vmatpush1.bf16.msra.mxu1 %v5449_v12  ;;  %5403 = vmatprep.subr.bf16.mxu0 %v9089_v0  ;;  %v1704_v12 = vld [vmem:[#allocation8 + $0x3b8] sm:$0xff] }
 0x192   : > { %819 = vmatmul.mubr.f32.gmra.mrb[10].mxu0 %v7120_v17  ;;  %5451 = vmatprep.subr.bf16.mxu1 %v9089_v0  ;;  %v5470_v16 = vpack.c.bf16 %v1704_v12, %v1703_v11  ;;  %v7264_v11 = vld [vmem:[%s6994_s23 + $0x110] sm:$0xff]  ;;  %v7268_v12 = vld [vmem:[%s6994_s23 + $0x128] sm:$0xff] }
 0x193   : > { %1149 = vmatmul.mubr.f32.gmra.mrb[10].mxu1 %v7120_v17  ;;  %823 = vmatprep.mubr.f32.mxu0 %v7124_v18 }
 0x194   : > { %1153 = vmatprep.mubr.f32.mxu1 %v7124_v18  ;;  %5405 = vmatpush1.bf16.msra.mxu0 %v5404_v19  ;;  %v1374_v19 = vld [vmem:[#allocation8 + $0x2c0] sm:$0xff] }
 0x195   : > { %5453 = vmatpush1.bf16.msra.mxu1 %v5452_v20  ;;  %5406 = vmatprep.subr.bf16.mxu0 %v9089_v0  ;;  %v1375_v20 = vld [vmem:[#allocation8 + $0x2c8] sm:$0xff] }
 0x196   : > { %824 = vmatmul.mubr.f32.gmra.mrb[12].mxu0 %v7132_v25  ;;  %5454 = vmatprep.subr.bf16.mxu1 %v9089_v0 }
 0x197   : > { %1154 = vmatmul.mubr.f32.gmra.mrb[12].mxu1 %v7132_v25  ;;  %828 = vmatprep.mubr.f32.mxu0 %v7136_v26 }
 0x198   : > { %1158 = vmatprep.mubr.f32.mxu1 %v7136_v26  ;;  %5408 = vmatpush1.bf16.msra.mxu0 %v5407_v27  ;;  %v5425_v27 = vpack.c.bf16 %v1375_v20, %v1374_v19  ;;  %v7284_v19 = vld [vmem:[%s6994_s23 + $0x130] sm:$0xff]  ;;  %v7288_v20 = vld [vmem:[%s6994_s23 + $0x148] sm:$0xff] }
 0x199   : > { %5456 = vmatpush1.bf16.msra.mxu1 %v5455_v28  ;;  %5409 = vmatprep.subr.bf16.mxu0 %v9089_v0  ;;  %v5473_v28 = vpack.c.bf16 %v1706_v22, %v1705_v21  ;;  %v7294_v21 = vld [vmem:[%s6994_s23 + $0x140] sm:$0xff]  ;;  %v7298_v22 = vld [vmem:[%s6994_s23 + $0x158] sm:$0xff] }
 0x19a   : > { %829 = vmatmul.mubr.f32.gmra.mrb[14].mxu0 %v7144_v33  ;;  %5457 = vmatprep.subr.bf16.mxu1 %v9089_v0 }
 0x19b   : > { %1159 = vmatmul.mubr.f32.gmra.mrb[14].mxu1 %v7144_v33  ;;  %833 = vmatprep.mubr.f32.mxu0 %v7148_v34 }
 0x19c   : > { %1163 = vmatprep.mubr.f32.mxu1 %v7148_v34  ;;  %5411 = vmatpush1.bf16.msra.mxu0 %v5410_v35  ;;  %v7216_v35 = vld [vmem:[%s6994_s23 + $0xd0] sm:$0xff] }
 0x19d   : > { %5459 = vmatpush1.bf16.msra.mxu1 %v5458_v36  ;;  %5412 = vmatprep.subr.bf16.mxu0 %v9089_v0  ;;  %v7220_v36 = vld [vmem:[%s6994_s23 + $0xe8] sm:$0xff] }
 0x19e   : > { %834 = vmatmul.mubr.f32.gmra.mrb[16].mxu0 %v7156_v44  ;;  %5460 = vmatprep.subr.bf16.mxu1 %v9089_v0 }
 0x19f   : > { %1164 = vmatmul.mubr.f32.gmra.mrb[16].mxu1 %v7156_v44  ;;  %838 = vmatprep.mubr.f32.mxu0 %v7160_v45 }
 0x1a0   : > { %1168 = vmatprep.mubr.f32.mxu1 %v7160_v45  ;;  %5414 = vmatpush1.bf16.msra.mxu0 %v5413_v46  ;;  %v1709_v46 = vld [vmem:[#allocation8 + $0x3e0] sm:$0xff] }
 0x1a1   : > { %5462 = vmatpush1.bf16.msra.mxu1 %v5461_v47  ;;  %5415 = vmatprep.subr.bf16.mxu0 %v9089_v0  ;;  %v1710_v47 = vld [vmem:[#allocation8 + $0x3e8] sm:$0xff] }
 0x1a2   : > { %839 = vmatmul.mubr.f32.gmra.mrb[18].mxu0 %v7168_v54  ;;  %5463 = vmatprep.subr.bf16.mxu1 %v9089_v0  ;;  %v5479_v53 = vpack.c.bf16 %v1710_v47, %v1709_v46  ;;  %v7354_v46 = vld [vmem:[%s6994_s23 + $0x1a0] sm:$0xff]  ;;  %v7358_v47 = vld [vmem:[%s6994_s23 + $0x1b8] sm:$0xff] }
 0x1a3   : > { %1169 = vmatmul.mubr.f32.gmra.mrb[18].mxu1 %v7168_v54  ;;  %843 = vmatprep.mubr.f32.mxu0 %v7172_v55  ;;  %9165 = vst [vmem:[#allocation46_spill] sm:$0xff] %v7354_v46  ;;  %9166 = vst [vmem:[#allocation47_spill] sm:$0xff] %v7358_v47 }
 0x1a4   : > { %1173 = vmatprep.mubr.f32.mxu1 %v7172_v55  ;;  %5417 = vmatpush1.bf16.msra.mxu0 %v5416_v58  ;;  %v1380_v58 = vld [vmem:[#allocation8 + $0x2f0] sm:$0xff] }
 0x1a5   : > { %5465 = vmatpush1.bf16.msra.mxu1 %v5464_v59  ;;  %5418 = vmatprep.subr.bf16.mxu0 %v9089_v0  ;;  %v1381_v59 = vld [vmem:[#allocation8 + $0x2f8] sm:$0xff] }
 0x1a6   : > { %844 = vmatmul.mubr.f32.gmra.mrb[20].mxu0 %v7180_v3  ;;  %5466 = vmatprep.subr.bf16.mxu1 %v9089_v0 }
 0x1a7   : > { %1174 = vmatmul.mubr.f32.gmra.mrb[20].mxu1 %v7180_v3  ;;  %848 = vmatprep.mubr.f32.mxu0 %v7184_v4 }
 0x1a8   : > { %1178 = vmatprep.mubr.f32.mxu1 %v7184_v4  ;;  %5420 = vmatpush1.bf16.msra.mxu0 %v5419_v5  ;;  %v5434_v5 = vpack.c.bf16 %v1381_v59, %v1380_v58  ;;  %v7374_v58 = vld [vmem:[%s6994_s23 + $0x1c0] sm:$0xff]  ;;  %v7378_v59 = vld [vmem:[%s6994_s23 + $0x1d8] sm:$0xff] }
 0x1a9   : > { %5468 = vmatpush1.bf16.msra.mxu1 %v5467_v6  ;;  %5421 = vmatprep.subr.bf16.mxu0 %v9089_v0  ;;  %v5482_v6 = vpack.c.bf16 %v1712_v61, %v1711_v60  ;;  %9169 = vst [vmem:[#allocation50_spill] sm:$0xff] %v7374_v58  ;;  %9170 = vst [vmem:[#allocation51_spill] sm:$0xff] %v7378_v59  ;;  %v7384_v60 = vld [vmem:[%s6994_s23 + $0x1d0] sm:$0xff]  ;;  %v7388_v61 = vld [vmem:[%s6994_s23 + $0x1e8] sm:$0xff] }
 0x1aa   : > { %849 = vmatmul.mubr.f32.gmra.mrb[22].mxu0 %v7192_v13  ;;  %5469 = vmatprep.subr.bf16.mxu1 %v9089_v0  ;;  %9171 = vst [vmem:[#allocation52_spill] sm:$0xff] %v7384_v60  ;;  %9172 = vst [vmem:[#allocation53_spill] sm:$0xff] %v7388_v61 }
 0x1ab   : > { %1179 = vmatmul.mubr.f32.gmra.mrb[22].mxu1 %v7192_v13  ;;  %853 = vmatprep.mubr.f32.mxu0 %v7196_v14 }
 0x1ac   : > { %1183 = vmatprep.mubr.f32.mxu1 %v7196_v14  ;;  %5423 = vmatpush1.bf16.msra.mxu0 %v5422_v15  ;;  %v7274_v15 = vld [vmem:[%s6994_s23 + $0x120] sm:$0xff] }
 0x1ad   : > { %5471 = vmatpush1.bf16.msra.mxu1 %v5470_v16  ;;  %5424 = vmatprep.subr.bf16.mxu0 %v9089_v0  ;;  %v7278_v16 = vld [vmem:[%s6994_s23 + $0x138] sm:$0xff] }
 0x1ae   : > { %854 = vmatmul.mubr.f32.gmra.mrb[24].mxu0 %v7204_v23  ;;  %5472 = vmatprep.subr.bf16.mxu1 %v9089_v0 }
 0x1af   : > { %1184 = vmatmul.mubr.f32.gmra.mrb[24].mxu1 %v7204_v23  ;;  %858 = vmatprep.mubr.f32.mxu0 %v7208_v24 }
 0x1b0   : > { %1188 = vmatprep.mubr.f32.mxu1 %v7208_v24  ;;  %5426 = vmatpush1.bf16.msra.mxu0 %v5425_v27  ;;  %v7304_v27 = vld [vmem:[%s6994_s23 + $0x150] sm:$0xff] }
 0x1b1   : > { %5474 = vmatpush1.bf16.msra.mxu1 %v5473_v28  ;;  %5427 = vmatprep.subr.bf16.mxu0 %v9089_v0  ;;  %v7308_v28 = vld [vmem:[%s6994_s23 + $0x168] sm:$0xff] }
 0x1b2   : > { %859 = vmatmul.mubr.f32.gmra.mrb[26].mxu0 %v7216_v35  ;;  %5475 = vmatprep.subr.bf16.mxu1 %v9089_v0 }
 0x1b3   : > { %1189 = vmatmul.mubr.f32.gmra.mrb[26].mxu1 %v7216_v35  ;;  %863 = vmatprep.mubr.f32.mxu0 %v7220_v36 }
 0x1b4   : > { %1193 = vmatprep.mubr.f32.mxu1 %v7220_v36  ;;  %5429 = vmatpush1.bf16.msra.mxu0 %v5428_v37  ;;  %v7334_v37 = vld [vmem:[%s6994_s23 + $0x180] sm:$0xff] }
 0x1b5   : > { %5477 = vmatpush1.bf16.msra.mxu1 %v5476_v38  ;;  %5430 = vmatprep.subr.bf16.mxu0 %v9089_v0  ;;  %v7338_v38 = vld [vmem:[%s6994_s23 + $0x198] sm:$0xff] }
 0x1b6   : > { %864 = vmatmul.mubr.f32.gmra.mrb[28].mxu0 %v7228_v50  ;;  %5478 = vmatprep.subr.bf16.mxu1 %v9089_v0 }
 0x1b7   : > { %1194 = vmatmul.mubr.f32.gmra.mrb[28].mxu1 %v7228_v50  ;;  %868 = vmatprep.mubr.f32.mxu0 %v7232_v51 }
 0x1b8   : > { %1198 = vmatprep.mubr.f32.mxu1 %v7232_v51  ;;  %5432 = vmatpush1.bf16.msra.mxu0 %v5431_v52  ;;  %v7364_v52 = vld [vmem:[%s6994_s23 + $0x1b0] sm:$0xff] }
 0x1b9   : > { %5480 = vmatpush1.bf16.msra.mxu1 %v5479_v53  ;;  %5433 = vmatprep.subr.bf16.mxu0 %v9089_v0  ;;  %9167 = vst [vmem:[#allocation48_spill] sm:$0xff] %v7364_v52  ;;  %v7368_v53 = vld [vmem:[%s6994_s23 + $0x1c8] sm:$0xff] }
 0x1ba   : > { %869 = vmatmul.mubr.f32.gmra.mrb[30].mxu0 %v7240_v62  ;;  %5481 = vmatprep.subr.bf16.mxu1 %v9089_v0  ;;  %9168 = vst [vmem:[#allocation49_spill] sm:$0xff] %v7368_v53 }
 0x1bb   : > { %1199 = vmatmul.mubr.f32.gmra.mrb[30].mxu1 %v7240_v62  ;;  %873 = vmatprep.mubr.f32.mxu0 %v7244_v63 }
 0x1bc   : > { %1203 = vmatprep.mubr.f32.mxu1 %v7244_v63  ;;  %5435 = vmatpush1.bf16.msra.mxu0 %v5434_v5  ;;  %v7394_v5 = vld [vmem:[%s6994_s23 + $0x1e0] sm:$0xff] }
 0x1bd   : > { %5483 = vmatpush1.bf16.msra.mxu1 %v5482_v6  ;;  %5484 = vmatprep.subr.bf16.mxu0 %v9089_v0  ;;  %9173 = vst [vmem:[#allocation54_spill] sm:$0xff] %v7394_v5  ;;  %v7398_v6 = vld [vmem:[%s6994_s23 + $0x1f8] sm:$0xff] }
 0x1be   : > { %874 = vmatmul.mubr.f32.gmra.mrb[32].mxu0 %v7252_v7  ;;  %5532 = vmatprep.subr.bf16.mxu1 %v9089_v0  ;;  %9174 = vst [vmem:[#allocation55_spill] sm:$0xff] %v7398_v6  ;;  %v7404_v0 = vld [vmem:[%s6994_s23 + $0x1f0] sm:$0xff] }
 0x1bf   : > { %1204 = vmatmul.mubr.f32.gmra.mrb[32].mxu1 %v7252_v7  ;;  %878 = vmatprep.mubr.f32.mxu0 %v7256_v8  ;;  %9175 = vst [vmem:[#allocation56_spill] sm:$0xff] %v7404_v0 }
 0x1c0   : > { %1208 = vmatprep.mubr.f32.mxu1 %v7256_v8 }
 0x1c2   : > { %879 = vmatmul.mubr.f32.gmra.mrb[34].mxu0 %v7264_v11 }
 0x1c3   : > { %1209 = vmatmul.mubr.f32.gmra.mrb[34].mxu1 %v7264_v11  ;;  %883 = vmatprep.mubr.f32.mxu0 %v7268_v12 }
 0x1c4   : > { %1213 = vmatprep.mubr.f32.mxu1 %v7268_v12 }
 0x1c6   : > { %884 = vmatmul.mubr.f32.gmra.mrb[36].mxu0 %v7274_v15 }
 0x1c7   : > { %1214 = vmatmul.mubr.f32.gmra.mrb[36].mxu1 %v7274_v15  ;;  %888 = vmatprep.mubr.f32.mxu0 %v7278_v16 }
 0x1c8   : > { %1218 = vmatprep.mubr.f32.mxu1 %v7278_v16 }
 0x1ca   : > { %889 = vmatmul.mubr.f32.gmra.mrb[38].mxu0 %v7284_v19 }
 0x1cb   : > { %1219 = vmatmul.mubr.f32.gmra.mrb[38].mxu1 %v7284_v19  ;;  %893 = vmatprep.mubr.f32.mxu0 %v7288_v20 }
 0x1cc   : > { %1223 = vmatprep.mubr.f32.mxu1 %v7288_v20 }
 0x1ce   : > { %894 = vmatmul.mubr.f32.gmra.mrb[40].mxu0 %v7294_v21 }
 0x1cf   : > { %1224 = vmatmul.mubr.f32.gmra.mrb[40].mxu1 %v7294_v21  ;;  %898 = vmatprep.mubr.f32.mxu0 %v7298_v22 }
 0x1d0   : > { %1228 = vmatprep.mubr.f32.mxu1 %v7298_v22 }
 0x1d2   : > { %899 = vmatmul.mubr.f32.gmra.mrb[42].mxu0 %v7304_v27 }
 0x1d3   : > { %1229 = vmatmul.mubr.f32.gmra.mrb[42].mxu1 %v7304_v27  ;;  %903 = vmatprep.mubr.f32.mxu0 %v7308_v28 }
 0x1d4   : > { %1233 = vmatprep.mubr.f32.mxu1 %v7308_v28 }
 0x1d6   : > { %904 = vmatmul.mubr.f32.gmra.mrb[44].mxu0 %v7314_v29 }
 0x1d7   : > { %1234 = vmatmul.mubr.f32.gmra.mrb[44].mxu1 %v7314_v29  ;;  %908 = vmatprep.mubr.f32.mxu0 %v7318_v30 }
 0x1d8   : > { %1238 = vmatprep.mubr.f32.mxu1 %v7318_v30 }
 0x1da   : > { %909 = vmatmul.mubr.f32.gmra.mrb[46].mxu0 %v7324_v31 }
 0x1db   : > { %1239 = vmatmul.mubr.f32.gmra.mrb[46].mxu1 %v7324_v31  ;;  %913 = vmatprep.mubr.f32.mxu0 %v7328_v32 }
 0x1dc   : > { %1243 = vmatprep.mubr.f32.mxu1 %v7328_v32 }
 0x1de   : > { %914 = vmatmul.mubr.f32.gmra.mrb[48].mxu0 %v7334_v37 }
 0x1df   : > { %1244 = vmatmul.mubr.f32.gmra.mrb[48].mxu1 %v7334_v37  ;;  %918 = vmatprep.mubr.f32.mxu0 %v7338_v38 }
 0x1e0   : > { %1248 = vmatprep.mubr.f32.mxu1 %v7338_v38 }
 0x1e2   : > { %919 = vmatmul.mubr.f32.gmra.mrb[50].mxu0 %v7344_v40 }
 0x1e3   : > { %1249 = vmatmul.mubr.f32.gmra.mrb[50].mxu1 %v7344_v40  ;;  %923 = vmatprep.mubr.f32.mxu0 %v7348_v42 }
 0x1e4   : > { %1253 = vmatprep.mubr.f32.mxu1 %v7348_v42 }
 0x1e6   : > { %924 = vmatmul.mubr.f32.gmra.mrb[52].mxu0 %v7354_v46 }
 0x1e7   : > { %1254 = vmatmul.mubr.f32.gmra.mrb[52].mxu1 %v7354_v46  ;;  %928 = vmatprep.mubr.f32.mxu0 %v7358_v47  ;;  %v2374_v46 = vld [vmem:[#allocation11 + $0x110] sm:$0xff] }
 0x1e8   : > { %1258 = vmatprep.mubr.f32.mxu1 %v7358_v47  ;;  %v2078_v47 = vld [vmem:[#allocation11 + $0x18] sm:$0xff] }
 0x1ea   : > { %929 = vmatmul.mubr.f32.gmra.mrb[54].mxu0 %v7364_v52 }
 0x1eb   : > { %1259 = vmatmul.mubr.f32.gmra.mrb[54].mxu1 %v7364_v52  ;;  %933 = vmatprep.mubr.f32.mxu0 %v7368_v53  ;;  %v2077_v52 = vld [vmem:[#allocation11 + $0x10] sm:$0xff] }
 0x1ec   : > { %1263 = vmatprep.mubr.f32.mxu1 %v7368_v53  ;;  %v2373_v53 = vld [vmem:[#allocation11 + $0x108] sm:$0xff]  ;;  %v5488_v42 = vpack.c.bf16 %v2078_v47, %v2077_v52  ;;  %v2082_v47 = vld [vmem:[#allocation11 + $0x38] sm:$0xff]  ;;  %v2378_v52 = vld [vmem:[#allocation11 + $0x130] sm:$0xff] }
 0x1ee   : > { %934 = vmatmul.mubr.f32.gmra.mrb[56].mxu0 %v7374_v58 }
 0x1ef   : > { %1264 = vmatmul.mubr.f32.gmra.mrb[56].mxu1 %v7374_v58  ;;  %938 = vmatprep.mubr.f32.mxu0 %v7378_v59  ;;  %v2372_v58 = vld [vmem:[#allocation11 + $0x100] sm:$0xff] }
 0x1f0   : > { %1268 = vmatprep.mubr.f32.mxu1 %v7378_v59  ;;  %v2075_v59 = vld [vmem:[#allocation11] sm:$0xff] }
 0x1f2   : > { %939 = vmatmul.mubr.f32.gmra.mrb[58].mxu0 %v7384_v60 }
 0x1f3   : > { %1269 = vmatmul.mubr.f32.gmra.mrb[58].mxu1 %v7384_v60  ;;  %943 = vmatprep.mubr.f32.mxu0 %v7388_v61  ;;  %v2076_v60 = vld [vmem:[#allocation11 + $0x8] sm:$0xff] }
 0x1f4   : > { %1273 = vmatprep.mubr.f32.mxu1 %v7388_v61  ;;  %v5485_v61 = vpack.c.bf16 %v2076_v60, %v2075_v59  ;;  %v2377_v60 = vld [vmem:[#allocation11 + $0x128] sm:$0xff] }
 0x1f6   : > { %944 = vmatmul.mubr.f32.gmra.mrb[60].mxu0 %v7394_v5 }
 0x1f7   : > { %1274 = vmatmul.mubr.f32.gmra.mrb[60].mxu1 %v7394_v5  ;;  %948 = vmatprep.mubr.f32.mxu0 %v7398_v6  ;;  %v5533_v5 = vpack.c.bf16 %v2373_v53, %v2372_v58  ;;  %v2080_v53 = vld [vmem:[#allocation11 + $0x28] sm:$0xff]  ;;  %v2376_v58 = vld [vmem:[#allocation11 + $0x120] sm:$0xff] }
 0x1f8   : > { %1278 = vmatprep.mubr.f32.mxu1 %v7398_v6  ;;  %v2375_v6 = vld [vmem:[#allocation11 + $0x118] sm:$0xff] }
 0x1f9   : > { %v5536_v59 = vpack.c.bf16 %v2375_v6, %v2374_v46  ;;  %v2081_v46 = vld [vmem:[#allocation11 + $0x30] sm:$0xff]  ;;  %v2380_v6 = vld [vmem:[#allocation11 + $0x140] sm:$0xff] }
 0x1fa   : > { %949 = vmatmul.mubr.f32.gmra.mrb[62].mxu0 %v7404_v0 }
 0x1fb   : > { %1279 = vmatmul.mubr.f32.gmra.mrb[62].mxu1 %v7404_v0  ;;  %1454 = vmatprep.mubr.f32.mxu0 %v7036_v41  ;;  %v9176_v0 = vmov 0.0|0.0  }
 0x1fc   : > { %1785 = vmatprep.mubr.f32.mxu1 %v7036_v41  ;;  %v2079_v41 = vld [vmem:[#allocation11 + $0x20] sm:$0xff] }
 0x1fe   : > { %1455 = vmatmul.mubr.f32.vlgmr.msra.gmra.mrb[64].mxu0 %v7061_v39 }
 0x1ff   : > { %1786 = vmatmul.mubr.f32.vlgmr.msra.gmra.mrb[64].mxu1 %v7061_v39  ;;  %5486 = vmatpush1.bf16.msra.mxu0 %v5485_v61  ;;  %v5491_v39 = vpack.c.bf16 %v2080_v53, %v2079_v41  ;;  %v2379_v61 = vld [vmem:[#allocation11 + $0x138] sm:$0xff]  ;;  %v2085_v41 = vld [vmem:[#allocation11 + $0x50] sm:$0xff] }
 0x200   : > { %5534 = vmatpush1.bf16.msra.mxu1 %v5533_v5  ;;  %1459 = vmatprep.mubr.f32.mxu0 %v7066_v43  ;;  %v2084_v5 = vld [vmem:[#allocation11 + $0x48] sm:$0xff]  ;;  %v2086_v53 = vld [vmem:[#allocation11 + $0x58] sm:$0xff] }
 0x201   : > { %1790 = vmatprep.mubr.f32.mxu1 %v7066_v43  ;;  %5487 = vmatprep.subr.bf16.mxu0 %v9176_v0  ;;  %v5539_v43 = vpack.c.bf16 %v2377_v60, %v2376_v58  ;;  %v2382_v58 = vld [vmem:[#allocation11 + $0x150] sm:$0xff]  ;;  %v2383_v60 = vld [vmem:[#allocation11 + $0x158] sm:$0xff] }
 0x202   : > { %1460 = vmatmul.mubr.f32.gmra.mrb[66].mxu0 %v7071_v48  ;;  %5535 = vmatprep.subr.bf16.mxu1 %v9176_v0 }
 0x203   : > { %1791 = vmatmul.mubr.f32.gmra.mrb[66].mxu1 %v7071_v48  ;;  %1464 = vmatprep.mubr.f32.mxu0 %v7075_v49  ;;  %v5494_v48 = vpack.c.bf16 %v2082_v47, %v2081_v46  ;;  %v2384_v46 = vld [vmem:[#allocation11 + $0x160] sm:$0xff]  ;;  %v2385_v47 = vld [vmem:[#allocation11 + $0x168] sm:$0xff] }
 0x204   : > { %1795 = vmatprep.mubr.f32.mxu1 %v7075_v49  ;;  %5489 = vmatpush1.bf16.msra.mxu0 %v5488_v42  ;;  %v5542_v49 = vpack.c.bf16 %v2379_v61, %v2378_v52  ;;  %v2083_v42 = vld [vmem:[#allocation11 + $0x40] sm:$0xff]  ;;  %v2089_v52 = vld [vmem:[#allocation11 + $0x70] sm:$0xff]  ;;  %v2090_v61 = vld [vmem:[#allocation11 + $0x78] sm:$0xff] }
 0x205   : > { %5537 = vmatpush1.bf16.msra.mxu1 %v5536_v59  ;;  %5490 = vmatprep.subr.bf16.mxu0 %v9176_v0  ;;  %v2381_v59 = vld [vmem:[#allocation11 + $0x148] sm:$0xff] }
 0x206   : > { %1465 = vmatmul.mubr.f32.gmra.mrb[68].mxu0 %v7084_v56  ;;  %5538 = vmatprep.subr.bf16.mxu1 %v9176_v0 }
 0x207   : > { %1796 = vmatmul.mubr.f32.gmra.mrb[68].mxu1 %v7084_v56  ;;  %1469 = vmatprep.mubr.f32.mxu0 %v7088_v57  ;;  %v5497_v56 = vpack.c.bf16 %v2084_v5, %v2083_v42  ;;  %v2091_v42 = vld [vmem:[#allocation11 + $0x80] sm:$0xff]  ;;  %v2092_v5 = vld [vmem:[#allocation11 + $0x88] sm:$0xff] }
 0x208   : > { %1800 = vmatprep.mubr.f32.mxu1 %v7088_v57  ;;  %5492 = vmatpush1.bf16.msra.mxu0 %v5491_v39  ;;  %v5545_v57 = vpack.c.bf16 %v2381_v59, %v2380_v6  ;;  %v2087_v39 = vld [vmem:[#allocation11 + $0x60] sm:$0xff]  ;;  %v2389_v59 = vld [vmem:[#allocation11 + $0x188] sm:$0xff] }
 0x209   : > { %5540 = vmatpush1.bf16.msra.mxu1 %v5539_v43  ;;  %5493 = vmatprep.subr.bf16.mxu0 %v9176_v0  ;;  %v2088_v43 = vld [vmem:[#allocation11 + $0x68] sm:$0xff]  ;;  %v2388_v6 = vld [vmem:[#allocation11 + $0x180] sm:$0xff] }
 0x20a   : > { %1470 = vmatmul.mubr.f32.gmra.mrb[70].mxu0 %v7096_v1  ;;  %5541 = vmatprep.subr.bf16.mxu1 %v9176_v0 }
 0x20b   : > { %1801 = vmatmul.mubr.f32.gmra.mrb[70].mxu1 %v7096_v1  ;;  %1474 = vmatprep.mubr.f32.mxu0 %v7100_v2  ;;  %v5500_v1 = vpack.c.bf16 %v2086_v53, %v2085_v41  ;;  %v2390_v41 = vld [vmem:[#allocation11 + $0x190] sm:$0xff]  ;;  %v2391_v53 = vld [vmem:[#allocation11 + $0x198] sm:$0xff] }
 0x20c   : > { %1805 = vmatprep.mubr.f32.mxu1 %v7100_v2  ;;  %5495 = vmatpush1.bf16.msra.mxu0 %v5494_v48  ;;  %v5548_v2 = vpack.c.bf16 %v2383_v60, %v2382_v58  ;;  %v2386_v48 = vld [vmem:[#allocation11 + $0x170] sm:$0xff]  ;;  %v2095_v58 = vld [vmem:[#allocation11 + $0xa0] sm:$0xff]  ;;  %v2096_v60 = vld [vmem:[#allocation11 + $0xa8] sm:$0xff] }
 0x20d   : > { %5543 = vmatpush1.bf16.msra.mxu1 %v5542_v49  ;;  %5496 = vmatprep.subr.bf16.mxu0 %v9176_v0  ;;  %v2387_v49 = vld [vmem:[#allocation11 + $0x178] sm:$0xff] }
 0x20e   : > { %1475 = vmatmul.mubr.f32.gmra.mrb[72].mxu0 %v7108_v9  ;;  %5544 = vmatprep.subr.bf16.mxu1 %v9176_v0 }
 0x20f   : > { %1806 = vmatmul.mubr.f32.gmra.mrb[72].mxu1 %v7108_v9  ;;  %1479 = vmatprep.mubr.f32.mxu0 %v7112_v10  ;;  %v5503_v9 = vpack.c.bf16 %v2088_v43, %v2087_v39  ;;  %v2097_v39 = vld [vmem:[#allocation11 + $0xb0] sm:$0xff]  ;;  %v2098_v43 = vld [vmem:[#allocation11 + $0xb8] sm:$0xff] }
 0x210   : > { %1810 = vmatprep.mubr.f32.mxu1 %v7112_v10  ;;  %5498 = vmatpush1.bf16.msra.mxu0 %v5497_v56  ;;  %v5551_v10 = vpack.c.bf16 %v2385_v47, %v2384_v46  ;;  %v2093_v56 = vld [vmem:[#allocation11 + $0x90] sm:$0xff]  ;;  %v2395_v47 = vld [vmem:[#allocation11 + $0x1b8] sm:$0xff] }
 0x211   : > { %5546 = vmatpush1.bf16.msra.mxu1 %v5545_v57  ;;  %5499 = vmatprep.subr.bf16.mxu0 %v9176_v0  ;;  %v2094_v57 = vld [vmem:[#allocation11 + $0x98] sm:$0xff]  ;;  %v2394_v46 = vld [vmem:[#allocation11 + $0x1b0] sm:$0xff] }
 0x212   : > { %1480 = vmatmul.mubr.f32.gmra.mrb[74].mxu0 %v7120_v17  ;;  %5547 = vmatprep.subr.bf16.mxu1 %v9176_v0 }
 0x213   : > { %1811 = vmatmul.mubr.f32.gmra.mrb[74].mxu1 %v7120_v17  ;;  %1484 = vmatprep.mubr.f32.mxu0 %v7124_v18  ;;  %v5506_v17 = vpack.c.bf16 %v2090_v61, %v2089_v52  ;;  %v2396_v52 = vld [vmem:[#allocation11 + $0x1c0] sm:$0xff]  ;;  %v2397_v61 = vld [vmem:[#allocation11 + $0x1c8] sm:$0xff] }
 0x214   : > { %1815 = vmatprep.mubr.f32.mxu1 %v7124_v18  ;;  %5501 = vmatpush1.bf16.msra.mxu0 %v5500_v1  ;;  %v5554_v18 = vpack.c.bf16 %v2387_v49, %v2386_v48  ;;  %v2392_v1 = vld [vmem:[#allocation11 + $0x1a0] sm:$0xff]  ;;  %v2101_v48 = vld [vmem:[#allocation11 + $0xd0] sm:$0xff]  ;;  %v2102_v49 = vld [vmem:[#allocation11 + $0xd8] sm:$0xff] }
 0x215   : > { %5549 = vmatpush1.bf16.msra.mxu1 %v5548_v2  ;;  %5502 = vmatprep.subr.bf16.mxu0 %v9176_v0  ;;  %v2393_v2 = vld [vmem:[#allocation11 + $0x1a8] sm:$0xff] }
 0x216   : > { %1485 = vmatmul.mubr.f32.gmra.mrb[76].mxu0 %v7132_v25  ;;  %5550 = vmatprep.subr.bf16.mxu1 %v9176_v0 }
 0x217   : > { %1816 = vmatmul.mubr.f32.gmra.mrb[76].mxu1 %v7132_v25  ;;  %1489 = vmatprep.mubr.f32.mxu0 %v7136_v26  ;;  %v5509_v25 = vpack.c.bf16 %v2092_v5, %v2091_v42  ;;  %v2103_v42 = vld [vmem:[#allocation11 + $0xe0] sm:$0xff]  ;;  %v2104_v5 = vld [vmem:[#allocation11 + $0xe8] sm:$0xff] }
 0x218   : > { %1820 = vmatprep.mubr.f32.mxu1 %v7136_v26  ;;  %5504 = vmatpush1.bf16.msra.mxu0 %v5503_v9  ;;  %v5557_v26 = vpack.c.bf16 %v2389_v59, %v2388_v6  ;;  %v2099_v9 = vld [vmem:[#allocation11 + $0xc0] sm:$0xff]  ;;  %v2401_v59 = vld [vmem:[#allocation11 + $0x1e8] sm:$0xff] }
 0x219   : > { %5552 = vmatpush1.bf16.msra.mxu1 %v5551_v10  ;;  %5505 = vmatprep.subr.bf16.mxu0 %v9176_v0  ;;  %v2100_v10 = vld [vmem:[#allocation11 + $0xc8] sm:$0xff]  ;;  %v2400_v6 = vld [vmem:[#allocation11 + $0x1e0] sm:$0xff] }
 0x21a   : > { %1490 = vmatmul.mubr.f32.gmra.mrb[78].mxu0 %v7144_v33  ;;  %5553 = vmatprep.subr.bf16.mxu1 %v9176_v0 }
 0x21b   : > { %1821 = vmatmul.mubr.f32.gmra.mrb[78].mxu1 %v7144_v33  ;;  %1494 = vmatprep.mubr.f32.mxu0 %v7148_v34  ;;  %v5512_v33 = vpack.c.bf16 %v2094_v57, %v2093_v56  ;;  %v2402_v56 = vld [vmem:[#allocation11 + $0x1f0] sm:$0xff]  ;;  %v2403_v57 = vld [vmem:[#allocation11 + $0x1f8] sm:$0xff] }
 0x21c   : > { %1825 = vmatprep.mubr.f32.mxu1 %v7148_v34  ;;  %5507 = vmatpush1.bf16.msra.mxu0 %v5506_v17  ;;  %v5560_v34 = vpack.c.bf16 %v2391_v53, %v2390_v41  ;;  %v2398_v17 = vld [vmem:[#allocation11 + $0x1d0] sm:$0xff] }
 0x21d   : > { %5555 = vmatpush1.bf16.msra.mxu1 %v5554_v18  ;;  %5508 = vmatprep.subr.bf16.mxu0 %v9176_v0  ;;  %v2399_v18 = vld [vmem:[#allocation11 + $0x1d8] sm:$0xff] }
 0x21e   : > { %1495 = vmatmul.mubr.f32.gmra.mrb[80].mxu0 %v7156_v44  ;;  %5556 = vmatprep.subr.bf16.mxu1 %v9176_v0 }
 0x21f   : > { %1826 = vmatmul.mubr.f32.gmra.mrb[80].mxu1 %v7156_v44  ;;  %1499 = vmatprep.mubr.f32.mxu0 %v7160_v45  ;;  %v5515_v44 = vpack.c.bf16 %v2096_v60, %v2095_v58 }
 0x220   : > { %1830 = vmatprep.mubr.f32.mxu1 %v7160_v45  ;;  %5510 = vmatpush1.bf16.msra.mxu0 %v5509_v25  ;;  %v5563_v45 = vpack.c.bf16 %v2393_v2, %v2392_v1  ;;  %v2105_v25 = vld [vmem:[#allocation11 + $0xf0] sm:$0xff] }
 0x221   : > { %5558 = vmatpush1.bf16.msra.mxu1 %v5557_v26  ;;  %5511 = vmatprep.subr.bf16.mxu0 %v9176_v0  ;;  %v2106_v26 = vld [vmem:[#allocation11 + $0xf8] sm:$0xff] }
 0x222   : > { %1500 = vmatmul.mubr.f32.gmra.mrb[82].mxu0 %v7168_v54  ;;  %5559 = vmatprep.subr.bf16.mxu1 %v9176_v0 }
 0x223   : > { %1831 = vmatmul.mubr.f32.gmra.mrb[82].mxu1 %v7168_v54  ;;  %1504 = vmatprep.mubr.f32.mxu0 %v7172_v55  ;;  %v5518_v54 = vpack.c.bf16 %v2098_v43, %v2097_v39 }
 0x224   : > { %1835 = vmatprep.mubr.f32.mxu1 %v7172_v55  ;;  %5513 = vmatpush1.bf16.msra.mxu0 %v5512_v33  ;;  %v5566_v55 = vpack.c.bf16 %v2395_v47, %v2394_v46 }
 0x225   : > { %5561 = vmatpush1.bf16.msra.mxu1 %v5560_v34  ;;  %5514 = vmatprep.subr.bf16.mxu0 %v9176_v0 }
 0x226   : > { %1505 = vmatmul.mubr.f32.gmra.mrb[84].mxu0 %v7180_v3  ;;  %5562 = vmatprep.subr.bf16.mxu1 %v9176_v0 }
 0x227   : > { %1836 = vmatmul.mubr.f32.gmra.mrb[84].mxu1 %v7180_v3  ;;  %1509 = vmatprep.mubr.f32.mxu0 %v7184_v4  ;;  %v5521_v3 = vpack.c.bf16 %v2100_v10, %v2099_v9 }
 0x228   : > { %1840 = vmatprep.mubr.f32.mxu1 %v7184_v4  ;;  %5516 = vmatpush1.bf16.msra.mxu0 %v5515_v44  ;;  %v5569_v4 = vpack.c.bf16 %v2397_v61, %v2396_v52  ;;  %v9177_v61 = vld [vmem:[#allocation45_spill] sm:$0xff] }
 0x229   : > { %5564 = vmatpush1.bf16.msra.mxu1 %v5563_v45  ;;  %5517 = vmatprep.subr.bf16.mxu0 %v9176_v0 }
 0x22a   : > { %1510 = vmatmul.mubr.f32.gmra.mrb[86].mxu0 %v7192_v13  ;;  %5565 = vmatprep.subr.bf16.mxu1 %v9176_v0 }
 0x22b   : > { %1841 = vmatmul.mubr.f32.gmra.mrb[86].mxu1 %v7192_v13  ;;  %1514 = vmatprep.mubr.f32.mxu0 %v7196_v14  ;;  %v5524_v13 = vpack.c.bf16 %v2102_v49, %v2101_v48 }
 0x22c   : > { %1845 = vmatprep.mubr.f32.mxu1 %v7196_v14  ;;  %5519 = vmatpush1.bf16.msra.mxu0 %v5518_v54  ;;  %v5572_v14 = vpack.c.bf16 %v2399_v18, %v2398_v17  ;;  %v9178_v18 = vld [vmem:[#allocation46_spill] sm:$0xff] }
 0x22d   : > { %5567 = vmatpush1.bf16.msra.mxu1 %v5566_v55  ;;  %5520 = vmatprep.subr.bf16.mxu0 %v9176_v0 }
 0x22e   : > { %1515 = vmatmul.mubr.f32.gmra.mrb[88].mxu0 %v7204_v23  ;;  %5568 = vmatprep.subr.bf16.mxu1 %v9176_v0 }
 0x22f   : > { %1846 = vmatmul.mubr.f32.gmra.mrb[88].mxu1 %v7204_v23  ;;  %1519 = vmatprep.mubr.f32.mxu0 %v7208_v24  ;;  %v5527_v23 = vpack.c.bf16 %v2104_v5, %v2103_v42 }
 0x230   : > { %1850 = vmatprep.mubr.f32.mxu1 %v7208_v24  ;;  %5522 = vmatpush1.bf16.msra.mxu0 %v5521_v3  ;;  %v5575_v24 = vpack.c.bf16 %v2401_v59, %v2400_v6 }
 0x231   : > { %5570 = vmatpush1.bf16.msra.mxu1 %v5569_v4  ;;  %5523 = vmatprep.subr.bf16.mxu0 %v9176_v0 }
 0x232   : > { %1520 = vmatmul.mubr.f32.gmra.mrb[90].mxu0 %v7216_v35  ;;  %5571 = vmatprep.subr.bf16.mxu1 %v9176_v0 }
 0x233   : > { %1851 = vmatmul.mubr.f32.gmra.mrb[90].mxu1 %v7216_v35  ;;  %1524 = vmatprep.mubr.f32.mxu0 %v7220_v36  ;;  %v5530_v35 = vpack.c.bf16 %v2106_v26, %v2105_v25  ;;  %v9180_v25 = vld [vmem:[#allocation48_spill] sm:$0xff] }
 0x234   : > { %1855 = vmatprep.mubr.f32.mxu1 %v7220_v36  ;;  %5525 = vmatpush1.bf16.msra.mxu0 %v5524_v13  ;;  %v5578_v36 = vpack.c.bf16 %v2403_v57, %v2402_v56  ;;  %v9181_v57 = vld [vmem:[#allocation49_spill] sm:$0xff] }
 0x235   : > { %5573 = vmatpush1.bf16.msra.mxu1 %v5572_v14  ;;  %5526 = vmatprep.subr.bf16.mxu0 %v9176_v0  ;;  %v9179_v14 = vld [vmem:[#allocation47_spill] sm:$0xff] }
 0x236   : > { %1525 = vmatmul.mubr.f32.gmra.mrb[92].mxu0 %v7228_v50  ;;  %5574 = vmatprep.subr.bf16.mxu1 %v9176_v0 }
 0x237   : > { %1856 = vmatmul.mubr.f32.gmra.mrb[92].mxu1 %v7228_v50  ;;  %1529 = vmatprep.mubr.f32.mxu0 %v7232_v51  ;;  %v7525_v50 = vld [vmem:[#allocation10] ss:$0 sm:$0xff] }
 0x238   : > { %1860 = vmatprep.mubr.f32.mxu1 %v7232_v51  ;;  %5528 = vmatpush1.bf16.msra.mxu0 %v5527_v23  ;;  %v7531_v51 = vld [vmem:[#allocation10 + $0x1] ss:$0 sm:$0xff] }
 0x239   : > { %5576 = vmatpush1.bf16.msra.mxu1 %v5575_v24  ;;  %5529 = vmatprep.subr.bf16.mxu0 %v9176_v0 }
 0x23a   : > { %1530 = vmatmul.mubr.f32.gmra.mrb[94].mxu0 %v7240_v62  ;;  %5577 = vmatprep.subr.bf16.mxu1 %v9176_v0 }
 0x23b   : > { %1861 = vmatmul.mubr.f32.gmra.mrb[94].mxu1 %v7240_v62  ;;  %1534 = vmatprep.mubr.f32.mxu0 %v7244_v63 }
 0x23c   : > { %1865 = vmatprep.mubr.f32.mxu1 %v7244_v63  ;;  %5531 = vmatpush1.bf16.msra.mxu0 %v5530_v35 }
 0x23d   : > { %5579 = vmatpush1.bf16.msra.mxu1 %v5578_v36  ;;  %5580 = vmatprep.subr.bf16.mxu0 %v9176_v0 }
 0x23e   : > { %1535 = vmatmul.mubr.f32.gmra.mrb[96].mxu0 %v7252_v7  ;;  %5628 = vmatprep.subr.bf16.mxu1 %v9176_v0 }
 0x23f   : > { %1866 = vmatmul.mubr.f32.gmra.mrb[96].mxu1 %v7252_v7  ;;  %1539 = vmatprep.mubr.f32.mxu0 %v7256_v8 }
 0x240   : > { %1870 = vmatprep.mubr.f32.mxu1 %v7256_v8 }
 0x242   : > { %1540 = vmatmul.mubr.f32.gmra.mrb[98].mxu0 %v7264_v11 }
 0x243   : > { %1871 = vmatmul.mubr.f32.gmra.mrb[98].mxu1 %v7264_v11  ;;  %1544 = vmatprep.mubr.f32.mxu0 %v7268_v12 }
 0x244   : > { %1875 = vmatprep.mubr.f32.mxu1 %v7268_v12 }
 0x246   : > { %1545 = vmatmul.mubr.f32.gmra.mrb[100].mxu0 %v7274_v15 }
 0x247   : > { %1876 = vmatmul.mubr.f32.gmra.mrb[100].mxu1 %v7274_v15  ;;  %1549 = vmatprep.mubr.f32.mxu0 %v7278_v16 }
 0x248   : > { %1880 = vmatprep.mubr.f32.mxu1 %v7278_v16 }
 0x24a   : > { %1550 = vmatmul.mubr.f32.gmra.mrb[102].mxu0 %v7284_v19 }
 0x24b   : > { %1881 = vmatmul.mubr.f32.gmra.mrb[102].mxu1 %v7284_v19  ;;  %1554 = vmatprep.mubr.f32.mxu0 %v7288_v20 }
 0x24c   : > { %1885 = vmatprep.mubr.f32.mxu1 %v7288_v20 }
 0x24e   : > { %1555 = vmatmul.mubr.f32.gmra.mrb[104].mxu0 %v7294_v21 }
 0x24f   : > { %1886 = vmatmul.mubr.f32.gmra.mrb[104].mxu1 %v7294_v21  ;;  %1559 = vmatprep.mubr.f32.mxu0 %v7298_v22 }
 0x250   : > { %1890 = vmatprep.mubr.f32.mxu1 %v7298_v22 }
 0x251   : > { %v795_v62 = vpop.f32.mrb[0].mxu0 }
 0x252   : > { %v796_v63 = vadd.f32 %v7525_v50, %v795_v62  ;;  %v1125_v7 = vpop.f32.mrb[0].mxu1  ;;  %v797_v8 = vpop.f32.mrb[1].mxu0  ;;  %1560 = vmatmul.mubr.f32.gmra.mrb[106].mxu0 %v7304_v27 }
 0x253   : > { %v1126_v11 = vadd.f32 %v7531_v51, %v1125_v7  ;;  %v1127_v12 = vpop.f32.mrb[1].mxu1  ;;  %1891 = vmatmul.mubr.f32.gmra.mrb[106].mxu1 %v7304_v27  ;;  %1564 = vmatprep.mubr.f32.mxu0 %v7308_v28 }
 0x254   : > { %v954_v15 = vmul.f32 0.18033688, %v796_v63  ;;  %1895 = vmatprep.mubr.f32.mxu1 %v7308_v28 }
 0x255   : > { %v1284_v16 = vmul.f32 0.18033688, %v1126_v11  ;;  %v800_v19 = vpop.f32.mrb[2].mxu0  ;;  %v9182_v11 = vld [vmem:[#allocation50_spill] sm:$0xff] }
 0x256   : > { %986 = vst [vmem:[%s7541_s2] sm:$0xff] %v954_v15  ;;  %v801_v20 = vadd.f32 %v7525_v50, %v800_v19  ;;  %v1130_v21 = vpop.f32.mrb[2].mxu1  ;;  %v802_v22 = vpop.f32.mrb[3].mxu0  ;;  %1565 = vmatmul.mubr.f32.gmra.mrb[108].mxu0 %v7314_v29 }
 0x257   : > { %4977 = vst [vmem:[%s7541_s2 + $0x100] sm:$0xff] %v1284_v16  ;;  %v1131_v27 = vadd.f32 %v7531_v51, %v1130_v21  ;;  %v1132_v41 = vpop.f32.mrb[3].mxu1  ;;  %1896 = vmatmul.mubr.f32.gmra.mrb[108].mxu1 %v7314_v29  ;;  %1569 = vmatprep.mubr.f32.mxu0 %v7318_v30  ;;  %v9183_v16 = vld [vmem:[#allocation51_spill] sm:$0xff] }
 0x258   : > { %v955_v28 = vmul.f32 0.18033688, %v801_v20  ;;  %1900 = vmatprep.mubr.f32.mxu1 %v7318_v30 }
 0x259   : > { %v1285_v53 = vmul.f32 0.18033688, %v1131_v27  ;;  %v805_v33 = vpop.f32.mrb[4].mxu0 }
 0x25a   : > { %987 = vst [vmem:[%s7541_s2 + $0x8] sm:$0xff] %v955_v28  ;;  %v806_v34 = vadd.f32 %v7525_v50, %v805_v33  ;;  %v1135_v58 = vpop.f32.mrb[4].mxu1  ;;  %v807_v60 = vpop.f32.mrb[5].mxu0  ;;  %1570 = vmatmul.mubr.f32.gmra.mrb[110].mxu0 %v7324_v31  ;;  %v9184_v28 = vld [vmem:[#allocation52_spill] sm:$0xff] }
 0x25b   : > { %4978 = vst [vmem:[%s7541_s2 + $0x108] sm:$0xff] %v1285_v53  ;;  %v1136_v1 = vadd.f32 %v7531_v51, %v1135_v58  ;;  %v1137_v29 = vpop.f32.mrb[5].mxu1  ;;  %1901 = vmatmul.mubr.f32.gmra.mrb[110].mxu1 %v7324_v31  ;;  %1574 = vmatprep.mubr.f32.mxu0 %v7328_v32 }
 0x25c   : > { %v956_v30 = vmul.f32 0.18033688, %v806_v34  ;;  %1905 = vmatprep.mubr.f32.mxu1 %v7328_v32  ;;  %v9185_v34 = vld [vmem:[#allocation53_spill] sm:$0xff] }
 0x25d   : > { %v1286_v2 = vmul.f32 0.18033688, %v1136_v1  ;;  %v810_v44 = vpop.f32.mrb[6].mxu0 }
 0x25e   : > { %988 = vst [vmem:[%s7541_s2 + $0x10] sm:$0xff] %v956_v30  ;;  %v811_v45 = vadd.f32 %v7525_v50, %v810_v44  ;;  %v1140_v39 = vpop.f32.mrb[6].mxu1  ;;  %v812_v43 = vpop.f32.mrb[7].mxu0  ;;  %1575 = vmatmul.mubr.f32.gmra.mrb[112].mxu0 %v7334_v37  ;;  %v9186_v44 = vld [vmem:[#allocation54_spill] sm:$0xff] }
 0x25f   : > { %4979 = vst [vmem:[%s7541_s2 + $0x110] sm:$0xff] %v1286_v2  ;;  %v1141_v46 = vadd.f32 %v7531_v51, %v1140_v39  ;;  %v1142_v31 = vpop.f32.mrb[7].mxu1  ;;  %1906 = vmatmul.mubr.f32.gmra.mrb[112].mxu1 %v7334_v37  ;;  %1579 = vmatprep.mubr.f32.mxu0 %v7338_v38  ;;  %v9187_v43 = vld [vmem:[#allocation55_spill] sm:$0xff] }
 0x260   : > { %v957_v32 = vmul.f32 0.18033688, %v811_v45  ;;  %1910 = vmatprep.mubr.f32.mxu1 %v7338_v38  ;;  %v2012_v31 = vld [vmem:[%s7003_s28 + $0x8] sm:$0xff] }
 0x261   : > { %v1287_v47 = vmul.f32 0.18033688, %v1141_v46  ;;  %v815_v54 = vpop.f32.mrb[8].mxu0 }
 0x262   : > { %989 = vst [vmem:[%s7541_s2 + $0x18] sm:$0xff] %v957_v32  ;;  %v816_v55 = vadd.f32 %v7525_v50, %v815_v54  ;;  %v1145_v9 = vpop.f32.mrb[8].mxu1  ;;  %v817_v10 = vpop.f32.mrb[9].mxu0  ;;  %1580 = vmatmul.mubr.f32.gmra.mrb[114].mxu0 %v7344_v40  ;;  %v2671_v32 = vld [vmem:[#allocation11 + $0x200] sm:$0xff] }
 0x263   : > { %4980 = vst [vmem:[%s7541_s2 + $0x118] sm:$0xff] %v1287_v47  ;;  %v1146_v52 = vadd.f32 %v7531_v51, %v1145_v9  ;;  %v1147_v37 = vpop.f32.mrb[9].mxu1  ;;  %1911 = vmatmul.mubr.f32.gmra.mrb[114].mxu1 %v7344_v40  ;;  %1584 = vmatprep.mubr.f32.mxu0 %v9177_v61  ;;  %v2672_v47 = vld [vmem:[#allocation11 + $0x208] sm:$0xff]  ;;  %v2970_v9 = vld [vmem:[#allocation11 + $0x300] sm:$0xff] }
 0x264   : > { %v958_v38 = vmul.f32 0.18033688, %v816_v55  ;;  %1915 = vmatprep.mubr.f32.mxu1 %v9177_v61  ;;  %v2971_v10 = vld [vmem:[#allocation11 + $0x308] sm:$0xff] }
 0x265   : > { %v1288_v3 = vmul.f32 0.18033688, %v1146_v52  ;;  %v820_v4 = vpop.f32.mrb[10].mxu0 }
 0x266   : > { %990 = vst [vmem:[%s7541_s2 + $0x20] sm:$0xff] %v958_v38  ;;  %v821_v48 = vadd.f32 %v7525_v50, %v820_v4  ;;  %v1150_v49 = vpop.f32.mrb[10].mxu1  ;;  %v822_v17 = vpop.f32.mrb[11].mxu0  ;;  %1585 = vmatmul.mubr.f32.gmra.mrb[116].mxu0 %v9178_v18  ;;  %v9188_v38 = vld [vmem:[#allocation56_spill] sm:$0xff] }
 0x267   : > { %4981 = vst [vmem:[%s7541_s2 + $0x120] sm:$0xff] %v1288_v3  ;;  %v1151_v13 = vadd.f32 %v7531_v51, %v1150_v49  ;;  %v1152_v40 = vpop.f32.mrb[11].mxu1  ;;  %1916 = vmatmul.mubr.f32.gmra.mrb[116].mxu1 %v9178_v18  ;;  %1589 = vmatprep.mubr.f32.mxu0 %v9179_v14  ;;  %v5581_v49 = vpack.c.bf16 %v2672_v47, %v2671_v32  ;;  %v2020_v47 = vld [vmem:[%s7003_s28 + $0x48] sm:$0xff] }
 0x268   : > { %v959_v42 = vmul.f32 0.18033688, %v821_v48  ;;  %1920 = vmatprep.mubr.f32.mxu1 %v9179_v14  ;;  %v2011_v48 = vld [vmem:[%s7003_s28] sm:$0xff]  ;;  %v5629_v18 = vpack.c.bf16 %v2971_v10, %v2970_v9  ;;  %v2014_v14 = vld [vmem:[%s7003_s28 + $0x18] sm:$0xff] }
 0x269   : > { %v1289_v5 = vmul.f32 0.18033688, %v1151_v13  ;;  %v825_v6 = vpop.f32.mrb[12].mxu0 }
 0x26a   : > { %991 = vst [vmem:[%s7541_s2 + $0x28] sm:$0xff] %v959_v42  ;;  %v826_v59 = vadd.f32 %v7525_v50, %v825_v6  ;;  %v1155_v23 = vpop.f32.mrb[12].mxu1  ;;  %v827_v24 = vpop.f32.mrb[13].mxu0  ;;  %1590 = vmatmul.mubr.f32.gmra.mrb[118].mxu0 %v9180_v25  ;;  %v2673_v42 = vld [vmem:[#allocation11 + $0x210] sm:$0xff] }
 0x26b   : > { %4982 = vst [vmem:[%s7541_s2 + $0x128] sm:$0xff] %v1289_v5  ;;  %v1156_v26 = vadd.f32 %v7531_v51, %v1155_v23  ;;  %v1157_v56 = vpop.f32.mrb[13].mxu1  ;;  %1921 = vmatmul.mubr.f32.gmra.mrb[118].mxu1 %v9180_v25  ;;  %1594 = vmatprep.mubr.f32.mxu0 %v9181_v57  ;;  %v2674_v5 = vld [vmem:[#allocation11 + $0x218] sm:$0xff]  ;;  %v2972_v24 = vld [vmem:[#allocation11 + $0x310] sm:$0xff] }
 0x26c   : > { %v960_v35 = vmul.f32 0.18033688, %v826_v59  ;;  %1925 = vmatprep.mubr.f32.mxu1 %v9181_v57  ;;  %v2973_v25 = vld [vmem:[#allocation11 + $0x318] sm:$0xff]  ;;  %v2013_v57 = vld [vmem:[%s7003_s28 + $0x10] sm:$0xff] }
 0x26d   : > { %v1290_v36 = vmul.f32 0.18033688, %v1156_v26  ;;  %v830_v62 = vpop.f32.mrb[14].mxu0 }
 0x26e   : > { %992 = vst [vmem:[%s7541_s2 + $0x30] sm:$0xff] %v960_v35  ;;  %v831_v63 = vadd.f32 %v7525_v50, %v830_v62  ;;  %v1160_v7 = vpop.f32.mrb[14].mxu1  ;;  %v832_v8 = vpop.f32.mrb[15].mxu0  ;;  %1595 = vmatmul.mubr.f32.gmra.mrb[120].mxu0 %v9182_v11  ;;  %v5584_v62 = vpack.c.bf16 %v2674_v5, %v2673_v42 }
 0x26f   : > { %4983 = vst [vmem:[%s7541_s2 + $0x130] sm:$0xff] %v1290_v36  ;;  %v1161_v12 = vadd.f32 %v7531_v51, %v1160_v7  ;;  %v1162_v15 = vpop.f32.mrb[15].mxu1  ;;  %1926 = vmatmul.mubr.f32.gmra.mrb[120].mxu1 %v9182_v11  ;;  %1599 = vmatprep.mubr.f32.mxu0 %v9183_v16  ;;  %v2016_v36 = vld [vmem:[%s7003_s28 + $0x28] sm:$0xff]  ;;  %v5632_v8 = vpack.c.bf16 %v2973_v25, %v2972_v24 }
 0x270   : > { %v961_v19 = vmul.f32 0.18033688, %v831_v63  ;;  %1930 = vmatprep.mubr.f32.mxu1 %v9183_v16  ;;  %v2675_v11 = vld [vmem:[#allocation11 + $0x220] sm:$0xff] }
 0x271   : > { %v1291_v20 = vmul.f32 0.18033688, %v1161_v12  ;;  %v835_v21 = vpop.f32.mrb[16].mxu0  ;;  %v2676_v12 = vld [vmem:[#allocation11 + $0x228] sm:$0xff] }
 0x272   : > { %993 = vst [vmem:[%s7541_s2 + $0x38] sm:$0xff] %v961_v19  ;;  %v836_v22 = vadd.f32 %v7525_v50, %v835_v21  ;;  %v1165_v27 = vpop.f32.mrb[16].mxu1  ;;  %v837_v41 = vpop.f32.mrb[17].mxu0  ;;  %1600 = vmatmul.mubr.f32.gmra.mrb[122].mxu0 %v9184_v28  ;;  %v2975_v21 = vld [vmem:[#allocation11 + $0x328] sm:$0xff] }
 0x273   : > { %4984 = vst [vmem:[%s7541_s2 + $0x138] sm:$0xff] %v1291_v20  ;;  %v1166_v53 = vadd.f32 %v7531_v51, %v1165_v27  ;;  %v1167_v33 = vpop.f32.mrb[17].mxu1  ;;  %1931 = vmatmul.mubr.f32.gmra.mrb[122].mxu1 %v9184_v28  ;;  %1604 = vmatprep.mubr.f32.mxu0 %v9185_v34  ;;  %v2974_v20 = vld [vmem:[#allocation11 + $0x320] sm:$0xff] }
 0x274   : > { %v962_v58 = vmul.f32 0.18033688, %v836_v22  ;;  %1935 = vmatprep.mubr.f32.mxu1 %v9185_v34  ;;  %v2015_v41 = vld [vmem:[%s7003_s28 + $0x20] sm:$0xff]  ;;  %v5587_v33 = vpack.c.bf16 %v2676_v12, %v2675_v11 }
 0x275   : > { %v1292_v60 = vmul.f32 0.18033688, %v1166_v53  ;;  %v840_v1 = vpop.f32.mrb[18].mxu0  ;;  %v2018_v53 = vld [vmem:[%s7003_s28 + $0x38] sm:$0xff] }
 0x276   : > { %994 = vst [vmem:[%s7541_s2 + $0x40] sm:$0xff] %v962_v58  ;;  %v841_v29 = vadd.f32 %v7525_v50, %v840_v1  ;;  %v1170_v30 = vpop.f32.mrb[18].mxu1  ;;  %v842_v2 = vpop.f32.mrb[19].mxu0  ;;  %1605 = vmatmul.mubr.f32.gmra.mrb[124].mxu0 %v9186_v44  ;;  %v2677_v1 = vld [vmem:[#allocation11 + $0x230] sm:$0xff] }
 0x277   : > { %4985 = vst [vmem:[%s7541_s2 + $0x140] sm:$0xff] %v1292_v60  ;;  %v1171_v45 = vadd.f32 %v7531_v51, %v1170_v30  ;;  %v1172_v39 = vpop.f32.mrb[19].mxu1  ;;  %1936 = vmatmul.mubr.f32.gmra.mrb[124].mxu1 %v9186_v44  ;;  %1609 = vmatprep.mubr.f32.mxu0 %v9187_v43  ;;  %v5635_v60 = vpack.c.bf16 %v2975_v21, %v2974_v20 }
 0x278   : > { %v963_v46 = vmul.f32 0.18033688, %v841_v29  ;;  %1940 = vmatprep.mubr.f32.mxu1 %v9187_v43  ;;  %v2678_v29 = vld [vmem:[#allocation11 + $0x238] sm:$0xff] }
 0x279   : > { %v1293_v54 = vmul.f32 0.18033688, %v1171_v45  ;;  %v845_v55 = vpop.f32.mrb[20].mxu0  ;;  %v2976_v45 = vld [vmem:[#allocation11 + $0x330] sm:$0xff]  ;;  %v2977_v39 = vld [vmem:[#allocation11 + $0x338] sm:$0xff] }
 0x27a   : > { %995 = vst [vmem:[%s7541_s2 + $0x48] sm:$0xff] %v963_v46  ;;  %v846_v52 = vadd.f32 %v7525_v50, %v845_v55  ;;  %v1175_v37 = vpop.f32.mrb[20].mxu1  ;;  %v847_v61 = vpop.f32.mrb[21].mxu0  ;;  %1610 = vmatmul.mubr.f32.gmra.mrb[126].mxu0 %v9188_v38  ;;  %v5638_v10 = vpack.c.bf16 %v2977_v39, %v2976_v45 }
 0x27b   : > { %4986 = vst [vmem:[%s7541_s2 + $0x148] sm:$0xff] %v1293_v54  ;;  %v1176_v3 = vadd.f32 %v7531_v51, %v1175_v37  ;;  %v1177_v4 = vpop.f32.mrb[21].mxu1  ;;  %1941 = vmatmul.mubr.f32.gmra.mrb[126].mxu1 %v9188_v38  ;;  %2178 = vmatprep.mubr.f32.mxu0 %v2012_v31  ;;  %v5590_v54 = vpack.c.bf16 %v2678_v29, %v2677_v1  ;;  %v2680_v37 = vld [vmem:[#allocation11 + $0x248] sm:$0xff] }
 0x27c   : > { %v964_v17 = vmul.f32 0.18033688, %v846_v52  ;;  %2476 = vmatprep.mubr.f32.mxu1 %v2012_v31  ;;  %v2017_v31 = vld [vmem:[%s7003_s28 + $0x30] sm:$0xff]  ;;  %v2679_v52 = vld [vmem:[#allocation11 + $0x240] sm:$0xff] }
 0x27d   : > { %v1294_v13 = vmul.f32 0.18033688, %v1176_v3  ;;  %v850_v40 = vpop.f32.mrb[22].mxu0  ;;  %v2978_v4 = vld [vmem:[#allocation11 + $0x340] sm:$0xff] }
 0x27e   : > { %996 = vst [vmem:[%s7541_s2 + $0x50] sm:$0xff] %v964_v17  ;;  %v851_v6 = vadd.f32 %v7525_v50, %v850_v40  ;;  %v1180_v59 = vpop.f32.mrb[22].mxu1  ;;  %v852_v23 = vpop.f32.mrb[23].mxu0  ;;  %2179 = vmatmul.mubr.f32.vlgmr.msra.gmra.mrb[128].mxu0 %v2011_v48  ;;  %v2022_v40 = vld [vmem:[%s7003_s28 + $0x58] sm:$0xff] }
 0x27f   : > { %4987 = vst [vmem:[%s7541_s2 + $0x150] sm:$0xff] %v1294_v13  ;;  %v1181_v26 = vadd.f32 %v7531_v51, %v1180_v59  ;;  %v1182_v56 = vpop.f32.mrb[23].mxu1  ;;  %2477 = vmatmul.mubr.f32.vlgmr.msra.gmra.mrb[128].mxu1 %v2011_v48  ;;  %5582 = vmatpush1.bf16.msra.mxu0 %v5581_v49  ;;  %v2979_v48 = vld [vmem:[#allocation11 + $0x348] sm:$0xff]  ;;  %v2681_v59 = vld [vmem:[#allocation11 + $0x250] sm:$0xff]  ;;  %v2682_v23 = vld [vmem:[#allocation11 + $0x258] sm:$0xff] }
 0x280   : > { %v965_v35 = vmul.f32 0.18033688, %v851_v6  ;;  %5630 = vmatpush1.bf16.msra.mxu1 %v5629_v18  ;;  %2183 = vmatprep.mubr.f32.mxu0 %v2014_v14  ;;  %v2019_v18 = vld [vmem:[%s7003_s28 + $0x40] sm:$0xff]  ;;  %v5641_v6 = vpack.c.bf16 %v2979_v48, %v2978_v4  ;;  %v2980_v56 = vld [vmem:[#allocation11 + $0x350] sm:$0xff] }
 0x281   : > { %v1295_v63 = vmul.f32 0.18033688, %v1181_v26  ;;  %v855_v7 = vpop.f32.mrb[24].mxu0  ;;  %2481 = vmatprep.mubr.f32.mxu1 %v2014_v14  ;;  %5583 = vmatprep.subr.bf16.mxu0 %v9176_v0  ;;  %v5593_v14 = vpack.c.bf16 %v2680_v37, %v2679_v52 }
 0x282   : > { %997 = vst [vmem:[%s7541_s2 + $0x58] sm:$0xff] %v965_v35  ;;  %v856_v15 = vadd.f32 %v7525_v50, %v855_v7  ;;  %v1185_v16 = vpop.f32.mrb[24].mxu1  ;;  %v857_v19 = vpop.f32.mrb[25].mxu0  ;;  %2184 = vmatmul.mubr.f32.gmra.mrb[130].mxu0 %v2013_v57  ;;  %5631 = vmatprep.subr.bf16.mxu1 %v9176_v0  ;;  %v2024_v7 = vld [vmem:[%s7003_s28 + $0x68] sm:$0xff] }
 0x283   : > { %4988 = vst [vmem:[%s7541_s2 + $0x158] sm:$0xff] %v1295_v63  ;;  %v1186_v22 = vadd.f32 %v7531_v51, %v1185_v16  ;;  %v1187_v27 = vpop.f32.mrb[25].mxu1  ;;  %2482 = vmatmul.mubr.f32.gmra.mrb[130].mxu1 %v2013_v57  ;;  %2188 = vmatprep.mubr.f32.mxu0 %v2016_v36  ;;  %v2981_v57 = vld [vmem:[#allocation11 + $0x358] sm:$0xff]  ;;  %v2683_v16 = vld [vmem:[#allocation11 + $0x260] sm:$0xff]  ;;  %v2684_v19 = vld [vmem:[#allocation11 + $0x268] sm:$0xff] }
 0x284   : > { %v966_v28 = vmul.f32 0.18033688, %v856_v15  ;;  %2486 = vmatprep.mubr.f32.mxu1 %v2016_v36  ;;  %5585 = vmatpush1.bf16.msra.mxu0 %v5584_v62  ;;  %v2021_v62 = vld [vmem:[%s7003_s28 + $0x50] sm:$0xff]  ;;  %v5644_v15 = vpack.c.bf16 %v2981_v57, %v2980_v56  ;;  %v2982_v27 = vld [vmem:[#allocation11 + $0x360] sm:$0xff] }
 0x285   : > { %v1296_v34 = vmul.f32 0.18033688, %v1186_v22  ;;  %v860_v58 = vpop.f32.mrb[26].mxu0  ;;  %5633 = vmatpush1.bf16.msra.mxu1 %v5632_v8  ;;  %5586 = vmatprep.subr.bf16.mxu0 %v9176_v0  ;;  %v5596_v8 = vpack.c.bf16 %v2682_v23, %v2681_v59 }
 0x286   : > { %998 = vst [vmem:[%s7541_s2 + $0x60] sm:$0xff] %v966_v28  ;;  %v861_v30 = vadd.f32 %v7525_v50, %v860_v58  ;;  %v1190_v2 = vpop.f32.mrb[26].mxu1  ;;  %v862_v44 = vpop.f32.mrb[27].mxu0  ;;  %2189 = vmatmul.mubr.f32.gmra.mrb[132].mxu0 %v2015_v41  ;;  %5634 = vmatprep.subr.bf16.mxu1 %v9176_v0  ;;  %v2026_v58 = vld [vmem:[%s7003_s28 + $0x78] sm:$0xff] }
 0x287   : > { %4989 = vst [vmem:[%s7541_s2 + $0x160] sm:$0xff] %v1296_v34  ;;  %v1191_v43 = vadd.f32 %v7531_v51, %v1190_v2  ;;  %v1192_v46 = vpop.f32.mrb[27].mxu1  ;;  %2487 = vmatmul.mubr.f32.gmra.mrb[132].mxu1 %v2015_v41  ;;  %2193 = vmatprep.mubr.f32.mxu0 %v2018_v53  ;;  %v2983_v41 = vld [vmem:[#allocation11 + $0x368] sm:$0xff]  ;;  %v2685_v2 = vld [vmem:[#allocation11 + $0x270] sm:$0xff]  ;;  %v2686_v44 = vld [vmem:[#allocation11 + $0x278] sm:$0xff] }
 0x288   : > { %v967_v32 = vmul.f32 0.18033688, %v861_v30  ;;  %2491 = vmatprep.mubr.f32.mxu1 %v2018_v53  ;;  %5588 = vmatpush1.bf16.msra.mxu0 %v5587_v33  ;;  %v2023_v33 = vld [vmem:[%s7003_s28 + $0x60] sm:$0xff]  ;;  %v5647_v30 = vpack.c.bf16 %v2983_v41, %v2982_v27  ;;  %v2984_v46 = vld [vmem:[#allocation11 + $0x370] sm:$0xff] }
 0x289   : > { %v1297_v55 = vmul.f32 0.18033688, %v1191_v43  ;;  %v865_v9 = vpop.f32.mrb[28].mxu0  ;;  %5636 = vmatpush1.bf16.msra.mxu1 %v5635_v60  ;;  %5589 = vmatprep.subr.bf16.mxu0 %v9176_v0  ;;  %v5599_v60 = vpack.c.bf16 %v2684_v19, %v2683_v16 }
 0x28a   : > { %999 = vst [vmem:[%s7541_s2 + $0x68] sm:$0xff] %v967_v32  ;;  %v866_v61 = vadd.f32 %v7525_v50, %v865_v9  ;;  %v1195_v38 = vpop.f32.mrb[28].mxu1  ;;  %v867_v3 = vpop.f32.mrb[29].mxu0  ;;  %2194 = vmatmul.mubr.f32.gmra.mrb[134].mxu0 %v2017_v31  ;;  %5637 = vmatprep.subr.bf16.mxu1 %v9176_v0  ;;  %v2028_v9 = vld [vmem:[%s7003_s28 + $0x88] sm:$0xff] }
 0x28b   : > { %4990 = vst [vmem:[%s7541_s2 + $0x168] sm:$0xff] %v1297_v55  ;;  %v1196_v49 = vadd.f32 %v7531_v51, %v1195_v38  ;;  %v1197_v17 = vpop.f32.mrb[29].mxu1  ;;  %2492 = vmatmul.mubr.f32.gmra.mrb[134].mxu1 %v2017_v31  ;;  %2198 = vmatprep.mubr.f32.mxu0 %v2020_v47  ;;  %v2985_v31 = vld [vmem:[#allocation11 + $0x378] sm:$0xff]  ;;  %v2687_v38 = vld [vmem:[#allocation11 + $0x280] sm:$0xff]  ;;  %v2688_v3 = vld [vmem:[#allocation11 + $0x288] sm:$0xff] }
 0x28c   : > { %v968_v13 = vmul.f32 0.18033688, %v866_v61  ;;  %2496 = vmatprep.mubr.f32.mxu1 %v2020_v47  ;;  %5591 = vmatpush1.bf16.msra.mxu0 %v5590_v54  ;;  %v2025_v54 = vld [vmem:[%s7003_s28 + $0x70] sm:$0xff]  ;;  %v5650_v61 = vpack.c.bf16 %v2985_v31, %v2984_v46  ;;  %v2986_v17 = vld [vmem:[#allocation11 + $0x380] sm:$0xff] }
 0x28d   : > { %v1298_v42 = vmul.f32 0.18033688, %v1196_v49  ;;  %v870_v5 = vpop.f32.mrb[30].mxu0  ;;  %5639 = vmatpush1.bf16.msra.mxu1 %v5638_v10  ;;  %5592 = vmatprep.subr.bf16.mxu0 %v9176_v0  ;;  %v5602_v10 = vpack.c.bf16 %v2686_v44, %v2685_v2 }
 0x28e   : > { %1000 = vst [vmem:[%s7541_s2 + $0x70] sm:$0xff] %v968_v13  ;;  %v871_v24 = vadd.f32 %v7525_v50, %v870_v5  ;;  %v1200_v25 = vpop.f32.mrb[30].mxu1  ;;  %v872_v26 = vpop.f32.mrb[31].mxu0  ;;  %2199 = vmatmul.mubr.f32.gmra.mrb[136].mxu0 %v2019_v18  ;;  %5640 = vmatprep.subr.bf16.mxu1 %v9176_v0  ;;  %v2030_v5 = vld [vmem:[%s7003_s28 + $0x98] sm:$0xff] }
 0x28f   : > { %4991 = vst [vmem:[%s7541_s2 + $0x170] sm:$0xff] %v1298_v42  ;;  %v1201_v35 = vadd.f32 %v7531_v51, %v1200_v25  ;;  %v1202_v36 = vpop.f32.mrb[31].mxu1  ;;  %2497 = vmatmul.mubr.f32.gmra.mrb[136].mxu1 %v2019_v18  ;;  %2203 = vmatprep.mubr.f32.mxu0 %v2022_v40  ;;  %v2987_v18 = vld [vmem:[#allocation11 + $0x388] sm:$0xff]  ;;  %v2689_v25 = vld [vmem:[#allocation11 + $0x290] sm:$0xff]  ;;  %v2690_v26 = vld [vmem:[#allocation11 + $0x298] sm:$0xff] }
 0x290   : > { %v969_v63 = vmul.f32 0.18033688, %v871_v24  ;;  %2501 = vmatprep.mubr.f32.mxu1 %v2022_v40  ;;  %5594 = vmatpush1.bf16.msra.mxu0 %v5593_v14  ;;  %v2027_v14 = vld [vmem:[%s7003_s28 + $0x80] sm:$0xff]  ;;  %v5653_v24 = vpack.c.bf16 %v2987_v18, %v2986_v17  ;;  %v2988_v36 = vld [vmem:[#allocation11 + $0x390] sm:$0xff] }
 0x291   : > { %v1299_v11 = vmul.f32 0.18033688, %v1201_v35  ;;  %v875_v12 = vpop.f32.mrb[32].mxu0  ;;  %5642 = vmatpush1.bf16.msra.mxu1 %v5641_v6  ;;  %5595 = vmatprep.subr.bf16.mxu0 %v9176_v0  ;;  %v5605_v6 = vpack.c.bf16 %v2688_v3, %v2687_v38 }
 0x292   : > { %1001 = vst [vmem:[%s7541_s2 + $0x78] sm:$0xff] %v969_v63  ;;  %v876_v20 = vadd.f32 %v7525_v50, %v875_v12  ;;  %v1205_v21 = vpop.f32.mrb[32].mxu1  ;;  %v877_v22 = vpop.f32.mrb[33].mxu0  ;;  %2204 = vmatmul.mubr.f32.gmra.mrb[138].mxu0 %v2021_v62  ;;  %5643 = vmatprep.subr.bf16.mxu1 %v9176_v0  ;;  %v2032_v12 = vld [vmem:[%s7003_s28 + $0xa8] sm:$0xff] }
 0x293   : > { %4992 = vst [vmem:[%s7541_s2 + $0x178] sm:$0xff] %v1299_v11  ;;  %v1206_v28 = vadd.f32 %v7531_v51, %v1205_v21  ;;  %v1207_v53 = vpop.f32.mrb[33].mxu1  ;;  %2502 = vmatmul.mubr.f32.gmra.mrb[138].mxu1 %v2021_v62  ;;  %2208 = vmatprep.mubr.f32.mxu0 %v2024_v7  ;;  %v2989_v62 = vld [vmem:[#allocation11 + $0x398] sm:$0xff]  ;;  %v2691_v21 = vld [vmem:[#allocation11 + $0x2a0] sm:$0xff]  ;;  %v2692_v22 = vld [vmem:[#allocation11 + $0x2a8] sm:$0xff] }
 0x294   : > { %v970_v34 = vmul.f32 0.18033688, %v876_v20  ;;  %2506 = vmatprep.mubr.f32.mxu1 %v2024_v7  ;;  %5597 = vmatpush1.bf16.msra.mxu0 %v5596_v8  ;;  %v2029_v8 = vld [vmem:[%s7003_s28 + $0x90] sm:$0xff]  ;;  %v5656_v20 = vpack.c.bf16 %v2989_v62, %v2988_v36  ;;  %v2990_v53 = vld [vmem:[#allocation11 + $0x3a0] sm:$0xff] }
 0x295   : > { %v1300_v1 = vmul.f32 0.18033688, %v1206_v28  ;;  %v880_v29 = vpop.f32.mrb[34].mxu0  ;;  %5645 = vmatpush1.bf16.msra.mxu1 %v5644_v15  ;;  %5598 = vmatprep.subr.bf16.mxu0 %v9176_v0  ;;  %v5608_v15 = vpack.c.bf16 %v2690_v26, %v2689_v25 }
 0x296   : > { %1002 = vst [vmem:[%s7541_s2 + $0x80] sm:$0xff] %v970_v34  ;;  %v881_v45 = vadd.f32 %v7525_v50, %v880_v29  ;;  %v1210_v39 = vpop.f32.mrb[34].mxu1  ;;  %v882_v43 = vpop.f32.mrb[35].mxu0  ;;  %2209 = vmatmul.mubr.f32.gmra.mrb[140].mxu0 %v2023_v33  ;;  %5646 = vmatprep.subr.bf16.mxu1 %v9176_v0  ;;  %v2034_v29 = vld [vmem:[%s7003_s28 + $0xb8] sm:$0xff] }
 0x297   : > { %4993 = vst [vmem:[%s7541_s2 + $0x180] sm:$0xff] %v1300_v1  ;;  %v1211_v32 = vadd.f32 %v7531_v51, %v1210_v39  ;;  %v1212_v47 = vpop.f32.mrb[35].mxu1  ;;  %2507 = vmatmul.mubr.f32.gmra.mrb[140].mxu1 %v2023_v33  ;;  %2213 = vmatprep.mubr.f32.mxu0 %v2026_v58  ;;  %v2991_v33 = vld [vmem:[#allocation11 + $0x3a8] sm:$0xff]  ;;  %v2693_v39 = vld [vmem:[#allocation11 + $0x2b0] sm:$0xff]  ;;  %v2694_v43 = vld [vmem:[#allocation11 + $0x2b8] sm:$0xff] }
 0x298   : > { %v971_v55 = vmul.f32 0.18033688, %v881_v45  ;;  %2511 = vmatprep.mubr.f32.mxu1 %v2026_v58  ;;  %5600 = vmatpush1.bf16.msra.mxu0 %v5599_v60  ;;  %v2031_v60 = vld [vmem:[%s7003_s28 + $0xa0] sm:$0xff]  ;;  %v5659_v45 = vpack.c.bf16 %v2991_v33, %v2990_v53  ;;  %v2992_v47 = vld [vmem:[#allocation11 + $0x3b0] sm:$0xff] }
 0x299   : > { %v1301_v52 = vmul.f32 0.18033688, %v1211_v32  ;;  %v885_v37 = vpop.f32.mrb[36].mxu0  ;;  %5648 = vmatpush1.bf16.msra.mxu1 %v5647_v30  ;;  %5601 = vmatprep.subr.bf16.mxu0 %v9176_v0  ;;  %v5611_v30 = vpack.c.bf16 %v2692_v22, %v2691_v21 }
 0x29a   : > { %1003 = vst [vmem:[%s7541_s2 + $0x88] sm:$0xff] %v971_v55  ;;  %v886_v4 = vadd.f32 %v7525_v50, %v885_v37  ;;  %v1215_v48 = vpop.f32.mrb[36].mxu1  ;;  %v887_v49 = vpop.f32.mrb[37].mxu0  ;;  %2214 = vmatmul.mubr.f32.gmra.mrb[142].mxu0 %v2025_v54  ;;  %5649 = vmatprep.subr.bf16.mxu1 %v9176_v0  ;;  %v2036_v37 = vld [vmem:[%s7003_s28 + $0xc8] sm:$0xff] }
 0x29b   : > { %4994 = vst [vmem:[%s7541_s2 + $0x188] sm:$0xff] %v1301_v52  ;;  %v1216_v13 = vadd.f32 %v7531_v51, %v1215_v48  ;;  %v1217_v40 = vpop.f32.mrb[37].mxu1  ;;  %2512 = vmatmul.mubr.f32.gmra.mrb[142].mxu1 %v2025_v54  ;;  %2218 = vmatprep.mubr.f32.mxu0 %v2028_v9  ;;  %v2993_v54 = vld [vmem:[#allocation11 + $0x3b8] sm:$0xff]  ;;  %v2695_v48 = vld [vmem:[#allocation11 + $0x2c0] sm:$0xff]  ;;  %v2696_v49 = vld [vmem:[#allocation11 + $0x2c8] sm:$0xff] }
 0x29c   : > { %v972_v42 = vmul.f32 0.18033688, %v886_v4  ;;  %2516 = vmatprep.mubr.f32.mxu1 %v2028_v9  ;;  %5603 = vmatpush1.bf16.msra.mxu0 %v5602_v10  ;;  %v2033_v10 = vld [vmem:[%s7003_s28 + $0xb0] sm:$0xff]  ;;  %v5662_v4 = vpack.c.bf16 %v2993_v54, %v2992_v47  ;;  %v2994_v40 = vld [vmem:[#allocation11 + $0x3c0] sm:$0xff] }
 0x29d   : > { %v1302_v59 = vmul.f32 0.18033688, %v1216_v13  ;;  %v890_v23 = vpop.f32.mrb[38].mxu0  ;;  %5651 = vmatpush1.bf16.msra.mxu1 %v5650_v61  ;;  %5604 = vmatprep.subr.bf16.mxu0 %v9176_v0  ;;  %v5614_v61 = vpack.c.bf16 %v2694_v43, %v2693_v39 }
 0x29e   : > { %1004 = vst [vmem:[%s7541_s2 + $0x90] sm:$0xff] %v972_v42  ;;  %v891_v56 = vadd.f32 %v7525_v50, %v890_v23  ;;  %v1220_v57 = vpop.f32.mrb[38].mxu1  ;;  %v892_v35 = vpop.f32.mrb[39].mxu0  ;;  %2219 = vmatmul.mubr.f32.gmra.mrb[144].mxu0 %v2027_v14  ;;  %5652 = vmatprep.subr.bf16.mxu1 %v9176_v0  ;;  %v2038_v23 = vld [vmem:[%s7003_s28 + $0xd8] sm:$0xff] }
 0x29f   : > { %4995 = vst [vmem:[%s7541_s2 + $0x190] sm:$0xff] %v1302_v59  ;;  %v1221_v63 = vadd.f32 %v7531_v51, %v1220_v57  ;;  %v1222_v7 = vpop.f32.mrb[39].mxu1  ;;  %2517 = vmatmul.mubr.f32.gmra.mrb[144].mxu1 %v2027_v14  ;;  %2223 = vmatprep.mubr.f32.mxu0 %v2030_v5  ;;  %v2995_v14 = vld [vmem:[#allocation11 + $0x3c8] sm:$0xff]  ;;  %v2697_v57 = vld [vmem:[#allocation11 + $0x2d0] sm:$0xff]  ;;  %v2698_v35 = vld [vmem:[#allocation11 + $0x2d8] sm:$0xff] }
 0x2a0   : > { %v973_v11 = vmul.f32 0.18033688, %v891_v56  ;;  %2521 = vmatprep.mubr.f32.mxu1 %v2030_v5  ;;  %5606 = vmatpush1.bf16.msra.mxu0 %v5605_v6  ;;  %v2035_v6 = vld [vmem:[%s7003_s28 + $0xc0] sm:$0xff]  ;;  %v5665_v56 = vpack.c.bf16 %v2995_v14, %v2994_v40  ;;  %v2996_v7 = vld [vmem:[#allocation11 + $0x3d0] sm:$0xff] }
 0x2a1   : > { %v1303_v16 = vmul.f32 0.18033688, %v1221_v63  ;;  %v895_v19 = vpop.f32.mrb[40].mxu0  ;;  %5654 = vmatpush1.bf16.msra.mxu1 %v5653_v24  ;;  %5607 = vmatprep.subr.bf16.mxu0 %v9176_v0  ;;  %v5617_v24 = vpack.c.bf16 %v2696_v49, %v2695_v48 }
 0x2a2   : > { %1005 = vst [vmem:[%s7541_s2 + $0x98] sm:$0xff] %v973_v11  ;;  %v896_v27 = vadd.f32 %v7525_v50, %v895_v19  ;;  %v1225_v41 = vpop.f32.mrb[40].mxu1  ;;  %v897_v28 = vpop.f32.mrb[41].mxu0  ;;  %2224 = vmatmul.mubr.f32.gmra.mrb[146].mxu0 %v2029_v8  ;;  %5655 = vmatprep.subr.bf16.mxu1 %v9176_v0  ;;  %v2040_v19 = vld [vmem:[%s7003_s28 + $0xe8] sm:$0xff] }
 0x2a3   : > { %4996 = vst [vmem:[%s7541_s2 + $0x198] sm:$0xff] %v1303_v16  ;;  %v1226_v34 = vadd.f32 %v7531_v51, %v1225_v41  ;;  %v1227_v58 = vpop.f32.mrb[41].mxu1  ;;  %2522 = vmatmul.mubr.f32.gmra.mrb[146].mxu1 %v2029_v8  ;;  %2228 = vmatprep.mubr.f32.mxu0 %v2032_v12  ;;  %v2997_v8 = vld [vmem:[#allocation11 + $0x3d8] sm:$0xff]  ;;  %v2699_v41 = vld [vmem:[#allocation11 + $0x2e0] sm:$0xff] }
 0x2a4   : > { %v974_v1 = vmul.f32 0.18033688, %v896_v27  ;;  %2526 = vmatprep.mubr.f32.mxu1 %v2032_v12  ;;  %5609 = vmatpush1.bf16.msra.mxu0 %v5608_v15  ;;  %v2037_v15 = vld [vmem:[%s7003_s28 + $0xd0] sm:$0xff]  ;;  %v5668_v27 = vpack.c.bf16 %v2997_v8, %v2996_v7 }
 0x2a5   : > { %v1304_v2 = vmul.f32 0.18033688, %v1226_v34  ;;  %v900_v44 = vpop.f32.mrb[42].mxu0  ;;  %5657 = vmatpush1.bf16.msra.mxu1 %v5656_v20  ;;  %5610 = vmatprep.subr.bf16.mxu0 %v9176_v0  ;;  %v5620_v20 = vpack.c.bf16 %v2698_v35, %v2697_v57  ;;  %v2998_v34 = vld [vmem:[#allocation11 + $0x3e0] sm:$0xff]  ;;  %v2999_v58 = vld [vmem:[#allocation11 + $0x3e8] sm:$0xff] }
 0x2a6   : > { %1006 = vst [vmem:[%s7541_s2 + $0xa0] sm:$0xff] %v974_v1  ;;  %v901_v46 = vadd.f32 %v7525_v50, %v900_v44  ;;  %v1230_v31 = vpop.f32.mrb[42].mxu1  ;;  %v902_v32 = vpop.f32.mrb[43].mxu0  ;;  %2229 = vmatmul.mubr.f32.gmra.mrb[148].mxu0 %v2031_v60  ;;  %5658 = vmatprep.subr.bf16.mxu1 %v9176_v0  ;;  %v5671_v43 = vpack.c.bf16 %v2999_v58, %v2998_v34  ;;  %v2049_v58 = vld [vmem:[%s7003_s28 + $0x130] sm:$0xff] }
 0x2a7   : > { %4997 = vst [vmem:[%s7541_s2 + $0x1a0] sm:$0xff] %v1304_v2  ;;  %v1231_v55 = vadd.f32 %v7531_v51, %v1230_v31  ;;  %v1232_v9 = vpop.f32.mrb[43].mxu1  ;;  %2527 = vmatmul.mubr.f32.gmra.mrb[148].mxu1 %v2031_v60  ;;  %2233 = vmatprep.mubr.f32.mxu0 %v2034_v29  ;;  %v7731_v60 = vld [vmem:[#allocation10 + $0x1] ss:$0 sm:$0xff]  ;;  %v7738_v32 = vld [vmem:[#allocation10] ss:$0 sm:$0xff] }
 0x2a8   : > { %v975_v52 = vmul.f32 0.18033688, %v901_v46  ;;  %2531 = vmatprep.mubr.f32.mxu1 %v2034_v29  ;;  %5612 = vmatpush1.bf16.msra.mxu0 %v5611_v30  ;;  %v2039_v30 = vld [vmem:[%s7003_s28 + $0xe0] sm:$0xff]  ;;  %v2701_v46 = vld [vmem:[#allocation11 + $0x2f0] sm:$0xff] }
 0x2a9   : > { %v1305_v38 = vmul.f32 0.18033688, %v1231_v55  ;;  %v905_v3 = vpop.f32.mrb[44].mxu0  ;;  %5660 = vmatpush1.bf16.msra.mxu1 %v5659_v45  ;;  %5613 = vmatprep.subr.bf16.mxu0 %v9176_v0  ;;  %v2702_v31 = vld [vmem:[#allocation11 + $0x2f8] sm:$0xff]  ;;  %v3000_v9 = vld [vmem:[#allocation11 + $0x3f0] sm:$0xff] }
 0x2aa   : > { %1007 = vst [vmem:[%s7541_s2 + $0xa8] sm:$0xff] %v975_v52  ;;  %v906_v17 = vadd.f32 %v7525_v50, %v905_v3  ;;  %v1235_v18 = vpop.f32.mrb[44].mxu1  ;;  %v907_v13 = vpop.f32.mrb[45].mxu0  ;;  %2234 = vmatmul.mubr.f32.gmra.mrb[150].mxu0 %v2033_v10  ;;  %5661 = vmatprep.subr.bf16.mxu1 %v9176_v0  ;;  %v2044_v3 = vld [vmem:[%s7003_s28 + $0x108] sm:$0xff] }
 0x2ab   : > { %4998 = vst [vmem:[%s7541_s2 + $0x1a8] sm:$0xff] %v1305_v38  ;;  %v1236_v42 = vadd.f32 %v7531_v51, %v1235_v18  ;;  %v1237_v5 = vpop.f32.mrb[45].mxu1  ;;  %2532 = vmatmul.mubr.f32.gmra.mrb[150].mxu1 %v2033_v10  ;;  %2238 = vmatprep.mubr.f32.mxu0 %v2036_v37  ;;  %v3001_v10 = vld [vmem:[#allocation11 + $0x3f8] sm:$0xff] }
 0x2ac   : > { %v976_v59 = vmul.f32 0.18033688, %v906_v17  ;;  %2536 = vmatprep.mubr.f32.mxu1 %v2036_v37  ;;  %5615 = vmatpush1.bf16.msra.mxu0 %v5614_v61  ;;  %v2041_v61 = vld [vmem:[%s7003_s28 + $0xf0] sm:$0xff]  ;;  %v5674_v17 = vpack.c.bf16 %v3001_v10, %v3000_v9  ;;  %v2043_v5 = vld [vmem:[%s7003_s28 + $0x100] sm:$0xff] }
 0x2ad   : > { %v1306_v25 = vmul.f32 0.18033688, %v1236_v42  ;;  %v910_v26 = vpop.f32.mrb[46].mxu0  ;;  %5663 = vmatpush1.bf16.msra.mxu1 %v5662_v4  ;;  %5616 = vmatprep.subr.bf16.mxu0 %v9176_v0  ;;  %v5626_v4 = vpack.c.bf16 %v2702_v31, %v2701_v46  ;;  %v2051_v46 = vld [vmem:[%s7003_s28 + $0x140] sm:$0xff] }
 0x2ae   : > { %1008 = vst [vmem:[%s7541_s2 + $0xb0] sm:$0xff] %v976_v59  ;;  %v911_v36 = vadd.f32 %v7525_v50, %v910_v26  ;;  %v1240_v62 = vpop.f32.mrb[46].mxu1  ;;  %v912_v63 = vpop.f32.mrb[47].mxu0  ;;  %2239 = vmatmul.mubr.f32.gmra.mrb[152].mxu0 %v2035_v6  ;;  %5664 = vmatprep.subr.bf16.mxu1 %v9176_v0  ;;  %v2046_v59 = vld [vmem:[%s7003_s28 + $0x118] sm:$0xff] }
 0x2af   : > { %4999 = vst [vmem:[%s7541_s2 + $0x1b0] sm:$0xff] %v1306_v25  ;;  %v1241_v11 = vadd.f32 %v7531_v51, %v1240_v62  ;;  %v1242_v12 = vpop.f32.mrb[47].mxu1  ;;  %2537 = vmatmul.mubr.f32.gmra.mrb[152].mxu1 %v2035_v6  ;;  %2243 = vmatprep.mubr.f32.mxu0 %v2038_v23  ;;  %v2700_v51 = vld [vmem:[#allocation11 + $0x2e8] sm:$0xff] }
 0x2b0   : > { %v977_v16 = vmul.f32 0.18033688, %v911_v36  ;;  %2541 = vmatprep.mubr.f32.mxu1 %v2038_v23  ;;  %5618 = vmatpush1.bf16.msra.mxu0 %v5617_v24  ;;  %v5623_v44 = vpack.c.bf16 %v2700_v51, %v2699_v41  ;;  %v2045_v36 = vld [vmem:[%s7003_s28 + $0x110] sm:$0xff]  ;;  %v2048_v63 = vld [vmem:[%s7003_s28 + $0x128] sm:$0xff] }
 0x2b1   : > { %v1307_v21 = vmul.f32 0.18033688, %v1241_v11  ;;  %v915_v22 = vpop.f32.mrb[48].mxu0  ;;  %5666 = vmatpush1.bf16.msra.mxu1 %v5665_v56  ;;  %5619 = vmatprep.subr.bf16.mxu0 %v9176_v0 }
 0x2b2   : > { %1009 = vst [vmem:[%s7541_s2 + $0xb8] sm:$0xff] %v977_v16  ;;  %v916_v28 = vadd.f32 %v7525_v50, %v915_v22  ;;  %v1245_v53 = vpop.f32.mrb[48].mxu1  ;;  %v917_v33 = vpop.f32.mrb[49].mxu0  ;;  %2244 = vmatmul.mubr.f32.gmra.mrb[154].mxu0 %v2037_v15  ;;  %5667 = vmatprep.subr.bf16.mxu1 %v9176_v0  ;;  %v2042_v50 = vld [vmem:[%s7003_s28 + $0xf8] sm:$0xff] }
 0x2b3   : > { %5000 = vst [vmem:[%s7541_s2 + $0x1b8] sm:$0xff] %v1307_v21  ;;  %v1246_v1 = vadd.f32 %v7731_v60, %v1245_v53  ;;  %v1247_v29 = vpop.f32.mrb[49].mxu1  ;;  %2542 = vmatmul.mubr.f32.gmra.mrb[154].mxu1 %v2037_v15  ;;  %2248 = vmatprep.mubr.f32.mxu0 %v2040_v19  ;;  %v2050_v22 = vld [vmem:[%s7003_s28 + $0x138] sm:$0xff] }
 0x2b4   : > { %v978_v2 = vmul.f32 0.18033688, %v916_v28  ;;  %2546 = vmatprep.mubr.f32.mxu1 %v2040_v19  ;;  %5621 = vmatpush1.bf16.msra.mxu0 %v5620_v20  ;;  %v2047_v20 = vld [vmem:[%s7003_s28 + $0x120] sm:$0xff]  ;;  %v2052_v29 = vld [vmem:[%s7003_s28 + $0x148] sm:$0xff] }
 0x2b5   : > { %v1308_v45 = vmul.f32 0.18033688, %v1246_v1  ;;  %v920_v39 = vpop.f32.mrb[50].mxu0  ;;  %5669 = vmatpush1.bf16.msra.mxu1 %v5668_v27  ;;  %5622 = vmatprep.subr.bf16.mxu0 %v9176_v0 }
 0x2b6   : > { %1010 = vst [vmem:[%s7541_s2 + $0xc0] sm:$0xff] %v978_v2  ;;  %v921_v47 = vadd.f32 %v7738_v32, %v920_v39  ;;  %v1250_v54 = vpop.f32.mrb[50].mxu1  ;;  %v922_v55 = vpop.f32.mrb[51].mxu0  ;;  %2249 = vmatmul.mubr.f32.gmra.mrb[156].mxu0 %v2039_v30  ;;  %5670 = vmatprep.subr.bf16.mxu1 %v9176_v0 }
 0x2b7   : > { %5001 = vst [vmem:[%s7541_s2 + $0x1c0] sm:$0xff] %v1308_v45  ;;  %v1251_v52 = vadd.f32 %v7731_v60, %v1250_v54  ;;  %v1252_v37 = vpop.f32.mrb[51].mxu1  ;;  %2547 = vmatmul.mubr.f32.gmra.mrb[156].mxu1 %v2039_v30  ;;  %2253 = vmatprep.mubr.f32.mxu0 %v2042_v50 }
 0x2b8   : > { %v979_v38 = vmul.f32 0.18033688, %v921_v47  ;;  %2551 = vmatprep.mubr.f32.mxu1 %v2042_v50  ;;  %5624 = vmatpush1.bf16.msra.mxu0 %v5623_v44  ;;  %v2054_v47 = vld [vmem:[%s7003_s28 + $0x158] sm:$0xff] }
 0x2b9   : > { %v1309_v48 = vmul.f32 0.18033688, %v1251_v52  ;;  %v925_v49 = vpop.f32.mrb[52].mxu0  ;;  %5672 = vmatpush1.bf16.msra.mxu1 %v5671_v43  ;;  %5625 = vmatprep.subr.bf16.mxu0 %v9176_v0 }
 0x2ba   : > { %1011 = vst [vmem:[%s7541_s2 + $0xc8] sm:$0xff] %v979_v38  ;;  %v926_v18 = vadd.f32 %v7738_v32, %v925_v49  ;;  %v1255_v13 = vpop.f32.mrb[52].mxu1  ;;  %v927_v40 = vpop.f32.mrb[53].mxu0  ;;  %2254 = vmatmul.mubr.f32.gmra.mrb[158].mxu0 %v2041_v61  ;;  %5673 = vmatprep.subr.bf16.mxu1 %v9176_v0  ;;  %v7784_v38 = vld [vmem:[#allocation10 + $0x2] ss:$0 sm:$0xff] }
 0x2bb   : > { %5002 = vst [vmem:[%s7541_s2 + $0x1c8] sm:$0xff] %v1309_v48  ;;  %v1256_v14 = vadd.f32 %v7731_v60, %v1255_v13  ;;  %v1257_v42 = vpop.f32.mrb[53].mxu1  ;;  %2552 = vmatmul.mubr.f32.gmra.mrb[158].mxu1 %v2041_v61  ;;  %2258 = vmatprep.mubr.f32.mxu0 %v2044_v3  ;;  %v7787_v48 = vld [vmem:[#allocation10 + $0x3] ss:$0 sm:$0xff] }
 0x2bc   : > { %v980_v6 = vmul.f32 0.18033688, %v926_v18  ;;  %2556 = vmatprep.mubr.f32.mxu1 %v2044_v3  ;;  %5627 = vmatpush1.bf16.msra.mxu0 %v5626_v4  ;;  %v2053_v3 = vld [vmem:[%s7003_s28 + $0x150] sm:$0xff]  ;;  %v2055_v42 = vld [vmem:[%s7003_s28 + $0x160] sm:$0xff] }
 0x2bd   : > { %v1310_v23 = vmul.f32 0.18033688, %v1256_v14  ;;  %v930_v24 = vpop.f32.mrb[54].mxu0  ;;  %5675 = vmatpush1.bf16.msra.mxu1 %v5674_v17  ;;  %5676 = vmatprep.subr.bf16.mxu0 %v9176_v0 }
 0x2be   : > { %1012 = vst [vmem:[%s7541_s2 + $0xd0] sm:$0xff] %v980_v6  ;;  %v931_v25 = vadd.f32 %v7738_v32, %v930_v24  ;;  %v1260_v26 = vpop.f32.mrb[54].mxu1  ;;  %v932_v56 = vpop.f32.mrb[55].mxu0  ;;  %2259 = vmatmul.mubr.f32.gmra.mrb[160].mxu0 %v2043_v5  ;;  %5724 = vmatprep.subr.bf16.mxu1 %v9176_v0  ;;  %v2058_v6 = vld [vmem:[%s7003_s28 + $0x178] sm:$0xff] }
 0x2bf   : > { %5003 = vst [vmem:[%s7541_s2 + $0x1d0] sm:$0xff] %v1310_v23  ;;  %v1261_v57 = vadd.f32 %v7731_v60, %v1260_v26  ;;  %v1262_v35 = vpop.f32.mrb[55].mxu1  ;;  %2557 = vmatmul.mubr.f32.gmra.mrb[160].mxu1 %v2043_v5  ;;  %2263 = vmatprep.mubr.f32.mxu0 %v2046_v59 }
 0x2c0   : > { %v981_v62 = vmul.f32 0.18033688, %v931_v25  ;;  %2561 = vmatprep.mubr.f32.mxu1 %v2046_v59  ;;  %v2057_v35 = vld [vmem:[%s7003_s28 + $0x170] sm:$0xff] }
 0x2c1   : > { %v1311_v7 = vmul.f32 0.18033688, %v1261_v57  ;;  %v935_v8 = vpop.f32.mrb[56].mxu0 }
 0x2c2   : > { %1013 = vst [vmem:[%s7541_s2 + $0xd8] sm:$0xff] %v981_v62  ;;  %v936_v11 = vadd.f32 %v7738_v32, %v935_v8  ;;  %v1265_v12 = vpop.f32.mrb[56].mxu1  ;;  %v937_v15 = vpop.f32.mrb[57].mxu0  ;;  %2264 = vmatmul.mubr.f32.gmra.mrb[162].mxu0 %v2045_v36  ;;  %v2060_v62 = vld [vmem:[%s7003_s28 + $0x188] sm:$0xff] }
 0x2c3   : > { %5004 = vst [vmem:[%s7541_s2 + $0x1d8] sm:$0xff] %v1311_v7  ;;  %v1266_v16 = vadd.f32 %v7731_v60, %v1265_v12  ;;  %v1267_v19 = vpop.f32.mrb[57].mxu1  ;;  %2562 = vmatmul.mubr.f32.gmra.mrb[162].mxu1 %v2045_v36  ;;  %2268 = vmatprep.mubr.f32.mxu0 %v2048_v63 }
 0x2c4   : > { %v982_v21 = vmul.f32 0.18033688, %v936_v11  ;;  %2566 = vmatprep.mubr.f32.mxu1 %v2048_v63  ;;  %v2059_v19 = vld [vmem:[%s7003_s28 + $0x180] sm:$0xff] }
 0x2c5   : > { %v1312_v27 = vmul.f32 0.18033688, %v1266_v16  ;;  %v940_v41 = vpop.f32.mrb[58].mxu0 }
 0x2c6   : > { %1014 = vst [vmem:[%s7541_s2 + $0xe0] sm:$0xff] %v982_v21  ;;  %v941_v51 = vadd.f32 %v7738_v32, %v940_v41  ;;  %v1270_v28 = vpop.f32.mrb[58].mxu1  ;;  %v942_v53 = vpop.f32.mrb[59].mxu0  ;;  %2269 = vmatmul.mubr.f32.gmra.mrb[164].mxu0 %v2047_v20  ;;  %v2062_v21 = vld [vmem:[%s7003_s28 + $0x198] sm:$0xff] }
 0x2c7   : > { %5005 = vst [vmem:[%s7541_s2 + $0x1e0] sm:$0xff] %v1312_v27  ;;  %v1271_v33 = vadd.f32 %v7731_v60, %v1270_v28  ;;  %v1272_v34 = vpop.f32.mrb[59].mxu1  ;;  %2567 = vmatmul.mubr.f32.gmra.mrb[164].mxu1 %v2047_v20  ;;  %2273 = vmatprep.mubr.f32.mxu0 %v2050_v22 }
 0x2c8   : > { %v983_v1 = vmul.f32 0.18033688, %v941_v51  ;;  %2571 = vmatprep.mubr.f32.mxu1 %v2050_v22  ;;  %v2061_v34 = vld [vmem:[%s7003_s28 + $0x190] sm:$0xff] }
 0x2c9   : > { %v1313_v30 = vmul.f32 0.18033688, %v1271_v33  ;;  %v945_v2 = vpop.f32.mrb[60].mxu0 }
 0x2ca   : > { %1015 = vst [vmem:[%s7541_s2 + $0xe8] sm:$0xff] %v983_v1  ;;  %v946_v50 = vadd.f32 %v7738_v32, %v945_v2  ;;  %v1275_v44 = vpop.f32.mrb[60].mxu1  ;;  %v947_v45 = vpop.f32.mrb[61].mxu0  ;;  %2274 = vmatmul.mubr.f32.gmra.mrb[166].mxu0 %v2049_v58  ;;  %v2064_v1 = vld [vmem:[%s7003_s28 + $0x1a8] sm:$0xff] }
 0x2cb   : > { %5006 = vst [vmem:[%s7541_s2 + $0x1e8] sm:$0xff] %v1313_v30  ;;  %v1276_v39 = vadd.f32 %v7731_v60, %v1275_v44  ;;  %v1277_v43 = vpop.f32.mrb[61].mxu1  ;;  %2572 = vmatmul.mubr.f32.gmra.mrb[166].mxu1 %v2049_v58  ;;  %2278 = vmatprep.mubr.f32.mxu0 %v2052_v29 }
 0x2cc   : > { %v984_v31 = vmul.f32 0.18033688, %v946_v50  ;;  %2576 = vmatprep.mubr.f32.mxu1 %v2052_v29  ;;  %v2063_v43 = vld [vmem:[%s7003_s28 + $0x1a0] sm:$0xff] }
 0x2cd   : > { %v1314_v54 = vmul.f32 0.18033688, %v1276_v39  ;;  %v950_v55 = vpop.f32.mrb[62].mxu0 }
 0x2ce   : > { %1016 = vst [vmem:[%s7541_s2 + $0xf0] sm:$0xff] %v984_v31  ;;  %v951_v9 = vadd.f32 %v7738_v32, %v950_v55  ;;  %v1280_v10 = vpop.f32.mrb[62].mxu1  ;;  %v952_v52 = vpop.f32.mrb[63].mxu0  ;;  %2279 = vmatmul.mubr.f32.gmra.mrb[168].mxu0 %v2051_v46  ;;  %v2056_v32 = vld [vmem:[%s7003_s28 + $0x168] sm:$0xff]  ;;  %v2066_v31 = vld [vmem:[%s7003_s28 + $0x1b8] sm:$0xff] }
 0x2cf   : > { %5007 = vst [vmem:[%s7541_s2 + $0x1f0] sm:$0xff] %v1314_v54  ;;  %v1281_v37 = vadd.f32 %v7731_v60, %v1280_v10  ;;  %v1282_v61 = vpop.f32.mrb[63].mxu1  ;;  %2577 = vmatmul.mubr.f32.gmra.mrb[168].mxu1 %v2051_v46  ;;  %2283 = vmatprep.mubr.f32.mxu0 %v2054_v47 }
 0x2d0   : > { %v985_v4 = vmul.f32 0.18033688, %v951_v9  ;;  %2581 = vmatprep.mubr.f32.mxu1 %v2054_v47  ;;  %v2065_v61 = vld [vmem:[%s7003_s28 + $0x1b0] sm:$0xff] }
 0x2d1   : > { %v1315_v49 = vmul.f32 0.18033688, %v1281_v37  ;;  %v1456_v17 = vpop.f32.mrb[64].mxu0 }
 0x2d2   : > { %1017 = vst [vmem:[%s7541_s2 + $0xf8] sm:$0xff] %v985_v4  ;;  %v1457_v60 = vadd.f32 %v7784_v38, %v1456_v17  ;;  %v1787_v18 = vpop.f32.mrb[64].mxu1  ;;  %v1458_v13 = vpop.f32.mrb[65].mxu0  ;;  %2284 = vmatmul.mubr.f32.gmra.mrb[170].mxu0 %v2053_v3  ;;  %v2068_v4 = vld [vmem:[%s7003_s28 + $0x1c8] sm:$0xff] }
 0x2d3   : > { %5008 = vst [vmem:[%s7541_s2 + $0x1f8] sm:$0xff] %v1315_v49  ;;  %v1788_v40 = vadd.f32 %v7787_v48, %v1787_v18  ;;  %v1789_v14 = vpop.f32.mrb[65].mxu1  ;;  %2582 = vmatmul.mubr.f32.gmra.mrb[170].mxu1 %v2053_v3  ;;  %2288 = vmatprep.mubr.f32.mxu0 %v2056_v32 }
 0x2d4   : > { %v1615_v5 = vmul.f32 0.18033688, %v1457_v60  ;;  %2586 = vmatprep.mubr.f32.mxu1 %v2056_v32  ;;  %v2067_v14 = vld [vmem:[%s7003_s28 + $0x1c0] sm:$0xff] }
 0x2d5   : > { %v1946_v59 = vmul.f32 0.18033688, %v1788_v40  ;;  %v1461_v23 = vpop.f32.mrb[66].mxu0 }
 0x2d6   : > { %5010 = vst [vmem:[%s7541_s2 + $0x200] sm:$0xff] %v1615_v5  ;;  %v1462_v24 = vadd.f32 %v7784_v38, %v1461_v23  ;;  %v1792_v25 = vpop.f32.mrb[66].mxu1  ;;  %v1463_v26 = vpop.f32.mrb[67].mxu0  ;;  %2289 = vmatmul.mubr.f32.gmra.mrb[172].mxu0 %v2055_v42  ;;  %v2070_v5 = vld [vmem:[%s7003_s28 + $0x1d8] sm:$0xff] }
 0x2d7   : > { %5043 = vst [vmem:[%s7541_s2 + $0x300] sm:$0xff] %v1946_v59  ;;  %v1793_v56 = vadd.f32 %v7787_v48, %v1792_v25  ;;  %v1794_v57 = vpop.f32.mrb[67].mxu1  ;;  %2587 = vmatmul.mubr.f32.gmra.mrb[172].mxu1 %v2055_v42  ;;  %2293 = vmatprep.mubr.f32.mxu0 %v2058_v6 }
 0x2d8   : > { %v1616_v36 = vmul.f32 0.18033688, %v1462_v24  ;;  %2591 = vmatprep.mubr.f32.mxu1 %v2058_v6  ;;  %v2069_v57 = vld [vmem:[%s7003_s28 + $0x1d0] sm:$0xff] }
 0x2d9   : > { %v1947_v63 = vmul.f32 0.18033688, %v1793_v56  ;;  %v1466_v7 = vpop.f32.mrb[68].mxu0 }
 0x2da   : > { %5011 = vst [vmem:[%s7541_s2 + $0x208] sm:$0xff] %v1616_v36  ;;  %v1467_v8 = vadd.f32 %v7784_v38, %v1466_v7  ;;  %v1797_v11 = vpop.f32.mrb[68].mxu1  ;;  %v1468_v12 = vpop.f32.mrb[69].mxu0  ;;  %2294 = vmatmul.mubr.f32.gmra.mrb[174].mxu0 %v2057_v35  ;;  %v2072_v36 = vld [vmem:[%s7003_s28 + $0x1e8] sm:$0xff] }
 0x2db   : > { %5044 = vst [vmem:[%s7541_s2 + $0x308] sm:$0xff] %v1947_v63  ;;  %v1798_v15 = vadd.f32 %v7787_v48, %v1797_v11  ;;  %v1799_v16 = vpop.f32.mrb[69].mxu1  ;;  %2592 = vmatmul.mubr.f32.gmra.mrb[174].mxu1 %v2057_v35  ;;  %2298 = vmatprep.mubr.f32.mxu0 %v2060_v62 }
 0x2dc   : > { %v1617_v20 = vmul.f32 0.18033688, %v1467_v8  ;;  %2596 = vmatprep.mubr.f32.mxu1 %v2060_v62  ;;  %v2071_v16 = vld [vmem:[%s7003_s28 + $0x1e0] sm:$0xff] }
 0x2dd   : > { %v1948_v22 = vmul.f32 0.18033688, %v1798_v15  ;;  %v1471_v27 = vpop.f32.mrb[70].mxu0 }
 0x2de   : > { %5012 = vst [vmem:[%s7541_s2 + $0x210] sm:$0xff] %v1617_v20  ;;  %v1472_v41 = vadd.f32 %v7784_v38, %v1471_v27  ;;  %v1802_v51 = vpop.f32.mrb[70].mxu1  ;;  %v1473_v28 = vpop.f32.mrb[71].mxu0  ;;  %2299 = vmatmul.mubr.f32.gmra.mrb[176].mxu0 %v2059_v19  ;;  %v2074_v20 = vld [vmem:[%s7003_s28 + $0x1f8] sm:$0xff] }
 0x2df   : > { %5045 = vst [vmem:[%s7541_s2 + $0x310] sm:$0xff] %v1948_v22  ;;  %v1803_v53 = vadd.f32 %v7787_v48, %v1802_v51  ;;  %v1804_v33 = vpop.f32.mrb[71].mxu1  ;;  %2597 = vmatmul.mubr.f32.gmra.mrb[176].mxu1 %v2059_v19  ;;  %2303 = vmatprep.mubr.f32.mxu0 %v2062_v21 }
 0x2e0   : > { %v1618_v58 = vmul.f32 0.18033688, %v1472_v41  ;;  %2601 = vmatprep.mubr.f32.mxu1 %v2062_v21  ;;  %v2073_v33 = vld [vmem:[%s7003_s28 + $0x1f0] sm:$0xff] }
 0x2e1   : > { %v1949_v29 = vmul.f32 0.18033688, %v1803_v53  ;;  %v1476_v30 = vpop.f32.mrb[72].mxu0 }
 0x2e2   : > { %5013 = vst [vmem:[%s7541_s2 + $0x218] sm:$0xff] %v1618_v58  ;;  %v1477_v2 = vadd.f32 %v7784_v38, %v1476_v30  ;;  %v1807_v50 = vpop.f32.mrb[72].mxu1  ;;  %v1478_v44 = vpop.f32.mrb[73].mxu0  ;;  %2304 = vmatmul.mubr.f32.gmra.mrb[178].mxu0 %v2061_v34  ;;  %v3332_v58 = vld [vmem:[#allocation14] sm:$0xff] }
 0x2e3   : > { %5046 = vst [vmem:[%s7541_s2 + $0x318] sm:$0xff] %v1949_v29  ;;  %v1808_v45 = vadd.f32 %v7787_v48, %v1807_v50  ;;  %v1809_v39 = vpop.f32.mrb[73].mxu1  ;;  %2602 = vmatmul.mubr.f32.gmra.mrb[178].mxu1 %v2061_v34  ;;  %2308 = vmatprep.mubr.f32.mxu0 %v2064_v1  ;;  %v3630_v50 = vld [vmem:[#allocation14 + $0x108] sm:$0xff] }
 0x2e4   : > { %v1619_v46 = vmul.f32 0.18033688, %v1477_v2  ;;  %2606 = vmatprep.mubr.f32.mxu1 %v2064_v1  ;;  %v3333_v1 = vld [vmem:[#allocation14 + $0x8] sm:$0xff]  ;;  %v3629_v2 = vld [vmem:[#allocation14 + $0x100] sm:$0xff] }
 0x2e5   : > { %v1950_v47 = vmul.f32 0.18033688, %v1808_v45  ;;  %v1481_v54 = vpop.f32.mrb[74].mxu0 }
 0x2e6   : > { %5014 = vst [vmem:[%s7541_s2 + $0x220] sm:$0xff] %v1619_v46  ;;  %v1482_v55 = vadd.f32 %v7784_v38, %v1481_v54  ;;  %v1812_v9 = vpop.f32.mrb[74].mxu1  ;;  %v1483_v10 = vpop.f32.mrb[75].mxu0  ;;  %2309 = vmatmul.mubr.f32.gmra.mrb[180].mxu0 %v2063_v43 }
 0x2e7   : > { %5047 = vst [vmem:[%s7541_s2 + $0x320] sm:$0xff] %v1950_v47  ;;  %v1813_v52 = vadd.f32 %v7787_v48, %v1812_v9  ;;  %v1814_v37 = vpop.f32.mrb[75].mxu1  ;;  %2607 = vmatmul.mubr.f32.gmra.mrb[180].mxu1 %v2063_v43  ;;  %2313 = vmatprep.mubr.f32.mxu0 %v2066_v31  ;;  %v5677_v47 = vpack.c.bf16 %v3333_v1, %v3332_v58 }
 0x2e8   : > { %v1620_v3 = vmul.f32 0.18033688, %v1482_v55  ;;  %2611 = vmatprep.mubr.f32.mxu1 %v2066_v31  ;;  %v6074_v31 = vld [vmem:[%s7003_s28 + $0x8] sm:$0xff]  ;;  %v5725_v55 = vpack.c.bf16 %v3630_v50, %v3629_v2  ;;  %v3335_v37 = vld [vmem:[#allocation14 + $0x18] sm:$0xff]  ;;  %v3341_v50 = vld [vmem:[#allocation14 + $0x48] sm:$0xff] }
 0x2e9   : > { %v1951_v32 = vmul.f32 0.18033688, %v1813_v52  ;;  %v1486_v49 = vpop.f32.mrb[76].mxu0  ;;  %v3334_v52 = vld [vmem:[#allocation14 + $0x10] sm:$0xff]  ;;  %v3340_v2 = vld [vmem:[#allocation14 + $0x40] sm:$0xff] }
 0x2ea   : > { %5015 = vst [vmem:[%s7541_s2 + $0x228] sm:$0xff] %v1620_v3  ;;  %v1487_v17 = vadd.f32 %v7784_v38, %v1486_v49  ;;  %v1817_v60 = vpop.f32.mrb[76].mxu1  ;;  %v1488_v18 = vpop.f32.mrb[77].mxu0  ;;  %2314 = vmatmul.mubr.f32.gmra.mrb[182].mxu0 %v2065_v61  ;;  %v3631_v49 = vld [vmem:[#allocation14 + $0x110] sm:$0xff] }
 0x2eb   : > { %5048 = vst [vmem:[%s7541_s2 + $0x328] sm:$0xff] %v1951_v32  ;;  %v1818_v13 = vadd.f32 %v7787_v48, %v1817_v60  ;;  %v1819_v40 = vpop.f32.mrb[77].mxu1  ;;  %2612 = vmatmul.mubr.f32.gmra.mrb[182].mxu1 %v2065_v61  ;;  %2318 = vmatprep.mubr.f32.mxu0 %v2068_v4  ;;  %v6075_v32 = vld [vmem:[%s7003_s28] sm:$0xff] }
 0x2ec   : > { %v1621_v42 = vmul.f32 0.18033688, %v1487_v17  ;;  %2616 = vmatprep.mubr.f32.mxu1 %v2068_v4  ;;  %v3632_v17 = vld [vmem:[#allocation14 + $0x118] sm:$0xff]  ;;  %v6076_v40 = vld [vmem:[%s7003_s28 + $0x18] sm:$0xff] }
 0x2ed   : > { %v1952_v6 = vmul.f32 0.18033688, %v1818_v13  ;;  %v1491_v59 = vpop.f32.mrb[78].mxu0 }
 0x2ee   : > { %5016 = vst [vmem:[%s7541_s2 + $0x230] sm:$0xff] %v1621_v42  ;;  %v1492_v23 = vadd.f32 %v7784_v38, %v1491_v59  ;;  %v1822_v24 = vpop.f32.mrb[78].mxu1  ;;  %v1493_v25 = vpop.f32.mrb[79].mxu0  ;;  %2319 = vmatmul.mubr.f32.gmra.mrb[184].mxu0 %v2067_v14  ;;  %v3336_v59 = vld [vmem:[#allocation14 + $0x20] sm:$0xff] }
 0x2ef   : > { %5049 = vst [vmem:[%s7541_s2 + $0x330] sm:$0xff] %v1952_v6  ;;  %v1823_v26 = vadd.f32 %v7787_v48, %v1822_v24  ;;  %v1824_v56 = vpop.f32.mrb[79].mxu1  ;;  %2617 = vmatmul.mubr.f32.gmra.mrb[184].mxu1 %v2067_v14  ;;  %2323 = vmatprep.mubr.f32.mxu0 %v2070_v5  ;;  %v5680_v14 = vpack.c.bf16 %v3335_v37, %v3334_v52 }
 0x2f0   : > { %v1622_v35 = vmul.f32 0.18033688, %v1492_v23  ;;  %2621 = vmatprep.mubr.f32.mxu1 %v2070_v5  ;;  %v5728_v6 = vpack.c.bf16 %v3632_v17, %v3631_v49  ;;  %v3337_v23 = vld [vmem:[#allocation14 + $0x28] sm:$0xff] }
 0x2f1   : > { %v1953_v62 = vmul.f32 0.18033688, %v1823_v26  ;;  %v1496_v63 = vpop.f32.mrb[80].mxu0  ;;  %v6077_v56 = vld [vmem:[%s7003_s28 + $0x10] sm:$0xff] }
 0x2f2   : > { %5017 = vst [vmem:[%s7541_s2 + $0x238] sm:$0xff] %v1622_v35  ;;  %v1497_v7 = vadd.f32 %v7784_v38, %v1496_v63  ;;  %v1827_v8 = vpop.f32.mrb[80].mxu1  ;;  %v1498_v11 = vpop.f32.mrb[81].mxu0  ;;  %2324 = vmatmul.mubr.f32.gmra.mrb[186].mxu0 %v2069_v57  ;;  %v3634_v35 = vld [vmem:[#allocation14 + $0x128] sm:$0xff]  ;;  %v6078_v63 = vld [vmem:[%s7003_s28 + $0x28] sm:$0xff] }
 0x2f3   : > { %5050 = vst [vmem:[%s7541_s2 + $0x338] sm:$0xff] %v1953_v62  ;;  %v1828_v12 = vadd.f32 %v7787_v48, %v1827_v8  ;;  %v1829_v15 = vpop.f32.mrb[81].mxu1  ;;  %2622 = vmatmul.mubr.f32.gmra.mrb[186].mxu1 %v2069_v57  ;;  %2328 = vmatprep.mubr.f32.mxu0 %v2072_v36  ;;  %v3633_v57 = vld [vmem:[#allocation14 + $0x120] sm:$0xff]  ;;  %v5683_v8 = vpack.c.bf16 %v3337_v23, %v3336_v59 }
 0x2f4   : > { %v1623_v19 = vmul.f32 0.18033688, %v1497_v7  ;;  %2626 = vmatprep.mubr.f32.mxu1 %v2072_v36  ;;  %v5731_v15 = vpack.c.bf16 %v3634_v35, %v3633_v57 }
 0x2f5   : > { %v1954_v21 = vmul.f32 0.18033688, %v1828_v12  ;;  %v1501_v22 = vpop.f32.mrb[82].mxu0 }
 0x2f6   : > { %5018 = vst [vmem:[%s7541_s2 + $0x240] sm:$0xff] %v1623_v19  ;;  %v1502_v27 = vadd.f32 %v7784_v38, %v1501_v22  ;;  %v1832_v41 = vpop.f32.mrb[82].mxu1  ;;  %v1503_v51 = vpop.f32.mrb[83].mxu0  ;;  %2329 = vmatmul.mubr.f32.gmra.mrb[188].mxu0 %v2071_v16  ;;  %v3339_v19 = vld [vmem:[#allocation14 + $0x38] sm:$0xff] }
 0x2f7   : > { %5051 = vst [vmem:[%s7541_s2 + $0x340] sm:$0xff] %v1954_v21  ;;  %v1833_v28 = vadd.f32 %v7787_v48, %v1832_v41  ;;  %v1834_v53 = vpop.f32.mrb[83].mxu1  ;;  %2627 = vmatmul.mubr.f32.gmra.mrb[188].mxu1 %v2071_v16  ;;  %2333 = vmatprep.mubr.f32.mxu0 %v2074_v20  ;;  %v3338_v16 = vld [vmem:[#allocation14 + $0x30] sm:$0xff]  ;;  %v3636_v51 = vld [vmem:[#allocation14 + $0x138] sm:$0xff] }
 0x2f8   : > { %v1624_v34 = vmul.f32 0.18033688, %v1502_v27  ;;  %2631 = vmatprep.mubr.f32.mxu1 %v2074_v20  ;;  %v6079_v27 = vld [vmem:[%s7003_s28 + $0x20] sm:$0xff]  ;;  %v3635_v41 = vld [vmem:[#allocation14 + $0x130] sm:$0xff]  ;;  %v5686_v58 = vpack.c.bf16 %v3339_v19, %v3338_v16 }
 0x2f9   : > { %v1955_v29 = vmul.f32 0.18033688, %v1833_v28  ;;  %v1506_v30 = vpop.f32.mrb[84].mxu0 }
 0x2fa   : > { %5019 = vst [vmem:[%s7541_s2 + $0x248] sm:$0xff] %v1624_v34  ;;  %v1507_v44 = vadd.f32 %v7784_v38, %v1506_v30  ;;  %v1837_v45 = vpop.f32.mrb[84].mxu1  ;;  %v1508_v39 = vpop.f32.mrb[85].mxu0  ;;  %2334 = vmatmul.mubr.f32.gmra.mrb[190].mxu0 %v2073_v33  ;;  %v5734_v30 = vpack.c.bf16 %v3636_v51, %v3635_v41 }
 0x2fb   : > { %5052 = vst [vmem:[%s7541_s2 + $0x348] sm:$0xff] %v1955_v29  ;;  %v1838_v43 = vadd.f32 %v7787_v48, %v1837_v45  ;;  %v1839_v46 = vpop.f32.mrb[85].mxu1  ;;  %2632 = vmatmul.mubr.f32.gmra.mrb[190].mxu1 %v2073_v33  ;;  %2775 = vmatprep.mubr.f32.mxu0 %v6074_v31  ;;  %v6080_v33 = vld [vmem:[%s7003_s28 + $0x38] sm:$0xff] }
 0x2fc   : > { %v1625_v54 = vmul.f32 0.18033688, %v1507_v44  ;;  %3074 = vmatprep.mubr.f32.mxu1 %v6074_v31  ;;  %v3637_v46 = vld [vmem:[#allocation14 + $0x140] sm:$0xff]  ;;  %v3638_v31 = vld [vmem:[#allocation14 + $0x148] sm:$0xff] }
 0x2fd   : > { %v1956_v9 = vmul.f32 0.18033688, %v1838_v43  ;;  %v1511_v10 = vpop.f32.mrb[86].mxu0  ;;  %v6081_v43 = vld [vmem:[%s7003_s28 + $0x30] sm:$0xff] }
 0x2fe   : > { %5020 = vst [vmem:[%s7541_s2 + $0x250] sm:$0xff] %v1625_v54  ;;  %v1512_v61 = vadd.f32 %v7784_v38, %v1511_v10  ;;  %v1842_v3 = vpop.f32.mrb[86].mxu1  ;;  %v1513_v4 = vpop.f32.mrb[87].mxu0  ;;  %2776 = vmatmul.mubr.f32.vlgmr.msra.gmra.mrb[192].mxu0 %v6075_v32  ;;  %v5689_v10 = vpack.c.bf16 %v3341_v50, %v3340_v2 }
 0x2ff   : > { %5053 = vst [vmem:[%s7541_s2 + $0x350] sm:$0xff] %v1956_v9  ;;  %v1843_v60 = vadd.f32 %v7787_v48, %v1842_v3  ;;  %v1844_v18 = vpop.f32.mrb[87].mxu1  ;;  %3075 = vmatmul.mubr.f32.vlgmr.msra.gmra.mrb[192].mxu1 %v6075_v32  ;;  %5678 = vmatpush1.bf16.msra.mxu0 %v5677_v47  ;;  %v3342_v3 = vld [vmem:[#allocation14 + $0x50] sm:$0xff]  ;;  %v3343_v4 = vld [vmem:[#allocation14 + $0x58] sm:$0xff] }
 0x300   : > { %v1626_v13 = vmul.f32 0.18033688, %v1512_v61  ;;  %5726 = vmatpush1.bf16.msra.mxu1 %v5725_v55  ;;  %2780 = vmatprep.mubr.f32.mxu0 %v6076_v40  ;;  %v6082_v55 = vld [vmem:[%s7003_s28 + $0x48] sm:$0xff]  ;;  %v5737_v61 = vpack.c.bf16 %v3638_v31, %v3637_v46  ;;  %v3639_v18 = vld [vmem:[#allocation14 + $0x150] sm:$0xff] }
 0x301   : > { %v1957_v42 = vmul.f32 0.18033688, %v1843_v60  ;;  %v1516_v5 = vpop.f32.mrb[88].mxu0  ;;  %3079 = vmatprep.mubr.f32.mxu1 %v6076_v40  ;;  %5679 = vmatprep.subr.bf16.mxu0 %v9176_v0  ;;  %v6083_v60 = vld [vmem:[%s7003_s28 + $0x40] sm:$0xff] }
 0x302   : > { %5021 = vst [vmem:[%s7541_s2 + $0x258] sm:$0xff] %v1626_v13  ;;  %v1517_v24 = vadd.f32 %v7784_v38, %v1516_v5  ;;  %v1847_v25 = vpop.f32.mrb[88].mxu1  ;;  %v1518_v26 = vpop.f32.mrb[89].mxu0  ;;  %2781 = vmatmul.mubr.f32.gmra.mrb[194].mxu0 %v6077_v56  ;;  %5727 = vmatprep.subr.bf16.mxu1 %v9176_v0  ;;  %v3640_v13 = vld [vmem:[#allocation14 + $0x158] sm:$0xff] }
 0x303   : > { %5054 = vst [vmem:[%s7541_s2 + $0x358] sm:$0xff] %v1957_v42  ;;  %v1848_v36 = vadd.f32 %v7787_v48, %v1847_v25  ;;  %v1849_v62 = vpop.f32.mrb[89].mxu1  ;;  %3080 = vmatmul.mubr.f32.gmra.mrb[194].mxu1 %v6077_v56  ;;  %2785 = vmatprep.mubr.f32.mxu0 %v6078_v63  ;;  %v6084_v42 = vld [vmem:[%s7003_s28 + $0x58] sm:$0xff]  ;;  %v3344_v25 = vld [vmem:[#allocation14 + $0x60] sm:$0xff]  ;;  %v3345_v26 = vld [vmem:[#allocation14 + $0x68] sm:$0xff] }
 0x304   : > { %v1627_v7 = vmul.f32 0.18033688, %v1517_v24  ;;  %3084 = vmatprep.mubr.f32.mxu1 %v6078_v63  ;;  %5681 = vmatpush1.bf16.msra.mxu0 %v5680_v14  ;;  %v5740_v24 = vpack.c.bf16 %v3640_v13, %v3639_v18  ;;  %v3641_v62 = vld [vmem:[#allocation14 + $0x160] sm:$0xff]  ;;  %v3642_v63 = vld [vmem:[#allocation14 + $0x168] sm:$0xff] }
 0x305   : > { %v1958_v11 = vmul.f32 0.18033688, %v1848_v36  ;;  %v1521_v12 = vpop.f32.mrb[90].mxu0  ;;  %5729 = vmatpush1.bf16.msra.mxu1 %v5728_v6  ;;  %5682 = vmatprep.subr.bf16.mxu0 %v9176_v0  ;;  %v5692_v6 = vpack.c.bf16 %v3343_v4, %v3342_v3  ;;  %v6085_v36 = vld [vmem:[%s7003_s28 + $0x50] sm:$0xff] }
 0x306   : > { %5022 = vst [vmem:[%s7541_s2 + $0x260] sm:$0xff] %v1627_v7  ;;  %v1522_v20 = vadd.f32 %v7784_v38, %v1521_v12  ;;  %v1852_v21 = vpop.f32.mrb[90].mxu1  ;;  %v1523_v22 = vpop.f32.mrb[91].mxu0  ;;  %2786 = vmatmul.mubr.f32.gmra.mrb[196].mxu0 %v6079_v27  ;;  %5730 = vmatprep.subr.bf16.mxu1 %v9176_v0 }
 0x307   : > { %5055 = vst [vmem:[%s7541_s2 + $0x360] sm:$0xff] %v1958_v11  ;;  %v1853_v28 = vadd.f32 %v7787_v48, %v1852_v21  ;;  %v1854_v53 = vpop.f32.mrb[91].mxu1  ;;  %3085 = vmatmul.mubr.f32.gmra.mrb[196].mxu1 %v6079_v27  ;;  %2790 = vmatprep.mubr.f32.mxu0 %v6080_v33  ;;  %v6086_v11 = vld [vmem:[%s7003_s28 + $0x68] sm:$0xff]  ;;  %v3346_v21 = vld [vmem:[#allocation14 + $0x70] sm:$0xff]  ;;  %v3347_v22 = vld [vmem:[#allocation14 + $0x78] sm:$0xff] }
 0x308   : > { %v1628_v34 = vmul.f32 0.18033688, %v1522_v20  ;;  %3089 = vmatprep.mubr.f32.mxu1 %v6080_v33  ;;  %5684 = vmatpush1.bf16.msra.mxu0 %v5683_v8  ;;  %v5743_v20 = vpack.c.bf16 %v3642_v63, %v3641_v62  ;;  %v3643_v53 = vld [vmem:[#allocation14 + $0x170] sm:$0xff]  ;;  %v3644_v33 = vld [vmem:[#allocation14 + $0x178] sm:$0xff] }
 0x309   : > { %v1959_v1 = vmul.f32 0.18033688, %v1853_v28  ;;  %v1526_v29 = vpop.f32.mrb[92].mxu0  ;;  %5732 = vmatpush1.bf16.msra.mxu1 %v5731_v15  ;;  %5685 = vmatprep.subr.bf16.mxu0 %v9176_v0  ;;  %v5695_v15 = vpack.c.bf16 %v3345_v26, %v3344_v25  ;;  %v6087_v28 = vld [vmem:[%s7003_s28 + $0x60] sm:$0xff] }
 0x30a   : > { %5023 = vst [vmem:[%s7541_s2 + $0x268] sm:$0xff] %v1628_v34  ;;  %v1527_v44 = vadd.f32 %v7784_v38, %v1526_v29  ;;  %v1857_v45 = vpop.f32.mrb[92].mxu1  ;;  %v1528_v39 = vpop.f32.mrb[93].mxu0  ;;  %2791 = vmatmul.mubr.f32.gmra.mrb[198].mxu0 %v6081_v43  ;;  %5733 = vmatprep.subr.bf16.mxu1 %v9176_v0 }
 0x30b   : > { %5056 = vst [vmem:[%s7541_s2 + $0x368] sm:$0xff] %v1959_v1  ;;  %v1858_v47 = vadd.f32 %v7787_v48, %v1857_v45  ;;  %v1859_v54 = vpop.f32.mrb[93].mxu1  ;;  %3090 = vmatmul.mubr.f32.gmra.mrb[198].mxu1 %v6081_v43  ;;  %2795 = vmatprep.mubr.f32.mxu0 %v6082_v55  ;;  %v6088_v1 = vld [vmem:[%s7003_s28 + $0x78] sm:$0xff]  ;;  %v3348_v45 = vld [vmem:[#allocation14 + $0x80] sm:$0xff]  ;;  %v3349_v39 = vld [vmem:[#allocation14 + $0x88] sm:$0xff] }
 0x30c   : > { %v1629_v9 = vmul.f32 0.18033688, %v1527_v44  ;;  %3094 = vmatprep.mubr.f32.mxu1 %v6082_v55  ;;  %5687 = vmatpush1.bf16.msra.mxu0 %v5686_v58  ;;  %v5746_v44 = vpack.c.bf16 %v3644_v33, %v3643_v53  ;;  %v3645_v54 = vld [vmem:[#allocation14 + $0x180] sm:$0xff]  ;;  %v3646_v55 = vld [vmem:[#allocation14 + $0x188] sm:$0xff] }
 0x30d   : > { %v1960_v52 = vmul.f32 0.18033688, %v1858_v47  ;;  %v1531_v37 = vpop.f32.mrb[94].mxu0  ;;  %5735 = vmatpush1.bf16.msra.mxu1 %v5734_v30  ;;  %5688 = vmatprep.subr.bf16.mxu0 %v9176_v0  ;;  %v5698_v30 = vpack.c.bf16 %v3347_v22, %v3346_v21  ;;  %v6089_v47 = vld [vmem:[%s7003_s28 + $0x70] sm:$0xff] }
 0x30e   : > { %5024 = vst [vmem:[%s7541_s2 + $0x270] sm:$0xff] %v1629_v9  ;;  %v1532_v32 = vadd.f32 %v7784_v38, %v1531_v37  ;;  %v1862_v49 = vpop.f32.mrb[94].mxu1  ;;  %v1533_v17 = vpop.f32.mrb[95].mxu0  ;;  %2796 = vmatmul.mubr.f32.gmra.mrb[200].mxu0 %v6083_v60  ;;  %5736 = vmatprep.subr.bf16.mxu1 %v9176_v0 }
 0x30f   : > { %5057 = vst [vmem:[%s7541_s2 + $0x370] sm:$0xff] %v1960_v52  ;;  %v1863_v40 = vadd.f32 %v7787_v48, %v1862_v49  ;;  %v1864_v14 = vpop.f32.mrb[95].mxu1  ;;  %3095 = vmatmul.mubr.f32.gmra.mrb[200].mxu1 %v6083_v60  ;;  %2800 = vmatprep.mubr.f32.mxu0 %v6084_v42  ;;  %v6090_v52 = vld [vmem:[%s7003_s28 + $0x88] sm:$0xff]  ;;  %v3350_v49 = vld [vmem:[#allocation14 + $0x90] sm:$0xff]  ;;  %v3351_v17 = vld [vmem:[#allocation14 + $0x98] sm:$0xff] }
 0x310   : > { %v1630_v5 = vmul.f32 0.18033688, %v1532_v32  ;;  %3099 = vmatprep.mubr.f32.mxu1 %v6084_v42  ;;  %5690 = vmatpush1.bf16.msra.mxu0 %v5689_v10  ;;  %v5749_v32 = vpack.c.bf16 %v3646_v55, %v3645_v54  ;;  %v3647_v14 = vld [vmem:[#allocation14 + $0x190] sm:$0xff]  ;;  %v3648_v42 = vld [vmem:[#allocation14 + $0x198] sm:$0xff] }
 0x311   : > { %v1961_v59 = vmul.f32 0.18033688, %v1863_v40  ;;  %v1536_v23 = vpop.f32.mrb[96].mxu0  ;;  %5738 = vmatpush1.bf16.msra.mxu1 %v5737_v61  ;;  %5691 = vmatprep.subr.bf16.mxu0 %v9176_v0  ;;  %v5701_v61 = vpack.c.bf16 %v3349_v39, %v3348_v45  ;;  %v6091_v40 = vld [vmem:[%s7003_s28 + $0x80] sm:$0xff] }
 0x312   : > { %5025 = vst [vmem:[%s7541_s2 + $0x278] sm:$0xff] %v1630_v5  ;;  %v1537_v56 = vadd.f32 %v7784_v38, %v1536_v23  ;;  %v1867_v57 = vpop.f32.mrb[96].mxu1  ;;  %v1538_v35 = vpop.f32.mrb[97].mxu0  ;;  %2801 = vmatmul.mubr.f32.gmra.mrb[202].mxu0 %v6085_v36  ;;  %5739 = vmatprep.subr.bf16.mxu1 %v9176_v0 }
 0x313   : > { %5058 = vst [vmem:[%s7541_s2 + $0x378] sm:$0xff] %v1961_v59  ;;  %v1868_v7 = vadd.f32 %v7787_v48, %v1867_v57  ;;  %v1869_v8 = vpop.f32.mrb[97].mxu1  ;;  %3100 = vmatmul.mubr.f32.gmra.mrb[202].mxu1 %v6085_v36  ;;  %2805 = vmatprep.mubr.f32.mxu0 %v6086_v11  ;;  %v6092_v59 = vld [vmem:[%s7003_s28 + $0x98] sm:$0xff]  ;;  %v3352_v57 = vld [vmem:[#allocation14 + $0xa0] sm:$0xff]  ;;  %v3353_v35 = vld [vmem:[#allocation14 + $0xa8] sm:$0xff] }
 0x314   : > { %v1631_v12 = vmul.f32 0.18033688, %v1537_v56  ;;  %3104 = vmatprep.mubr.f32.mxu1 %v6086_v11  ;;  %5693 = vmatpush1.bf16.msra.mxu0 %v5692_v6  ;;  %v5752_v56 = vpack.c.bf16 %v3648_v42, %v3647_v14  ;;  %v3649_v8 = vld [vmem:[#allocation14 + $0x1a0] sm:$0xff]  ;;  %v3650_v11 = vld [vmem:[#allocation14 + $0x1a8] sm:$0xff] }
 0x315   : > { %v1962_v16 = vmul.f32 0.18033688, %v1868_v7  ;;  %v1541_v19 = vpop.f32.mrb[98].mxu0  ;;  %5741 = vmatpush1.bf16.msra.mxu1 %v5740_v24  ;;  %5694 = vmatprep.subr.bf16.mxu0 %v9176_v0  ;;  %v5704_v24 = vpack.c.bf16 %v3351_v17, %v3350_v49  ;;  %v6093_v7 = vld [vmem:[%s7003_s28 + $0x90] sm:$0xff] }
 0x316   : > { %5026 = vst [vmem:[%s7541_s2 + $0x280] sm:$0xff] %v1631_v12  ;;  %v1542_v27 = vadd.f32 %v7784_v38, %v1541_v19  ;;  %v1872_v41 = vpop.f32.mrb[98].mxu1  ;;  %v1543_v51 = vpop.f32.mrb[99].mxu0  ;;  %2806 = vmatmul.mubr.f32.gmra.mrb[204].mxu0 %v6087_v28  ;;  %5742 = vmatprep.subr.bf16.mxu1 %v9176_v0 }
 0x317   : > { %5059 = vst [vmem:[%s7541_s2 + $0x380] sm:$0xff] %v1962_v16  ;;  %v1873_v34 = vadd.f32 %v7787_v48, %v1872_v41  ;;  %v1874_v58 = vpop.f32.mrb[99].mxu1  ;;  %3105 = vmatmul.mubr.f32.gmra.mrb[204].mxu1 %v6087_v28  ;;  %2810 = vmatprep.mubr.f32.mxu0 %v6088_v1  ;;  %v6094_v16 = vld [vmem:[%s7003_s28 + $0xa8] sm:$0xff]  ;;  %v3354_v41 = vld [vmem:[#allocation14 + $0xb0] sm:$0xff]  ;;  %v3355_v51 = vld [vmem:[#allocation14 + $0xb8] sm:$0xff] }
 0x318   : > { %v1632_v29 = vmul.f32 0.18033688, %v1542_v27  ;;  %3109 = vmatprep.mubr.f32.mxu1 %v6088_v1  ;;  %5696 = vmatpush1.bf16.msra.mxu0 %v5695_v15  ;;  %v5755_v27 = vpack.c.bf16 %v3650_v11, %v3649_v8  ;;  %v3651_v58 = vld [vmem:[#allocation14 + $0x1b0] sm:$0xff]  ;;  %v3652_v1 = vld [vmem:[#allocation14 + $0x1b8] sm:$0xff] }
 0x319   : > { %v1963_v2 = vmul.f32 0.18033688, %v1873_v34  ;;  %v1546_v50 = vpop.f32.mrb[100].mxu0  ;;  %5744 = vmatpush1.bf16.msra.mxu1 %v5743_v20  ;;  %5697 = vmatprep.subr.bf16.mxu0 %v9176_v0  ;;  %v5707_v20 = vpack.c.bf16 %v3353_v35, %v3352_v57  ;;  %v6095_v34 = vld [vmem:[%s7003_s28 + $0xa0] sm:$0xff] }
 0x31a   : > { %5027 = vst [vmem:[%s7541_s2 + $0x288] sm:$0xff] %v1632_v29  ;;  %v1547_v43 = vadd.f32 %v7784_v38, %v1546_v50  ;;  %v1877_v46 = vpop.f32.mrb[100].mxu1  ;;  %v1548_v31 = vpop.f32.mrb[101].mxu0  ;;  %2811 = vmatmul.mubr.f32.gmra.mrb[206].mxu0 %v6089_v47  ;;  %5745 = vmatprep.subr.bf16.mxu1 %v9176_v0 }
 0x31b   : > { %5060 = vst [vmem:[%s7541_s2 + $0x388] sm:$0xff] %v1963_v2  ;;  %v1878_v9 = vadd.f32 %v7787_v48, %v1877_v46  ;;  %v1879_v10 = vpop.f32.mrb[101].mxu1  ;;  %3110 = vmatmul.mubr.f32.gmra.mrb[206].mxu1 %v6089_v47  ;;  %2815 = vmatprep.mubr.f32.mxu0 %v6090_v52  ;;  %v6096_v2 = vld [vmem:[%s7003_s28 + $0xb8] sm:$0xff]  ;;  %v3356_v46 = vld [vmem:[#allocation14 + $0xc0] sm:$0xff]  ;;  %v3357_v31 = vld [vmem:[#allocation14 + $0xc8] sm:$0xff] }
 0x31c   : > { %v1633_v37 = vmul.f32 0.18033688, %v1547_v43  ;;  %3114 = vmatprep.mubr.f32.mxu1 %v6090_v52  ;;  %5699 = vmatpush1.bf16.msra.mxu0 %v5698_v30  ;;  %v5758_v43 = vpack.c.bf16 %v3652_v1, %v3651_v58  ;;  %v3653_v10 = vld [vmem:[#allocation14 + $0x1c0] sm:$0xff]  ;;  %v3654_v52 = vld [vmem:[#allocation14 + $0x1c8] sm:$0xff]  ;;  %v6104_v1 = vld [vmem:[%s7003_s28 + $0xe0] sm:$0xff] }
 0x31d   : > { %v1964_v3 = vmul.f32 0.18033688, %v1878_v9  ;;  %v1551_v4 = vpop.f32.mrb[102].mxu0  ;;  %5747 = vmatpush1.bf16.msra.mxu1 %v5746_v44  ;;  %5700 = vmatprep.subr.bf16.mxu0 %v9176_v0  ;;  %v5710_v44 = vpack.c.bf16 %v3355_v51, %v3354_v41  ;;  %v6097_v9 = vld [vmem:[%s7003_s28 + $0xb0] sm:$0xff] }
 0x31e   : > { %5028 = vst [vmem:[%s7541_s2 + $0x290] sm:$0xff] %v1633_v37  ;;  %v1552_v60 = vadd.f32 %v7784_v38, %v1551_v4  ;;  %v1882_v18 = vpop.f32.mrb[102].mxu1  ;;  %v1553_v13 = vpop.f32.mrb[103].mxu0  ;;  %2816 = vmatmul.mubr.f32.gmra.mrb[208].mxu0 %v6091_v40  ;;  %5748 = vmatprep.subr.bf16.mxu1 %v9176_v0 }
 0x31f   : > { %5061 = vst [vmem:[%s7541_s2 + $0x390] sm:$0xff] %v1964_v3  ;;  %v1883_v5 = vadd.f32 %v7787_v48, %v1882_v18  ;;  %v1884_v6 = vpop.f32.mrb[103].mxu1  ;;  %3115 = vmatmul.mubr.f32.gmra.mrb[208].mxu1 %v6091_v40  ;;  %2820 = vmatprep.mubr.f32.mxu0 %v6092_v59  ;;  %v6098_v3 = vld [vmem:[%s7003_s28 + $0xc8] sm:$0xff]  ;;  %v3358_v18 = vld [vmem:[#allocation14 + $0xd0] sm:$0xff]  ;;  %v3359_v13 = vld [vmem:[#allocation14 + $0xd8] sm:$0xff] }
 0x320   : > { %v1634_v23 = vmul.f32 0.18033688, %v1552_v60  ;;  %3119 = vmatprep.mubr.f32.mxu1 %v6092_v59  ;;  %5702 = vmatpush1.bf16.msra.mxu0 %v5701_v61  ;;  %v5761_v60 = vpack.c.bf16 %v3654_v52, %v3653_v10  ;;  %v3655_v6 = vld [vmem:[#allocation14 + $0x1d0] sm:$0xff]  ;;  %v3656_v59 = vld [vmem:[#allocation14 + $0x1d8] sm:$0xff]  ;;  %v6107_v10 = vld [vmem:[%s7003_s28 + $0xf0] sm:$0xff] }
 0x321   : > { %v1965_v25 = vmul.f32 0.18033688, %v1883_v5  ;;  %v1556_v26 = vpop.f32.mrb[104].mxu0  ;;  %5750 = vmatpush1.bf16.msra.mxu1 %v5749_v32  ;;  %5703 = vmatprep.subr.bf16.mxu0 %v9176_v0  ;;  %v5713_v32 = vpack.c.bf16 %v3357_v31, %v3356_v46  ;;  %v6099_v5 = vld [vmem:[%s7003_s28 + $0xc0] sm:$0xff] }
 0x322   : > { %5029 = vst [vmem:[%s7541_s2 + $0x298] sm:$0xff] %v1634_v23  ;;  %v1557_v36 = vadd.f32 %v7784_v38, %v1556_v26  ;;  %v1887_v62 = vpop.f32.mrb[104].mxu1  ;;  %v1558_v63 = vpop.f32.mrb[105].mxu0  ;;  %2821 = vmatmul.mubr.f32.gmra.mrb[210].mxu0 %v6093_v7  ;;  %5751 = vmatprep.subr.bf16.mxu1 %v9176_v0 }
 0x323   : > { %5062 = vst [vmem:[%s7541_s2 + $0x398] sm:$0xff] %v1965_v25  ;;  %v1888_v12 = vadd.f32 %v7787_v48, %v1887_v62  ;;  %v1889_v15 = vpop.f32.mrb[105].mxu1  ;;  %3120 = vmatmul.mubr.f32.gmra.mrb[210].mxu1 %v6093_v7  ;;  %2825 = vmatprep.mubr.f32.mxu0 %v6094_v16  ;;  %v6100_v25 = vld [vmem:[%s7003_s28 + $0xd8] sm:$0xff]  ;;  %v3360_v62 = vld [vmem:[#allocation14 + $0xe0] sm:$0xff]  ;;  %v3361_v63 = vld [vmem:[#allocation14 + $0xe8] sm:$0xff] }
 0x324   : > { %v1635_v19 = vmul.f32 0.18033688, %v1557_v36  ;;  %3124 = vmatprep.mubr.f32.mxu1 %v6094_v16  ;;  %5705 = vmatpush1.bf16.msra.mxu0 %v5704_v24  ;;  %v5764_v36 = vpack.c.bf16 %v3656_v59, %v3655_v6  ;;  %v3657_v15 = vld [vmem:[#allocation14 + $0x1e0] sm:$0xff]  ;;  %v3658_v16 = vld [vmem:[#allocation14 + $0x1e8] sm:$0xff] }
 0x325   : > { %v1966_v21 = vmul.f32 0.18033688, %v1888_v12  ;;  %v1561_v22 = vpop.f32.mrb[106].mxu0  ;;  %5753 = vmatpush1.bf16.msra.mxu1 %v5752_v56  ;;  %5706 = vmatprep.subr.bf16.mxu0 %v9176_v0  ;;  %v5716_v56 = vpack.c.bf16 %v3359_v13, %v3358_v18  ;;  %v6101_v12 = vld [vmem:[%s7003_s28 + $0xd0] sm:$0xff]  ;;  %v5767_v51 = vpack.c.bf16 %v3658_v16, %v3657_v15  ;;  %v6109_v18 = vld [vmem:[%s7003_s28 + $0x100] sm:$0xff]  ;;  %v6114_v16 = vld [vmem:[%s7003_s28 + $0x138] sm:$0xff] }
 0x326   : > { %5030 = vst [vmem:[%s7541_s2 + $0x2a0] sm:$0xff] %v1635_v19  ;;  %v1562_v28 = vadd.f32 %v7784_v38, %v1561_v22  ;;  %v1892_v53 = vpop.f32.mrb[106].mxu1  ;;  %v1563_v33 = vpop.f32.mrb[107].mxu0  ;;  %2826 = vmatmul.mubr.f32.gmra.mrb[212].mxu0 %v6095_v34  ;;  %5754 = vmatprep.subr.bf16.mxu1 %v9176_v0 }
 0x327   : > { %5063 = vst [vmem:[%s7541_s2 + $0x3a0] sm:$0xff] %v1966_v21  ;;  %v1893_v29 = vadd.f32 %v7787_v48, %v1892_v53  ;;  %v1894_v30 = vpop.f32.mrb[107].mxu1  ;;  %3125 = vmatmul.mubr.f32.gmra.mrb[212].mxu1 %v6095_v34  ;;  %2830 = vmatprep.mubr.f32.mxu0 %v6096_v2  ;;  %v6102_v21 = vld [vmem:[%s7003_s28 + $0xe8] sm:$0xff]  ;;  %v3363_v53 = vld [vmem:[#allocation14 + $0xf8] sm:$0xff] }
 0x328   : > { %v1636_v50 = vmul.f32 0.18033688, %v1562_v28  ;;  %3129 = vmatprep.mubr.f32.mxu1 %v6096_v2  ;;  %5708 = vmatpush1.bf16.msra.mxu0 %v5707_v20  ;;  %v3362_v28 = vld [vmem:[#allocation14 + $0xf0] sm:$0xff]  ;;  %v3660_v30 = vld [vmem:[#allocation14 + $0x1f8] sm:$0xff] }
 0x329   : > { %v1967_v45 = vmul.f32 0.18033688, %v1893_v29  ;;  %v1566_v39 = vpop.f32.mrb[108].mxu0  ;;  %5756 = vmatpush1.bf16.msra.mxu1 %v5755_v27  ;;  %5709 = vmatprep.subr.bf16.mxu0 %v9176_v0  ;;  %v3659_v29 = vld [vmem:[#allocation14 + $0x1f0] sm:$0xff]  ;;  %v7972_v2 = vld [vmem:[#allocation10 + $0x3] ss:$0 sm:$0xff] }
 0x32a   : > { %5031 = vst [vmem:[%s7541_s2 + $0x2a8] sm:$0xff] %v1636_v50  ;;  %v1567_v47 = vadd.f32 %v7784_v38, %v1566_v39  ;;  %v1897_v54 = vpop.f32.mrb[108].mxu1  ;;  %v1568_v55 = vpop.f32.mrb[109].mxu0  ;;  %2831 = vmatmul.mubr.f32.gmra.mrb[214].mxu0 %v6097_v9  ;;  %5757 = vmatprep.subr.bf16.mxu1 %v9176_v0 }
 0x32b   : > { %5064 = vst [vmem:[%s7541_s2 + $0x3a8] sm:$0xff] %v1967_v45  ;;  %v1898_v37 = vadd.f32 %v7787_v48, %v1897_v54  ;;  %v1899_v61 = vpop.f32.mrb[109].mxu1  ;;  %3130 = vmatmul.mubr.f32.gmra.mrb[214].mxu1 %v6097_v9  ;;  %2835 = vmatprep.mubr.f32.mxu0 %v6098_v3  ;;  %v6106_v45 = vld [vmem:[%s7003_s28 + $0xf8] sm:$0xff] }
 0x32c   : > { %v1637_v4 = vmul.f32 0.18033688, %v1567_v47  ;;  %3134 = vmatprep.mubr.f32.mxu1 %v6098_v3  ;;  %5711 = vmatpush1.bf16.msra.mxu0 %v5710_v44  ;;  %v5770_v47 = vpack.c.bf16 %v3660_v30, %v3659_v29  ;;  %v6108_v61 = vld [vmem:[%s7003_s28 + $0x108] sm:$0xff] }
 0x32d   : > { %v1968_v49 = vmul.f32 0.18033688, %v1898_v37  ;;  %v1571_v17 = vpop.f32.mrb[110].mxu0  ;;  %5759 = vmatpush1.bf16.msra.mxu1 %v5758_v43  ;;  %5712 = vmatprep.subr.bf16.mxu0 %v9176_v0  ;;  %v5722_v43 = vpack.c.bf16 %v3363_v53, %v3362_v28  ;;  %v6116_v53 = vld [vmem:[%s7003_s28 + $0x148] sm:$0xff] }
 0x32e   : > { %5032 = vst [vmem:[%s7541_s2 + $0x2b0] sm:$0xff] %v1637_v4  ;;  %v1572_v40 = vadd.f32 %v7784_v38, %v1571_v17  ;;  %v1902_v14 = vpop.f32.mrb[110].mxu1  ;;  %v1573_v42 = vpop.f32.mrb[111].mxu0  ;;  %2836 = vmatmul.mubr.f32.gmra.mrb[216].mxu0 %v6099_v5  ;;  %5760 = vmatprep.subr.bf16.mxu1 %v9176_v0 }
 0x32f   : > { %5065 = vst [vmem:[%s7541_s2 + $0x3b0] sm:$0xff] %v1968_v49  ;;  %v1903_v23 = vadd.f32 %v7787_v48, %v1902_v14  ;;  %v1904_v24 = vpop.f32.mrb[111].mxu1  ;;  %3135 = vmatmul.mubr.f32.gmra.mrb[216].mxu1 %v6099_v5  ;;  %2840 = vmatprep.mubr.f32.mxu0 %v6100_v25  ;;  %v6110_v14 = vld [vmem:[%s7003_s28 + $0x118] sm:$0xff] }
 0x330   : > { %v1638_v26 = vmul.f32 0.18033688, %v1572_v40  ;;  %3139 = vmatprep.mubr.f32.mxu1 %v6100_v25  ;;  %5714 = vmatpush1.bf16.msra.mxu0 %v5713_v32  ;;  %v6111_v25 = vld [vmem:[%s7003_s28 + $0x110] sm:$0xff] }
 0x331   : > { %v1969_v57 = vmul.f32 0.18033688, %v1903_v23  ;;  %v1576_v35 = vpop.f32.mrb[112].mxu0  ;;  %5762 = vmatpush1.bf16.msra.mxu1 %v5761_v60  ;;  %5715 = vmatprep.subr.bf16.mxu0 %v9176_v0 }
 0x332   : > { %5033 = vst [vmem:[%s7541_s2 + $0x2b8] sm:$0xff] %v1638_v26  ;;  %v1577_v7 = vadd.f32 %v7784_v38, %v1576_v35  ;;  %v1907_v8 = vpop.f32.mrb[112].mxu1  ;;  %v1578_v11 = vpop.f32.mrb[113].mxu0  ;;  %2841 = vmatmul.mubr.f32.gmra.mrb[218].mxu0 %v6101_v12  ;;  %5763 = vmatprep.subr.bf16.mxu1 %v9176_v0  ;;  %v5719_v38 = vpack.c.bf16 %v3361_v63, %v3360_v62 }
 0x333   : > { %5066 = vst [vmem:[%s7541_s2 + $0x3b8] sm:$0xff] %v1969_v57  ;;  %v1908_v19 = vadd.f32 %v7787_v48, %v1907_v8  ;;  %v1909_v20 = vpop.f32.mrb[113].mxu1  ;;  %3140 = vmatmul.mubr.f32.gmra.mrb[218].mxu1 %v6101_v12  ;;  %2845 = vmatprep.mubr.f32.mxu0 %v6102_v21  ;;  %v7966_v48 = vld [vmem:[#allocation10 + $0x2] ss:$0 sm:$0xff]  ;;  %v6112_v57 = vld [vmem:[%s7003_s28 + $0x128] sm:$0xff] }
 0x334   : > { %v1639_v22 = vmul.f32 0.18033688, %v1577_v7  ;;  %3144 = vmatprep.mubr.f32.mxu1 %v6102_v21  ;;  %5717 = vmatpush1.bf16.msra.mxu0 %v5716_v56  ;;  %v6113_v11 = vld [vmem:[%s7003_s28 + $0x120] sm:$0xff] }
 0x335   : > { %v1970_v27 = vmul.f32 0.18033688, %v1908_v19  ;;  %v1581_v41 = vpop.f32.mrb[114].mxu0  ;;  %5765 = vmatpush1.bf16.msra.mxu1 %v5764_v36  ;;  %5718 = vmatprep.subr.bf16.mxu0 %v9176_v0 }
 0x336   : > { %5034 = vst [vmem:[%s7541_s2 + $0x2c0] sm:$0xff] %v1639_v22  ;;  %v1582_v33 = vadd.f32 %v7966_v48, %v1581_v41  ;;  %v1912_v34 = vpop.f32.mrb[114].mxu1  ;;  %v1583_v58 = vpop.f32.mrb[115].mxu0  ;;  %2846 = vmatmul.mubr.f32.gmra.mrb[220].mxu0 %v6104_v1  ;;  %5766 = vmatprep.subr.bf16.mxu1 %v9176_v0  ;;  %v6115_v41 = vld [vmem:[%s7003_s28 + $0x130] sm:$0xff] }
 0x337   : > { %5067 = vst [vmem:[%s7541_s2 + $0x3c0] sm:$0xff] %v1970_v27  ;;  %v1913_v50 = vadd.f32 %v7972_v2, %v1912_v34  ;;  %v1914_v44 = vpop.f32.mrb[115].mxu1  ;;  %3145 = vmatmul.mubr.f32.gmra.mrb[220].mxu1 %v6104_v1  ;;  %2850 = vmatprep.mubr.f32.mxu0 %v6106_v45 }
 0x338   : > { %v1640_v39 = vmul.f32 0.18033688, %v1582_v33  ;;  %3149 = vmatprep.mubr.f32.mxu1 %v6106_v45  ;;  %5720 = vmatpush1.bf16.msra.mxu0 %v5719_v38 }
 0x339   : > { %v1971_v46 = vmul.f32 0.18033688, %v1913_v50  ;;  %v1586_v31 = vpop.f32.mrb[116].mxu0  ;;  %5768 = vmatpush1.bf16.msra.mxu1 %v5767_v51  ;;  %5721 = vmatprep.subr.bf16.mxu0 %v9176_v0  ;;  %v6117_v50 = vld [vmem:[%s7003_s28 + $0x140] sm:$0xff] }
 0x33a   : > { %5035 = vst [vmem:[%s7541_s2 + $0x2c8] sm:$0xff] %v1640_v39  ;;  %v1587_v54 = vadd.f32 %v7966_v48, %v1586_v31  ;;  %v1917_v55 = vpop.f32.mrb[116].mxu1  ;;  %v1588_v9 = vpop.f32.mrb[117].mxu0  ;;  %2851 = vmatmul.mubr.f32.gmra.mrb[222].mxu0 %v6107_v10  ;;  %5769 = vmatprep.subr.bf16.mxu1 %v9176_v0  ;;  %v8015_v39 = vld [vmem:[#allocation13] ss:$0 sm:$0xff] }
 0x33b   : > { %5068 = vst [vmem:[%s7541_s2 + $0x3c8] sm:$0xff] %v1971_v46  ;;  %v1918_v52 = vadd.f32 %v7972_v2, %v1917_v55  ;;  %v1919_v37 = vpop.f32.mrb[117].mxu1  ;;  %3150 = vmatmul.mubr.f32.gmra.mrb[222].mxu1 %v6107_v10  ;;  %2855 = vmatprep.mubr.f32.mxu0 %v6108_v61  ;;  %v8018_v31 = vld [vmem:[#allocation13 + $0x1] ss:$0 sm:$0xff]  ;;  %v6119_v9 = vld [vmem:[%s7003_s28 + $0x150] sm:$0xff] }
 0x33c   : > { %v1641_v3 = vmul.f32 0.18033688, %v1587_v54  ;;  %3154 = vmatprep.mubr.f32.mxu1 %v6108_v61  ;;  %5723 = vmatpush1.bf16.msra.mxu0 %v5722_v43  ;;  %v6118_v43 = vld [vmem:[%s7003_s28 + $0x158] sm:$0xff]  ;;  %v6120_v37 = vld [vmem:[%s7003_s28 + $0x168] sm:$0xff] }
 0x33d   : > { %v1972_v4 = vmul.f32 0.18033688, %v1918_v52  ;;  %v1591_v32 = vpop.f32.mrb[118].mxu0  ;;  %5771 = vmatpush1.bf16.msra.mxu1 %v5770_v47  ;;  %5772 = vmatprep.subr.bf16.mxu0 %v9176_v0 }
 0x33e   : > { %5036 = vst [vmem:[%s7541_s2 + $0x2d0] sm:$0xff] %v1641_v3  ;;  %v1592_v49 = vadd.f32 %v7966_v48, %v1591_v32  ;;  %v1922_v17 = vpop.f32.mrb[118].mxu1  ;;  %v1593_v60 = vpop.f32.mrb[119].mxu0  ;;  %2856 = vmatmul.mubr.f32.gmra.mrb[224].mxu0 %v6109_v18  ;;  %5820 = vmatprep.subr.bf16.mxu1 %v9176_v0 }
 0x33f   : > { %5069 = vst [vmem:[%s7541_s2 + $0x3d0] sm:$0xff] %v1972_v4  ;;  %v1923_v13 = vadd.f32 %v7972_v2, %v1922_v17  ;;  %v1924_v40 = vpop.f32.mrb[119].mxu1  ;;  %3155 = vmatmul.mubr.f32.gmra.mrb[224].mxu1 %v6109_v18  ;;  %2860 = vmatprep.mubr.f32.mxu0 %v6110_v14  ;;  %v6122_v18 = vld [vmem:[%s7003_s28 + $0x178] sm:$0xff] }
 0x340   : > { %v1642_v42 = vmul.f32 0.18033688, %v1592_v49  ;;  %3159 = vmatprep.mubr.f32.mxu1 %v6110_v14  ;;  %v6121_v49 = vld [vmem:[%s7003_s28 + $0x160] sm:$0xff] }
 0x341   : > { %v1973_v5 = vmul.f32 0.18033688, %v1923_v13  ;;  %v1596_v6 = vpop.f32.mrb[120].mxu0 }
 0x342   : > { %5037 = vst [vmem:[%s7541_s2 + $0x2d8] sm:$0xff] %v1642_v42  ;;  %v1597_v59 = vadd.f32 %v7966_v48, %v1596_v6  ;;  %v1927_v23 = vpop.f32.mrb[120].mxu1  ;;  %v1598_v24 = vpop.f32.mrb[121].mxu0  ;;  %2861 = vmatmul.mubr.f32.gmra.mrb[226].mxu0 %v6111_v25 }
 0x343   : > { %5070 = vst [vmem:[%s7541_s2 + $0x3d8] sm:$0xff] %v1973_v5  ;;  %v1928_v26 = vadd.f32 %v7972_v2, %v1927_v23  ;;  %v1929_v56 = vpop.f32.mrb[121].mxu1  ;;  %3160 = vmatmul.mubr.f32.gmra.mrb[226].mxu1 %v6111_v25  ;;  %2865 = vmatprep.mubr.f32.mxu0 %v6112_v57  ;;  %v6123_v5 = vld [vmem:[%s7003_s28 + $0x170] sm:$0xff]  ;;  %v6124_v23 = vld [vmem:[%s7003_s28 + $0x188] sm:$0xff] }
 0x344   : > { %v1643_v35 = vmul.f32 0.18033688, %v1597_v59  ;;  %3164 = vmatprep.mubr.f32.mxu1 %v6112_v57  ;;  %v6125_v57 = vld [vmem:[%s7003_s28 + $0x180] sm:$0xff] }
 0x345   : > { %v1974_v36 = vmul.f32 0.18033688, %v1928_v26  ;;  %v1601_v62 = vpop.f32.mrb[122].mxu0 }
 0x346   : > { %5038 = vst [vmem:[%s7541_s2 + $0x2e0] sm:$0xff] %v1643_v35  ;;  %v1602_v63 = vadd.f32 %v7966_v48, %v1601_v62  ;;  %v1932_v7 = vpop.f32.mrb[122].mxu1  ;;  %v1603_v8 = vpop.f32.mrb[123].mxu0  ;;  %2866 = vmatmul.mubr.f32.gmra.mrb[228].mxu0 %v6113_v11  ;;  %v6126_v62 = vld [vmem:[%s7003_s28 + $0x198] sm:$0xff] }
 0x347   : > { %5071 = vst [vmem:[%s7541_s2 + $0x3e0] sm:$0xff] %v1974_v36  ;;  %v1933_v12 = vadd.f32 %v7972_v2, %v1932_v7  ;;  %v1934_v15 = vpop.f32.mrb[123].mxu1  ;;  %3165 = vmatmul.mubr.f32.gmra.mrb[228].mxu1 %v6113_v11  ;;  %2870 = vmatprep.mubr.f32.mxu0 %v6114_v16 }
 0x348   : > { %v1644_v19 = vmul.f32 0.18033688, %v1602_v63  ;;  %3169 = vmatprep.mubr.f32.mxu1 %v6114_v16 }
 0x349   : > { %v1975_v20 = vmul.f32 0.18033688, %v1933_v12  ;;  %v1606_v21 = vpop.f32.mrb[124].mxu0  ;;  %v6127_v12 = vld [vmem:[%s7003_s28 + $0x190] sm:$0xff] }
 0x34a   : > { %5039 = vst [vmem:[%s7541_s2 + $0x2e8] sm:$0xff] %v1644_v19  ;;  %v1607_v22 = vadd.f32 %v7966_v48, %v1606_v21  ;;  %v1937_v38 = vpop.f32.mrb[124].mxu1  ;;  %v1608_v27 = vpop.f32.mrb[125].mxu0  ;;  %2871 = vmatmul.mubr.f32.gmra.mrb[230].mxu0 %v6115_v41  ;;  %v6128_v19 = vld [vmem:[%s7003_s28 + $0x1a8] sm:$0xff] }
 0x34b   : > { %5072 = vst [vmem:[%s7541_s2 + $0x3e8] sm:$0xff] %v1975_v20  ;;  %v1938_v51 = vadd.f32 %v7972_v2, %v1937_v38  ;;  %v1939_v28 = vpop.f32.mrb[125].mxu1  ;;  %3170 = vmatmul.mubr.f32.gmra.mrb[230].mxu1 %v6115_v41  ;;  %2875 = vmatprep.mubr.f32.mxu0 %v6116_v53  ;;  %v6129_v27 = vld [vmem:[%s7003_s28 + $0x1a0] sm:$0xff] }
 0x34c   : > { %v1645_v33 = vmul.f32 0.18033688, %v1607_v22  ;;  %3174 = vmatprep.mubr.f32.mxu1 %v6116_v53  ;;  %v6130_v28 = vld [vmem:[%s7003_s28 + $0x1b8] sm:$0xff] }
 0x34d   : > { %v1976_v34 = vmul.f32 0.18033688, %v1938_v51  ;;  %v1611_v58 = vpop.f32.mrb[126].mxu0 }
 0x34e   : > { %5040 = vst [vmem:[%s7541_s2 + $0x2f0] sm:$0xff] %v1645_v33  ;;  %v1612_v1 = vadd.f32 %v7966_v48, %v1611_v58  ;;  %v1942_v29 = vpop.f32.mrb[126].mxu1  ;;  %v1613_v30 = vpop.f32.mrb[127].mxu0  ;;  %2876 = vmatmul.mubr.f32.gmra.mrb[232].mxu0 %v6117_v50 }
 0x34f   : > { %5073 = vst [vmem:[%s7541_s2 + $0x3f0] sm:$0xff] %v1976_v34  ;;  %v1943_v44 = vadd.f32 %v7972_v2, %v1942_v29  ;;  %v1944_v45 = vpop.f32.mrb[127].mxu1  ;;  %3175 = vmatmul.mubr.f32.gmra.mrb[232].mxu1 %v6117_v50  ;;  %2880 = vmatprep.mubr.f32.mxu0 %v6118_v43  ;;  %v6132_v50 = vld [vmem:[%s7003_s28 + $0x1c8] sm:$0xff] }
 0x350   : > { %v1646_v46 = vmul.f32 0.18033688, %v1612_v1  ;;  %3179 = vmatprep.mubr.f32.mxu1 %v6118_v43  ;;  %v6131_v1 = vld [vmem:[%s7003_s28 + $0x1b0] sm:$0xff] }
 0x351   : > { %v1977_v48 = vmul.f32 0.18033688, %v1943_v44  ;;  %v2180_v47 = vpop.f32.mrb[128].mxu0 }
 0x352   : > { %5041 = vst [vmem:[%s7541_s2 + $0x2f8] sm:$0xff] %v1646_v46  ;;  %v2181_v54 = vadd.f32 %v8015_v39, %v2180_v47  ;;  %v2478_v55 = vpop.f32.mrb[128].mxu1  ;;  %v2182_v2 = vpop.f32.mrb[129].mxu0  ;;  %2881 = vmatmul.mubr.f32.gmra.mrb[234].mxu0 %v6119_v9 }
 0x353   : > { %5074 = vst [vmem:[%s7541_s2 + $0x3f8] sm:$0xff] %v1977_v48  ;;  %v2479_v10 = vadd.f32 %v8018_v31, %v2478_v55  ;;  %v2480_v52 = vpop.f32.mrb[129].mxu1  ;;  %3180 = vmatmul.mubr.f32.gmra.mrb[234].mxu1 %v6119_v9  ;;  %2885 = vmatprep.mubr.f32.mxu0 %v6120_v37  ;;  %v6133_v48 = vld [vmem:[%s7003_s28 + $0x1c0] sm:$0xff]  ;;  %v6134_v55 = vld [vmem:[%s7003_s28 + $0x1d8] sm:$0xff] }
 0x354   : > { %2339 = vst [vmem:[%s8027_s10] sm:$0xff] %v2181_v54  ;;  %3184 = vmatprep.mubr.f32.mxu1 %v6120_v37  ;;  %v6135_v37 = vld [vmem:[%s7003_s28 + $0x1d0] sm:$0xff] }
 0x355   : > { %5077 = vst [vmem:[%s8027_s10 + $0x100] sm:$0xff] %v2479_v10  ;;  %v2185_v61 = vpop.f32.mrb[130].mxu0 }
 0x356   : > { %v2186_v3 = vadd.f32 %v8015_v39, %v2185_v61  ;;  %v2483_v4 = vpop.f32.mrb[130].mxu1  ;;  %v2187_v32 = vpop.f32.mrb[131].mxu0  ;;  %2886 = vmatmul.mubr.f32.gmra.mrb[236].mxu0 %v6121_v49 }
 0x357   : > { %v2484_v17 = vadd.f32 %v8018_v31, %v2483_v4  ;;  %v2485_v60 = vpop.f32.mrb[131].mxu1  ;;  %3185 = vmatmul.mubr.f32.gmra.mrb[236].mxu1 %v6121_v49  ;;  %2890 = vmatprep.mubr.f32.mxu0 %v6122_v18  ;;  %v6136_v4 = vld [vmem:[%s7003_s28 + $0x1e8] sm:$0xff] }
 0x358   : > { %2340 = vst [vmem:[%s8027_s10 + $0x8] sm:$0xff] %v2186_v3  ;;  %3189 = vmatprep.mubr.f32.mxu1 %v6122_v18  ;;  %v6137_v18 = vld [vmem:[%s7003_s28 + $0x1e0] sm:$0xff] }
 0x359   : > { %5078 = vst [vmem:[%s8027_s10 + $0x108] sm:$0xff] %v2484_v17  ;;  %v2190_v13 = vpop.f32.mrb[132].mxu0 }
 0x35a   : > { %v2191_v40 = vadd.f32 %v8015_v39, %v2190_v13  ;;  %v2488_v14 = vpop.f32.mrb[132].mxu1  ;;  %v2192_v42 = vpop.f32.mrb[133].mxu0  ;;  %2891 = vmatmul.mubr.f32.gmra.mrb[238].mxu0 %v6123_v5 }
 0x35b   : > { %v2489_v6 = vadd.f32 %v8018_v31, %v2488_v14  ;;  %v2490_v59 = vpop.f32.mrb[133].mxu1  ;;  %3190 = vmatmul.mubr.f32.gmra.mrb[238].mxu1 %v6123_v5  ;;  %2895 = vmatprep.mubr.f32.mxu0 %v6124_v23  ;;  %v6138_v14 = vld [vmem:[%s7003_s28 + $0x1f8] sm:$0xff]  ;;  %v3269_v42 = vld [vmem:[%s7009_s27 + $0x8] sm:$0xff] }
 0x35c   : > { %2341 = vst [vmem:[%s8027_s10 + $0x10] sm:$0xff] %v2191_v40  ;;  %3194 = vmatprep.mubr.f32.mxu1 %v6124_v23  ;;  %v3928_v5 = vld [vmem:[#allocation14 + $0x200] sm:$0xff] }
 0x35d   : > { %5079 = vst [vmem:[%s8027_s10 + $0x110] sm:$0xff] %v2489_v6  ;;  %v2195_v24 = vpop.f32.mrb[134].mxu0  ;;  %v3929_v6 = vld [vmem:[#allocation14 + $0x208] sm:$0xff]  ;;  %v4227_v23 = vld [vmem:[#allocation14 + $0x300] sm:$0xff] }
 0x35e   : > { %v2196_v25 = vadd.f32 %v8015_v39, %v2195_v24  ;;  %v2493_v26 = vpop.f32.mrb[134].mxu1  ;;  %v2197_v56 = vpop.f32.mrb[135].mxu0  ;;  %2896 = vmatmul.mubr.f32.gmra.mrb[240].mxu0 %v6125_v57  ;;  %v4228_v24 = vld [vmem:[#allocation14 + $0x308] sm:$0xff] }
 0x35f   : > { %v2494_v35 = vadd.f32 %v8018_v31, %v2493_v26  ;;  %v2495_v36 = vpop.f32.mrb[135].mxu1  ;;  %3195 = vmatmul.mubr.f32.gmra.mrb[240].mxu1 %v6125_v57  ;;  %2900 = vmatprep.mubr.f32.mxu0 %v6126_v62  ;;  %v6139_v57 = vld [vmem:[%s7003_s28 + $0x1f0] sm:$0xff] }
 0x360   : > { %2342 = vst [vmem:[%s8027_s10 + $0x18] sm:$0xff] %v2196_v25  ;;  %3199 = vmatprep.mubr.f32.mxu1 %v6126_v62  ;;  %v3268_v62 = vld [vmem:[%s7009_s27] sm:$0xff] }
 0x361   : > { %5080 = vst [vmem:[%s8027_s10 + $0x118] sm:$0xff] %v2494_v35  ;;  %v2200_v63 = vpop.f32.mrb[136].mxu0 }
 0x362   : > { %v2201_v7 = vadd.f32 %v8015_v39, %v2200_v63  ;;  %v2498_v8 = vpop.f32.mrb[136].mxu1  ;;  %v2202_v11 = vpop.f32.mrb[137].mxu0  ;;  %2901 = vmatmul.mubr.f32.gmra.mrb[242].mxu0 %v6127_v12  ;;  %v5773_v63 = vpack.c.bf16 %v3929_v6, %v3928_v5 }
 0x363   : > { %v2499_v15 = vadd.f32 %v8018_v31, %v2498_v8  ;;  %v2500_v16 = vpop.f32.mrb[137].mxu1  ;;  %3200 = vmatmul.mubr.f32.gmra.mrb[242].mxu1 %v6127_v12  ;;  %2905 = vmatprep.mubr.f32.mxu0 %v6128_v19  ;;  %v3271_v11 = vld [vmem:[%s7009_s27 + $0x18] sm:$0xff] }
 0x364   : > { %2343 = vst [vmem:[%s8027_s10 + $0x20] sm:$0xff] %v2201_v7  ;;  %3204 = vmatprep.mubr.f32.mxu1 %v6128_v19  ;;  %v5821_v7 = vpack.c.bf16 %v4228_v24, %v4227_v23  ;;  %v3930_v12 = vld [vmem:[#allocation14 + $0x210] sm:$0xff]  ;;  %v4236_v23 = vld [vmem:[#allocation14 + $0x348] sm:$0xff] }
 0x365   : > { %5081 = vst [vmem:[%s8027_s10 + $0x120] sm:$0xff] %v2499_v15  ;;  %v2205_v20 = vpop.f32.mrb[138].mxu0  ;;  %v3931_v15 = vld [vmem:[#allocation14 + $0x218] sm:$0xff] }
 0x366   : > { %v2206_v21 = vadd.f32 %v8015_v39, %v2205_v20  ;;  %v2503_v22 = vpop.f32.mrb[138].mxu1  ;;  %v2207_v38 = vpop.f32.mrb[139].mxu0  ;;  %2906 = vmatmul.mubr.f32.gmra.mrb[244].mxu0 %v6129_v27 }
 0x367   : > { %v2504_v41 = vadd.f32 %v8018_v31, %v2503_v22  ;;  %v2505_v51 = vpop.f32.mrb[139].mxu1  ;;  %3205 = vmatmul.mubr.f32.gmra.mrb[244].mxu1 %v6129_v27  ;;  %2910 = vmatprep.mubr.f32.mxu0 %v6130_v28  ;;  %v4230_v22 = vld [vmem:[#allocation14 + $0x318] sm:$0xff] }
 0x368   : > { %2344 = vst [vmem:[%s8027_s10 + $0x28] sm:$0xff] %v2206_v21  ;;  %3209 = vmatprep.mubr.f32.mxu1 %v6130_v28  ;;  %v4229_v21 = vld [vmem:[#allocation14 + $0x310] sm:$0xff]  ;;  %v3273_v51 = vld [vmem:[%s7009_s27 + $0x28] sm:$0xff]  ;;  %v5776_v28 = vpack.c.bf16 %v3931_v15, %v3930_v12  ;;  %v4238_v15 = vld [vmem:[#allocation14 + $0x358] sm:$0xff] }
 0x369   : > { %5082 = vst [vmem:[%s8027_s10 + $0x128] sm:$0xff] %v2504_v41  ;;  %v2210_v53 = vpop.f32.mrb[140].mxu0  ;;  %v3270_v41 = vld [vmem:[%s7009_s27 + $0x10] sm:$0xff]  ;;  %v4237_v12 = vld [vmem:[#allocation14 + $0x350] sm:$0xff] }
 0x36a   : > { %v2211_v33 = vadd.f32 %v8015_v39, %v2210_v53  ;;  %v2508_v34 = vpop.f32.mrb[140].mxu1  ;;  %v2212_v58 = vpop.f32.mrb[141].mxu0  ;;  %2911 = vmatmul.mubr.f32.gmra.mrb[246].mxu0 %v6131_v1 }
 0x36b   : > { %v2509_v29 = vadd.f32 %v8018_v31, %v2508_v34  ;;  %v2510_v30 = vpop.f32.mrb[141].mxu1  ;;  %3210 = vmatmul.mubr.f32.gmra.mrb[246].mxu1 %v6131_v1  ;;  %2915 = vmatprep.mubr.f32.mxu0 %v6132_v50  ;;  %v3932_v34 = vld [vmem:[#allocation14 + $0x220] sm:$0xff]  ;;  %v3933_v58 = vld [vmem:[#allocation14 + $0x228] sm:$0xff] }
 0x36c   : > { %2345 = vst [vmem:[%s8027_s10 + $0x30] sm:$0xff] %v2211_v33  ;;  %3214 = vmatprep.mubr.f32.mxu1 %v6132_v50  ;;  %v5824_v33 = vpack.c.bf16 %v4230_v22, %v4229_v21  ;;  %v4231_v50 = vld [vmem:[#allocation14 + $0x320] sm:$0xff] }
 0x36d   : > { %5083 = vst [vmem:[%s8027_s10 + $0x130] sm:$0xff] %v2509_v29  ;;  %v2215_v44 = vpop.f32.mrb[142].mxu0  ;;  %v3281_v21 = vld [vmem:[%s7009_s27 + $0x68] sm:$0xff] }
 0x36e   : > { %v2216_v45 = vadd.f32 %v8015_v39, %v2215_v44  ;;  %v2513_v43 = vpop.f32.mrb[142].mxu1  ;;  %v2217_v46 = vpop.f32.mrb[143].mxu0  ;;  %2916 = vmatmul.mubr.f32.gmra.mrb[248].mxu0 %v6133_v48  ;;  %v4232_v44 = vld [vmem:[#allocation14 + $0x328] sm:$0xff] }
 0x36f   : > { %v2514_v47 = vadd.f32 %v8018_v31, %v2513_v43  ;;  %v2515_v54 = vpop.f32.mrb[143].mxu1  ;;  %3215 = vmatmul.mubr.f32.gmra.mrb[248].mxu1 %v6133_v48  ;;  %2920 = vmatprep.mubr.f32.mxu0 %v6134_v55  ;;  %v3272_v46 = vld [vmem:[%s7009_s27 + $0x20] sm:$0xff]  ;;  %v3275_v48 = vld [vmem:[%s7009_s27 + $0x38] sm:$0xff] }
 0x370   : > { %2346 = vst [vmem:[%s8027_s10 + $0x38] sm:$0xff] %v2216_v45  ;;  %3219 = vmatprep.mubr.f32.mxu1 %v6134_v55  ;;  %v5827_v55 = vpack.c.bf16 %v4232_v44, %v4231_v50  ;;  %v3283_v50 = vld [vmem:[%s7009_s27 + $0x78] sm:$0xff] }
 0x371   : > { %5084 = vst [vmem:[%s8027_s10 + $0x138] sm:$0xff] %v2514_v47  ;;  %v2220_v2 = vpop.f32.mrb[144].mxu0  ;;  %v5779_v47 = vpack.c.bf16 %v3933_v58, %v3932_v34  ;;  %v4239_v34 = vld [vmem:[#allocation14 + $0x360] sm:$0xff]  ;;  %v4240_v58 = vld [vmem:[#allocation14 + $0x368] sm:$0xff] }
 0x372   : > { %v2221_v9 = vadd.f32 %v8015_v39, %v2220_v2  ;;  %v2518_v10 = vpop.f32.mrb[144].mxu1  ;;  %v2222_v52 = vpop.f32.mrb[145].mxu0  ;;  %2921 = vmatmul.mubr.f32.gmra.mrb[250].mxu0 %v6135_v37  ;;  %v3934_v2 = vld [vmem:[#allocation14 + $0x230] sm:$0xff] }
 0x373   : > { %v2519_v61 = vadd.f32 %v8018_v31, %v2518_v10  ;;  %v2520_v3 = vpop.f32.mrb[145].mxu1  ;;  %3220 = vmatmul.mubr.f32.gmra.mrb[250].mxu1 %v6135_v37  ;;  %2925 = vmatprep.mubr.f32.mxu0 %v6136_v4 }
 0x374   : > { %2347 = vst [vmem:[%s8027_s10 + $0x40] sm:$0xff] %v2221_v9  ;;  %3224 = vmatprep.mubr.f32.mxu1 %v6136_v4  ;;  %v3935_v9 = vld [vmem:[#allocation14 + $0x238] sm:$0xff] }
 0x375   : > { %5085 = vst [vmem:[%s8027_s10 + $0x140] sm:$0xff] %v2519_v61  ;;  %v2225_v32 = vpop.f32.mrb[146].mxu0  ;;  %v4233_v61 = vld [vmem:[#allocation14 + $0x330] sm:$0xff]  ;;  %v4234_v3 = vld [vmem:[#allocation14 + $0x338] sm:$0xff] }
 0x376   : > { %v2226_v49 = vadd.f32 %v8015_v39, %v2225_v32  ;;  %v2523_v17 = vpop.f32.mrb[146].mxu1  ;;  %v2227_v60 = vpop.f32.mrb[147].mxu0  ;;  %2926 = vmatmul.mubr.f32.gmra.mrb[252].mxu0 %v6137_v18 }
 0x377   : > { %v2524_v13 = vadd.f32 %v8018_v31, %v2523_v17  ;;  %v2525_v40 = vpop.f32.mrb[147].mxu1  ;;  %3225 = vmatmul.mubr.f32.gmra.mrb[252].mxu1 %v6137_v18  ;;  %2930 = vmatprep.mubr.f32.mxu0 %v6138_v14  ;;  %v3277_v17 = vld [vmem:[%s7009_s27 + $0x48] sm:$0xff]  ;;  %v5782_v60 = vpack.c.bf16 %v3935_v9, %v3934_v2  ;;  %v4241_v2 = vld [vmem:[#allocation14 + $0x370] sm:$0xff]  ;;  %v4242_v9 = vld [vmem:[#allocation14 + $0x378] sm:$0xff] }
 0x378   : > { %2348 = vst [vmem:[%s8027_s10 + $0x48] sm:$0xff] %v2226_v49  ;;  %3229 = vmatprep.mubr.f32.mxu1 %v6138_v14  ;;  %v3274_v49 = vld [vmem:[%s7009_s27 + $0x30] sm:$0xff]  ;;  %v3936_v40 = vld [vmem:[#allocation14 + $0x240] sm:$0xff] }
 0x379   : > { %5086 = vst [vmem:[%s8027_s10 + $0x148] sm:$0xff] %v2524_v13  ;;  %v2230_v59 = vpop.f32.mrb[148].mxu0  ;;  %v5830_v13 = vpack.c.bf16 %v4234_v3, %v4233_v61  ;;  %v3937_v14 = vld [vmem:[#allocation14 + $0x248] sm:$0xff]  ;;  %v3285_v61 = vld [vmem:[%s7009_s27 + $0x88] sm:$0xff] }
 0x37a   : > { %v2231_v25 = vadd.f32 %v8015_v39, %v2230_v59  ;;  %v2528_v26 = vpop.f32.mrb[148].mxu1  ;;  %v2232_v56 = vpop.f32.mrb[149].mxu0  ;;  %2931 = vmatmul.mubr.f32.gmra.mrb[254].mxu0 %v6139_v57  ;;  %v4235_v59 = vld [vmem:[#allocation14 + $0x340] sm:$0xff] }
 0x37b   : > { %v2529_v35 = vadd.f32 %v8018_v31, %v2528_v26  ;;  %v2530_v36 = vpop.f32.mrb[149].mxu1  ;;  %3230 = vmatmul.mubr.f32.gmra.mrb[254].mxu1 %v6139_v57  ;;  %3435 = vmatprep.mubr.f32.mxu0 %v3269_v42  ;;  %v3276_v26 = vld [vmem:[%s7009_s27 + $0x40] sm:$0xff]  ;;  %v3279_v56 = vld [vmem:[%s7009_s27 + $0x58] sm:$0xff]  ;;  %v5785_v57 = vpack.c.bf16 %v3937_v14, %v3936_v40  ;;  %v4243_v40 = vld [vmem:[#allocation14 + $0x380] sm:$0xff] }
 0x37c   : > { %2349 = vst [vmem:[%s8027_s10 + $0x50] sm:$0xff] %v2231_v25  ;;  %3733 = vmatprep.mubr.f32.mxu1 %v3269_v42  ;;  %v5833_v36 = vpack.c.bf16 %v4236_v23, %v4235_v59  ;;  %v4244_v14 = vld [vmem:[#allocation14 + $0x388] sm:$0xff]  ;;  %v3287_v59 = vld [vmem:[%s7009_s27 + $0x98] sm:$0xff] }
 0x37d   : > { %5087 = vst [vmem:[%s8027_s10 + $0x150] sm:$0xff] %v2529_v35  ;;  %v2235_v8 = vpop.f32.mrb[150].mxu0 }
 0x37e   : > { %v2236_v16 = vadd.f32 %v8015_v39, %v2235_v8  ;;  %v2533_v19 = vpop.f32.mrb[150].mxu1  ;;  %v2237_v20 = vpop.f32.mrb[151].mxu0  ;;  %3436 = vmatmul.mubr.f32.vlgmr.msra.gmra.mrb[0].mxu0 %v3268_v62 }
 0x37f   : > { %v2534_v38 = vadd.f32 %v8018_v31, %v2533_v19  ;;  %v2535_v27 = vpop.f32.mrb[151].mxu1  ;;  %3734 = vmatmul.mubr.f32.vlgmr.msra.gmra.mrb[0].mxu1 %v3268_v62  ;;  %5774 = vmatpush1.bf16.msra.mxu0 %v5773_v63  ;;  %v3938_v62 = vld [vmem:[#allocation14 + $0x250] sm:$0xff]  ;;  %v3939_v63 = vld [vmem:[#allocation14 + $0x258] sm:$0xff]  ;;  %v3278_v20 = vld [vmem:[%s7009_s27 + $0x50] sm:$0xff] }
 0x380   : > { %2350 = vst [vmem:[%s8027_s10 + $0x58] sm:$0xff] %v2236_v16  ;;  %5822 = vmatpush1.bf16.msra.mxu1 %v5821_v7  ;;  %3440 = vmatprep.mubr.f32.mxu0 %v3271_v11  ;;  %v5788_v22 = vpack.c.bf16 %v3939_v63, %v3938_v62  ;;  %v5836_v27 = vpack.c.bf16 %v4238_v15, %v4237_v12  ;;  %v4245_v62 = vld [vmem:[#allocation14 + $0x390] sm:$0xff]  ;;  %v4246_v63 = vld [vmem:[#allocation14 + $0x398] sm:$0xff]  ;;  %v8164_v12 = vld [vmem:[%s7009_s27 + $0xa8] sm:$0xff] }
 0x381   : > { %5088 = vst [vmem:[%s8027_s10 + $0x158] sm:$0xff] %v2534_v38  ;;  %v2240_v53 = vpop.f32.mrb[152].mxu0  ;;  %3738 = vmatprep.mubr.f32.mxu1 %v3271_v11  ;;  %5775 = vmatprep.subr.bf16.mxu0 %v9176_v0 }
 0x382   : > { %v2241_v1 = vadd.f32 %v8015_v39, %v2240_v53  ;;  %v2538_v29 = vpop.f32.mrb[152].mxu1  ;;  %v2242_v30 = vpop.f32.mrb[153].mxu0  ;;  %3441 = vmatmul.mubr.f32.gmra.mrb[2].mxu0 %v3270_v41  ;;  %5823 = vmatprep.subr.bf16.mxu1 %v9176_v0 }
 0x383   : > { %v2539_v45 = vadd.f32 %v8018_v31, %v2538_v29  ;;  %v2540_v43 = vpop.f32.mrb[153].mxu1  ;;  %3739 = vmatmul.mubr.f32.gmra.mrb[2].mxu1 %v3270_v41  ;;  %3445 = vmatprep.mubr.f32.mxu0 %v3273_v51  ;;  %v3940_v41 = vld [vmem:[#allocation14 + $0x260] sm:$0xff]  ;;  %v3280_v30 = vld [vmem:[%s7009_s27 + $0x60] sm:$0xff] }
 0x384   : > { %2351 = vst [vmem:[%s8027_s10 + $0x60] sm:$0xff] %v2241_v1  ;;  %3743 = vmatprep.mubr.f32.mxu1 %v3273_v51  ;;  %5777 = vmatpush1.bf16.msra.mxu0 %v5776_v28  ;;  %v3941_v51 = vld [vmem:[#allocation14 + $0x268] sm:$0xff]  ;;  %v5839_v43 = vpack.c.bf16 %v4240_v58, %v4239_v34  ;;  %v8180_v34 = vld [vmem:[%s7009_s27 + $0xb8] sm:$0xff] }
 0x385   : > { %5089 = vst [vmem:[%s8027_s10 + $0x160] sm:$0xff] %v2539_v45  ;;  %v2245_v54 = vpop.f32.mrb[154].mxu0  ;;  %5825 = vmatpush1.bf16.msra.mxu1 %v5824_v33  ;;  %5778 = vmatprep.subr.bf16.mxu0 %v9176_v0  ;;  %v5791_v44 = vpack.c.bf16 %v3941_v51, %v3940_v41  ;;  %v4247_v41 = vld [vmem:[#allocation14 + $0x3a0] sm:$0xff]  ;;  %v4248_v51 = vld [vmem:[#allocation14 + $0x3a8] sm:$0xff] }
 0x386   : > { %v2246_v10 = vadd.f32 %v8015_v39, %v2245_v54  ;;  %v2543_v52 = vpop.f32.mrb[154].mxu1  ;;  %v2247_v37 = vpop.f32.mrb[155].mxu0  ;;  %3446 = vmatmul.mubr.f32.gmra.mrb[4].mxu0 %v3272_v46  ;;  %5826 = vmatprep.subr.bf16.mxu1 %v9176_v0 }
 0x387   : > { %v2544_v4 = vadd.f32 %v8018_v31, %v2543_v52  ;;  %v2545_v32 = vpop.f32.mrb[155].mxu1  ;;  %3744 = vmatmul.mubr.f32.gmra.mrb[4].mxu1 %v3272_v46  ;;  %3450 = vmatprep.mubr.f32.mxu0 %v3275_v48  ;;  %v3942_v46 = vld [vmem:[#allocation14 + $0x270] sm:$0xff]  ;;  %v3282_v37 = vld [vmem:[%s7009_s27 + $0x70] sm:$0xff] }
 0x388   : > { %2352 = vst [vmem:[%s8027_s10 + $0x68] sm:$0xff] %v2246_v10  ;;  %3748 = vmatprep.mubr.f32.mxu1 %v3275_v48  ;;  %5780 = vmatpush1.bf16.msra.mxu0 %v5779_v47  ;;  %v3943_v48 = vld [vmem:[#allocation14 + $0x278] sm:$0xff]  ;;  %v5842_v32 = vpack.c.bf16 %v4242_v9, %v4241_v2  ;;  %v8196_v2 = vld [vmem:[%s7009_s27 + $0xc8] sm:$0xff] }
 0x389   : > { %5090 = vst [vmem:[%s8027_s10 + $0x168] sm:$0xff] %v2544_v4  ;;  %v2250_v18 = vpop.f32.mrb[156].mxu0  ;;  %5828 = vmatpush1.bf16.msra.mxu1 %v5827_v55  ;;  %5781 = vmatprep.subr.bf16.mxu0 %v9176_v0  ;;  %v5794_v3 = vpack.c.bf16 %v3943_v48, %v3942_v46  ;;  %v4249_v46 = vld [vmem:[#allocation14 + $0x3b0] sm:$0xff]  ;;  %v4250_v48 = vld [vmem:[#allocation14 + $0x3b8] sm:$0xff] }
 0x38a   : > { %v2251_v42 = vadd.f32 %v8015_v39, %v2250_v18  ;;  %v2548_v5 = vpop.f32.mrb[156].mxu1  ;;  %v2252_v6 = vpop.f32.mrb[157].mxu0  ;;  %3451 = vmatmul.mubr.f32.gmra.mrb[6].mxu0 %v3274_v49  ;;  %5829 = vmatprep.subr.bf16.mxu1 %v9176_v0 }
 0x38b   : > { %v2549_v24 = vadd.f32 %v8018_v31, %v2548_v5  ;;  %v2550_v25 = vpop.f32.mrb[157].mxu1  ;;  %3749 = vmatmul.mubr.f32.gmra.mrb[6].mxu1 %v3274_v49  ;;  %3455 = vmatprep.mubr.f32.mxu0 %v3277_v17  ;;  %v3944_v49 = vld [vmem:[#allocation14 + $0x280] sm:$0xff]  ;;  %v3284_v6 = vld [vmem:[%s7009_s27 + $0x80] sm:$0xff] }
 0x38c   : > { %2353 = vst [vmem:[%s8027_s10 + $0x70] sm:$0xff] %v2251_v42  ;;  %3753 = vmatprep.mubr.f32.mxu1 %v3277_v17  ;;  %5783 = vmatpush1.bf16.msra.mxu0 %v5782_v60  ;;  %v3945_v17 = vld [vmem:[#allocation14 + $0x288] sm:$0xff]  ;;  %v5845_v25 = vpack.c.bf16 %v4244_v14, %v4243_v40  ;;  %v8212_v40 = vld [vmem:[%s7009_s27 + $0xd8] sm:$0xff] }
 0x38d   : > { %5091 = vst [vmem:[%s8027_s10 + $0x170] sm:$0xff] %v2549_v24  ;;  %v2255_v35 = vpop.f32.mrb[158].mxu0  ;;  %5831 = vmatpush1.bf16.msra.mxu1 %v5830_v13  ;;  %5784 = vmatprep.subr.bf16.mxu0 %v9176_v0  ;;  %v5797_v23 = vpack.c.bf16 %v3945_v17, %v3944_v49  ;;  %v4251_v49 = vld [vmem:[#allocation14 + $0x3c0] sm:$0xff]  ;;  %v4252_v17 = vld [vmem:[#allocation14 + $0x3c8] sm:$0xff] }
 0x38e   : > { %v2256_v7 = vadd.f32 %v8015_v39, %v2255_v35  ;;  %v2553_v8 = vpop.f32.mrb[158].mxu1  ;;  %v2257_v11 = vpop.f32.mrb[159].mxu0  ;;  %3456 = vmatmul.mubr.f32.gmra.mrb[8].mxu0 %v3276_v26  ;;  %5832 = vmatprep.subr.bf16.mxu1 %v9176_v0 }
 0x38f   : > { %v2554_v16 = vadd.f32 %v8018_v31, %v2553_v8  ;;  %v2555_v19 = vpop.f32.mrb[159].mxu1  ;;  %3754 = vmatmul.mubr.f32.gmra.mrb[8].mxu1 %v3276_v26  ;;  %3460 = vmatprep.mubr.f32.mxu0 %v3279_v56  ;;  %v3946_v26 = vld [vmem:[#allocation14 + $0x290] sm:$0xff]  ;;  %v8160_v11 = vld [vmem:[%s7009_s27 + $0x90] sm:$0xff] }
 0x390   : > { %2354 = vst [vmem:[%s8027_s10 + $0x78] sm:$0xff] %v2256_v7  ;;  %3758 = vmatprep.mubr.f32.mxu1 %v3279_v56  ;;  %5786 = vmatpush1.bf16.msra.mxu0 %v5785_v57  ;;  %v3947_v56 = vld [vmem:[#allocation14 + $0x298] sm:$0xff]  ;;  %v5848_v19 = vpack.c.bf16 %v4246_v63, %v4245_v62  ;;  %v8228_v62 = vld [vmem:[%s7009_s27 + $0xe8] sm:$0xff] }
 0x391   : > { %5092 = vst [vmem:[%s8027_s10 + $0x178] sm:$0xff] %v2554_v16  ;;  %v2260_v38 = vpop.f32.mrb[160].mxu0  ;;  %5834 = vmatpush1.bf16.msra.mxu1 %v5833_v36  ;;  %5787 = vmatprep.subr.bf16.mxu0 %v9176_v0  ;;  %v5800_v15 = vpack.c.bf16 %v3947_v56, %v3946_v26  ;;  %v4253_v26 = vld [vmem:[#allocation14 + $0x3d0] sm:$0xff]  ;;  %v4254_v56 = vld [vmem:[#allocation14 + $0x3d8] sm:$0xff] }
 0x392   : > { %v2261_v28 = vadd.f32 %v8015_v39, %v2260_v38  ;;  %v2558_v53 = vpop.f32.mrb[160].mxu1  ;;  %v2262_v33 = vpop.f32.mrb[161].mxu0  ;;  %3461 = vmatmul.mubr.f32.gmra.mrb[10].mxu0 %v3278_v20  ;;  %5835 = vmatprep.subr.bf16.mxu1 %v9176_v0 }
 0x393   : > { %v2559_v1 = vadd.f32 %v8018_v31, %v2558_v53  ;;  %v2560_v29 = vpop.f32.mrb[161].mxu1  ;;  %3759 = vmatmul.mubr.f32.gmra.mrb[10].mxu1 %v3278_v20  ;;  %3465 = vmatprep.mubr.f32.mxu0 %v3281_v21  ;;  %v3948_v20 = vld [vmem:[#allocation14 + $0x2a0] sm:$0xff]  ;;  %v8175_v33 = vld [vmem:[%s7009_s27 + $0xa0] sm:$0xff] }
 0x394   : > { %2355 = vst [vmem:[%s8027_s10 + $0x80] sm:$0xff] %v2261_v28  ;;  %3763 = vmatprep.mubr.f32.mxu1 %v3281_v21  ;;  %5789 = vmatpush1.bf16.msra.mxu0 %v5788_v22  ;;  %v3949_v21 = vld [vmem:[#allocation14 + $0x2a8] sm:$0xff]  ;;  %v5851_v29 = vpack.c.bf16 %v4248_v51, %v4247_v41  ;;  %v8239_v51 = vld [vmem:[%s7009_s27 + $0xe0] sm:$0xff] }
 0x395   : > { %5093 = vst [vmem:[%s8027_s10 + $0x180] sm:$0xff] %v2559_v1  ;;  %v2265_v45 = vpop.f32.mrb[162].mxu0  ;;  %5837 = vmatpush1.bf16.msra.mxu1 %v5836_v27  ;;  %5790 = vmatprep.subr.bf16.mxu0 %v9176_v0  ;;  %v5803_v58 = vpack.c.bf16 %v3949_v21, %v3948_v20 }
 0x396   : > { %v2266_v47 = vadd.f32 %v8015_v39, %v2265_v45  ;;  %v2563_v54 = vpop.f32.mrb[162].mxu1  ;;  %v2267_v55 = vpop.f32.mrb[163].mxu0  ;;  %3466 = vmatmul.mubr.f32.gmra.mrb[12].mxu0 %v3280_v30  ;;  %5838 = vmatprep.subr.bf16.mxu1 %v9176_v0 }
 0x397   : > { %v2564_v10 = vadd.f32 %v8018_v31, %v2563_v54  ;;  %v2565_v52 = vpop.f32.mrb[163].mxu1  ;;  %3764 = vmatmul.mubr.f32.gmra.mrb[12].mxu1 %v3280_v30  ;;  %3470 = vmatprep.mubr.f32.mxu0 %v3283_v50  ;;  %v3950_v30 = vld [vmem:[#allocation14 + $0x2b0] sm:$0xff]  ;;  %v8191_v55 = vld [vmem:[%s7009_s27 + $0xb0] sm:$0xff] }
 0x398   : > { %2356 = vst [vmem:[%s8027_s10 + $0x88] sm:$0xff] %v2266_v47  ;;  %3768 = vmatprep.mubr.f32.mxu1 %v3283_v50  ;;  %5792 = vmatpush1.bf16.msra.mxu0 %v5791_v44  ;;  %v3951_v50 = vld [vmem:[#allocation14 + $0x2b8] sm:$0xff]  ;;  %v5854_v52 = vpack.c.bf16 %v4250_v48, %v4249_v46 }
 0x399   : > { %5094 = vst [vmem:[%s8027_s10 + $0x188] sm:$0xff] %v2564_v10  ;;  %v2270_v4 = vpop.f32.mrb[164].mxu0  ;;  %5840 = vmatpush1.bf16.msra.mxu1 %v5839_v43  ;;  %5793 = vmatprep.subr.bf16.mxu0 %v9176_v0  ;;  %v5806_v9 = vpack.c.bf16 %v3951_v50, %v3950_v30  ;;  %v3959_v30 = vld [vmem:[#allocation14 + $0x2f8] sm:$0xff] }
 0x39a   : > { %v2271_v60 = vadd.f32 %v8015_v39, %v2270_v4  ;;  %v2568_v18 = vpop.f32.mrb[164].mxu1  ;;  %v2272_v13 = vpop.f32.mrb[165].mxu0  ;;  %3471 = vmatmul.mubr.f32.gmra.mrb[14].mxu0 %v3282_v37  ;;  %5841 = vmatprep.subr.bf16.mxu1 %v9176_v0  ;;  %v4258_v46 = vld [vmem:[#allocation14 + $0x3f8] sm:$0xff] }
 0x39b   : > { %v2569_v42 = vadd.f32 %v8018_v31, %v2568_v18  ;;  %v2570_v5 = vpop.f32.mrb[165].mxu1  ;;  %3769 = vmatmul.mubr.f32.gmra.mrb[14].mxu1 %v3282_v37  ;;  %3475 = vmatprep.mubr.f32.mxu0 %v3285_v61  ;;  %v3952_v37 = vld [vmem:[#allocation14 + $0x2c0] sm:$0xff]  ;;  %v8207_v13 = vld [vmem:[%s7009_s27 + $0xc0] sm:$0xff] }
 0x39c   : > { %2357 = vst [vmem:[%s8027_s10 + $0x90] sm:$0xff] %v2271_v60  ;;  %3773 = vmatprep.mubr.f32.mxu1 %v3285_v61  ;;  %5795 = vmatpush1.bf16.msra.mxu0 %v5794_v3  ;;  %v3953_v61 = vld [vmem:[#allocation14 + $0x2c8] sm:$0xff]  ;;  %v5857_v5 = vpack.c.bf16 %v4252_v17, %v4251_v49  ;;  %v8273_v17 = vld [vmem:[%s7009_s27 + $0x100] sm:$0xff] }
 0x39d   : > { %5095 = vst [vmem:[%s8027_s10 + $0x190] sm:$0xff] %v2569_v42  ;;  %v2275_v24 = vpop.f32.mrb[166].mxu0  ;;  %5843 = vmatpush1.bf16.msra.mxu1 %v5842_v32  ;;  %5796 = vmatprep.subr.bf16.mxu0 %v9176_v0  ;;  %v5809_v14 = vpack.c.bf16 %v3953_v61, %v3952_v37 }
 0x39e   : > { %v2276_v57 = vadd.f32 %v8015_v39, %v2275_v24  ;;  %v2573_v35 = vpop.f32.mrb[166].mxu1  ;;  %v2277_v36 = vpop.f32.mrb[167].mxu0  ;;  %3476 = vmatmul.mubr.f32.gmra.mrb[16].mxu0 %v3284_v6  ;;  %5844 = vmatprep.subr.bf16.mxu1 %v9176_v0 }
 0x39f   : > { %v2574_v7 = vadd.f32 %v8018_v31, %v2573_v35  ;;  %v2575_v8 = vpop.f32.mrb[167].mxu1  ;;  %3774 = vmatmul.mubr.f32.gmra.mrb[16].mxu1 %v3284_v6  ;;  %3480 = vmatprep.mubr.f32.mxu0 %v3287_v59  ;;  %v3954_v6 = vld [vmem:[#allocation14 + $0x2d0] sm:$0xff]  ;;  %v8223_v36 = vld [vmem:[%s7009_s27 + $0xd0] sm:$0xff] }
 0x3a0   : > { %2358 = vst [vmem:[%s8027_s10 + $0x98] sm:$0xff] %v2276_v57  ;;  %3778 = vmatprep.mubr.f32.mxu1 %v3287_v59  ;;  %5798 = vmatpush1.bf16.msra.mxu0 %v5797_v23  ;;  %v3955_v59 = vld [vmem:[#allocation14 + $0x2d8] sm:$0xff]  ;;  %v5860_v8 = vpack.c.bf16 %v4254_v56, %v4253_v26 }
 0x3a1   : > { %5096 = vst [vmem:[%s8027_s10 + $0x198] sm:$0xff] %v2574_v7  ;;  %v2280_v16 = vpop.f32.mrb[168].mxu0  ;;  %5846 = vmatpush1.bf16.msra.mxu1 %v5845_v25  ;;  %5799 = vmatprep.subr.bf16.mxu0 %v9176_v0  ;;  %v5812_v63 = vpack.c.bf16 %v3955_v59, %v3954_v6  ;;  %v8286_v59 = vld [vmem:[%s7009_s27 + $0x110] sm:$0xff] }
 0x3a2   : > { %v2281_v22 = vadd.f32 %v8015_v39, %v2280_v16  ;;  %v2578_v38 = vpop.f32.mrb[168].mxu1  ;;  %v2282_v27 = vpop.f32.mrb[169].mxu0  ;;  %3481 = vmatmul.mubr.f32.gmra.mrb[18].mxu0 %v8160_v11  ;;  %5847 = vmatprep.subr.bf16.mxu1 %v9176_v0  ;;  %v3957_v16 = vld [vmem:[#allocation14 + $0x2e8] sm:$0xff] }
 0x3a3   : > { %v2579_v28 = vadd.f32 %v8018_v31, %v2578_v38  ;;  %v2580_v53 = vpop.f32.mrb[169].mxu1  ;;  %3779 = vmatmul.mubr.f32.gmra.mrb[18].mxu1 %v8160_v11  ;;  %3485 = vmatprep.mubr.f32.mxu0 %v8164_v12  ;;  %v4256_v38 = vld [vmem:[#allocation14 + $0x3e8] sm:$0xff] }
 0x3a4   : > { %2359 = vst [vmem:[%s8027_s10 + $0xa0] sm:$0xff] %v2281_v22  ;;  %3783 = vmatprep.mubr.f32.mxu1 %v8164_v12  ;;  %5801 = vmatpush1.bf16.msra.mxu0 %v5800_v15  ;;  %v3956_v15 = vld [vmem:[#allocation14 + $0x2e0] sm:$0xff] }
 0x3a5   : > { %5097 = vst [vmem:[%s8027_s10 + $0x1a0] sm:$0xff] %v2579_v28  ;;  %v2285_v1 = vpop.f32.mrb[170].mxu0  ;;  %5849 = vmatpush1.bf16.msra.mxu1 %v5848_v19  ;;  %5802 = vmatprep.subr.bf16.mxu0 %v9176_v0  ;;  %v4255_v22 = vld [vmem:[#allocation14 + $0x3e0] sm:$0xff]  ;;  %v8244_v28 = vld [vmem:[%s7009_s27 + $0xf8] sm:$0xff]  ;;  %v5815_v53 = vpack.c.bf16 %v3957_v16, %v3956_v15 }
 0x3a6   : > { %v2286_v44 = vadd.f32 %v8015_v39, %v2285_v1  ;;  %v2583_v45 = vpop.f32.mrb[170].mxu1  ;;  %v2287_v43 = vpop.f32.mrb[171].mxu0  ;;  %3486 = vmatmul.mubr.f32.gmra.mrb[20].mxu0 %v8175_v33  ;;  %5850 = vmatprep.subr.bf16.mxu1 %v9176_v0  ;;  %v5863_v1 = vpack.c.bf16 %v4256_v38, %v4255_v22  ;;  %v8312_v22 = vld [vmem:[%s7009_s27 + $0x130] sm:$0xff]  ;;  %v8317_v38 = vld [vmem:[%s7009_s27 + $0x148] sm:$0xff] }
 0x3a7   : > { %v2584_v47 = vadd.f32 %v8018_v31, %v2583_v45  ;;  %v2585_v54 = vpop.f32.mrb[171].mxu1  ;;  %3784 = vmatmul.mubr.f32.gmra.mrb[20].mxu1 %v8175_v33  ;;  %3490 = vmatprep.mubr.f32.mxu0 %v8180_v34  ;;  %v4257_v43 = vld [vmem:[#allocation14 + $0x3f0] sm:$0xff] }
 0x3a8   : > { %2360 = vst [vmem:[%s8027_s10 + $0xa8] sm:$0xff] %v2286_v44  ;;  %3788 = vmatprep.mubr.f32.mxu1 %v8180_v34  ;;  %5804 = vmatpush1.bf16.msra.mxu0 %v5803_v58  ;;  %v8255_v54 = vld [vmem:[%s7009_s27 + $0xf0] sm:$0xff] }
 0x3a9   : > { %5098 = vst [vmem:[%s8027_s10 + $0x1a8] sm:$0xff] %v2584_v47  ;;  %v2290_v10 = vpop.f32.mrb[172].mxu0  ;;  %5852 = vmatpush1.bf16.msra.mxu1 %v5851_v29  ;;  %5805 = vmatprep.subr.bf16.mxu0 %v9176_v0  ;;  %v3958_v29 = vld [vmem:[#allocation14 + $0x2f0] sm:$0xff] }
 0x3aa   : > { %v2291_v3 = vadd.f32 %v8015_v39, %v2290_v10  ;;  %v2588_v4 = vpop.f32.mrb[172].mxu1  ;;  %v2292_v32 = vpop.f32.mrb[173].mxu0  ;;  %3491 = vmatmul.mubr.f32.gmra.mrb[22].mxu0 %v8191_v55  ;;  %5853 = vmatprep.subr.bf16.mxu1 %v9176_v0  ;;  %v5818_v10 = vpack.c.bf16 %v3959_v30, %v3958_v29  ;;  %v8325_v30 = vld [vmem:[%s7009_s27 + $0x140] sm:$0xff] }
 0x3ab   : > { %v2589_v60 = vadd.f32 %v8018_v31, %v2588_v4  ;;  %v2590_v18 = vpop.f32.mrb[173].mxu1  ;;  %3789 = vmatmul.mubr.f32.gmra.mrb[22].mxu1 %v8191_v55  ;;  %3495 = vmatprep.mubr.f32.mxu0 %v8196_v2  ;;  %v8267_v4 = vld [vmem:[#allocation13 + $0x1] ss:$0 sm:$0xff] }
 0x3ac   : > { %2361 = vst [vmem:[%s8027_s10 + $0xb0] sm:$0xff] %v2291_v3  ;;  %3793 = vmatprep.mubr.f32.mxu1 %v8196_v2  ;;  %5807 = vmatpush1.bf16.msra.mxu0 %v5806_v9  ;;  %v8260_v9 = vld [vmem:[%s7009_s27 + $0x108] sm:$0xff] }
 0x3ad   : > { %5099 = vst [vmem:[%s8027_s10 + $0x1b0] sm:$0xff] %v2589_v60  ;;  %v2295_v42 = vpop.f32.mrb[174].mxu0  ;;  %5855 = vmatpush1.bf16.msra.mxu1 %v5854_v52  ;;  %5808 = vmatprep.subr.bf16.mxu0 %v9176_v0  ;;  %v6141_v60 = vld [vmem:[#allocation13] ss:$0 sm:$0xff] }
 0x3ae   : > { %v2296_v23 = vadd.f32 %v8015_v39, %v2295_v42  ;;  %v2593_v24 = vpop.f32.mrb[174].mxu1  ;;  %v2297_v25 = vpop.f32.mrb[175].mxu0  ;;  %3496 = vmatmul.mubr.f32.gmra.mrb[24].mxu0 %v8207_v13  ;;  %5856 = vmatprep.subr.bf16.mxu1 %v9176_v0 }
 0x3af   : > { %v2594_v57 = vadd.f32 %v8018_v31, %v2593_v24  ;;  %v2595_v35 = vpop.f32.mrb[175].mxu1  ;;  %3794 = vmatmul.mubr.f32.gmra.mrb[24].mxu1 %v8207_v13  ;;  %3500 = vmatprep.mubr.f32.mxu0 %v8212_v40 }
 0x3b0   : > { %2362 = vst [vmem:[%s8027_s10 + $0xb8] sm:$0xff] %v2296_v23  ;;  %3798 = vmatprep.mubr.f32.mxu1 %v8212_v40  ;;  %5810 = vmatpush1.bf16.msra.mxu0 %v5809_v14  ;;  %v8291_v23 = vld [vmem:[%s7009_s27 + $0x128] sm:$0xff] }
 0x3b1   : > { %5100 = vst [vmem:[%s8027_s10 + $0x1b8] sm:$0xff] %v2594_v57  ;;  %v2300_v7 = vpop.f32.mrb[176].mxu0  ;;  %5858 = vmatpush1.bf16.msra.mxu1 %v5857_v5  ;;  %5811 = vmatprep.subr.bf16.mxu0 %v9176_v0 }
 0x3b2   : > { %v2301_v19 = vadd.f32 %v8015_v39, %v2300_v7  ;;  %v2598_v20 = vpop.f32.mrb[176].mxu1  ;;  %v2302_v21 = vpop.f32.mrb[177].mxu0  ;;  %3501 = vmatmul.mubr.f32.gmra.mrb[26].mxu0 %v8223_v36  ;;  %5859 = vmatprep.subr.bf16.mxu1 %v9176_v0  ;;  %v8304_v7 = vld [vmem:[%s7009_s27 + $0x138] sm:$0xff] }
 0x3b3   : > { %v2599_v27 = vadd.f32 %v8018_v31, %v2598_v20  ;;  %v2600_v41 = vpop.f32.mrb[177].mxu1  ;;  %3799 = vmatmul.mubr.f32.gmra.mrb[26].mxu1 %v8223_v36  ;;  %3505 = vmatprep.mubr.f32.mxu0 %v8228_v62 }
 0x3b4   : > { %2363 = vst [vmem:[%s8027_s10 + $0xc0] sm:$0xff] %v2301_v19  ;;  %3803 = vmatprep.mubr.f32.mxu1 %v8228_v62  ;;  %5813 = vmatpush1.bf16.msra.mxu0 %v5812_v63  ;;  %v8299_v63 = vld [vmem:[%s7009_s27 + $0x120] sm:$0xff] }
 0x3b5   : > { %5101 = vst [vmem:[%s8027_s10 + $0x1c0] sm:$0xff] %v2599_v27  ;;  %v2305_v58 = vpop.f32.mrb[178].mxu0  ;;  %5861 = vmatpush1.bf16.msra.mxu1 %v5860_v8  ;;  %5814 = vmatprep.subr.bf16.mxu0 %v9176_v0 }
 0x3b6   : > { %v2306_v50 = vadd.f32 %v8015_v39, %v2305_v58  ;;  %v2603_v44 = vpop.f32.mrb[178].mxu1  ;;  %v2307_v45 = vpop.f32.mrb[179].mxu0  ;;  %3506 = vmatmul.mubr.f32.gmra.mrb[28].mxu0 %v8239_v51  ;;  %5862 = vmatprep.subr.bf16.mxu1 %v9176_v0 }
 0x3b7   : > { %v2604_v48 = vadd.f32 %v8018_v31, %v2603_v44  ;;  %v2605_v47 = vpop.f32.mrb[179].mxu1  ;;  %3804 = vmatmul.mubr.f32.gmra.mrb[28].mxu1 %v8239_v51  ;;  %3510 = vmatprep.mubr.f32.mxu0 %v8244_v28  ;;  %v5866_v31 = vpack.c.bf16 %v4258_v46, %v4257_v43 }
 0x3b8   : > { %2364 = vst [vmem:[%s8027_s10 + $0xc8] sm:$0xff] %v2306_v50  ;;  %3808 = vmatprep.mubr.f32.mxu1 %v8244_v28  ;;  %5816 = vmatpush1.bf16.msra.mxu0 %v5815_v53  ;;  %v8330_v50 = vld [vmem:[%s7009_s27 + $0x158] sm:$0xff] }
 0x3b9   : > { %5102 = vst [vmem:[%s8027_s10 + $0x1c8] sm:$0xff] %v2604_v48  ;;  %v2310_v52 = vpop.f32.mrb[180].mxu0  ;;  %5864 = vmatpush1.bf16.msra.mxu1 %v5863_v1  ;;  %5817 = vmatprep.subr.bf16.mxu0 %v9176_v0 }
 0x3ba   : > { %v2311_v37 = vadd.f32 %v8015_v39, %v2310_v52  ;;  %v2608_v61 = vpop.f32.mrb[180].mxu1  ;;  %v2312_v3 = vpop.f32.mrb[181].mxu0  ;;  %3511 = vmatmul.mubr.f32.gmra.mrb[30].mxu0 %v8255_v54  ;;  %5865 = vmatprep.subr.bf16.mxu1 %v9176_v0  ;;  %v8278_v39 = vld [vmem:[%s7009_s27 + $0x118] sm:$0xff]  ;;  %v8340_v52 = vld [vmem:[%s7009_s27 + $0x150] sm:$0xff] }
 0x3bb   : > { %v2609_v32 = vadd.f32 %v8267_v4, %v2608_v61  ;;  %v2610_v49 = vpop.f32.mrb[181].mxu1  ;;  %3809 = vmatmul.mubr.f32.gmra.mrb[30].mxu1 %v8255_v54  ;;  %3515 = vmatprep.mubr.f32.mxu0 %v8260_v9 }
 0x3bc   : > { %2365 = vst [vmem:[%s8027_s10 + $0xd0] sm:$0xff] %v2311_v37  ;;  %3813 = vmatprep.mubr.f32.mxu1 %v8260_v9  ;;  %5819 = vmatpush1.bf16.msra.mxu0 %v5818_v10  ;;  %v8336_v10 = vld [vmem:[#allocation13 + $0x2] ss:$0 sm:$0xff]  ;;  %v8347_v37 = vld [vmem:[%s7009_s27 + $0x168] sm:$0xff] }
 0x3bd   : > { %5103 = vst [vmem:[%s8027_s10 + $0x1d0] sm:$0xff] %v2609_v32  ;;  %v2315_v0 = vpop.f32.mrb[182].mxu0  ;;  %5867 = vmatpush1.bf16.msra.mxu1 %v5866_v31  ;;  %v8343_v31 = vld [vmem:[#allocation13 + $0x3] ss:$0 sm:$0xff] }
 0x3be   : > { %v2316_v18 = vadd.f32 %v6141_v60, %v2315_v0  ;;  %v2613_v14 = vpop.f32.mrb[182].mxu1  ;;  %v2317_v42 = vpop.f32.mrb[183].mxu0  ;;  %3516 = vmatmul.mubr.f32.gmra.mrb[32].mxu0 %v8273_v17 }
 0x3bf   : > { %v2614_v5 = vadd.f32 %v8267_v4, %v2613_v14  ;;  %v2615_v6 = vpop.f32.mrb[183].mxu1  ;;  %3814 = vmatmul.mubr.f32.gmra.mrb[32].mxu1 %v8273_v17  ;;  %3520 = vmatprep.mubr.f32.mxu0 %v8278_v39 }
 0x3c0   : > { %2366 = vst [vmem:[%s8027_s10 + $0xd8] sm:$0xff] %v2316_v18  ;;  %3818 = vmatprep.mubr.f32.mxu1 %v8278_v39  ;;  %v8361_v18 = vld [vmem:[%s7009_s27 + $0x178] sm:$0xff] }
 0x3c1   : > { %5104 = vst [vmem:[%s8027_s10 + $0x1d8] sm:$0xff] %v2614_v5  ;;  %v2320_v24 = vpop.f32.mrb[184].mxu0 }
 0x3c2   : > { %v2321_v25 = vadd.f32 %v6141_v60, %v2320_v24  ;;  %v2618_v26 = vpop.f32.mrb[184].mxu1  ;;  %v2322_v56 = vpop.f32.mrb[185].mxu0  ;;  %3521 = vmatmul.mubr.f32.gmra.mrb[34].mxu0 %v8286_v59 }
 0x3c3   : > { %v2619_v57 = vadd.f32 %v8267_v4, %v2618_v26  ;;  %v2620_v35 = vpop.f32.mrb[185].mxu1  ;;  %3819 = vmatmul.mubr.f32.gmra.mrb[34].mxu1 %v8286_v59  ;;  %3525 = vmatprep.mubr.f32.mxu0 %v8291_v23  ;;  %v8370_v26 = vld [vmem:[%s7009_s27 + $0x170] sm:$0xff]  ;;  %v8375_v56 = vld [vmem:[%s7009_s27 + $0x188] sm:$0xff] }
 0x3c4   : > { %2367 = vst [vmem:[%s8027_s10 + $0xe0] sm:$0xff] %v2321_v25  ;;  %3823 = vmatprep.mubr.f32.mxu1 %v8291_v23 }
 0x3c5   : > { %5105 = vst [vmem:[%s8027_s10 + $0x1e0] sm:$0xff] %v2619_v57  ;;  %v2325_v8 = vpop.f32.mrb[186].mxu0 }
 0x3c6   : > { %v2326_v15 = vadd.f32 %v6141_v60, %v2325_v8  ;;  %v2623_v16 = vpop.f32.mrb[186].mxu1  ;;  %v2327_v19 = vpop.f32.mrb[187].mxu0  ;;  %3526 = vmatmul.mubr.f32.gmra.mrb[36].mxu0 %v8299_v63 }
 0x3c7   : > { %v2624_v20 = vadd.f32 %v8267_v4, %v2623_v16  ;;  %v2625_v21 = vpop.f32.mrb[187].mxu1  ;;  %3824 = vmatmul.mubr.f32.gmra.mrb[36].mxu1 %v8299_v63  ;;  %3530 = vmatprep.mubr.f32.mxu0 %v8304_v7 }
 0x3c8   : > { %2368 = vst [vmem:[%s8027_s10 + $0xe8] sm:$0xff] %v2326_v15  ;;  %3828 = vmatprep.mubr.f32.mxu1 %v8304_v7  ;;  %v8389_v21 = vld [vmem:[%s7009_s27 + $0x198] sm:$0xff] }
 0x3c9   : > { %5106 = vst [vmem:[%s8027_s10 + $0x1e8] sm:$0xff] %v2624_v20  ;;  %v2330_v27 = vpop.f32.mrb[188].mxu0  ;;  %v8384_v20 = vld [vmem:[%s7009_s27 + $0x180] sm:$0xff] }
 0x3ca   : > { %v2331_v41 = vadd.f32 %v6141_v60, %v2330_v27  ;;  %v2628_v53 = vpop.f32.mrb[188].mxu1  ;;  %v2332_v58 = vpop.f32.mrb[189].mxu0  ;;  %3531 = vmatmul.mubr.f32.gmra.mrb[38].mxu0 %v8312_v22 }
 0x3cb   : > { %v2629_v1 = vadd.f32 %v8267_v4, %v2628_v53  ;;  %v2630_v29 = vpop.f32.mrb[189].mxu1  ;;  %3829 = vmatmul.mubr.f32.gmra.mrb[38].mxu1 %v8312_v22  ;;  %3535 = vmatprep.mubr.f32.mxu0 %v8317_v38 }
 0x3cc   : > { %2369 = vst [vmem:[%s8027_s10 + $0xf0] sm:$0xff] %v2331_v41  ;;  %3833 = vmatprep.mubr.f32.mxu1 %v8317_v38 }
 0x3cd   : > { %5107 = vst [vmem:[%s8027_s10 + $0x1f0] sm:$0xff] %v2629_v1  ;;  %v2335_v44 = vpop.f32.mrb[190].mxu0 }
 0x3ce   : > { %v2336_v45 = vadd.f32 %v6141_v60, %v2335_v44  ;;  %v2633_v43 = vpop.f32.mrb[190].mxu1  ;;  %v2337_v46 = vpop.f32.mrb[191].mxu0  ;;  %3536 = vmatmul.mubr.f32.gmra.mrb[40].mxu0 %v8325_v30  ;;  %v8356_v60 = vld [vmem:[%s7009_s27 + $0x160] sm:$0xff]  ;;  %v8398_v44 = vld [vmem:[%s7009_s27 + $0x190] sm:$0xff] }
 0x3cf   : > { %v2634_v48 = vadd.f32 %v8267_v4, %v2633_v43  ;;  %v2635_v47 = vpop.f32.mrb[191].mxu1  ;;  %3834 = vmatmul.mubr.f32.gmra.mrb[40].mxu1 %v8325_v30  ;;  %3540 = vmatprep.mubr.f32.mxu0 %v8330_v50 }
 0x3d0   : > { %2370 = vst [vmem:[%s8027_s10 + $0xf8] sm:$0xff] %v2336_v45  ;;  %3838 = vmatprep.mubr.f32.mxu1 %v8330_v50  ;;  %v8403_v45 = vld [vmem:[%s7009_s27 + $0x1a8] sm:$0xff] }
 0x3d1   : > { %5108 = vst [vmem:[%s8027_s10 + $0x1f8] sm:$0xff] %v2634_v48  ;;  %v2777_v61 = vpop.f32.mrb[192].mxu0 }
 0x3d2   : > { %v2778_v3 = vadd.f32 %v8336_v10, %v2777_v61  ;;  %v3076_v4 = vpop.f32.mrb[192].mxu1  ;;  %v2779_v32 = vpop.f32.mrb[193].mxu0  ;;  %3541 = vmatmul.mubr.f32.gmra.mrb[42].mxu0 %v8340_v52 }
 0x3d3   : > { %v3077_v49 = vadd.f32 %v8343_v31, %v3076_v4  ;;  %v3078_v0 = vpop.f32.mrb[193].mxu1  ;;  %3839 = vmatmul.mubr.f32.gmra.mrb[42].mxu1 %v8340_v52  ;;  %3545 = vmatprep.mubr.f32.mxu0 %v8347_v37  ;;  %v8412_v4 = vld [vmem:[%s7009_s27 + $0x1a0] sm:$0xff]  ;;  %v8417_v32 = vld [vmem:[%s7009_s27 + $0x1b8] sm:$0xff] }
 0x3d4   : > { %5110 = vst [vmem:[%s8027_s10 + $0x200] sm:$0xff] %v2778_v3  ;;  %3843 = vmatprep.mubr.f32.mxu1 %v8347_v37 }
 0x3d5   : > { %5143 = vst [vmem:[%s8027_s10 + $0x300] sm:$0xff] %v3077_v49  ;;  %v2782_v14 = vpop.f32.mrb[194].mxu0 }
 0x3d6   : > { %v2783_v42 = vadd.f32 %v8336_v10, %v2782_v14  ;;  %v3081_v5 = vpop.f32.mrb[194].mxu1  ;;  %v2784_v6 = vpop.f32.mrb[195].mxu0  ;;  %3546 = vmatmul.mubr.f32.gmra.mrb[44].mxu0 %v8356_v60 }
 0x3d7   : > { %v3082_v24 = vadd.f32 %v8343_v31, %v3081_v5  ;;  %v3083_v25 = vpop.f32.mrb[195].mxu1  ;;  %3844 = vmatmul.mubr.f32.gmra.mrb[44].mxu1 %v8356_v60  ;;  %3550 = vmatprep.mubr.f32.mxu0 %v8361_v18 }
 0x3d8   : > { %5111 = vst [vmem:[%s8027_s10 + $0x208] sm:$0xff] %v2783_v42  ;;  %3848 = vmatprep.mubr.f32.mxu1 %v8361_v18  ;;  %v8431_v25 = vld [vmem:[%s7009_s27 + $0x1c8] sm:$0xff] }
 0x3d9   : > { %5144 = vst [vmem:[%s8027_s10 + $0x308] sm:$0xff] %v3082_v24  ;;  %v2787_v57 = vpop.f32.mrb[196].mxu0  ;;  %v8426_v24 = vld [vmem:[%s7009_s27 + $0x1b0] sm:$0xff] }
 0x3da   : > { %v2788_v35 = vadd.f32 %v8336_v10, %v2787_v57  ;;  %v3086_v8 = vpop.f32.mrb[196].mxu1  ;;  %v2789_v15 = vpop.f32.mrb[197].mxu0  ;;  %3551 = vmatmul.mubr.f32.gmra.mrb[46].mxu0 %v8370_v26 }
 0x3db   : > { %v3087_v16 = vadd.f32 %v8343_v31, %v3086_v8  ;;  %v3088_v19 = vpop.f32.mrb[197].mxu1  ;;  %3849 = vmatmul.mubr.f32.gmra.mrb[46].mxu1 %v8370_v26  ;;  %3555 = vmatprep.mubr.f32.mxu0 %v8375_v56 }
 0x3dc   : > { %5112 = vst [vmem:[%s8027_s10 + $0x210] sm:$0xff] %v2788_v35  ;;  %3853 = vmatprep.mubr.f32.mxu1 %v8375_v56 }
 0x3dd   : > { %5145 = vst [vmem:[%s8027_s10 + $0x310] sm:$0xff] %v3087_v16  ;;  %v2792_v27 = vpop.f32.mrb[198].mxu0 }
 0x3de   : > { %v2793_v41 = vadd.f32 %v8336_v10, %v2792_v27  ;;  %v3091_v53 = vpop.f32.mrb[198].mxu1  ;;  %v2794_v58 = vpop.f32.mrb[199].mxu0  ;;  %3556 = vmatmul.mubr.f32.gmra.mrb[48].mxu0 %v8384_v20  ;;  %v8440_v27 = vld [vmem:[%s7009_s27 + $0x1c0] sm:$0xff] }
 0x3df   : > { %v3092_v1 = vadd.f32 %v8343_v31, %v3091_v53  ;;  %v3093_v29 = vpop.f32.mrb[199].mxu1  ;;  %3854 = vmatmul.mubr.f32.gmra.mrb[48].mxu1 %v8384_v20  ;;  %3560 = vmatprep.mubr.f32.mxu0 %v8389_v21 }
 0x3e0   : > { %5113 = vst [vmem:[%s8027_s10 + $0x218] sm:$0xff] %v2793_v41  ;;  %3858 = vmatprep.mubr.f32.mxu1 %v8389_v21  ;;  %v8445_v41 = vld [vmem:[%s7009_s27 + $0x1d8] sm:$0xff] }
 0x3e1   : > { %5146 = vst [vmem:[%s8027_s10 + $0x318] sm:$0xff] %v3092_v1  ;;  %v2797_v43 = vpop.f32.mrb[200].mxu0 }
 0x3e2   : > { %v2798_v46 = vadd.f32 %v8336_v10, %v2797_v43  ;;  %v3096_v48 = vpop.f32.mrb[200].mxu1  ;;  %v2799_v47 = vpop.f32.mrb[201].mxu0  ;;  %3561 = vmatmul.mubr.f32.gmra.mrb[50].mxu0 %v8398_v44 }
 0x3e3   : > { %v3097_v61 = vadd.f32 %v8343_v31, %v3096_v48  ;;  %v3098_v3 = vpop.f32.mrb[201].mxu1  ;;  %3859 = vmatmul.mubr.f32.gmra.mrb[50].mxu1 %v8398_v44  ;;  %3565 = vmatprep.mubr.f32.mxu0 %v8403_v45  ;;  %v8454_v48 = vld [vmem:[%s7009_s27 + $0x1d0] sm:$0xff]  ;;  %v8459_v47 = vld [vmem:[%s7009_s27 + $0x1e8] sm:$0xff] }
 0x3e4   : > { %5114 = vst [vmem:[%s8027_s10 + $0x220] sm:$0xff] %v2798_v46  ;;  %3863 = vmatprep.mubr.f32.mxu1 %v8403_v45 }
 0x3e5   : > { %5147 = vst [vmem:[%s8027_s10 + $0x320] sm:$0xff] %v3097_v61  ;;  %v2802_v49 = vpop.f32.mrb[202].mxu0 }
 0x3e6   : > { %v2803_v0 = vadd.f32 %v8336_v10, %v2802_v49  ;;  %v3101_v14 = vpop.f32.mrb[202].mxu1  ;;  %v2804_v42 = vpop.f32.mrb[203].mxu0  ;;  %3566 = vmatmul.mubr.f32.gmra.mrb[52].mxu0 %v8412_v4 }
 0x3e7   : > { %v3102_v5 = vadd.f32 %v8343_v31, %v3101_v14  ;;  %v3103_v6 = vpop.f32.mrb[203].mxu1  ;;  %3864 = vmatmul.mubr.f32.gmra.mrb[52].mxu1 %v8412_v4  ;;  %3570 = vmatprep.mubr.f32.mxu0 %v8417_v32 }
 0x3e8   : > { %5115 = vst [vmem:[%s8027_s10 + $0x228] sm:$0xff] %v2803_v0  ;;  %3868 = vmatprep.mubr.f32.mxu1 %v8417_v32  ;;  %v8473_v6 = vld [vmem:[%s7009_s27 + $0x1f8] sm:$0xff] }
 0x3e9   : > { %5148 = vst [vmem:[%s8027_s10 + $0x328] sm:$0xff] %v3102_v5  ;;  %v2807_v57 = vpop.f32.mrb[204].mxu0  ;;  %v8468_v5 = vld [vmem:[%s7009_s27 + $0x1e0] sm:$0xff] }
 0x3ea   : > { %v2808_v35 = vadd.f32 %v8336_v10, %v2807_v57  ;;  %v3106_v8 = vpop.f32.mrb[204].mxu1  ;;  %v2809_v15 = vpop.f32.mrb[205].mxu0  ;;  %3571 = vmatmul.mubr.f32.gmra.mrb[54].mxu0 %v8426_v24 }
 0x3eb   : > { %v3107_v16 = vadd.f32 %v8343_v31, %v3106_v8  ;;  %v3108_v19 = vpop.f32.mrb[205].mxu1  ;;  %3869 = vmatmul.mubr.f32.gmra.mrb[54].mxu1 %v8426_v24  ;;  %3575 = vmatprep.mubr.f32.mxu0 %v8431_v25 }
 0x3ec   : > { %5116 = vst [vmem:[%s8027_s10 + $0x230] sm:$0xff] %v2808_v35  ;;  %3873 = vmatprep.mubr.f32.mxu1 %v8431_v25 }
 0x3ed   : > { %5149 = vst [vmem:[%s8027_s10 + $0x330] sm:$0xff] %v3107_v16  ;;  %v2812_v53 = vpop.f32.mrb[206].mxu0 }
 0x3ee   : > { %v2813_v58 = vadd.f32 %v8336_v10, %v2812_v53  ;;  %v3111_v1 = vpop.f32.mrb[206].mxu1  ;;  %v2814_v29 = vpop.f32.mrb[207].mxu0  ;;  %3576 = vmatmul.mubr.f32.gmra.mrb[56].mxu0 %v8440_v27  ;;  %v8482_v53 = vld [vmem:[%s7009_s27 + $0x1f0] sm:$0xff] }
 0x3ef   : > { %v3112_v43 = vadd.f32 %v8343_v31, %v3111_v1  ;;  %v3113_v46 = vpop.f32.mrb[207].mxu1  ;;  %3874 = vmatmul.mubr.f32.gmra.mrb[56].mxu1 %v8440_v27  ;;  %3580 = vmatprep.mubr.f32.mxu0 %v8445_v41 }
 0x3f0   : > { %5117 = vst [vmem:[%s8027_s10 + $0x238] sm:$0xff] %v2813_v58  ;;  %3878 = vmatprep.mubr.f32.mxu1 %v8445_v41 }
 0x3f1   : > { %5150 = vst [vmem:[%s8027_s10 + $0x338] sm:$0xff] %v3112_v43  ;;  %v2817_v61 = vpop.f32.mrb[208].mxu0 }
 0x3f2   : > { %v2818_v3 = vadd.f32 %v8336_v10, %v2817_v61  ;;  %v3116_v49 = vpop.f32.mrb[208].mxu1  ;;  %v2819_v0 = vpop.f32.mrb[209].mxu0  ;;  %3581 = vmatmul.mubr.f32.gmra.mrb[58].mxu0 %v8454_v48 }
 0x3f3   : > { %v3117_v14 = vadd.f32 %v8343_v31, %v3116_v49  ;;  %v3118_v42 = vpop.f32.mrb[209].mxu1  ;;  %3879 = vmatmul.mubr.f32.gmra.mrb[58].mxu1 %v8454_v48  ;;  %3585 = vmatprep.mubr.f32.mxu0 %v8459_v47 }
 0x3f4   : > { %5118 = vst [vmem:[%s8027_s10 + $0x240] sm:$0xff] %v2818_v3  ;;  %3883 = vmatprep.mubr.f32.mxu1 %v8459_v47  ;;  %v6142_v3 = vld [vmem:[%s7009_s27 + $0x8] sm:$0xff] }
 0x3f5   : > { %5151 = vst [vmem:[%s8027_s10 + $0x340] sm:$0xff] %v3117_v14  ;;  %v2822_v57 = vpop.f32.mrb[210].mxu0 }
 0x3f6   : > { %v2823_v35 = vadd.f32 %v8336_v10, %v2822_v57  ;;  %v3121_v8 = vpop.f32.mrb[210].mxu1  ;;  %v2824_v15 = vpop.f32.mrb[211].mxu0  ;;  %3586 = vmatmul.mubr.f32.gmra.mrb[60].mxu0 %v8468_v5  ;;  %v6143_v57 = vld [vmem:[%s7009_s27] sm:$0xff] }
 0x3f7   : > { %v3122_v16 = vadd.f32 %v8343_v31, %v3121_v8  ;;  %v3123_v19 = vpop.f32.mrb[211].mxu1  ;;  %3884 = vmatmul.mubr.f32.gmra.mrb[60].mxu1 %v8468_v5  ;;  %3590 = vmatprep.mubr.f32.mxu0 %v8473_v6  ;;  %v6144_v15 = vld [vmem:[%s7009_s27 + $0x18] sm:$0xff] }
 0x3f8   : > { %5119 = vst [vmem:[%s8027_s10 + $0x248] sm:$0xff] %v2823_v35  ;;  %3888 = vmatprep.mubr.f32.mxu1 %v8473_v6 }
 0x3f9   : > { %5152 = vst [vmem:[%s8027_s10 + $0x348] sm:$0xff] %v3122_v16  ;;  %v2827_v58 = vpop.f32.mrb[212].mxu0 }
 0x3fa   : > { %v2828_v1 = vadd.f32 %v8336_v10, %v2827_v58  ;;  %v3126_v29 = vpop.f32.mrb[212].mxu1  ;;  %v2829_v43 = vpop.f32.mrb[213].mxu0  ;;  %3591 = vmatmul.mubr.f32.gmra.mrb[62].mxu0 %v8482_v53 }
 0x3fb   : > { %v3127_v46 = vadd.f32 %v8343_v31, %v3126_v29  ;;  %v3128_v61 = vpop.f32.mrb[213].mxu1  ;;  %3889 = vmatmul.mubr.f32.gmra.mrb[62].mxu1 %v8482_v53  ;;  %4032 = vmatprep.mubr.f32.mxu0 %v6142_v3  ;;  %v6145_v29 = vld [vmem:[%s7009_s27 + $0x10] sm:$0xff] }
 0x3fc   : > { %5120 = vst [vmem:[%s8027_s10 + $0x250] sm:$0xff] %v2828_v1  ;;  %4331 = vmatprep.mubr.f32.mxu1 %v6142_v3  ;;  %v6146_v61 = vld [vmem:[%s7009_s27 + $0x28] sm:$0xff] }
 0x3fd   : > { %5153 = vst [vmem:[%s8027_s10 + $0x350] sm:$0xff] %v3127_v46  ;;  %v2832_v49 = vpop.f32.mrb[214].mxu0 }
 0x3fe   : > { %v2833_v0 = vadd.f32 %v8336_v10, %v2832_v49  ;;  %v3131_v14 = vpop.f32.mrb[214].mxu1  ;;  %v2834_v42 = vpop.f32.mrb[215].mxu0  ;;  %4033 = vmatmul.mubr.f32.vlgmr.msra.gmra.mrb[64].mxu0 %v6143_v57 }
 0x3ff   : > { %v3132_v35 = vadd.f32 %v8343_v31, %v3131_v14  ;;  %v3133_v8 = vpop.f32.mrb[215].mxu1  ;;  %4332 = vmatmul.mubr.f32.vlgmr.msra.gmra.mrb[64].mxu1 %v6143_v57  ;;  %4037 = vmatprep.mubr.f32.mxu0 %v6144_v15  ;;  %v6147_v42 = vld [vmem:[%s7009_s27 + $0x20] sm:$0xff] }
 0x400   : > { %5121 = vst [vmem:[%s8027_s10 + $0x258] sm:$0xff] %v2833_v0  ;;  %4336 = vmatprep.mubr.f32.mxu1 %v6144_v15  ;;  %v6148_v8 = vld [vmem:[%s7009_s27 + $0x38] sm:$0xff] }
 0x401   : > { %5154 = vst [vmem:[%s8027_s10 + $0x358] sm:$0xff] %v3132_v35  ;;  %v2837_v16 = vpop.f32.mrb[216].mxu0 }
 0x402   : > { %v2838_v19 = vadd.f32 %v8336_v10, %v2837_v16  ;;  %v3136_v58 = vpop.f32.mrb[216].mxu1  ;;  %v2839_v1 = vpop.f32.mrb[217].mxu0  ;;  %4038 = vmatmul.mubr.f32.gmra.mrb[66].mxu0 %v6145_v29 }
 0x403   : > { %v3137_v43 = vadd.f32 %v8343_v31, %v3136_v58  ;;  %v3138_v46 = vpop.f32.mrb[217].mxu1  ;;  %4337 = vmatmul.mubr.f32.gmra.mrb[66].mxu1 %v6145_v29  ;;  %4042 = vmatprep.mubr.f32.mxu0 %v6146_v61  ;;  %v6149_v1 = vld [vmem:[%s7009_s27 + $0x30] sm:$0xff] }
 0x404   : > { %5122 = vst [vmem:[%s8027_s10 + $0x260] sm:$0xff] %v2838_v19  ;;  %4341 = vmatprep.mubr.f32.mxu1 %v6146_v61  ;;  %v6150_v46 = vld [vmem:[%s7009_s27 + $0x48] sm:$0xff] }
 0x405   : > { %5155 = vst [vmem:[%s8027_s10 + $0x360] sm:$0xff] %v3137_v43  ;;  %v2842_v3 = vpop.f32.mrb[218].mxu0 }
 0x406   : > { %v2843_v49 = vadd.f32 %v8336_v10, %v2842_v3  ;;  %v3141_v0 = vpop.f32.mrb[218].mxu1  ;;  %v2844_v14 = vpop.f32.mrb[219].mxu0  ;;  %4043 = vmatmul.mubr.f32.gmra.mrb[68].mxu0 %v6147_v42 }
 0x407   : > { %v3142_v57 = vadd.f32 %v8343_v31, %v3141_v0  ;;  %v3143_v35 = vpop.f32.mrb[219].mxu1  ;;  %4342 = vmatmul.mubr.f32.gmra.mrb[68].mxu1 %v6147_v42  ;;  %4047 = vmatprep.mubr.f32.mxu0 %v6148_v8  ;;  %v6151_v14 = vld [vmem:[%s7009_s27 + $0x40] sm:$0xff] }
 0x408   : > { %5123 = vst [vmem:[%s8027_s10 + $0x268] sm:$0xff] %v2843_v49  ;;  %4346 = vmatprep.mubr.f32.mxu1 %v6148_v8  ;;  %v6152_v35 = vld [vmem:[%s7009_s27 + $0x58] sm:$0xff] }
 0x409   : > { %5156 = vst [vmem:[%s8027_s10 + $0x368] sm:$0xff] %v3142_v57  ;;  %v2847_v15 = vpop.f32.mrb[220].mxu0 }
 0x40a   : > { %v2848_v16 = vadd.f32 %v8336_v10, %v2847_v15  ;;  %v3146_v19 = vpop.f32.mrb[220].mxu1  ;;  %v2849_v58 = vpop.f32.mrb[221].mxu0  ;;  %4048 = vmatmul.mubr.f32.gmra.mrb[70].mxu0 %v6149_v1 }
 0x40b   : > { %v3147_v29 = vadd.f32 %v8343_v31, %v3146_v19  ;;  %v3148_v43 = vpop.f32.mrb[221].mxu1  ;;  %4347 = vmatmul.mubr.f32.gmra.mrb[70].mxu1 %v6149_v1  ;;  %4052 = vmatprep.mubr.f32.mxu0 %v6150_v46  ;;  %v6153_v58 = vld [vmem:[%s7009_s27 + $0x50] sm:$0xff] }
 0x40c   : > { %5124 = vst [vmem:[%s8027_s10 + $0x270] sm:$0xff] %v2848_v16  ;;  %4351 = vmatprep.mubr.f32.mxu1 %v6150_v46  ;;  %v6154_v43 = vld [vmem:[%s7009_s27 + $0x68] sm:$0xff] }
 0x40d   : > { %5157 = vst [vmem:[%s8027_s10 + $0x370] sm:$0xff] %v3147_v29  ;;  %v2852_v61 = vpop.f32.mrb[222].mxu0 }
 0x40e   : > { %v2853_v3 = vadd.f32 %v8336_v10, %v2852_v61  ;;  %v3151_v49 = vpop.f32.mrb[222].mxu1  ;;  %v2854_v0 = vpop.f32.mrb[223].mxu0  ;;  %4053 = vmatmul.mubr.f32.gmra.mrb[72].mxu0 %v6151_v14 }
 0x40f   : > { %v3152_v42 = vadd.f32 %v8343_v31, %v3151_v49  ;;  %v3153_v57 = vpop.f32.mrb[223].mxu1  ;;  %4352 = vmatmul.mubr.f32.gmra.mrb[72].mxu1 %v6151_v14  ;;  %4057 = vmatprep.mubr.f32.mxu0 %v6152_v35  ;;  %v6155_v0 = vld [vmem:[%s7009_s27 + $0x60] sm:$0xff] }
 0x410   : > { %5125 = vst [vmem:[%s8027_s10 + $0x278] sm:$0xff] %v2853_v3  ;;  %4356 = vmatprep.mubr.f32.mxu1 %v6152_v35  ;;  %v6156_v57 = vld [vmem:[%s7009_s27 + $0x78] sm:$0xff] }
 0x411   : > { %5158 = vst [vmem:[%s8027_s10 + $0x378] sm:$0xff] %v3152_v42  ;;  %v2857_v8 = vpop.f32.mrb[224].mxu0 }
 0x412   : > { %v2858_v15 = vadd.f32 %v8336_v10, %v2857_v8  ;;  %v3156_v16 = vpop.f32.mrb[224].mxu1  ;;  %v2859_v19 = vpop.f32.mrb[225].mxu0  ;;  %4058 = vmatmul.mubr.f32.gmra.mrb[74].mxu0 %v6153_v58 }
 0x413   : > { %v3157_v1 = vadd.f32 %v8343_v31, %v3156_v16  ;;  %v3158_v29 = vpop.f32.mrb[225].mxu1  ;;  %4357 = vmatmul.mubr.f32.gmra.mrb[74].mxu1 %v6153_v58  ;;  %4062 = vmatprep.mubr.f32.mxu0 %v6154_v43  ;;  %v6157_v19 = vld [vmem:[%s7009_s27 + $0x70] sm:$0xff] }
 0x414   : > { %5126 = vst [vmem:[%s8027_s10 + $0x280] sm:$0xff] %v2858_v15  ;;  %4361 = vmatprep.mubr.f32.mxu1 %v6154_v43  ;;  %v6158_v29 = vld [vmem:[%s7009_s27 + $0x88] sm:$0xff] }
 0x415   : > { %5159 = vst [vmem:[%s8027_s10 + $0x380] sm:$0xff] %v3157_v1  ;;  %v2862_v46 = vpop.f32.mrb[226].mxu0 }
 0x416   : > { %v2863_v61 = vadd.f32 %v8336_v10, %v2862_v46  ;;  %v3161_v3 = vpop.f32.mrb[226].mxu1  ;;  %v2864_v49 = vpop.f32.mrb[227].mxu0  ;;  %4063 = vmatmul.mubr.f32.gmra.mrb[76].mxu0 %v6155_v0 }
 0x417   : > { %v3162_v14 = vadd.f32 %v8343_v31, %v3161_v3  ;;  %v3163_v42 = vpop.f32.mrb[227].mxu1  ;;  %4362 = vmatmul.mubr.f32.gmra.mrb[76].mxu1 %v6155_v0  ;;  %4067 = vmatprep.mubr.f32.mxu0 %v6156_v57  ;;  %v6159_v49 = vld [vmem:[%s7009_s27 + $0x80] sm:$0xff] }
 0x418   : > { %5127 = vst [vmem:[%s8027_s10 + $0x288] sm:$0xff] %v2863_v61  ;;  %4366 = vmatprep.mubr.f32.mxu1 %v6156_v57  ;;  %v6160_v42 = vld [vmem:[%s7009_s27 + $0x98] sm:$0xff] }
 0x419   : > { %5160 = vst [vmem:[%s8027_s10 + $0x388] sm:$0xff] %v3162_v14  ;;  %v2867_v35 = vpop.f32.mrb[228].mxu0 }
 0x41a   : > { %v2868_v8 = vadd.f32 %v8336_v10, %v2867_v35  ;;  %v3166_v15 = vpop.f32.mrb[228].mxu1  ;;  %v2869_v16 = vpop.f32.mrb[229].mxu0  ;;  %4068 = vmatmul.mubr.f32.gmra.mrb[78].mxu0 %v6157_v19 }
 0x41b   : > { %v3167_v58 = vadd.f32 %v8343_v31, %v3166_v15  ;;  %v3168_v1 = vpop.f32.mrb[229].mxu1  ;;  %4367 = vmatmul.mubr.f32.gmra.mrb[78].mxu1 %v6157_v19  ;;  %4072 = vmatprep.mubr.f32.mxu0 %v6158_v29 }
 0x41c   : > { %5128 = vst [vmem:[%s8027_s10 + $0x290] sm:$0xff] %v2868_v8  ;;  %4371 = vmatprep.mubr.f32.mxu1 %v6158_v29 }
 0x41d   : > { %5161 = vst [vmem:[%s8027_s10 + $0x390] sm:$0xff] %v3167_v58  ;;  %v2872_v43 = vpop.f32.mrb[230].mxu0 }
 0x41e   : > { %v2873_v46 = vadd.f32 %v8336_v10, %v2872_v43  ;;  %v3171_v61 = vpop.f32.mrb[230].mxu1  ;;  %v2874_v3 = vpop.f32.mrb[231].mxu0  ;;  %4073 = vmatmul.mubr.f32.gmra.mrb[80].mxu0 %v6159_v49 }
 0x41f   : > { %v3172_v0 = vadd.f32 %v8343_v31, %v3171_v61  ;;  %v3173_v14 = vpop.f32.mrb[231].mxu1  ;;  %4372 = vmatmul.mubr.f32.gmra.mrb[80].mxu1 %v6159_v49  ;;  %4077 = vmatprep.mubr.f32.mxu0 %v6160_v42 }
 0x420   : > { %5129 = vst [vmem:[%s8027_s10 + $0x298] sm:$0xff] %v2873_v46  ;;  %4376 = vmatprep.mubr.f32.mxu1 %v6160_v42 }
 0x421   : > { %5162 = vst [vmem:[%s8027_s10 + $0x398] sm:$0xff] %v3172_v0  ;;  %v2877_v57 = vpop.f32.mrb[232].mxu0 }
 0x422   : > { %v2878_v35 = vadd.f32 %v8336_v10, %v2877_v57  ;;  %v3176_v8 = vpop.f32.mrb[232].mxu1  ;;  %v2879_v15 = vpop.f32.mrb[233].mxu0  ;;  %4078 = vmatmul.mubr.f32.gmra.mrb[82].mxu0 %v8160_v11 }
 0x423   : > { %v3177_v16 = vadd.f32 %v8343_v31, %v3176_v8  ;;  %v3178_v19 = vpop.f32.mrb[233].mxu1  ;;  %4377 = vmatmul.mubr.f32.gmra.mrb[82].mxu1 %v8160_v11  ;;  %4082 = vmatprep.mubr.f32.mxu0 %v8164_v12 }
 0x424   : > { %5130 = vst [vmem:[%s8027_s10 + $0x2a0] sm:$0xff] %v2878_v35  ;;  %4381 = vmatprep.mubr.f32.mxu1 %v8164_v12 }
 0x425   : > { %5163 = vst [vmem:[%s8027_s10 + $0x3a0] sm:$0xff] %v3177_v16  ;;  %v2882_v58 = vpop.f32.mrb[234].mxu0 }
 0x426   : > { %v2883_v1 = vadd.f32 %v8336_v10, %v2882_v58  ;;  %v3181_v29 = vpop.f32.mrb[234].mxu1  ;;  %v2884_v43 = vpop.f32.mrb[235].mxu0  ;;  %4083 = vmatmul.mubr.f32.gmra.mrb[84].mxu0 %v8175_v33 }
 0x427   : > { %v3182_v46 = vadd.f32 %v8343_v31, %v3181_v29  ;;  %v3183_v61 = vpop.f32.mrb[235].mxu1  ;;  %4382 = vmatmul.mubr.f32.gmra.mrb[84].mxu1 %v8175_v33  ;;  %4087 = vmatprep.mubr.f32.mxu0 %v8180_v34 }
 0x428   : > { %5131 = vst [vmem:[%s8027_s10 + $0x2a8] sm:$0xff] %v2883_v1  ;;  %4386 = vmatprep.mubr.f32.mxu1 %v8180_v34 }
 0x429   : > { %5164 = vst [vmem:[%s8027_s10 + $0x3a8] sm:$0xff] %v3182_v46  ;;  %v2887_v11 = vpop.f32.mrb[236].mxu0 }
 0x42a   : > { %v2888_v12 = vadd.f32 %v8336_v10, %v2887_v11  ;;  %v3186_v3 = vpop.f32.mrb[236].mxu1  ;;  %v2889_v49 = vpop.f32.mrb[237].mxu0  ;;  %4088 = vmatmul.mubr.f32.gmra.mrb[86].mxu0 %v8191_v55 }
 0x42b   : > { %v3187_v0 = vadd.f32 %v8343_v31, %v3186_v3  ;;  %v3188_v14 = vpop.f32.mrb[237].mxu1  ;;  %4387 = vmatmul.mubr.f32.gmra.mrb[86].mxu1 %v8191_v55  ;;  %4092 = vmatprep.mubr.f32.mxu0 %v8196_v2 }
 0x42c   : > { %5132 = vst [vmem:[%s8027_s10 + $0x2b0] sm:$0xff] %v2888_v12  ;;  %4391 = vmatprep.mubr.f32.mxu1 %v8196_v2 }
 0x42d   : > { %5165 = vst [vmem:[%s8027_s10 + $0x3b0] sm:$0xff] %v3187_v0  ;;  %v2892_v33 = vpop.f32.mrb[238].mxu0 }
 0x42e   : > { %v2893_v34 = vadd.f32 %v8336_v10, %v2892_v33  ;;  %v3191_v42 = vpop.f32.mrb[238].mxu1  ;;  %v2894_v57 = vpop.f32.mrb[239].mxu0  ;;  %4093 = vmatmul.mubr.f32.gmra.mrb[88].mxu0 %v8207_v13 }
 0x42f   : > { %v3192_v35 = vadd.f32 %v8343_v31, %v3191_v42  ;;  %v3193_v8 = vpop.f32.mrb[239].mxu1  ;;  %4392 = vmatmul.mubr.f32.gmra.mrb[88].mxu1 %v8207_v13  ;;  %4097 = vmatprep.mubr.f32.mxu0 %v8212_v40 }
 0x430   : > { %5133 = vst [vmem:[%s8027_s10 + $0x2b8] sm:$0xff] %v2893_v34  ;;  %4396 = vmatprep.mubr.f32.mxu1 %v8212_v40 }
 0x431   : > { %5166 = vst [vmem:[%s8027_s10 + $0x3b8] sm:$0xff] %v3192_v35  ;;  %v2897_v55 = vpop.f32.mrb[240].mxu0 }
 0x432   : > { %v2898_v2 = vadd.f32 %v8336_v10, %v2897_v55  ;;  %v3196_v15 = vpop.f32.mrb[240].mxu1  ;;  %v2899_v16 = vpop.f32.mrb[241].mxu0  ;;  %4098 = vmatmul.mubr.f32.gmra.mrb[90].mxu0 %v8223_v36 }
 0x433   : > { %v3197_v19 = vadd.f32 %v8343_v31, %v3196_v15  ;;  %v3198_v58 = vpop.f32.mrb[241].mxu1  ;;  %4397 = vmatmul.mubr.f32.gmra.mrb[90].mxu1 %v8223_v36  ;;  %4102 = vmatprep.mubr.f32.mxu0 %v8228_v62 }
 0x434   : > { %5134 = vst [vmem:[%s8027_s10 + $0x2c0] sm:$0xff] %v2898_v2  ;;  %4401 = vmatprep.mubr.f32.mxu1 %v8228_v62 }
 0x435   : > { %5167 = vst [vmem:[%s8027_s10 + $0x3c0] sm:$0xff] %v3197_v19  ;;  %v2902_v13 = vpop.f32.mrb[242].mxu0 }
 0x436   : > { %v2903_v40 = vadd.f32 %v8336_v10, %v2902_v13  ;;  %v3201_v1 = vpop.f32.mrb[242].mxu1  ;;  %v2904_v29 = vpop.f32.mrb[243].mxu0  ;;  %4103 = vmatmul.mubr.f32.gmra.mrb[92].mxu0 %v8239_v51 }
 0x437   : > { %v3202_v43 = vadd.f32 %v8343_v31, %v3201_v1  ;;  %v3203_v46 = vpop.f32.mrb[243].mxu1  ;;  %4402 = vmatmul.mubr.f32.gmra.mrb[92].mxu1 %v8239_v51  ;;  %4107 = vmatprep.mubr.f32.mxu0 %v8244_v28 }
 0x438   : > { %5135 = vst [vmem:[%s8027_s10 + $0x2c8] sm:$0xff] %v2903_v40  ;;  %4406 = vmatprep.mubr.f32.mxu1 %v8244_v28 }
 0x439   : > { %5168 = vst [vmem:[%s8027_s10 + $0x3c8] sm:$0xff] %v3202_v43  ;;  %v2907_v36 = vpop.f32.mrb[244].mxu0 }
 0x43a   : > { %v2908_v62 = vadd.f32 %v8336_v10, %v2907_v36  ;;  %v3206_v61 = vpop.f32.mrb[244].mxu1  ;;  %v2909_v11 = vpop.f32.mrb[245].mxu0  ;;  %4108 = vmatmul.mubr.f32.gmra.mrb[94].mxu0 %v8255_v54 }
 0x43b   : > { %v3207_v12 = vadd.f32 %v8343_v31, %v3206_v61  ;;  %v3208_v3 = vpop.f32.mrb[245].mxu1  ;;  %4407 = vmatmul.mubr.f32.gmra.mrb[94].mxu1 %v8255_v54  ;;  %4112 = vmatprep.mubr.f32.mxu0 %v8260_v9 }
 0x43c   : > { %5136 = vst [vmem:[%s8027_s10 + $0x2d0] sm:$0xff] %v2908_v62  ;;  %4411 = vmatprep.mubr.f32.mxu1 %v8260_v9 }
 0x43d   : > { %5169 = vst [vmem:[%s8027_s10 + $0x3d0] sm:$0xff] %v3207_v12  ;;  %v2912_v51 = vpop.f32.mrb[246].mxu0 }
 0x43e   : > { %v2913_v28 = vadd.f32 %v8336_v10, %v2912_v51  ;;  %v3211_v49 = vpop.f32.mrb[246].mxu1  ;;  %v2914_v0 = vpop.f32.mrb[247].mxu0  ;;  %4113 = vmatmul.mubr.f32.gmra.mrb[96].mxu0 %v8273_v17 }
 0x43f   : > { %v3212_v14 = vadd.f32 %v8343_v31, %v3211_v49  ;;  %v3213_v33 = vpop.f32.mrb[247].mxu1  ;;  %4412 = vmatmul.mubr.f32.gmra.mrb[96].mxu1 %v8273_v17  ;;  %4117 = vmatprep.mubr.f32.mxu0 %v8278_v39 }
 0x440   : > { %5137 = vst [vmem:[%s8027_s10 + $0x2d8] sm:$0xff] %v2913_v28  ;;  %4416 = vmatprep.mubr.f32.mxu1 %v8278_v39 }
 0x441   : > { %5170 = vst [vmem:[%s8027_s10 + $0x3d8] sm:$0xff] %v3212_v14  ;;  %v2917_v54 = vpop.f32.mrb[248].mxu0 }
 0x442   : > { %v2918_v9 = vadd.f32 %v8336_v10, %v2917_v54  ;;  %v3216_v34 = vpop.f32.mrb[248].mxu1  ;;  %v2919_v42 = vpop.f32.mrb[249].mxu0  ;;  %4118 = vmatmul.mubr.f32.gmra.mrb[98].mxu0 %v8286_v59 }
 0x443   : > { %v3217_v57 = vadd.f32 %v8343_v31, %v3216_v34  ;;  %v3218_v35 = vpop.f32.mrb[249].mxu1  ;;  %4417 = vmatmul.mubr.f32.gmra.mrb[98].mxu1 %v8286_v59  ;;  %4122 = vmatprep.mubr.f32.mxu0 %v8291_v23 }
 0x444   : > { %5138 = vst [vmem:[%s8027_s10 + $0x2e0] sm:$0xff] %v2918_v9  ;;  %4421 = vmatprep.mubr.f32.mxu1 %v8291_v23 }
 0x445   : > { %5171 = vst [vmem:[%s8027_s10 + $0x3e0] sm:$0xff] %v3217_v57  ;;  %v2922_v17 = vpop.f32.mrb[250].mxu0 }
 0x446   : > { %v2923_v39 = vadd.f32 %v8336_v10, %v2922_v17  ;;  %v3221_v8 = vpop.f32.mrb[250].mxu1  ;;  %v2924_v55 = vpop.f32.mrb[251].mxu0  ;;  %4123 = vmatmul.mubr.f32.gmra.mrb[100].mxu0 %v8299_v63 }
 0x447   : > { %v3222_v2 = vadd.f32 %v8343_v31, %v3221_v8  ;;  %v3223_v15 = vpop.f32.mrb[251].mxu1  ;;  %4422 = vmatmul.mubr.f32.gmra.mrb[100].mxu1 %v8299_v63  ;;  %4127 = vmatprep.mubr.f32.mxu0 %v8304_v7 }
 0x448   : > { %5139 = vst [vmem:[%s8027_s10 + $0x2e8] sm:$0xff] %v2923_v39  ;;  %4426 = vmatprep.mubr.f32.mxu1 %v8304_v7 }
 0x449   : > { %5172 = vst [vmem:[%s8027_s10 + $0x3e8] sm:$0xff] %v3222_v2  ;;  %v2927_v59 = vpop.f32.mrb[252].mxu0 }
 0x44a   : > { %v2928_v23 = vadd.f32 %v8336_v10, %v2927_v59  ;;  %v3226_v16 = vpop.f32.mrb[252].mxu1  ;;  %v2929_v19 = vpop.f32.mrb[253].mxu0  ;;  %4128 = vmatmul.mubr.f32.gmra.mrb[102].mxu0 %v8312_v22 }
 0x44b   : > { %v3227_v58 = vadd.f32 %v8343_v31, %v3226_v16  ;;  %v3228_v13 = vpop.f32.mrb[253].mxu1  ;;  %4427 = vmatmul.mubr.f32.gmra.mrb[102].mxu1 %v8312_v22  ;;  %4132 = vmatprep.mubr.f32.mxu0 %v8317_v38  ;;  %v8640_v22 = vld [vmem:[#allocation16] ss:$0 sm:$0xff] }
 0x44c   : > { %5140 = vst [vmem:[%s8027_s10 + $0x2f0] sm:$0xff] %v2928_v23  ;;  %4431 = vmatprep.mubr.f32.mxu1 %v8317_v38  ;;  %v8644_v38 = vld [vmem:[#allocation16 + $0x1] ss:$0 sm:$0xff] }
 0x44d   : > { %5173 = vst [vmem:[%s8027_s10 + $0x3f0] sm:$0xff] %v3227_v58  ;;  %v2932_v63 = vpop.f32.mrb[254].mxu0 }
 0x44e   : > { %v2933_v7 = vadd.f32 %v8336_v10, %v2932_v63  ;;  %v3231_v40 = vpop.f32.mrb[254].mxu1  ;;  %v2934_v1 = vpop.f32.mrb[255].mxu0  ;;  %4133 = vmatmul.mubr.f32.gmra.mrb[104].mxu0 %v8325_v30 }
 0x44f   : > { %v3232_v29 = vadd.f32 %v8343_v31, %v3231_v40  ;;  %v3233_v43 = vpop.f32.mrb[255].mxu1  ;;  %4432 = vmatmul.mubr.f32.gmra.mrb[104].mxu1 %v8325_v30  ;;  %4137 = vmatprep.mubr.f32.mxu0 %v8330_v50 }
 0x450   : > { %5141 = vst [vmem:[%s8027_s10 + $0x2f8] sm:$0xff] %v2933_v7  ;;  %4436 = vmatprep.mubr.f32.mxu1 %v8330_v50 }
 0x451   : > { %5174 = vst [vmem:[%s8027_s10 + $0x3f8] sm:$0xff] %v3232_v29  ;;  %v3437_v10 = vpop.f32.mrb[0].mxu0 }
 0x452   : > { %v3438_v46 = vadd.f32 %v8640_v22, %v3437_v10  ;;  %v3735_v36 = vpop.f32.mrb[0].mxu1  ;;  %v3439_v62 = vpop.f32.mrb[1].mxu0  ;;  %4138 = vmatmul.mubr.f32.gmra.mrb[106].mxu0 %v8340_v52 }
 0x453   : > { %v3736_v30 = vadd.f32 %v8644_v38, %v3735_v36  ;;  %v3737_v31 = vpop.f32.mrb[1].mxu1  ;;  %4437 = vmatmul.mubr.f32.gmra.mrb[106].mxu1 %v8340_v52  ;;  %4142 = vmatprep.mubr.f32.mxu0 %v8347_v37 }
 0x454   : > { %3596 = vst [vmem:[%s8654_s16] sm:$0xff] %v3438_v46  ;;  %4441 = vmatprep.mubr.f32.mxu1 %v8347_v37 }
 0x455   : > { %5177 = vst [vmem:[%s8654_s16 + $0x100] sm:$0xff] %v3736_v30  ;;  %v3442_v50 = vpop.f32.mrb[2].mxu0 }
 0x456   : > { %v3443_v61 = vadd.f32 %v8640_v22, %v3442_v50  ;;  %v3740_v11 = vpop.f32.mrb[2].mxu1  ;;  %v3444_v12 = vpop.f32.mrb[3].mxu0  ;;  %4143 = vmatmul.mubr.f32.gmra.mrb[108].mxu0 %v8356_v60 }
 0x457   : > { %v3741_v52 = vadd.f32 %v8644_v38, %v3740_v11  ;;  %v3742_v3 = vpop.f32.mrb[3].mxu1  ;;  %4442 = vmatmul.mubr.f32.gmra.mrb[108].mxu1 %v8356_v60  ;;  %4147 = vmatprep.mubr.f32.mxu0 %v8361_v18 }
 0x458   : > { %3597 = vst [vmem:[%s8654_s16 + $0x8] sm:$0xff] %v3443_v61  ;;  %4446 = vmatprep.mubr.f32.mxu1 %v8361_v18 }
 0x459   : > { %5178 = vst [vmem:[%s8654_s16 + $0x108] sm:$0xff] %v3741_v52  ;;  %v3447_v37 = vpop.f32.mrb[4].mxu0 }
 0x45a   : > { %v3448_v51 = vadd.f32 %v8640_v22, %v3447_v37  ;;  %v3745_v28 = vpop.f32.mrb[4].mxu1  ;;  %v3449_v49 = vpop.f32.mrb[5].mxu0  ;;  %4148 = vmatmul.mubr.f32.gmra.mrb[110].mxu0 %v8370_v26 }
 0x45b   : > { %v3746_v0 = vadd.f32 %v8644_v38, %v3745_v28  ;;  %v3747_v14 = vpop.f32.mrb[5].mxu1  ;;  %4447 = vmatmul.mubr.f32.gmra.mrb[110].mxu1 %v8370_v26  ;;  %4152 = vmatprep.mubr.f32.mxu0 %v8375_v56 }
 0x45c   : > { %3598 = vst [vmem:[%s8654_s16 + $0x10] sm:$0xff] %v3448_v51  ;;  %4451 = vmatprep.mubr.f32.mxu1 %v8375_v56 }
 0x45d   : > { %5179 = vst [vmem:[%s8654_s16 + $0x110] sm:$0xff] %v3746_v0  ;;  %v3452_v60 = vpop.f32.mrb[6].mxu0 }
 0x45e   : > { %v3453_v18 = vadd.f32 %v8640_v22, %v3452_v60  ;;  %v3750_v33 = vpop.f32.mrb[6].mxu1  ;;  %v3454_v54 = vpop.f32.mrb[7].mxu0  ;;  %4153 = vmatmul.mubr.f32.gmra.mrb[112].mxu0 %v8384_v20 }
 0x45f   : > { %v3751_v9 = vadd.f32 %v8644_v38, %v3750_v33  ;;  %v3752_v34 = vpop.f32.mrb[7].mxu1  ;;  %4452 = vmatmul.mubr.f32.gmra.mrb[112].mxu1 %v8384_v20  ;;  %4157 = vmatprep.mubr.f32.mxu0 %v8389_v21 }
 0x460   : > { %3599 = vst [vmem:[%s8654_s16 + $0x18] sm:$0xff] %v3453_v18  ;;  %4456 = vmatprep.mubr.f32.mxu1 %v8389_v21 }
 0x461   : > { %5180 = vst [vmem:[%s8654_s16 + $0x118] sm:$0xff] %v3751_v9  ;;  %v3457_v26 = vpop.f32.mrb[8].mxu0 }
 0x462   : > { %v3458_v56 = vadd.f32 %v8640_v22, %v3457_v26  ;;  %v3755_v42 = vpop.f32.mrb[8].mxu1  ;;  %v3459_v57 = vpop.f32.mrb[9].mxu0  ;;  %4158 = vmatmul.mubr.f32.gmra.mrb[114].mxu0 %v8398_v44 }
 0x463   : > { %v3756_v35 = vadd.f32 %v8644_v38, %v3755_v42  ;;  %v3757_v17 = vpop.f32.mrb[9].mxu1  ;;  %4457 = vmatmul.mubr.f32.gmra.mrb[114].mxu1 %v8398_v44  ;;  %4162 = vmatprep.mubr.f32.mxu0 %v8403_v45 }
 0x464   : > { %3600 = vst [vmem:[%s8654_s16 + $0x20] sm:$0xff] %v3458_v56  ;;  %4461 = vmatprep.mubr.f32.mxu1 %v8403_v45 }
 0x465   : > { %5181 = vst [vmem:[%s8654_s16 + $0x120] sm:$0xff] %v3756_v35  ;;  %v3462_v20 = vpop.f32.mrb[10].mxu0 }
 0x466   : > { %v3463_v21 = vadd.f32 %v8640_v22, %v3462_v20  ;;  %v3760_v39 = vpop.f32.mrb[10].mxu1  ;;  %v3464_v8 = vpop.f32.mrb[11].mxu0  ;;  %4163 = vmatmul.mubr.f32.gmra.mrb[116].mxu0 %v8412_v4 }
 0x467   : > { %v3761_v55 = vadd.f32 %v8644_v38, %v3760_v39  ;;  %v3762_v2 = vpop.f32.mrb[11].mxu1  ;;  %4462 = vmatmul.mubr.f32.gmra.mrb[116].mxu1 %v8412_v4  ;;  %4167 = vmatprep.mubr.f32.mxu0 %v8417_v32 }
 0x468   : > { %3601 = vst [vmem:[%s8654_s16 + $0x28] sm:$0xff] %v3463_v21  ;;  %4466 = vmatprep.mubr.f32.mxu1 %v8417_v32 }
 0x469   : > { %5182 = vst [vmem:[%s8654_s16 + $0x128] sm:$0xff] %v3761_v55  ;;  %v3467_v44 = vpop.f32.mrb[12].mxu0 }
 0x46a   : > { %v3468_v45 = vadd.f32 %v8640_v22, %v3467_v44  ;;  %v3765_v15 = vpop.f32.mrb[12].mxu1  ;;  %v3469_v59 = vpop.f32.mrb[13].mxu0  ;;  %4168 = vmatmul.mubr.f32.gmra.mrb[118].mxu0 %v8426_v24 }
 0x46b   : > { %v3766_v23 = vadd.f32 %v8644_v38, %v3765_v15  ;;  %v3767_v16 = vpop.f32.mrb[13].mxu1  ;;  %4467 = vmatmul.mubr.f32.gmra.mrb[118].mxu1 %v8426_v24  ;;  %4172 = vmatprep.mubr.f32.mxu0 %v8431_v25 }
 0x46c   : > { %3602 = vst [vmem:[%s8654_s16 + $0x30] sm:$0xff] %v3468_v45  ;;  %4471 = vmatprep.mubr.f32.mxu1 %v8431_v25 }
 0x46d   : > { %5183 = vst [vmem:[%s8654_s16 + $0x130] sm:$0xff] %v3766_v23  ;;  %v3472_v4 = vpop.f32.mrb[14].mxu0 }
 0x46e   : > { %v3473_v32 = vadd.f32 %v8640_v22, %v3472_v4  ;;  %v3770_v19 = vpop.f32.mrb[14].mxu1  ;;  %v3474_v58 = vpop.f32.mrb[15].mxu0  ;;  %4173 = vmatmul.mubr.f32.gmra.mrb[120].mxu0 %v8440_v27 }
 0x46f   : > { %v3771_v13 = vadd.f32 %v8644_v38, %v3770_v19  ;;  %v3772_v63 = vpop.f32.mrb[15].mxu1  ;;  %4472 = vmatmul.mubr.f32.gmra.mrb[120].mxu1 %v8440_v27  ;;  %4177 = vmatprep.mubr.f32.mxu0 %v8445_v41 }
 0x470   : > { %3603 = vst [vmem:[%s8654_s16 + $0x38] sm:$0xff] %v3473_v32  ;;  %4476 = vmatprep.mubr.f32.mxu1 %v8445_v41 }
 0x471   : > { %5184 = vst [vmem:[%s8654_s16 + $0x138] sm:$0xff] %v3771_v13  ;;  %v3477_v24 = vpop.f32.mrb[16].mxu0 }
 0x472   : > { %v3478_v25 = vadd.f32 %v8640_v22, %v3477_v24  ;;  %v3775_v7 = vpop.f32.mrb[16].mxu1  ;;  %v3479_v40 = vpop.f32.mrb[17].mxu0  ;;  %4178 = vmatmul.mubr.f32.gmra.mrb[122].mxu0 %v8454_v48 }
 0x473   : > { %v3776_v1 = vadd.f32 %v8644_v38, %v3775_v7  ;;  %v3777_v29 = vpop.f32.mrb[17].mxu1  ;;  %4477 = vmatmul.mubr.f32.gmra.mrb[122].mxu1 %v8454_v48  ;;  %4182 = vmatprep.mubr.f32.mxu0 %v8459_v47 }
 0x474   : > { %3604 = vst [vmem:[%s8654_s16 + $0x40] sm:$0xff] %v3478_v25  ;;  %4481 = vmatprep.mubr.f32.mxu1 %v8459_v47 }
 0x475   : > { %5185 = vst [vmem:[%s8654_s16 + $0x140] sm:$0xff] %v3776_v1  ;;  %v3482_v27 = vpop.f32.mrb[18].mxu0 }
 0x476   : > { %v3483_v41 = vadd.f32 %v8640_v22, %v3482_v27  ;;  %v3780_v43 = vpop.f32.mrb[18].mxu1  ;;  %v3484_v10 = vpop.f32.mrb[19].mxu0  ;;  %4183 = vmatmul.mubr.f32.gmra.mrb[124].mxu0 %v8468_v5 }
 0x477   : > { %v3781_v46 = vadd.f32 %v8644_v38, %v3780_v43  ;;  %v3782_v36 = vpop.f32.mrb[19].mxu1  ;;  %4482 = vmatmul.mubr.f32.gmra.mrb[124].mxu1 %v8468_v5  ;;  %4187 = vmatprep.mubr.f32.mxu0 %v8473_v6 }
 0x478   : > { %3605 = vst [vmem:[%s8654_s16 + $0x48] sm:$0xff] %v3483_v41  ;;  %4486 = vmatprep.mubr.f32.mxu1 %v8473_v6 }
 0x479   : > { %5186 = vst [vmem:[%s8654_s16 + $0x148] sm:$0xff] %v3781_v46  ;;  %v3487_v48 = vpop.f32.mrb[20].mxu0 }
 0x47a   : > { %v3488_v47 = vadd.f32 %v8640_v22, %v3487_v48  ;;  %v3785_v62 = vpop.f32.mrb[20].mxu1  ;;  %v3489_v30 = vpop.f32.mrb[21].mxu0  ;;  %4188 = vmatmul.mubr.f32.gmra.mrb[126].mxu0 %v8482_v53 }
 0x47b   : > { %v3786_v31 = vadd.f32 %v8644_v38, %v3785_v62  ;;  %v3787_v50 = vpop.f32.mrb[21].mxu1  ;;  %4487 = vmatmul.mubr.f32.gmra.mrb[126].mxu1 %v8482_v53 }
 0x47c   : > { %3606 = vst [vmem:[%s8654_s16 + $0x50] sm:$0xff] %v3488_v47 }
 0x47d   : > { %5187 = vst [vmem:[%s8654_s16 + $0x150] sm:$0xff] %v3786_v31  ;;  %v3492_v5 = vpop.f32.mrb[22].mxu0 }
 0x47e   : > { %v3493_v6 = vadd.f32 %v8640_v22, %v3492_v5  ;;  %v3790_v61 = vpop.f32.mrb[22].mxu1  ;;  %v3494_v11 = vpop.f32.mrb[23].mxu0 }
 0x47f   : > { %v3791_v12 = vadd.f32 %v8644_v38, %v3790_v61  ;;  %v3792_v52 = vpop.f32.mrb[23].mxu1 }
 0x480   : > { %3607 = vst [vmem:[%s8654_s16 + $0x58] sm:$0xff] %v3493_v6 }
 0x481   : > { %5188 = vst [vmem:[%s8654_s16 + $0x158] sm:$0xff] %v3791_v12  ;;  %v3497_v3 = vpop.f32.mrb[24].mxu0 }
 0x482   : > { %v3498_v37 = vadd.f32 %v8640_v22, %v3497_v3  ;;  %v3795_v53 = vpop.f32.mrb[24].mxu1  ;;  %v3499_v51 = vpop.f32.mrb[25].mxu0 }
 0x483   : > { %v3796_v28 = vadd.f32 %v8644_v38, %v3795_v53  ;;  %v3797_v49 = vpop.f32.mrb[25].mxu1 }
 0x484   : > { %3608 = vst [vmem:[%s8654_s16 + $0x60] sm:$0xff] %v3498_v37 }
 0x485   : > { %5189 = vst [vmem:[%s8654_s16 + $0x160] sm:$0xff] %v3796_v28  ;;  %v3502_v0 = vpop.f32.mrb[26].mxu0 }
 0x486   : > { %v3503_v14 = vadd.f32 %v8640_v22, %v3502_v0  ;;  %v3800_v60 = vpop.f32.mrb[26].mxu1  ;;  %v3504_v18 = vpop.f32.mrb[27].mxu0 }
 0x487   : > { %v3801_v33 = vadd.f32 %v8644_v38, %v3800_v60  ;;  %v3802_v54 = vpop.f32.mrb[27].mxu1 }
 0x488   : > { %3609 = vst [vmem:[%s8654_s16 + $0x68] sm:$0xff] %v3503_v14 }
 0x489   : > { %5190 = vst [vmem:[%s8654_s16 + $0x168] sm:$0xff] %v3801_v33  ;;  %v3507_v9 = vpop.f32.mrb[28].mxu0 }
 0x48a   : > { %v3508_v34 = vadd.f32 %v8640_v22, %v3507_v9  ;;  %v3805_v26 = vpop.f32.mrb[28].mxu1  ;;  %v3509_v56 = vpop.f32.mrb[29].mxu0 }
 0x48b   : > { %v3806_v42 = vadd.f32 %v8644_v38, %v3805_v26  ;;  %v3807_v57 = vpop.f32.mrb[29].mxu1 }
 0x48c   : > { %3610 = vst [vmem:[%s8654_s16 + $0x70] sm:$0xff] %v3508_v34 }
 0x48d   : > { %5191 = vst [vmem:[%s8654_s16 + $0x170] sm:$0xff] %v3806_v42  ;;  %v3512_v35 = vpop.f32.mrb[30].mxu0 }
 0x48e   : > { %v3513_v17 = vadd.f32 %v8640_v22, %v3512_v35  ;;  %v3810_v20 = vpop.f32.mrb[30].mxu1  ;;  %v3514_v21 = vpop.f32.mrb[31].mxu0 }
 0x48f   : > { %v3811_v39 = vadd.f32 %v8644_v38, %v3810_v20  ;;  %v3812_v8 = vpop.f32.mrb[31].mxu1 }
 0x490   : > { %3611 = vst [vmem:[%s8654_s16 + $0x78] sm:$0xff] %v3513_v17 }
 0x491   : > { %5192 = vst [vmem:[%s8654_s16 + $0x178] sm:$0xff] %v3811_v39  ;;  %v3517_v55 = vpop.f32.mrb[32].mxu0 }
 0x492   : > { %v3518_v2 = vadd.f32 %v8640_v22, %v3517_v55  ;;  %v3815_v44 = vpop.f32.mrb[32].mxu1  ;;  %v3519_v45 = vpop.f32.mrb[33].mxu0 }
 0x493   : > { %v3816_v15 = vadd.f32 %v8644_v38, %v3815_v44  ;;  %v3817_v59 = vpop.f32.mrb[33].mxu1 }
 0x494   : > { %3612 = vst [vmem:[%s8654_s16 + $0x80] sm:$0xff] %v3518_v2 }
 0x495   : > { %5193 = vst [vmem:[%s8654_s16 + $0x180] sm:$0xff] %v3816_v15  ;;  %v3522_v23 = vpop.f32.mrb[34].mxu0 }
 0x496   : > { %v3523_v16 = vadd.f32 %v8640_v22, %v3522_v23  ;;  %v3820_v4 = vpop.f32.mrb[34].mxu1  ;;  %v3524_v32 = vpop.f32.mrb[35].mxu0 }
 0x497   : > { %v3821_v19 = vadd.f32 %v8644_v38, %v3820_v4  ;;  %v3822_v58 = vpop.f32.mrb[35].mxu1 }
 0x498   : > { %3613 = vst [vmem:[%s8654_s16 + $0x88] sm:$0xff] %v3523_v16 }
 0x499   : > { %5194 = vst [vmem:[%s8654_s16 + $0x188] sm:$0xff] %v3821_v19  ;;  %v3527_v13 = vpop.f32.mrb[36].mxu0 }
 0x49a   : > { %v3528_v63 = vadd.f32 %v8640_v22, %v3527_v13  ;;  %v3825_v24 = vpop.f32.mrb[36].mxu1  ;;  %v3529_v25 = vpop.f32.mrb[37].mxu0 }
 0x49b   : > { %v3826_v7 = vadd.f32 %v8644_v38, %v3825_v24  ;;  %v3827_v40 = vpop.f32.mrb[37].mxu1 }
 0x49c   : > { %3614 = vst [vmem:[%s8654_s16 + $0x90] sm:$0xff] %v3528_v63 }
 0x49d   : > { %5195 = vst [vmem:[%s8654_s16 + $0x190] sm:$0xff] %v3826_v7  ;;  %v3532_v1 = vpop.f32.mrb[38].mxu0 }
 0x49e   : > { %v3533_v29 = vadd.f32 %v8640_v22, %v3532_v1  ;;  %v3830_v27 = vpop.f32.mrb[38].mxu1  ;;  %v3534_v41 = vpop.f32.mrb[39].mxu0 }
 0x49f   : > { %v3831_v43 = vadd.f32 %v8644_v38, %v3830_v27  ;;  %v3832_v10 = vpop.f32.mrb[39].mxu1 }
 0x4a0   : > { %3615 = vst [vmem:[%s8654_s16 + $0x98] sm:$0xff] %v3533_v29 }
 0x4a1   : > { %5196 = vst [vmem:[%s8654_s16 + $0x198] sm:$0xff] %v3831_v43  ;;  %v3537_v46 = vpop.f32.mrb[40].mxu0 }
 0x4a2   : > { %v3538_v36 = vadd.f32 %v8640_v22, %v3537_v46  ;;  %v3835_v48 = vpop.f32.mrb[40].mxu1  ;;  %v3539_v47 = vpop.f32.mrb[41].mxu0 }
 0x4a3   : > { %v3836_v62 = vadd.f32 %v8644_v38, %v3835_v48  ;;  %v3837_v30 = vpop.f32.mrb[41].mxu1 }
 0x4a4   : > { %3616 = vst [vmem:[%s8654_s16 + $0xa0] sm:$0xff] %v3538_v36 }
 0x4a5   : > { %5197 = vst [vmem:[%s8654_s16 + $0x1a0] sm:$0xff] %v3836_v62  ;;  %v3542_v31 = vpop.f32.mrb[42].mxu0 }
 0x4a6   : > { %v3543_v50 = vadd.f32 %v8640_v22, %v3542_v31  ;;  %v3840_v5 = vpop.f32.mrb[42].mxu1  ;;  %v3544_v6 = vpop.f32.mrb[43].mxu0 }
 0x4a7   : > { %v3841_v61 = vadd.f32 %v8644_v38, %v3840_v5  ;;  %v3842_v11 = vpop.f32.mrb[43].mxu1 }
 0x4a8   : > { %3617 = vst [vmem:[%s8654_s16 + $0xa8] sm:$0xff] %v3543_v50  ;;  %v8822_v11 = vld [vmem:[#allocation16 + $0x3] ss:$0 sm:$0xff] }
 0x4a9   : > { %5198 = vst [vmem:[%s8654_s16 + $0x1a8] sm:$0xff] %v3841_v61  ;;  %v3547_v12 = vpop.f32.mrb[44].mxu0  ;;  %v8819_v61 = vld [vmem:[#allocation16 + $0x2] ss:$0 sm:$0xff] }
 0x4aa   : > { %v3548_v52 = vadd.f32 %v8640_v22, %v3547_v12  ;;  %v3845_v3 = vpop.f32.mrb[44].mxu1  ;;  %v3549_v37 = vpop.f32.mrb[45].mxu0 }
 0x4ab   : > { %v3846_v53 = vadd.f32 %v8644_v38, %v3845_v3  ;;  %v3847_v51 = vpop.f32.mrb[45].mxu1 }
 0x4ac   : > { %3618 = vst [vmem:[%s8654_s16 + $0xb0] sm:$0xff] %v3548_v52 }
 0x4ad   : > { %5199 = vst [vmem:[%s8654_s16 + $0x1b0] sm:$0xff] %v3846_v53  ;;  %v3552_v28 = vpop.f32.mrb[46].mxu0 }
 0x4ae   : > { %v3553_v49 = vadd.f32 %v8640_v22, %v3552_v28  ;;  %v3850_v0 = vpop.f32.mrb[46].mxu1  ;;  %v3554_v14 = vpop.f32.mrb[47].mxu0 }
 0x4af   : > { %v3851_v60 = vadd.f32 %v8644_v38, %v3850_v0  ;;  %v3852_v18 = vpop.f32.mrb[47].mxu1 }
 0x4b0   : > { %3619 = vst [vmem:[%s8654_s16 + $0xb8] sm:$0xff] %v3553_v49 }
 0x4b1   : > { %5200 = vst [vmem:[%s8654_s16 + $0x1b8] sm:$0xff] %v3851_v60  ;;  %v3557_v33 = vpop.f32.mrb[48].mxu0 }
 0x4b2   : > { %v3558_v54 = vadd.f32 %v8640_v22, %v3557_v33  ;;  %v3855_v9 = vpop.f32.mrb[48].mxu1  ;;  %v3559_v34 = vpop.f32.mrb[49].mxu0 }
 0x4b3   : > { %v3856_v26 = vadd.f32 %v8644_v38, %v3855_v9  ;;  %v3857_v56 = vpop.f32.mrb[49].mxu1 }
 0x4b4   : > { %3620 = vst [vmem:[%s8654_s16 + $0xc0] sm:$0xff] %v3558_v54 }
 0x4b5   : > { %5201 = vst [vmem:[%s8654_s16 + $0x1c0] sm:$0xff] %v3856_v26  ;;  %v3562_v42 = vpop.f32.mrb[50].mxu0 }
 0x4b6   : > { %v3563_v57 = vadd.f32 %v8640_v22, %v3562_v42  ;;  %v3860_v35 = vpop.f32.mrb[50].mxu1  ;;  %v3564_v17 = vpop.f32.mrb[51].mxu0 }
 0x4b7   : > { %v3861_v20 = vadd.f32 %v8644_v38, %v3860_v35  ;;  %v3862_v21 = vpop.f32.mrb[51].mxu1 }
 0x4b8   : > { %3621 = vst [vmem:[%s8654_s16 + $0xc8] sm:$0xff] %v3563_v57 }
 0x4b9   : > { %5202 = vst [vmem:[%s8654_s16 + $0x1c8] sm:$0xff] %v3861_v20  ;;  %v3567_v39 = vpop.f32.mrb[52].mxu0 }
 0x4ba   : > { %v3568_v8 = vadd.f32 %v8640_v22, %v3567_v39  ;;  %v3865_v55 = vpop.f32.mrb[52].mxu1  ;;  %v3569_v2 = vpop.f32.mrb[53].mxu0 }
 0x4bb   : > { %v3866_v44 = vadd.f32 %v8644_v38, %v3865_v55  ;;  %v3867_v45 = vpop.f32.mrb[53].mxu1 }
 0x4bc   : > { %3622 = vst [vmem:[%s8654_s16 + $0xd0] sm:$0xff] %v3568_v8 }
 0x4bd   : > { %5203 = vst [vmem:[%s8654_s16 + $0x1d0] sm:$0xff] %v3866_v44  ;;  %v3572_v15 = vpop.f32.mrb[54].mxu0 }
 0x4be   : > { %v3573_v59 = vadd.f32 %v8640_v22, %v3572_v15  ;;  %v3870_v23 = vpop.f32.mrb[54].mxu1  ;;  %v3574_v16 = vpop.f32.mrb[55].mxu0 }
 0x4bf   : > { %v3871_v4 = vadd.f32 %v8644_v38, %v3870_v23  ;;  %v3872_v32 = vpop.f32.mrb[55].mxu1 }
 0x4c0   : > { %3623 = vst [vmem:[%s8654_s16 + $0xd8] sm:$0xff] %v3573_v59 }
 0x4c1   : > { %5204 = vst [vmem:[%s8654_s16 + $0x1d8] sm:$0xff] %v3871_v4  ;;  %v3577_v19 = vpop.f32.mrb[56].mxu0 }
 0x4c2   : > { %v3578_v58 = vadd.f32 %v8640_v22, %v3577_v19  ;;  %v3875_v13 = vpop.f32.mrb[56].mxu1  ;;  %v3579_v63 = vpop.f32.mrb[57].mxu0 }
 0x4c3   : > { %v3876_v24 = vadd.f32 %v8644_v38, %v3875_v13  ;;  %v3877_v25 = vpop.f32.mrb[57].mxu1 }
 0x4c4   : > { %3624 = vst [vmem:[%s8654_s16 + $0xe0] sm:$0xff] %v3578_v58 }
 0x4c5   : > { %5205 = vst [vmem:[%s8654_s16 + $0x1e0] sm:$0xff] %v3876_v24  ;;  %v3582_v7 = vpop.f32.mrb[58].mxu0 }
 0x4c6   : > { %v3583_v40 = vadd.f32 %v8640_v22, %v3582_v7  ;;  %v3880_v1 = vpop.f32.mrb[58].mxu1  ;;  %v3584_v29 = vpop.f32.mrb[59].mxu0 }
 0x4c7   : > { %v3881_v27 = vadd.f32 %v8644_v38, %v3880_v1  ;;  %v3882_v41 = vpop.f32.mrb[59].mxu1 }
 0x4c8   : > { %3625 = vst [vmem:[%s8654_s16 + $0xe8] sm:$0xff] %v3583_v40 }
 0x4c9   : > { %5206 = vst [vmem:[%s8654_s16 + $0x1e8] sm:$0xff] %v3881_v27  ;;  %v3587_v43 = vpop.f32.mrb[60].mxu0 }
 0x4ca   : > { %v3588_v10 = vadd.f32 %v8640_v22, %v3587_v43  ;;  %v3885_v46 = vpop.f32.mrb[60].mxu1  ;;  %v3589_v36 = vpop.f32.mrb[61].mxu0 }
 0x4cb   : > { %v3886_v48 = vadd.f32 %v8644_v38, %v3885_v46  ;;  %v3887_v47 = vpop.f32.mrb[61].mxu1 }
 0x4cc   : > { %3626 = vst [vmem:[%s8654_s16 + $0xf0] sm:$0xff] %v3588_v10 }
 0x4cd   : > { %5207 = vst [vmem:[%s8654_s16 + $0x1f0] sm:$0xff] %v3886_v48  ;;  %v3592_v62 = vpop.f32.mrb[62].mxu0 }
 0x4ce   : > { %v3593_v30 = vadd.f32 %v8640_v22, %v3592_v62  ;;  %v3890_v31 = vpop.f32.mrb[62].mxu1  ;;  %v3594_v50 = vpop.f32.mrb[63].mxu0 }
 0x4cf   : > { %v3891_v5 = vadd.f32 %v8644_v38, %v3890_v31  ;;  %v3892_v6 = vpop.f32.mrb[63].mxu1 }
 0x4d0   : > { %3627 = vst [vmem:[%s8654_s16 + $0xf8] sm:$0xff] %v3593_v30 }
 0x4d1   : > { %5208 = vst [vmem:[%s8654_s16 + $0x1f8] sm:$0xff] %v3891_v5  ;;  %v4034_v12 = vpop.f32.mrb[64].mxu0 }
 0x4d2   : > { %v4035_v52 = vadd.f32 %v8819_v61, %v4034_v12  ;;  %v4333_v3 = vpop.f32.mrb[64].mxu1  ;;  %v4036_v37 = vpop.f32.mrb[65].mxu0 }
 0x4d3   : > { %v4334_v22 = vadd.f32 %v8822_v11, %v4333_v3  ;;  %v4335_v53 = vpop.f32.mrb[65].mxu1 }
 0x4d4   : > { %5210 = vst [vmem:[%s8654_s16 + $0x200] sm:$0xff] %v4035_v52 }
 0x4d5   : > { %5243 = vst [vmem:[%s8654_s16 + $0x300] sm:$0xff] %v4334_v22  ;;  %v4039_v38 = vpop.f32.mrb[66].mxu0 }
 0x4d6   : > { %v4040_v51 = vadd.f32 %v8819_v61, %v4039_v38  ;;  %v4338_v28 = vpop.f32.mrb[66].mxu1  ;;  %v4041_v49 = vpop.f32.mrb[67].mxu0 }
 0x4d7   : > { %v4339_v0 = vadd.f32 %v8822_v11, %v4338_v28  ;;  %v4340_v14 = vpop.f32.mrb[67].mxu1 }
 0x4d8   : > { %5211 = vst [vmem:[%s8654_s16 + $0x208] sm:$0xff] %v4040_v51 }
 0x4d9   : > { %5244 = vst [vmem:[%s8654_s16 + $0x308] sm:$0xff] %v4339_v0  ;;  %v4044_v60 = vpop.f32.mrb[68].mxu0 }
 0x4da   : > { %v4045_v18 = vadd.f32 %v8819_v61, %v4044_v60  ;;  %v4343_v33 = vpop.f32.mrb[68].mxu1  ;;  %v4046_v54 = vpop.f32.mrb[69].mxu0 }
 0x4db   : > { %v4344_v9 = vadd.f32 %v8822_v11, %v4343_v33  ;;  %v4345_v34 = vpop.f32.mrb[69].mxu1 }
 0x4dc   : > { %5212 = vst [vmem:[%s8654_s16 + $0x210] sm:$0xff] %v4045_v18 }
 0x4dd   : > { %5245 = vst [vmem:[%s8654_s16 + $0x310] sm:$0xff] %v4344_v9  ;;  %v4049_v26 = vpop.f32.mrb[70].mxu0 }
 0x4de   : > { %v4050_v56 = vadd.f32 %v8819_v61, %v4049_v26  ;;  %v4348_v42 = vpop.f32.mrb[70].mxu1  ;;  %v4051_v57 = vpop.f32.mrb[71].mxu0 }
 0x4df   : > { %v4349_v35 = vadd.f32 %v8822_v11, %v4348_v42  ;;  %v4350_v17 = vpop.f32.mrb[71].mxu1 }
 0x4e0   : > { %5213 = vst [vmem:[%s8654_s16 + $0x218] sm:$0xff] %v4050_v56 }
 0x4e1   : > { %5246 = vst [vmem:[%s8654_s16 + $0x318] sm:$0xff] %v4349_v35  ;;  %v4054_v20 = vpop.f32.mrb[72].mxu0 }
 0x4e2   : > { %v4055_v21 = vadd.f32 %v8819_v61, %v4054_v20  ;;  %v4353_v39 = vpop.f32.mrb[72].mxu1  ;;  %v4056_v8 = vpop.f32.mrb[73].mxu0 }
 0x4e3   : > { %v4354_v55 = vadd.f32 %v8822_v11, %v4353_v39  ;;  %v4355_v2 = vpop.f32.mrb[73].mxu1 }
 0x4e4   : > { %5214 = vst [vmem:[%s8654_s16 + $0x220] sm:$0xff] %v4055_v21 }
 0x4e5   : > { %5247 = vst [vmem:[%s8654_s16 + $0x320] sm:$0xff] %v4354_v55  ;;  %v4059_v44 = vpop.f32.mrb[74].mxu0 }
 0x4e6   : > { %v4060_v45 = vadd.f32 %v8819_v61, %v4059_v44  ;;  %v4358_v15 = vpop.f32.mrb[74].mxu1  ;;  %v4061_v59 = vpop.f32.mrb[75].mxu0 }
 0x4e7   : > { %v4359_v23 = vadd.f32 %v8822_v11, %v4358_v15  ;;  %v4360_v16 = vpop.f32.mrb[75].mxu1 }
 0x4e8   : > { %5215 = vst [vmem:[%s8654_s16 + $0x228] sm:$0xff] %v4060_v45 }
 0x4e9   : > { %5248 = vst [vmem:[%s8654_s16 + $0x328] sm:$0xff] %v4359_v23  ;;  %v4064_v4 = vpop.f32.mrb[76].mxu0 }
 0x4ea   : > { %v4065_v32 = vadd.f32 %v8819_v61, %v4064_v4  ;;  %v4363_v19 = vpop.f32.mrb[76].mxu1  ;;  %v4066_v58 = vpop.f32.mrb[77].mxu0 }
 0x4eb   : > { %v4364_v13 = vadd.f32 %v8822_v11, %v4363_v19  ;;  %v4365_v63 = vpop.f32.mrb[77].mxu1 }
 0x4ec   : > { %5216 = vst [vmem:[%s8654_s16 + $0x230] sm:$0xff] %v4065_v32 }
 0x4ed   : > { %5249 = vst [vmem:[%s8654_s16 + $0x330] sm:$0xff] %v4364_v13  ;;  %v4069_v24 = vpop.f32.mrb[78].mxu0 }
 0x4ee   : > { %v4070_v25 = vadd.f32 %v8819_v61, %v4069_v24  ;;  %v4368_v7 = vpop.f32.mrb[78].mxu1  ;;  %v4071_v40 = vpop.f32.mrb[79].mxu0 }
 0x4ef   : > { %v4369_v1 = vadd.f32 %v8822_v11, %v4368_v7  ;;  %v4370_v29 = vpop.f32.mrb[79].mxu1 }
 0x4f0   : > { %5217 = vst [vmem:[%s8654_s16 + $0x238] sm:$0xff] %v4070_v25 }
 0x4f1   : > { %5250 = vst [vmem:[%s8654_s16 + $0x338] sm:$0xff] %v4369_v1  ;;  %v4074_v27 = vpop.f32.mrb[80].mxu0 }
 0x4f2   : > { %v4075_v41 = vadd.f32 %v8819_v61, %v4074_v27  ;;  %v4373_v43 = vpop.f32.mrb[80].mxu1  ;;  %v4076_v10 = vpop.f32.mrb[81].mxu0 }
 0x4f3   : > { %v4374_v46 = vadd.f32 %v8822_v11, %v4373_v43  ;;  %v4375_v36 = vpop.f32.mrb[81].mxu1 }
 0x4f4   : > { %5218 = vst [vmem:[%s8654_s16 + $0x240] sm:$0xff] %v4075_v41 }
 0x4f5   : > { %5251 = vst [vmem:[%s8654_s16 + $0x340] sm:$0xff] %v4374_v46  ;;  %v4079_v48 = vpop.f32.mrb[82].mxu0 }
 0x4f6   : > { %v4080_v47 = vadd.f32 %v8819_v61, %v4079_v48  ;;  %v4378_v62 = vpop.f32.mrb[82].mxu1  ;;  %v4081_v30 = vpop.f32.mrb[83].mxu0 }
 0x4f7   : > { %v4379_v31 = vadd.f32 %v8822_v11, %v4378_v62  ;;  %v4380_v50 = vpop.f32.mrb[83].mxu1 }
 0x4f8   : > { %5219 = vst [vmem:[%s8654_s16 + $0x248] sm:$0xff] %v4080_v47 }
 0x4f9   : > { %5252 = vst [vmem:[%s8654_s16 + $0x348] sm:$0xff] %v4379_v31  ;;  %v4084_v5 = vpop.f32.mrb[84].mxu0 }
 0x4fa   : > { %v4085_v6 = vadd.f32 %v8819_v61, %v4084_v5  ;;  %v4383_v12 = vpop.f32.mrb[84].mxu1  ;;  %v4086_v52 = vpop.f32.mrb[85].mxu0 }
 0x4fb   : > { %v4384_v3 = vadd.f32 %v8822_v11, %v4383_v12  ;;  %v4385_v37 = vpop.f32.mrb[85].mxu1 }
 0x4fc   : > { %5220 = vst [vmem:[%s8654_s16 + $0x250] sm:$0xff] %v4085_v6 }
 0x4fd   : > { %5253 = vst [vmem:[%s8654_s16 + $0x350] sm:$0xff] %v4384_v3  ;;  %v4089_v22 = vpop.f32.mrb[86].mxu0 }
 0x4fe   : > { %v4090_v53 = vadd.f32 %v8819_v61, %v4089_v22  ;;  %v4388_v38 = vpop.f32.mrb[86].mxu1  ;;  %v4091_v51 = vpop.f32.mrb[87].mxu0 }
 0x4ff   : > { %v4389_v28 = vadd.f32 %v8822_v11, %v4388_v38  ;;  %v4390_v49 = vpop.f32.mrb[87].mxu1 }
 0x500   : > { %5221 = vst [vmem:[%s8654_s16 + $0x258] sm:$0xff] %v4090_v53 }
 0x501   : > { %5254 = vst [vmem:[%s8654_s16 + $0x358] sm:$0xff] %v4389_v28  ;;  %v4094_v0 = vpop.f32.mrb[88].mxu0 }
 0x502   : > { %v4095_v14 = vadd.f32 %v8819_v61, %v4094_v0  ;;  %v4393_v60 = vpop.f32.mrb[88].mxu1  ;;  %v4096_v18 = vpop.f32.mrb[89].mxu0 }
 0x503   : > { %v4394_v33 = vadd.f32 %v8822_v11, %v4393_v60  ;;  %v4395_v54 = vpop.f32.mrb[89].mxu1 }
 0x504   : > { %5222 = vst [vmem:[%s8654_s16 + $0x260] sm:$0xff] %v4095_v14 }
 0x505   : > { %5255 = vst [vmem:[%s8654_s16 + $0x360] sm:$0xff] %v4394_v33  ;;  %v4099_v9 = vpop.f32.mrb[90].mxu0 }
 0x506   : > { %v4100_v34 = vadd.f32 %v8819_v61, %v4099_v9  ;;  %v4398_v26 = vpop.f32.mrb[90].mxu1  ;;  %v4101_v56 = vpop.f32.mrb[91].mxu0 }
 0x507   : > { %v4399_v42 = vadd.f32 %v8822_v11, %v4398_v26  ;;  %v4400_v57 = vpop.f32.mrb[91].mxu1 }
 0x508   : > { %5223 = vst [vmem:[%s8654_s16 + $0x268] sm:$0xff] %v4100_v34 }
 0x509   : > { %5256 = vst [vmem:[%s8654_s16 + $0x368] sm:$0xff] %v4399_v42  ;;  %v4104_v35 = vpop.f32.mrb[92].mxu0 }
 0x50a   : > { %v4105_v17 = vadd.f32 %v8819_v61, %v4104_v35  ;;  %v4403_v20 = vpop.f32.mrb[92].mxu1  ;;  %v4106_v21 = vpop.f32.mrb[93].mxu0 }
 0x50b   : > { %v4404_v39 = vadd.f32 %v8822_v11, %v4403_v20  ;;  %v4405_v8 = vpop.f32.mrb[93].mxu1 }
 0x50c   : > { %5224 = vst [vmem:[%s8654_s16 + $0x270] sm:$0xff] %v4105_v17 }
 0x50d   : > { %5257 = vst [vmem:[%s8654_s16 + $0x370] sm:$0xff] %v4404_v39  ;;  %v4109_v55 = vpop.f32.mrb[94].mxu0 }
 0x50e   : > { %v4110_v2 = vadd.f32 %v8819_v61, %v4109_v55  ;;  %v4408_v44 = vpop.f32.mrb[94].mxu1  ;;  %v4111_v45 = vpop.f32.mrb[95].mxu0 }
 0x50f   : > { %v4409_v15 = vadd.f32 %v8822_v11, %v4408_v44  ;;  %v4410_v59 = vpop.f32.mrb[95].mxu1 }
 0x510   : > { %5225 = vst [vmem:[%s8654_s16 + $0x278] sm:$0xff] %v4110_v2 }
 0x511   : > { %5258 = vst [vmem:[%s8654_s16 + $0x378] sm:$0xff] %v4409_v15  ;;  %v4114_v23 = vpop.f32.mrb[96].mxu0 }
 0x512   : > { %v4115_v16 = vadd.f32 %v8819_v61, %v4114_v23  ;;  %v4413_v4 = vpop.f32.mrb[96].mxu1  ;;  %v4116_v32 = vpop.f32.mrb[97].mxu0 }
 0x513   : > { %v4414_v19 = vadd.f32 %v8822_v11, %v4413_v4  ;;  %v4415_v58 = vpop.f32.mrb[97].mxu1 }
 0x514   : > { %5226 = vst [vmem:[%s8654_s16 + $0x280] sm:$0xff] %v4115_v16 }
 0x515   : > { %5259 = vst [vmem:[%s8654_s16 + $0x380] sm:$0xff] %v4414_v19  ;;  %v4119_v13 = vpop.f32.mrb[98].mxu0 }
 0x516   : > { %v4120_v63 = vadd.f32 %v8819_v61, %v4119_v13  ;;  %v4418_v24 = vpop.f32.mrb[98].mxu1  ;;  %v4121_v25 = vpop.f32.mrb[99].mxu0 }
 0x517   : > { %v4419_v7 = vadd.f32 %v8822_v11, %v4418_v24  ;;  %v4420_v40 = vpop.f32.mrb[99].mxu1 }
 0x518   : > { %5227 = vst [vmem:[%s8654_s16 + $0x288] sm:$0xff] %v4120_v63 }
 0x519   : > { %5260 = vst [vmem:[%s8654_s16 + $0x388] sm:$0xff] %v4419_v7  ;;  %v4124_v1 = vpop.f32.mrb[100].mxu0 }
 0x51a   : > { %v4125_v29 = vadd.f32 %v8819_v61, %v4124_v1  ;;  %v4423_v27 = vpop.f32.mrb[100].mxu1  ;;  %v4126_v41 = vpop.f32.mrb[101].mxu0 }
 0x51b   : > { %v4424_v43 = vadd.f32 %v8822_v11, %v4423_v27  ;;  %v4425_v10 = vpop.f32.mrb[101].mxu1 }
 0x51c   : > { %5228 = vst [vmem:[%s8654_s16 + $0x290] sm:$0xff] %v4125_v29 }
 0x51d   : > { %5261 = vst [vmem:[%s8654_s16 + $0x390] sm:$0xff] %v4424_v43  ;;  %v4129_v46 = vpop.f32.mrb[102].mxu0 }
 0x51e   : > { %v4130_v36 = vadd.f32 %v8819_v61, %v4129_v46  ;;  %v4428_v48 = vpop.f32.mrb[102].mxu1  ;;  %v4131_v47 = vpop.f32.mrb[103].mxu0 }
 0x51f   : > { %v4429_v62 = vadd.f32 %v8822_v11, %v4428_v48  ;;  %v4430_v30 = vpop.f32.mrb[103].mxu1 }
 0x520   : > { %5229 = vst [vmem:[%s8654_s16 + $0x298] sm:$0xff] %v4130_v36 }
 0x521   : > { %5262 = vst [vmem:[%s8654_s16 + $0x398] sm:$0xff] %v4429_v62  ;;  %v4134_v31 = vpop.f32.mrb[104].mxu0 }
 0x522   : > { %v4135_v50 = vadd.f32 %v8819_v61, %v4134_v31  ;;  %v4433_v5 = vpop.f32.mrb[104].mxu1  ;;  %v4136_v6 = vpop.f32.mrb[105].mxu0 }
 0x523   : > { %v4434_v12 = vadd.f32 %v8822_v11, %v4433_v5  ;;  %v4435_v52 = vpop.f32.mrb[105].mxu1 }
 0x524   : > { %5230 = vst [vmem:[%s8654_s16 + $0x2a0] sm:$0xff] %v4135_v50 }
 0x525   : > { %5263 = vst [vmem:[%s8654_s16 + $0x3a0] sm:$0xff] %v4434_v12  ;;  %v4139_v3 = vpop.f32.mrb[106].mxu0 }
 0x526   : > { %v4140_v37 = vadd.f32 %v8819_v61, %v4139_v3  ;;  %v4438_v22 = vpop.f32.mrb[106].mxu1  ;;  %v4141_v53 = vpop.f32.mrb[107].mxu0 }
 0x527   : > { %v4439_v38 = vadd.f32 %v8822_v11, %v4438_v22  ;;  %v4440_v51 = vpop.f32.mrb[107].mxu1 }
 0x528   : > { %5231 = vst [vmem:[%s8654_s16 + $0x2a8] sm:$0xff] %v4140_v37 }
 0x529   : > { %5264 = vst [vmem:[%s8654_s16 + $0x3a8] sm:$0xff] %v4439_v38  ;;  %v4144_v28 = vpop.f32.mrb[108].mxu0 }
 0x52a   : > { %v4145_v49 = vadd.f32 %v8819_v61, %v4144_v28  ;;  %v4443_v0 = vpop.f32.mrb[108].mxu1  ;;  %v4146_v14 = vpop.f32.mrb[109].mxu0 }
 0x52b   : > { %v4444_v60 = vadd.f32 %v8822_v11, %v4443_v0  ;;  %v4445_v18 = vpop.f32.mrb[109].mxu1 }
 0x52c   : > { %5232 = vst [vmem:[%s8654_s16 + $0x2b0] sm:$0xff] %v4145_v49 }
 0x52d   : > { %5265 = vst [vmem:[%s8654_s16 + $0x3b0] sm:$0xff] %v4444_v60  ;;  %v4149_v33 = vpop.f32.mrb[110].mxu0 }
 0x52e   : > { %v4150_v54 = vadd.f32 %v8819_v61, %v4149_v33  ;;  %v4448_v9 = vpop.f32.mrb[110].mxu1  ;;  %v4151_v34 = vpop.f32.mrb[111].mxu0 }
 0x52f   : > { %v4449_v26 = vadd.f32 %v8822_v11, %v4448_v9  ;;  %v4450_v56 = vpop.f32.mrb[111].mxu1 }
 0x530   : > { %5233 = vst [vmem:[%s8654_s16 + $0x2b8] sm:$0xff] %v4150_v54 }
 0x531   : > { %5266 = vst [vmem:[%s8654_s16 + $0x3b8] sm:$0xff] %v4449_v26  ;;  %v4154_v42 = vpop.f32.mrb[112].mxu0 }
 0x532   : > { %v4155_v57 = vadd.f32 %v8819_v61, %v4154_v42  ;;  %v4453_v35 = vpop.f32.mrb[112].mxu1  ;;  %v4156_v17 = vpop.f32.mrb[113].mxu0 }
 0x533   : > { %v4454_v20 = vadd.f32 %v8822_v11, %v4453_v35  ;;  %v4455_v21 = vpop.f32.mrb[113].mxu1 }
 0x534   : > { %5234 = vst [vmem:[%s8654_s16 + $0x2c0] sm:$0xff] %v4155_v57 }
 0x535   : > { %5267 = vst [vmem:[%s8654_s16 + $0x3c0] sm:$0xff] %v4454_v20  ;;  %v4159_v39 = vpop.f32.mrb[114].mxu0 }
 0x536   : > { %v4160_v8 = vadd.f32 %v8819_v61, %v4159_v39  ;;  %v4458_v55 = vpop.f32.mrb[114].mxu1  ;;  %v4161_v2 = vpop.f32.mrb[115].mxu0 }
 0x537   : > { %v4459_v44 = vadd.f32 %v8822_v11, %v4458_v55  ;;  %v4460_v45 = vpop.f32.mrb[115].mxu1 }
 0x538   : > { %5235 = vst [vmem:[%s8654_s16 + $0x2c8] sm:$0xff] %v4160_v8 }
 0x539   : > { %5268 = vst [vmem:[%s8654_s16 + $0x3c8] sm:$0xff] %v4459_v44  ;;  %v4164_v15 = vpop.f32.mrb[116].mxu0 }
 0x53a   : > { %v4165_v59 = vadd.f32 %v8819_v61, %v4164_v15  ;;  %v4463_v23 = vpop.f32.mrb[116].mxu1  ;;  %v4166_v16 = vpop.f32.mrb[117].mxu0 }
 0x53b   : > { %v4464_v4 = vadd.f32 %v8822_v11, %v4463_v23  ;;  %v4465_v32 = vpop.f32.mrb[117].mxu1 }
 0x53c   : > { %5236 = vst [vmem:[%s8654_s16 + $0x2d0] sm:$0xff] %v4165_v59 }
 0x53d   : > { %5269 = vst [vmem:[%s8654_s16 + $0x3d0] sm:$0xff] %v4464_v4  ;;  %v4169_v19 = vpop.f32.mrb[118].mxu0 }
 0x53e   : > { %v4170_v58 = vadd.f32 %v8819_v61, %v4169_v19  ;;  %v4468_v13 = vpop.f32.mrb[118].mxu1  ;;  %v4171_v63 = vpop.f32.mrb[119].mxu0 }
 0x53f   : > { %v4469_v24 = vadd.f32 %v8822_v11, %v4468_v13  ;;  %v4470_v25 = vpop.f32.mrb[119].mxu1 }
 0x540   : > { %5237 = vst [vmem:[%s8654_s16 + $0x2d8] sm:$0xff] %v4170_v58 }
 0x541   : > { %5270 = vst [vmem:[%s8654_s16 + $0x3d8] sm:$0xff] %v4469_v24  ;;  %v4174_v7 = vpop.f32.mrb[120].mxu0 }
 0x542   : > { %v4175_v40 = vadd.f32 %v8819_v61, %v4174_v7  ;;  %v4473_v1 = vpop.f32.mrb[120].mxu1  ;;  %v4176_v29 = vpop.f32.mrb[121].mxu0 }
 0x543   : > { %v4474_v27 = vadd.f32 %v8822_v11, %v4473_v1  ;;  %v4475_v41 = vpop.f32.mrb[121].mxu1 }
 0x544   : > { %5238 = vst [vmem:[%s8654_s16 + $0x2e0] sm:$0xff] %v4175_v40 }
 0x545   : > { %5271 = vst [vmem:[%s8654_s16 + $0x3e0] sm:$0xff] %v4474_v27  ;;  %v4179_v43 = vpop.f32.mrb[122].mxu0 }
 0x546   : > { %v4180_v10 = vadd.f32 %v8819_v61, %v4179_v43  ;;  %v4478_v46 = vpop.f32.mrb[122].mxu1  ;;  %v4181_v36 = vpop.f32.mrb[123].mxu0 }
 0x547   : > { %v4479_v48 = vadd.f32 %v8822_v11, %v4478_v46  ;;  %v4480_v47 = vpop.f32.mrb[123].mxu1 }
 0x548   : > { %5239 = vst [vmem:[%s8654_s16 + $0x2e8] sm:$0xff] %v4180_v10 }
 0x549   : > { %5272 = vst [vmem:[%s8654_s16 + $0x3e8] sm:$0xff] %v4479_v48  ;;  %v4184_v62 = vpop.f32.mrb[124].mxu0 }
 0x54a   : > { %v4185_v30 = vadd.f32 %v8819_v61, %v4184_v62  ;;  %v4483_v31 = vpop.f32.mrb[124].mxu1  ;;  %v4186_v50 = vpop.f32.mrb[125].mxu0 }
 0x54b   : > { %v4484_v5 = vadd.f32 %v8822_v11, %v4483_v31  ;;  %v4485_v6 = vpop.f32.mrb[125].mxu1 }
 0x54c   : > { %5240 = vst [vmem:[%s8654_s16 + $0x2f0] sm:$0xff] %v4185_v30 }
 0x54d   : > { %5273 = vst [vmem:[%s8654_s16 + $0x3f0] sm:$0xff] %v4484_v5  ;;  %v4189_v12 = vpop.f32.mrb[126].mxu0 }
 0x54e   : > { %v4190_v52 = vadd.f32 %v8819_v61, %v4189_v12  ;;  %v4488_v3 = vpop.f32.mrb[126].mxu1  ;;  %v4191_v37 = vpop.f32.mrb[127].mxu0 }
 0x54f   : > { %v4489_v22 = vadd.f32 %v8822_v11, %v4488_v3  ;;  %v4490_v53 = vpop.f32.mrb[127].mxu1 }
 0x550   : > { %5241 = vst [vmem:[%s8654_s16 + $0x2f8] sm:$0xff] %v4190_v52 }
 0x551   : > { %5274 = vst [vmem:[%s8654_s16 + $0x3f8] sm:$0xff] %v4489_v22 }
 0x552   : > { %s9189_s30 = sld [smem:[#allocation35_spill]]  ;;  %s9190_s9 = sld [smem:[#allocation36_spill]] }
 0x553   : > { %s4567_s21 = sshll.u32 %s7541_s2, 4  ;;  %s9191_s17 = sld [smem:[#allocation62_spill]]  ;;  %s4568_s21 = int_to_ptr.vmem [resolvable:$true] %s4567_s21 }
 0x554   : > { %s6526_s13 = smov 4096   ;;  %p9192_p3 = scmp.ne.s32.totalorder %s9141_s15, 0 }
 0x555   : > { %s6527_s23 = smov 8192   ;;  %s6528_s7 = smov 32  }
 0x556   : > { %5898 = sst [smem:[#allocation22]] (%p9192_p3), %s6526_s13  ;;  %s6529_s12 = smov 128  }
 0x557   : > { %5899 = sst [smem:[#allocation22 + $0x1]] (%p9192_p3), %s6527_s23  ;;  %s6530_s28 = smov 8  }
 0x558   : > { %s5278_s26 = sshll.u32 %s9189_s30, 5  ;;  %s5279_s20 = sshll.u32 %s9190_s9, 8 }
 0x559   : > { %s4548_s24 = sadd.s32 %s5279_s20, %s5278_s26  ;;  %5900 = sst [smem:[#allocation22 + $0x2]] (%p9192_p3), %s6528_s7 }
 0x55a   : > { %s8961_s1 = sshll.u32 %s4548_s24, 7  ;;  %5901 = sst [smem:[#allocation22 + $0x3]] (%p9192_p3), %s6529_s12 }
 0x55b   : > { %s4550_s29 = scalar_lea.hbm %s9191_s17, %s8961_s1  ;;  %5902 = sst [smem:[#allocation22 + $0x4]] (%p9192_p3), %s6529_s12 }
 0x55c   : > { %5903 = sst [smem:[#allocation22 + $0x5]] (%p9192_p3), %s6530_s28  ;;  %s6531_s27 = smov [#allocation21]  }
 0x55d   : > { %s6532_s11 = smov 0  }
 0x55e   : > { %5904 = dma.general (%p9192_p3), %s4568_s21, 16384, %s4550_s29, %s4526_s22, %s6531_s27, [#allocation22], %s6532_s11, 0  }
 0x55f   : > { %s9193_s9 = sld [smem:[#allocation63_spill]]  ;;  %s4614_s20 = sshll.u32 %s8027_s10, 4  ;;  %s4615_s20 = int_to_ptr.vmem [resolvable:$true] %s4614_s20 }
 0x560   : > { %s6533_s24 = smov 4096   ;;  %s6534_s22 = smov 8192  }
 0x561   : > { %5905 = sst [smem:[#allocation24]] (%p9192_p3), %s6533_s24  ;;  %s6535_s21 = smov 32  }
 0x562   : > { %5906 = sst [smem:[#allocation24 + $0x1]] (%p9192_p3), %s6534_s22  ;;  %s6536_s25 = smov 128  }
 0x563   : > { %5907 = sst [smem:[#allocation24 + $0x2]] (%p9192_p3), %s6535_s21  ;;  %s6537_s5 = smov 8  }
 0x564   : > { %5908 = sst [smem:[#allocation24 + $0x3]] (%p9192_p3), %s6536_s25  ;;  %s6538_s17 = smov [#allocation23]  }
 0x565   : > { %s4597_s26 = scalar_lea.hbm %s9193_s9, %s8961_s1  ;;  %5909 = sst [smem:[#allocation24 + $0x4]] (%p9192_p3), %s6536_s25 }
 0x566   : > { %5910 = sst [smem:[#allocation24 + $0x5]] (%p9192_p3), %s6537_s5  ;;  %s6539_s10 = smov 0  }
 0x567   : > { %5911 = dma.general (%p9192_p3), %s4615_s20, 16384, %s4597_s26, %s8956_s14, %s6538_s17, [#allocation24], %s6539_s10, 0  }
 0x568   : > { %s9194_s23 = sld [smem:[#allocation64_spill]]  ;;  %s4661_s12 = sshll.u32 %s8654_s16, 4  ;;  %s4662_s12 = int_to_ptr.vmem [resolvable:$true] %s4661_s12 }
 0x569   : > { %s6540_s28 = smov 4096   ;;  %s6541_s27 = smov 8192  }
 0x56a   : > { %5912 = sst [smem:[#allocation26]] (%p9192_p3), %s6540_s28  ;;  %s6542_s11 = smov 32  }
 0x56b   : > { %5913 = sst [smem:[#allocation26 + $0x1]] (%p9192_p3), %s6541_s27  ;;  %s6543_s2 = smov 128  }
 0x56c   : > { %5914 = sst [smem:[#allocation26 + $0x2]] (%p9192_p3), %s6542_s11  ;;  %s6544_s30 = smov 8  }
 0x56d   : > { %5915 = sst [smem:[#allocation26 + $0x3]] (%p9192_p3), %s6543_s2  ;;  %s6546_s16 = smov 0  }
 0x56e   : > { %s4644_s7 = scalar_lea.hbm %s9194_s23, %s8961_s1  ;;  %5916 = sst [smem:[#allocation26 + $0x4]] (%p9192_p3), %s6543_s2 }
 0x56f   : > { %5917 = sst [smem:[#allocation26 + $0x5]] (%p9192_p3), %s6544_s30  ;;  %s6545_s1 = smov [#allocation25]  }
 0x570   : > { %5918 = dma.general (%p9192_p3), %s4662_s12, 16384, %s4644_s7, %s8956_s14, %s6545_s1, [#allocation26], %s6546_s16, 0  }
 0x571 PF: > { %s9195_s9 = sld [smem:[#allocation39_spill]]  ;;  %s9196_s26 = sld [smem:[#allocation34_spill]] }
 0x572   : > { %s9197_s20 = sld [smem:[#allocation43_spill]] }
 0x577   : > { %p5974_p8 = scmp.ge.s32.totalorder %s9195_s9, 2  ;;  %s4689_s24 = sand.u32 1, %s9196_s26  }
 0x578   : > { %p9198_p9 = scmp.ne.s32.totalorder %s9197_s20, 0  ;;  %s4690_s22 = scalar_lea.sflag [#allocation4], %s4689_s24 }
 0x57a   : > { %p5952_p10 = pnand %p5974_p8, %p9198_p9 }
 0x57c   : > { %6472 = dma.done.wait (!%p5952_p10), %s4690_s22, 16384  }
 0x57d   : > { %6474 = vsyncadd (!%p5952_p10), %s4690_s22, 4294950912  ;;  %s9199_s21 = sadd.s32 4294967294, %s9195_s9  }
 0x57e   : > { %s4698_s25 = sand.u32 1, %s9199_s21  }
 0x57f   : > { %s4699_s5 = scalar_lea.sflag [#allocation19], %s4698_s25 }
 0x580   : > { %6476 = dma.done.wait (!%p5952_p10), %s4699_s5, 32768  }
 0x581   : > { %6478 = vsyncadd (!%p5952_p10), %s4699_s5, 4294934528  ;;  %s37_s24 = sadd.s32 1, %s9195_s9   ;;  %s9200_s15 = sld [smem:[#allocation44_spill]] }
 0x582   : > { %p34_p1 = scmp.ge.s32.totalorder %s37_s24, 6   ;;  %s9201_s20 = sld [smem:[#allocation37_spill]] }
 0x583   : > { %s9202_s21 = sld [smem:[#allocation38_spill]]  ;;  %s9203_s22 = sld [smem:[#allocation41_spill]] }
 0x584   : > { %s9204_s23 = sld [smem:[#allocation42_spill]]  ;;  %s9205_s17 = smov %s6485_s18 }
 0x585   : > { %s9206_s18 = smov %s6489_s19  ;;  %36 = sbr.rel (!%p34_p1) target bundleno = 23 (0x17), region = 223 }
 0x587   : > { %s9207_s19 = smov %s9200_s15 }
 0x58c   :  { %4713 = vsyncpa [#allocation3], 1 }
 0x58d   :  { %4715 = vsyncpa [#allocation3 + $0x1], 1 }
 0x58e   :  { %4716 = vsyncpa [#allocation6], 1 }
 0x58f   :  { %4718 = vsyncpa [#allocation6 + $0x1], 1 }
 0x590   :  { %4719 = vsyncpa [#allocation9], 1 }
 0x591   :  { %4720 = vsyncpa [#allocation12], 1 }
 0x592   :  { %4721 = vsyncpa [#allocation15], 1 }
 0x593   :  { %4722 = vsyncpa [#allocation4], 1 }
 0x594   :  { %4724 = vsyncpa [#allocation4 + $0x1], 1 }
 0x595   :  { %4725 = vsyncpa [#allocation19], 1 }
 0x596   :  { %4727 = vsyncpa [#allocation19 + $0x1], 1 }

</bundles_post_ra>
